<compile_context>
chip_gen: v6e
topology: v6e:2x2x1
jax: 0.10.0
libtpu: 0.0.40
codegen_flags: <defaults>
</compile_context>

<pallas_src>
import functools

import jax
import jax.numpy as jnp
from jax import lax
from jax.experimental import pallas as pl
from jax.experimental.pallas import tpu as pltpu


# ----------------------------------------------------------------------------
# Fused dual-head kernel
# ----------------------------------------------------------------------------
def _make_finet_kernel(act):
    neg = 0.1 if act == "lrelu" else 0.0   # LeakyReLU(0.1) or ReLU

    def kernel(x_ref, w1_ref, w2_ref, w3_ref, w4_ref, w5_ref,
               ss1_ref, ss2_ref, ss3_ref, ss4_ref, ss5_ref,
               o_ref, acc_ref):
        h = pl.program_id(0)            # head: 0 = R (quaternion), 1 = t
        k = pl.program_id(1)            # K-chunk of layer 1
        nk = pl.num_programs(1)

        @pl.when(k == 0)
        def _():
            acc_ref[...] = jnp.zeros_like(acc_ref)

        # Layer 1: K-tiled matmul accumulation.  x is resident in VMEM
        # (DMA'd once per head, already bf16); the k-th chunk is selected by
        # a dynamic index on the leading (pre-chunked) axis.  W1 is int8 in
        # HBM/VMEM; cast to bf16 so the MXU path is bf16 on every generation.
        xk = x_ref[k]                                            # (B, tk) bf16
        w1 = w1_ref[...].astype(jnp.bfloat16)                    # (tk, N1)
        acc_ref[...] += jnp.dot(xk, w1, preferred_element_type=jnp.float32)

        @pl.when(k == nk - 1)
        def _():
            def bn_act(y, ss_ref, apply_act):
                # folded eval-mode BN * int8-dequant scale (+ folded bias)
                y = y * ss_ref[0:1, :] + ss_ref[1:2, :]
                if apply_act:
                    y = jnp.where(y > 0, y, neg * y)
                return y

            def lin(y, w_ref):
                # w_ref is int8 (W2..W4) or bf16 (W5); cast is a no-op for bf16
                return jnp.dot(y.astype(jnp.bfloat16),
                               w_ref[...].astype(jnp.bfloat16),
                               preferred_element_type=jnp.float32)

            a = bn_act(acc_ref[...], ss1_ref, True)
            a = bn_act(lin(a, w2_ref), ss2_ref, True)
            a = bn_act(lin(a, w3_ref), ss3_ref, True)
            a = bn_act(lin(a, w4_ref), ss4_ref, True)
            y = bn_act(lin(a, w5_ref), ss5_ref, False)

            # Head 0: F.normalize(dim=1).  The out block covers the entire
            # final N, so the L2 norm is over the full row (head-1's padded
            # zero column contributes nothing either way).  rsqrt -> EUP.
            sumsq = jnp.sum(y * y, axis=1, keepdims=True)
            inv = lax.rsqrt(jnp.maximum(sumsq, 1e-24))           # = 1/max(||y||,1e-12)
            inv = jnp.where(h == 0, inv, jnp.ones_like(inv))
            o_ref[...] = (y * inv).astype(o_ref.dtype)

    return kernel


def finet_regression_forward(R_feat, t_feat, Ws, SSs, *, act="lrelu",
                             out_channels=(4, 3), tk=1024):
    """Fused forward for both heads.  Ws/SSs are head-stacked (see
    stack_head_params).  Returns [pred_quat, pred_translate]."""
    B = R_feat.shape[0]
    K0, N1 = Ws[0].shape[1], Ws[0].shape[2]
    NOUT = Ws[-1].shape[2]
    assert K0 % tk == 0, "first-layer in_channels must be a multiple of tk"
    NK = K0 // tk

    def pad_feat(f):
        # zero-pad input channels when the heads have different in_channels
        # (weights are zero-padded to match in stack_head_params)
        return f if f.shape[1] == K0 else jnp.pad(f, ((0, 0), (0, K0 - f.shape[1])))

    # Pre-chunk x (and pre-cast to bf16) so the kernel loads it once per head
    # and indexes the chunk on the leading axis: (2, NK, B, tk).
    X = jnp.stack([pad_feat(R_feat), pad_feat(t_feat)])          # (2, B, K0)
    X = X.reshape(2, B, NK, tk).transpose(0, 2, 1, 3)            # (2, NK, B, tk)
    X = X.astype(jnp.bfloat16)

    in_specs = [
        pl.BlockSpec((None, NK, B, tk), lambda h, k: (h, 0, 0, 0)),   # x (resident)
        pl.BlockSpec((None, tk, N1), lambda h, k: (h, k, 0)),         # W1 (K-tiled, full N)
    ]
    for w in Ws[1:]:                                                  # W2..W5 resident per head
        in_specs.append(pl.BlockSpec((None, w.shape[1], w.shape[2]),
                                     lambda h, k: (h, 0, 0)))
    for s in SSs:                                                     # folded BN scale/shift
        in_specs.append(pl.BlockSpec((None, 2, s.shape[2]),
                                     lambda h, k: (h, 0, 0)))

    # Advisory cost: the kernel is bandwidth-heavy (weights dominate bytes).
    flops = 0
    bytes_accessed = X.size * X.dtype.itemsize + 2 * B * NOUT * 4
    for w in Ws:
        flops += 2 * B * w.shape[0] * w.shape[1] * w.shape[2]
        bytes_accessed += w.size * w.dtype.itemsize
    for s in SSs:
        bytes_accessed += s.size * s.dtype.itemsize

    out = pl.pallas_call(
        _make_finet_kernel(act),
        out_shape=jax.ShapeDtypeStruct((2, B, NOUT), jnp.float32),
        grid_spec=pltpu.PrefetchScalarGridSpec(
            num_scalar_prefetch=0,
            grid=(2, NK),                     # (head, layer-1 K chunk)
            in_specs=in_specs,
            out_specs=pl.BlockSpec((None, B, NOUT), lambda h, k: (h, 0, 0)),
            scratch_shapes=[pltpu.VMEM((B, N1), jnp.float32)],
        ),
        compiler_params=pltpu.CompilerParams(
            dimension_semantics=("parallel", "arbitrary"),
            vmem_limit_bytes=32 * 1024 * 1024,
        ),
        cost_estimate=pl.CostEstimate(flops=int(flops), transcendentals=0,
                                      bytes_accessed=int(bytes_accessed)),
    )(X, *Ws, *SSs)

    return [out[0, :, :out_channels[0]], out[1, :, :out_channels[1]]]


# ----------------------------------------------------------------------------
# Parameter construction (deterministic, synthetic)
#   W1..W4: int8 + per-output-channel dequant scale folded into the BN scale
#   W5:     bf16 (tiny), Linear bias pre-folded into the shift row
# ----------------------------------------------------------------------------
def _init_linear(key, fan_in, fan_out):
    kw, kb = jax.random.split(key)
    w = jax.random.normal(kw, (fan_in, fan_out), jnp.float32) / jnp.sqrt(
        jnp.float32(fan_in))
    b = 0.01 * jax.random.normal(kb, (fan_out,), jnp.float32)
    return w, b


def _init_bn(key, n, eps=1e-5):
    k1, k2, k3, k4 = jax.random.split(key, 4)
    gamma = 1.0 + 0.1 * jax.random.normal(k1, (n,), jnp.float32)
    beta = 0.1 * jax.random.normal(k2, (n,), jnp.float32)
    mean = 0.1 * jax.random.normal(k3, (n,), jnp.float32)
    var = jnp.abs(1.0 + 0.1 * jax.random.normal(k4, (n,), jnp.float32))
    scale = gamma / jnp.sqrt(var + eps)
    shift = beta - mean * scale
    return scale, shift


def _quantize_int8(w):
    """Symmetric per-output-channel int8 quantization: w ≈ w_q * qscale."""
    amax = jnp.max(jnp.abs(w), axis=0)                           # (N,)
    qscale = jnp.maximum(amax, 1e-8) / 127.0
    wq = jnp.clip(jnp.round(w / qscale), -127, 127).astype(jnp.int8)
    return wq, qscale


def build_head_params(key, in_channel, out_channel):
    """[Linear + BN + act] x4 then Linear.  W1..W4 int8 (in, out) with the
    dequant scale folded into the BN scale; Linear bias pre-folded into the
    BN shift (last layer: scale=1, shift=b, weight bf16)."""
    dims = [in_channel, 2048, 1024, 512, 256]
    Ws, SSs = [], []
    for i in range(4):
        key, k1, k2 = jax.random.split(key, 3)
        w, b = _init_linear(k1, dims[i], dims[i + 1])
        bn_scale, bn_shift = _init_bn(k2, dims[i + 1])
        wq, qscale = _quantize_int8(w)
        Ws.append(wq)                                            # int8 (K, N)
        SSs.append(jnp.stack([bn_scale * qscale,
                              b * bn_scale + bn_shift]))         # (2, N) f32
    key, k1 = jax.random.split(key)
    w, b = _init_linear(k1, dims[-1], out_channel)
    Ws.append(w.astype(jnp.bfloat16))                            # tiny: keep bf16
    SSs.append(jnp.stack([jnp.ones_like(b), b]))                 # (2, out)
    return Ws, SSs


def stack_head_params(R_Ws, R_SSs, t_Ws, t_SSs):
    """Stack R/t head params along a leading head axis so both heads run in
    one pallas_call (head axis = 'parallel' grid dim -> one head per
    TensorCore on megacore parts).  First-layer input rows and final-layer
    output columns are zero-padded to a common width when heads differ."""
    k_max = max(R_Ws[0].shape[0], t_Ws[0].shape[0])
    n_out = max(R_Ws[-1].shape[1], t_Ws[-1].shape[1])

    def pad_first(w):        # zero input-channel rows -> no effect on output
        return jnp.pad(w, ((0, k_max - w.shape[0]), (0, 0)))

    def pad_last_w(w):       # zero output columns -> padded outputs are 0
        return jnp.pad(w, ((0, 0), (0, n_out - w.shape[1])))

    def pad_last_ss(ss):
        pad = n_out - ss.shape[1]
        return jnp.stack([jnp.pad(ss[0], (0, pad), constant_values=1.0),
                          jnp.pad(ss[1], (0, pad), constant_values=0.0)])

    Ws = [jnp.stack([pad_first(R_Ws[0]), pad_first(t_Ws[0])])]
    Ws += [jnp.stack([rw, tw]) for rw, tw in zip(R_Ws[1:-1], t_Ws[1:-1])]
    Ws.append(jnp.stack([pad_last_w(R_Ws[-1]), pad_last_w(t_Ws[-1])]))
    SSs = [jnp.stack([rs, ts]) for rs, ts in zip(R_SSs[:-1], t_SSs[:-1])]
    SSs.append(jnp.stack([pad_last_ss(R_SSs[-1]), pad_last_ss(t_SSs[-1])]))
    return Ws, SSs


# ----------------------------------------------------------------------------
# Pure-JAX reference (same int8/bf16 weights, same cast points, f32 accum)
# ----------------------------------------------------------------------------
def finet_regression_reference(R_feat, t_feat, R_Ws, R_SSs, t_Ws, t_SSs, act):
    neg = 0.1 if act == "lrelu" else 0.0

    def run_head(x, Ws, SSs, normalize):
        y = x
        for i, (w, ss) in enumerate(zip(Ws, SSs)):
            y = jnp.dot(y.astype(jnp.bfloat16), w.astype(jnp.bfloat16),
                        preferred_element_type=jnp.float32)
            y = y * ss[0] + ss[1]
            if i < len(Ws) - 1:
                y = jnp.where(y > 0, y, neg * y)
        if normalize:
            sumsq = jnp.sum(y * y, axis=1, keepdims=True)
            y = y * lax.rsqrt(jnp.maximum(sumsq, 1e-24))
        return y

    return [run_head(R_feat, R_Ws, R_SSs, True),
            run_head(t_feat, t_Ws, t_SSs, False)]


if __name__ == "__main__":
    # config: {'R_feats': 'r-r', 't_feats': 't-t', 'lrelu': True}
    R_in_channel = 2048   # 'r-r'
    t_in_channel = 2048   # 't-t'
    act = "lrelu"         # LeakyReLU(0.1)
    batch = 2

    key = jax.random.PRNGKey(0)
    k_rp, k_tp, k_rx, k_tx = jax.random.split(key, 4)

    R_Ws, R_SSs = build_head_params(k_rp, R_in_channel, 4)
    t_Ws, t_SSs = build_head_params(k_tp, t_in_channel, 3)

    R_feat = jax.random.normal(k_rx, (batch, R_in_channel), jnp.float32)
    t_feat = jax.random.normal(k_tx, (batch, t_in_channel), jnp.float32)

    Ws, SSs = stack_head_params(R_Ws, R_SSs, t_Ws, t_SSs)

    fwd = jax.jit(functools.partial(finet_regression_forward, act=act,
                                    out_channels=(4, 3), tk=1024))
    pred_quat, pred_translate = fwd(R_feat, t_feat, Ws, SSs)
    jax.block_until_ready(pred_quat)
    jax.block_until_ready(pred_translate)

    ref_quat, ref_translate = finet_regression_reference(
        R_feat, t_feat, R_Ws, R_SSs, t_Ws, t_SSs, act)

    assert pred_quat.shape == (batch, 4) and pred_translate.shape == (batch, 3)
    assert jnp.allclose(pred_quat, ref_quat, atol=2e-3, rtol=2e-3)
    assert jnp.allclose(pred_translate, ref_translate, atol=2e-3, rtol=2e-3)

    print("KERNEL_OK")
</pallas_src>

<mosaic_0001>
module attributes {stable_mosaic.version = 11 : i64} {
  func.func @kernel(%arg0: i32, %arg1: i32, %arg2: memref<1x2x2x1024xbf16, #tpu.memory_space<vmem>>, %arg3: memref<1x1024x2048xi8, #tpu.memory_space<vmem>>, %arg4: memref<1x2048x1024xi8, #tpu.memory_space<vmem>>, %arg5: memref<1x1024x512xi8, #tpu.memory_space<vmem>>, %arg6: memref<1x512x256xi8, #tpu.memory_space<vmem>>, %arg7: memref<1x256x4xbf16, #tpu.memory_space<vmem>>, %arg8: memref<1x2x2048xf32, #tpu.memory_space<vmem>>, %arg9: memref<1x2x1024xf32, #tpu.memory_space<vmem>>, %arg10: memref<1x2x512xf32, #tpu.memory_space<vmem>>, %arg11: memref<1x2x256xf32, #tpu.memory_space<vmem>>, %arg12: memref<1x2x4xf32, #tpu.memory_space<vmem>>, %arg13: memref<1x2x4xf32, #tpu.memory_space<vmem>>, %arg14: memref<2x2048xf32, #tpu.memory_space<vmem>>) attributes {dimension_semantics = [#tpu.dimension_semantics<parallel>, #tpu.dimension_semantics<arbitrary>], iteration_bounds = array<i64: 2, 2>, scalar_prefetch = 0 : i64, scratch_operands = 1 : i64, tpu.core_type = #tpu.core_type<tc>, window_params = [{transform_indices = @transform_0, window_bounds = array<i64: 1, 2, 2, 1024>}, {transform_indices = @transform_1, window_bounds = array<i64: 1, 1024, 2048>}, {transform_indices = @transform_2, window_bounds = array<i64: 1, 2048, 1024>}, {transform_indices = @transform_3, window_bounds = array<i64: 1, 1024, 512>}, {transform_indices = @transform_4, window_bounds = array<i64: 1, 512, 256>}, {transform_indices = @transform_5, window_bounds = array<i64: 1, 256, 4>}, {transform_indices = @transform_6, window_bounds = array<i64: 1, 2, 2048>}, {transform_indices = @transform_7, window_bounds = array<i64: 1, 2, 1024>}, {transform_indices = @transform_8, window_bounds = array<i64: 1, 2, 512>}, {transform_indices = @transform_9, window_bounds = array<i64: 1, 2, 256>}, {transform_indices = @transform_10, window_bounds = array<i64: 1, 2, 4>}, {transform_indices = @transform_11, window_bounds = array<i64: 1, 2, 4>}]} {
    %c0_i32 = arith.constant 0 : i32
    %0 = arith.cmpi eq, %arg1, %c0_i32 : i32
    %1 = arith.extui %0 : i1 to i32
    %c0_i32_0 = arith.constant 0 : i32
    %2 = arith.cmpi ne, %1, %c0_i32_0 : i32
    scf.if %2 {
      %cst_11 = arith.constant 0.000000e+00 : f32
      %16 = vector.broadcast %cst_11 : f32 to vector<2x2048xf32>
      %c0_12 = arith.constant 0 : index
      %c0_13 = arith.constant 0 : index
      %17 = vector.load %arg14[%c0_12, %c0_13] : memref<2x2048xf32, #tpu.memory_space<vmem>>, vector<2x2048xf32>
      tpu.vector_store %arg14[%c0_12, %c0_13], %16 {strides = array<i32>} : memref<2x2048xf32, #tpu.memory_space<vmem>>, vector<2x2048xf32>,
    } else {
    }
    %c0 = arith.constant 0 : index
    %3 = arith.index_cast %arg1 : i32 to index
    %c0_1 = arith.constant 0 : index
    %c0_2 = arith.constant 0 : index
    %4 = vector.load %arg2[%c0, %3, %c0_1, %c0_2] : memref<1x2x2x1024xbf16, #tpu.memory_space<vmem>>, vector<1x1x2x1024xbf16>
    %5 = vector.shape_cast %4 : vector<1x1x2x1024xbf16> to vector<2x1024xbf16>
    %c0_3 = arith.constant 0 : index
    %c0_4 = arith.constant 0 : index
    %c0_5 = arith.constant 0 : index
    %6 = vector.load %arg3[%c0_3, %c0_4, %c0_5] : memref<1x1024x2048xi8, #tpu.memory_space<vmem>>, vector<1x1024x2048xi8>
    %7 = vector.shape_cast %6 : vector<1x1024x2048xi8> to vector<1024x2048xi8>
    %8 = arith.sitofp %7 : vector<1024x2048xi8> to vector<1024x2048xbf16>
    %c0_6 = arith.constant 0 : index
    %c0_7 = arith.constant 0 : index
    %9 = vector.load %arg14[%c0_6, %c0_7] : memref<2x2048xf32, #tpu.memory_space<vmem>>, vector<2x2048xf32>
    %cst = arith.constant dense<0.000000e+00> : vector<2x2048xf32>
    %10 = tpu.matmul %5, %8, %cst {dimension_numbers = #tpu.dot_dimension_numbers<[1], [0], [0], [1], [0, 0, 1, 1], [], []>} : vector<2x1024xbf16>, vector<1024x2048xbf16>, vector<2x2048xf32> -> vector<2x2048xf32>
    %11 = arith.addf %9, %10 : vector<2x2048xf32>
    %c0_8 = arith.constant 0 : index
    %c0_9 = arith.constant 0 : index
    %12 = vector.load %arg14[%c0_8, %c0_9] : memref<2x2048xf32, #tpu.memory_space<vmem>>, vector<2x2048xf32>
    tpu.vector_store %arg14[%c0_8, %c0_9], %11 {strides = array<i32>} : memref<2x2048xf32, #tpu.memory_space<vmem>>, vector<2x2048xf32>,
    %c1_i32 = arith.constant 1 : i32
    %13 = arith.cmpi eq, %arg1, %c1_i32 : i32
    %14 = arith.extui %13 : i1 to i32
    %c0_i32_10 = arith.constant 0 : i32
    %15 = arith.cmpi ne, %14, %c0_i32_10 : i32
    scf.if %15 {
      %c0_11 = arith.constant 0 : index
      %c0_12 = arith.constant 0 : index
      %16 = vector.load %arg14[%c0_11, %c0_12] : memref<2x2048xf32, #tpu.memory_space<vmem>>, vector<2x2048xf32>
      %c0_13 = arith.constant 0 : index
      %c0_14 = arith.constant 0 : index
      %c0_15 = arith.constant 0 : index
      %17 = vector.load %arg8[%c0_13, %c0_14, %c0_15] : memref<1x2x2048xf32, #tpu.memory_space<vmem>>, vector<1x1x2048xf32>
      %18 = vector.shape_cast %17 : vector<1x1x2048xf32> to vector<1x2048xf32>
      %19 = vector.broadcast %18 : vector<1x2048xf32> to vector<2x2048xf32>
      %20 = arith.mulf %16, %19 : vector<2x2048xf32>
      %c0_16 = arith.constant 0 : index
      %c1 = arith.constant 1 : index
      %c0_17 = arith.constant 0 : index
      %21 = vector.load %arg8[%c0_16, %c1, %c0_17] : memref<1x2x2048xf32, #tpu.memory_space<vmem>>, vector<1x1x2048xf32>
      %22 = vector.shape_cast %21 : vector<1x1x2048xf32> to vector<1x2048xf32>
      %23 = vector.broadcast %22 : vector<1x2048xf32> to vector<2x2048xf32>
      %24 = arith.addf %20, %23 : vector<2x2048xf32>
      %cst_18 = arith.constant 0.000000e+00 : f32
      %25 = vector.broadcast %cst_18 : f32 to vector<2x2048xf32>
      %26 = arith.cmpf ogt, %24, %25 : vector<2x2048xf32>
      %cst_19 = arith.constant 1.000000e-01 : f32
      %27 = vector.broadcast %cst_19 : f32 to vector<2x2048xf32>
      %28 = arith.mulf %27, %24 : vector<2x2048xf32>
      %29 = arith.select %26, %24, %28 : vector<2x2048xi1>, vector<2x2048xf32>
      %30 = arith.truncf %29 : vector<2x2048xf32> to vector<2x2048xbf16>
      %c0_20 = arith.constant 0 : index
      %c0_21 = arith.constant 0 : index
      %c0_22 = arith.constant 0 : index
      %31 = vector.load %arg4[%c0_20, %c0_21, %c0_22] : memref<1x2048x1024xi8, #tpu.memory_space<vmem>>, vector<1x2048x1024xi8>
      %32 = vector.shape_cast %31 : vector<1x2048x1024xi8> to vector<2048x1024xi8>
      %33 = arith.sitofp %32 : vector<2048x1024xi8> to vector<2048x1024xbf16>
      %cst_23 = arith.constant dense<0.000000e+00> : vector<2x1024xf32>
      %34 = tpu.matmul %30, %33, %cst_23 {dimension_numbers = #tpu.dot_dimension_numbers<[1], [0], [0], [1], [0, 0, 1, 1], [], []>} : vector<2x2048xbf16>, vector<2048x1024xbf16>, vector<2x1024xf32> -> vector<2x1024xf32>
      %c0_24 = arith.constant 0 : index
      %c0_25 = arith.constant 0 : index
      %c0_26 = arith.constant 0 : index
      %35 = vector.load %arg9[%c0_24, %c0_25, %c0_26] : memref<1x2x1024xf32, #tpu.memory_space<vmem>>, vector<1x1x1024xf32>
      %36 = vector.shape_cast %35 : vector<1x1x1024xf32> to vector<1x1024xf32>
      %37 = vector.broadcast %36 : vector<1x1024xf32> to vector<2x1024xf32>
      %38 = arith.mulf %34, %37 : vector<2x1024xf32>
      %c0_27 = arith.constant 0 : index
      %c1_28 = arith.constant 1 : index
      %c0_29 = arith.constant 0 : index
      %39 = vector.load %arg9[%c0_27, %c1_28, %c0_29] : memref<1x2x1024xf32, #tpu.memory_space<vmem>>, vector<1x1x1024xf32>
      %40 = vector.shape_cast %39 : vector<1x1x1024xf32> to vector<1x1024xf32>
      %41 = vector.broadcast %40 : vector<1x1024xf32> to vector<2x1024xf32>
      %42 = arith.addf %38, %41 : vector<2x1024xf32>
      %cst_30 = arith.constant 0.000000e+00 : f32
      %43 = vector.broadcast %cst_30 : f32 to vector<2x1024xf32>
      %44 = arith.cmpf ogt, %42, %43 : vector<2x1024xf32>
      %cst_31 = arith.constant 1.000000e-01 : f32
      %45 = vector.broadcast %cst_31 : f32 to vector<2x1024xf32>
      %46 = arith.mulf %45, %42 : vector<2x1024xf32>
      %47 = arith.select %44, %42, %46 : vector<2x1024xi1>, vector<2x1024xf32>
      %48 = arith.truncf %47 : vector<2x1024xf32> to vector<2x1024xbf16>
      %c0_32 = arith.constant 0 : index
      %c0_33 = arith.constant 0 : index
      %c0_34 = arith.constant 0 : index
      %49 = vector.load %arg5[%c0_32, %c0_33, %c0_34] : memref<1x1024x512xi8, #tpu.memory_space<vmem>>, vector<1x1024x512xi8>
      %50 = vector.shape_cast %49 : vector<1x1024x512xi8> to vector<1024x512xi8>
      %51 = arith.sitofp %50 : vector<1024x512xi8> to vector<1024x512xbf16>
      %cst_35 = arith.constant dense<0.000000e+00> : vector<2x512xf32>
      %52 = tpu.matmul %48, %51, %cst_35 {dimension_numbers = #tpu.dot_dimension_numbers<[1], [0], [0], [1], [0, 0, 1, 1], [], []>} : vector<2x1024xbf16>, vector<1024x512xbf16>, vector<2x512xf32> -> vector<2x512xf32>
      %c0_36 = arith.constant 0 : index
      %c0_37 = arith.constant 0 : index
      %c0_38 = arith.constant 0 : index
      %53 = vector.load %arg10[%c0_36, %c0_37, %c0_38] : memref<1x2x512xf32, #tpu.memory_space<vmem>>, vector<1x1x512xf32>
      %54 = vector.shape_cast %53 : vector<1x1x512xf32> to vector<1x512xf32>
      %55 = vector.broadcast %54 : vector<1x512xf32> to vector<2x512xf32>
      %56 = arith.mulf %52, %55 : vector<2x512xf32>
      %c0_39 = arith.constant 0 : index
      %c1_40 = arith.constant 1 : index
      %c0_41 = arith.constant 0 : index
      %57 = vector.load %arg10[%c0_39, %c1_40, %c0_41] : memref<1x2x512xf32, #tpu.memory_space<vmem>>, vector<1x1x512xf32>
      %58 = vector.shape_cast %57 : vector<1x1x512xf32> to vector<1x512xf32>
      %59 = vector.broadcast %58 : vector<1x512xf32> to vector<2x512xf32>
      %60 = arith.addf %56, %59 : vector<2x512xf32>
      %cst_42 = arith.constant 0.000000e+00 : f32
      %61 = vector.broadcast %cst_42 : f32 to vector<2x512xf32>
      %62 = arith.cmpf ogt, %60, %61 : vector<2x512xf32>
      %cst_43 = arith.constant 1.000000e-01 : f32
      %63 = vector.broadcast %cst_43 : f32 to vector<2x512xf32>
      %64 = arith.mulf %63, %60 : vector<2x512xf32>
      %65 = arith.select %62, %60, %64 : vector<2x512xi1>, vector<2x512xf32>
      %66 = arith.truncf %65 : vector<2x512xf32> to vector<2x512xbf16>
      %c0_44 = arith.constant 0 : index
      %c0_45 = arith.constant 0 : index
      %c0_46 = arith.constant 0 : index
      %67 = vector.load %arg6[%c0_44, %c0_45, %c0_46] : memref<1x512x256xi8, #tpu.memory_space<vmem>>, vector<1x512x256xi8>
      %68 = vector.shape_cast %67 : vector<1x512x256xi8> to vector<512x256xi8>
      %69 = arith.sitofp %68 : vector<512x256xi8> to vector<512x256xbf16>
      %cst_47 = arith.constant dense<0.000000e+00> : vector<2x256xf32>
      %70 = tpu.matmul %66, %69, %cst_47 {dimension_numbers = #tpu.dot_dimension_numbers<[1], [0], [0], [1], [0, 0, 1, 1], [], []>} : vector<2x512xbf16>, vector<512x256xbf16>, vector<2x256xf32> -> vector<2x256xf32>
      %c0_48 = arith.constant 0 : index
      %c0_49 = arith.constant 0 : index
      %c0_50 = arith.constant 0 : index
      %71 = vector.load %arg11[%c0_48, %c0_49, %c0_50] : memref<1x2x256xf32, #tpu.memory_space<vmem>>, vector<1x1x256xf32>
      %72 = vector.shape_cast %71 : vector<1x1x256xf32> to vector<1x256xf32>
      %73 = vector.broadcast %72 : vector<1x256xf32> to vector<2x256xf32>
      %74 = arith.mulf %70, %73 : vector<2x256xf32>
      %c0_51 = arith.constant 0 : index
      %c1_52 = arith.constant 1 : index
      %c0_53 = arith.constant 0 : index
      %75 = vector.load %arg11[%c0_51, %c1_52, %c0_53] : memref<1x2x256xf32, #tpu.memory_space<vmem>>, vector<1x1x256xf32>
      %76 = vector.shape_cast %75 : vector<1x1x256xf32> to vector<1x256xf32>
      %77 = vector.broadcast %76 : vector<1x256xf32> to vector<2x256xf32>
      %78 = arith.addf %74, %77 : vector<2x256xf32>
      %cst_54 = arith.constant 0.000000e+00 : f32
      %79 = vector.broadcast %cst_54 : f32 to vector<2x256xf32>
      %80 = arith.cmpf ogt, %78, %79 : vector<2x256xf32>
      %cst_55 = arith.constant 1.000000e-01 : f32
      %81 = vector.broadcast %cst_55 : f32 to vector<2x256xf32>
      %82 = arith.mulf %81, %78 : vector<2x256xf32>
      %83 = arith.select %80, %78, %82 : vector<2x256xi1>, vector<2x256xf32>
      %84 = arith.truncf %83 : vector<2x256xf32> to vector<2x256xbf16>
      %c0_56 = arith.constant 0 : index
      %c0_57 = arith.constant 0 : index
      %c0_58 = arith.constant 0 : index
      %85 = vector.load %arg7[%c0_56, %c0_57, %c0_58] : memref<1x256x4xbf16, #tpu.memory_space<vmem>>, vector<1x256x4xbf16>
      %86 = vector.shape_cast %85 : vector<1x256x4xbf16> to vector<256x4xbf16>
      %cst_59 = arith.constant dense<0.000000e+00> : vector<2x4xf32>
      %87 = tpu.matmul %84, %86, %cst_59 {dimension_numbers = #tpu.dot_dimension_numbers<[1], [0], [0], [1], [0, 0, 1, 1], [], []>} : vector<2x256xbf16>, vector<256x4xbf16>, vector<2x4xf32> -> vector<2x4xf32>
      %c0_60 = arith.constant 0 : index
      %c0_61 = arith.constant 0 : index
      %c0_62 = arith.constant 0 : index
      %88 = vector.load %arg12[%c0_60, %c0_61, %c0_62] : memref<1x2x4xf32, #tpu.memory_space<vmem>>, vector<1x1x4xf32>
      %89 = vector.shape_cast %88 : vector<1x1x4xf32> to vector<1x4xf32>
      %90 = vector.broadcast %89 : vector<1x4xf32> to vector<2x4xf32>
      %91 = arith.mulf %87, %90 : vector<2x4xf32>
      %c0_63 = arith.constant 0 : index
      %c1_64 = arith.constant 1 : index
      %c0_65 = arith.constant 0 : index
      %92 = vector.load %arg12[%c0_63, %c1_64, %c0_65] : memref<1x2x4xf32, #tpu.memory_space<vmem>>, vector<1x1x4xf32>
      %93 = vector.shape_cast %92 : vector<1x1x4xf32> to vector<1x4xf32>
      %94 = vector.broadcast %93 : vector<1x4xf32> to vector<2x4xf32>
      %95 = arith.addf %91, %94 : vector<2x4xf32>
      %96 = arith.mulf %95, %95 : vector<2x4xf32>
      %cst_66 = arith.constant dense<0.000000e+00> : vector<2xf32>
      %97 = vector.multi_reduction <add>, %96, %cst_66 [1] : vector<2x4xf32> to vector<2xf32>
      %98 = vector.shape_cast %97 : vector<2xf32> to vector<2x1xf32>
      %cst_67 = arith.constant 1.000000e-24 : f32
      %99 = vector.broadcast %cst_67 : f32 to vector<2x1xf32>
      %100 = arith.maximumf %98, %99 : vector<2x1xf32>
      %101 = math.rsqrt %100 : vector<2x1xf32>
      %c0_i32_68 = arith.constant 0 : i32
      %102 = arith.cmpi eq, %arg0, %c0_i32_68 : i32
      %cst_69 = arith.constant 1.000000e+00 : f32
      %103 = vector.broadcast %cst_69 : f32 to vector<2x1xf32>
      %104 = arith.select %102, %101, %103 : vector<2x1xf32>
      %105 = vector.broadcast %104 : vector<2x1xf32> to vector<2x4xf32>
      %106 = arith.mulf %95, %105 : vector<2x4xf32>
      %c0_70 = arith.constant 0 : index
      %c0_71 = arith.constant 0 : index
      %c0_72 = arith.constant 0 : index
      %107 = vector.load %arg13[%c0_70, %c0_71, %c0_72] : memref<1x2x4xf32, #tpu.memory_space<vmem>>, vector<1x2x4xf32>
      %108 = vector.shape_cast %107 : vector<1x2x4xf32> to vector<2x4xf32>
      %109 = vector.shape_cast %106 : vector<2x4xf32> to vector<1x2x4xf32>
      tpu.vector_store %arg13[%c0_70, %c0_71, %c0_72], %109 {strides = array<i32>} : memref<1x2x4xf32, #tpu.memory_space<vmem>>, vector<1x2x4xf32>,
    } else {
    }
    return
  }
  func.func @transform_0(%arg0: i32, %arg1: i32) -> (i32, i32, i32, i32) {
    %c0_i32 = arith.constant 0 : i32
    %c0_i32_0 = arith.constant 0 : i32
    %c0_i32_1 = arith.constant 0 : i32
    %c0_i32_2 = arith.constant 0 : i32
    return %arg0, %c0_i32, %c0_i32_0, %c0_i32_1 : i32, i32, i32, i32
  }
  func.func @transform_1(%arg0: i32, %arg1: i32) -> (i32, i32, i32) {
    %c0_i32 = arith.constant 0 : i32
    %c0_i32_0 = arith.constant 0 : i32
    return %arg0, %arg1, %c0_i32 : i32, i32, i32
  }
  func.func @transform_2(%arg0: i32, %arg1: i32) -> (i32, i32, i32) {
    %c0_i32 = arith.constant 0 : i32
    %c0_i32_0 = arith.constant 0 : i32
    %c0_i32_1 = arith.constant 0 : i32
    return %arg0, %c0_i32, %c0_i32_0 : i32, i32, i32
  }
  func.func @transform_3(%arg0: i32, %arg1: i32) -> (i32, i32, i32) {
    %c0_i32 = arith.constant 0 : i32
    %c0_i32_0 = arith.constant 0 : i32
    %c0_i32_1 = arith.constant 0 : i32
    return %arg0, %c0_i32, %c0_i32_0 : i32, i32, i32
  }
  func.func @transform_4(%arg0: i32, %arg1: i32) -> (i32, i32, i32) {
    %c0_i32 = arith.constant 0 : i32
    %c0_i32_0 = arith.constant 0 : i32
    %c0_i32_1 = arith.constant 0 : i32
    return %arg0, %c0_i32, %c0_i32_0 : i32, i32, i32
  }
  func.func @transform_5(%arg0: i32, %arg1: i32) -> (i32, i32, i32) {
    %c0_i32 = arith.constant 0 : i32
    %c0_i32_0 = arith.constant 0 : i32
    %c0_i32_1 = arith.constant 0 : i32
    return %arg0, %c0_i32, %c0_i32_0 : i32, i32, i32
  }
  func.func @transform_6(%arg0: i32, %arg1: i32) -> (i32, i32, i32) {
    %c0_i32 = arith.constant 0 : i32
    %c0_i32_0 = arith.constant 0 : i32
    %c0_i32_1 = arith.constant 0 : i32
    return %arg0, %c0_i32, %c0_i32_0 : i32, i32, i32
  }
  func.func @transform_7(%arg0: i32, %arg1: i32) -> (i32, i32, i32) {
    %c0_i32 = arith.constant 0 : i32
    %c0_i32_0 = arith.constant 0 : i32
    %c0_i32_1 = arith.constant 0 : i32
    return %arg0, %c0_i32, %c0_i32_0 : i32, i32, i32
  }
  func.func @transform_8(%arg0: i32, %arg1: i32) -> (i32, i32, i32) {
    %c0_i32 = arith.constant 0 : i32
    %c0_i32_0 = arith.constant 0 : i32
    %c0_i32_1 = arith.constant 0 : i32
    return %arg0, %c0_i32, %c0_i32_0 : i32, i32, i32
  }
  func.func @transform_9(%arg0: i32, %arg1: i32) -> (i32, i32, i32) {
    %c0_i32 = arith.constant 0 : i32
    %c0_i32_0 = arith.constant 0 : i32
    %c0_i32_1 = arith.constant 0 : i32
    return %arg0, %c0_i32, %c0_i32_0 : i32, i32, i32
  }
  func.func @transform_10(%arg0: i32, %arg1: i32) -> (i32, i32, i32) {
    %c0_i32 = arith.constant 0 : i32
    %c0_i32_0 = arith.constant 0 : i32
    %c0_i32_1 = arith.constant 0 : i32
    return %arg0, %c0_i32, %c0_i32_0 : i32, i32, i32
  }
  func.func @transform_11(%arg0: i32, %arg1: i32) -> (i32, i32, i32) {
    %c0_i32 = arith.constant 0 : i32
    %c0_i32_0 = arith.constant 0 : i32
    %c0_i32_1 = arith.constant 0 : i32
    return %arg0, %c0_i32, %c0_i32_0 : i32, i32, i32
  }
}

</mosaic_0001>

<bundles_post_ra>
// kernel: finet_regression_forward.1
= control target key start
LH: loop header
LB: loop body
LE: loop exit
PB: predicated region body
PF: predicated region fallthrough
CT: control target
= control target key end

     0   :  { %s11576_s0 = inlined_call_operand.vmem [shape: bf16[2,2,2,1024], index: 0, kind: input, shape index: {}]   ;;  %s11577_s1 = inlined_call_operand.hbm [shape: s8[2,2048,2048], index: 1, kind: input, shape index: {}]   ;;  %s11578_s2 = inlined_call_operand.hbm [shape: s8[2,2048,1024], index: 2, kind: input, shape index: {}]   ;;  %s11579_s3 = inlined_call_operand.hbm [shape: s8[2,1024,512], index: 3, kind: input, shape index: {}]   ;;  %s11580_s4 = inlined_call_operand.hbm [shape: s8[2,512,256], index: 4, kind: input, shape index: {}]   ;;  %s11581_s5 = inlined_call_operand.vmem [shape: bf16[2,256,4], index: 5, kind: input, shape index: {}]   ;;  %s11582_s6 = inlined_call_operand.hbm [shape: f32[2,2,2048], index: 6, kind: input, shape index: {}]   ;;  %s11583_s7 = inlined_call_operand.hbm [shape: f32[2,2,1024], index: 7, kind: input, shape index: {}]   ;;  %s11584_s8 = inlined_call_operand.hbm [shape: f32[2,2,512], index: 8, kind: input, shape index: {}]   ;;  %s11585_s9 = inlined_call_operand.hbm [shape: f32[2,2,256], index: 9, kind: input, shape index: {}]   ;;  %s11586_s10 = inlined_call_operand.hbm [shape: f32[2,2,4], index: 10, kind: input, shape index: {}]   ;;  %s11587_s11 = inlined_call_operand.vmem [shape: f32[2,2,4], index: 11, kind: output, shape index: {}]  }
   0x1   :  { %11602 = sst [smem:[#allocation32_spill]] %s11576_s0 }
   0x2   :  { %11603 = sst [smem:[#allocation33_spill]] %s11577_s1 }
   0x3   :  { %11604 = sst [smem:[#allocation34_spill]] %s11578_s2 }
   0x4   :  { %11605 = sst [smem:[#allocation35_spill]] %s11579_s3 }
   0x5   :  { %11606 = sst [smem:[#allocation36_spill]] %s11580_s4 }
   0x6   :  { %11607 = sst [smem:[#allocation37_spill]] %s11581_s5 }
   0x7   :  { %11608 = sst [smem:[#allocation38_spill]] %s11582_s6 }
   0x8   :  { %11609 = sst [smem:[#allocation39_spill]] %s11583_s7 }
   0x9   :  { %11610 = sst [smem:[#allocation40_spill]] %s11584_s8 }
   0xa   :  { %11611 = sst [smem:[#allocation41_spill]] %s11585_s9 }
   0xb   :  { %11612 = sst [smem:[#allocation42_spill]] %s11586_s10 }
   0xc   :  { %11613 = sst [smem:[#allocation43_spill]] %s11587_s11 }
   0xd   :  { %16 = vsyncpa [#allocation4], 0 }
   0xe   :  { %18 = vsyncpa [#allocation4 + $0x1], 0 }
   0xf   :  { %19 = vsyncpa [#allocation6], 0 }
  0x10   :  { %21 = vsyncpa [#allocation6 + $0x1], 0 }
  0x11   :  { %22 = vsyncpa [#allocation9], 0 }
  0x12   :  { %24 = vsyncpa [#allocation9 + $0x1], 0 }
  0x13   :  { %25 = vsyncpa [#allocation12], 0 }
  0x14   :  { %27 = vsyncpa [#allocation12 + $0x1], 0 }
  0x15   :  { %28 = vsyncpa [#allocation15], 0 }
  0x16   :  { %30 = vsyncpa [#allocation15 + $0x1], 0  ;;  %s9351_s17 = smov 0   ;;  %s9353_s18 = smov 0  }
  0x17   :  { %s9355_s19 = smov 0   ;;  %s9357_s20 = smov 0  }
  0x18   :  { %s9359_s21 = smov 0   ;;  %s9361_s22 = smov 0  }
  0x19   :  { %s9363_s23 = smov 0   ;;  %s9365_s24 = smov 0  }
  0x1a   :  { %s9367_s25 = smov 0   ;;  %s9369_s26 = smov 0  }
  0x1b   :  { %s9371_s27 = smov 0  }
  0x1c LB: > { %11614 = sst [smem:[#allocation22_spill]] %s9233_s18  ;;  %p91_p0 = scmp.eq.s32.totalorder %s9269_s27, 0  ;;  %s9269_s27 = sphi %s9371_s27, %s36_s27   ;;  %s9265_s26 = sphi %s9369_s26, %s11661_s26   ;;  %s9261_s25 = sphi %s9367_s25, %s11660_s25   ;;  %s9257_s24 = sphi %s9365_s24, %s11659_s24   ;;  %s9253_s23 = sphi %s9363_s23, %s11658_s23   ;;  %s9249_s22 = sphi %s9361_s22, %s11657_s22   ;;  %s9245_s21 = sphi %s9359_s21, %s11665_s21   ;;  %s9241_s20 = sphi %s9357_s20, %s11664_s20   ;;  %s9237_s19 = sphi %s9355_s19, %s11663_s19   ;;  %s9233_s18 = sphi %s9353_s18, %s11662_s18   ;;  %s9229_s17 = sphi %s9351_s17, %s11655_s17  }
  0x1d   : > { %11615 = sst [smem:[#allocation23_spill]] %s9249_s22  ;;  %p116_p1 = scmp.ne.s32.totalorder %s9237_s19, %s9233_s18 }
  0x1e   : > { %11616 = sst [smem:[#allocation24_spill]] %s9253_s23  ;;  %p8790_p2 = scmp.lt.s32.totalorder %s9269_s27, 4 }
  0x1f   : > { %11617 = sst [smem:[#allocation25_spill]] %s9257_s24  ;;  %p118_p3 = por %p116_p1, %p91_p0 }
  0x20   : > { %11618 = sst [smem:[#allocation26_spill]] %s9261_s25  ;;  %s9413_s28 = sand.u32 1, %s9269_s27  }
  0x21   : > { %11619 = sst [smem:[#allocation27_spill]] %s9265_s26  ;;  %s9416_s29 = sand.u32 1, %s9237_s19  }
  0x22   : > { %s8647_s30 = sshll.u32 %s9416_s29, 12  ;;  %s8714_s12 = sshll.u32 %s9265_s26, 16 }
  0x23   : > { %s11620_s2 = sld [smem:[#allocation34_spill]]  ;;  %s415_s16 = scalar_lea.vmem [#allocation5], %s8647_s30 }
  0x24   : > { %s422_s23 = sshll.u32 %s415_s16, 4  ;;  %p9425_p4 = pnand %p8790_p2, %p118_p3  ;;  %s423_s23 = int_to_ptr.vmem [resolvable:$true] %s422_s23 }
  0x25   : > { %s11590_s5 = scalar_lea.sflag [#allocation6], %s9413_s28  ;;  %s8924_s24 = scalar_lea.vmem %s423_s23, 65536 }
  0x26   : > { %p9432_p5 = pneg %p9425_p4  ;;  %p8925_p6 = scmp.ne.s32.totalorder %s423_s23, %s8924_s24 }
  0x27   : > { %s9271_s30 = smov [#allocation5]  }
  0x28   : > { %p8927_p7 = pnand %p8925_p6, %p9432_p5 }
  0x29   : > { %s421_s15 = scalar_lea.hbm %s11620_s2, %s8714_s12  ;;  %s8929_s12 = sshll.u32 %s9271_s30, 4  ;;  %s8930_s12 = int_to_ptr.vmem [resolvable:$false] %s8929_s12 }
  0x2a   : > { %p8928_p8 = pneg %p8927_p7  ;;  %s8931_s13 = scalar_lea.vmem %s8930_s12, 131072 }
  0x2b   : > { %p8932_p9 = scmp.lt.s32.totalorder %s423_s23, %s8930_s12  ;;  %p8933_p10 = scmp.lt.s32.totalorder %s8931_s13, %s8924_s24 }
  0x2d   : > { %p8934_p11 = por %p8933_p10, %p8932_p9 }
  0x2f   : > { %p8935_p12 = pnand %p8934_p11, %p8928_p8 }
  0x31   : > { %8938 = shalt.err (!%p8935_p12)
}
  0x32   : > { %s9272_s14 = smov 1024   ;;  %s9273_s16 = smov 64  }
  0x33   : > { %8768 = dma.hbm_to_vmem [thread:$0]  (!%p9425_p4), %s421_s15, 65536, %s423_s23, %s11590_s5, %s9272_s14, %s9272_s14, %s9273_s16  }
  0x34   : > { %p8670_p13 = scmp.ge.s32.totalorder %s9269_s27, 1  ;;  %p574_p1 = scmp.lt.s32.totalorder %s9269_s27, 5 }
  0x35   : > { %s8653_s30 = sshll.u32 %s9416_s29, 8  ;;  %s8716_s12 = sshll.u32 %s9265_s26, 12 }
  0x36   : > { %p9445_p3 = pnand %p8670_p13, %p574_p1  ;;  %s457_s13 = scalar_lea.vmem [#allocation8], %s8653_s30 }
  0x37   : > { %s464_s2 = sshll.u32 %s457_s13, 4  ;;  %s11625_s4 = sld [smem:[#allocation36_spill]]  ;;  %s465_s2 = int_to_ptr.vmem [resolvable:$true] %s464_s2 }
  0x38   : > { %s11623_s24 = scalar_select %p9445_p3, 1, 0 }
  0x39   : > { %s11596_s3 = scalar_lea.sflag [#allocation9], %s9413_s28  ;;  %s8952_s1 = scalar_lea.vmem %s465_s2, 4096 }
  0x3a   : > { %11624 = sst [smem:[#allocation28_spill]] %s11623_s24  ;;  %p8953_p6 = scmp.ne.s32.totalorder %s465_s2, %s8952_s1 }
  0x3b   : > { %s9274_s23 = smov [#allocation8]  }
  0x3c   : > { %p8955_p7 = pnand %p8953_p6, %p9432_p5  ;;  %s8957_s15 = sshll.u32 %s9274_s23, 4  ;;  %s8958_s15 = int_to_ptr.vmem [resolvable:$false] %s8957_s15 }
  0x3d   : > { %s463_s6 = scalar_lea.hbm %s11625_s4, %s8716_s12  ;;  %s8959_s14 = scalar_lea.vmem %s8958_s15, 8192 }
  0x3e   : > { %p8956_p8 = pneg %p8955_p7  ;;  %p8960_p9 = scmp.lt.s32.totalorder %s465_s2, %s8958_s15 }
  0x3f   : > { %p8961_p10 = scmp.lt.s32.totalorder %s8959_s14, %s8952_s1 }
  0x41   : > { %p8962_p11 = por %p8961_p10, %p8960_p9 }
  0x43   : > { %p8963_p12 = pnand %p8962_p11, %p8956_p8 }
  0x45   : > { %8966 = shalt.err (!%p8963_p12)
}
  0x46   : > { %s9275_s16 = smov 256   ;;  %s9276_s8 = smov 16  }
  0x47   : > { %8774 = dma.hbm_to_vmem [thread:$0]  (!%p9425_p4), %s463_s6, 4096, %s465_s2, %s11596_s3, %s9275_s16, %s9275_s16, %s9276_s8  }
  0x48   : > { %s8659_s10 = sshll.u32 %s9416_s29, 4  ;;  %s8718_s30 = sshll.u32 %s9265_s26, 8 }
  0x49   : > { %s11626_s7 = sld [smem:[#allocation39_spill]]  ;;  %s505_s23 = scalar_lea.vmem [#allocation11], %s8659_s10 }
  0x4a   : > { %s513_s15 = sshll.u32 %s505_s23, 4  ;;  %s11595_s14 = scalar_lea.sflag [#allocation12], %s9413_s28  ;;  %s514_s15 = int_to_ptr.vmem [resolvable:$true] %s513_s15 }
  0x4b   : > { %s8980_s5 = scalar_lea.vmem %s514_s15, 256  ;;  %s9277_s4 = smov [#allocation11]  }
  0x4c   : > { %p8981_p13 = scmp.ne.s32.totalorder %s514_s15, %s8980_s5  ;;  %s8985_s24 = sshll.u32 %s9277_s4, 4  ;;  %s8986_s24 = int_to_ptr.vmem [resolvable:$false] %s8985_s24 }
  0x4d   : > { %s8987_s18 = scalar_lea.vmem %s8986_s24, 512  ;;  %p8988_p7 = scmp.lt.s32.totalorder %s514_s15, %s8986_s24 }
  0x4e   : > { %p8983_p1 = pnand %p8981_p13, %p9432_p5  ;;  %p8989_p8 = scmp.lt.s32.totalorder %s8987_s18, %s8980_s5 }
  0x4f   : > { %s511_s1 = scalar_lea.hbm %s11626_s7, %s8718_s30 }
  0x50   : > { %p8984_p6 = pneg %p8983_p1  ;;  %p8990_p9 = por %p8989_p8, %p8988_p7 }
  0x52   : > { %p8991_p10 = pnand %p8990_p9, %p8984_p6 }
  0x54   : > { %8994 = shalt.err (!%p8991_p10)
}
  0x55   : > { %8780 = dma.hbm_to_vmem [thread:$0]  (!%p9425_p4), %s511_s1, 256, %s514_s15, %s11595_s14  }
  0x56   : > { %s8665_s2 = sshll.u32 %s9416_s29, 2  ;;  %s8720_s6 = sshll.u32 %s9265_s26, 6 }
  0x57   : > { %s11627_s9 = sld [smem:[#allocation41_spill]]  ;;  %s543_s24 = scalar_lea.vmem [#allocation14], %s8665_s2 }
  0x58   : > { %s551_s5 = sshll.u32 %s543_s24, 4  ;;  %s11594_s18 = scalar_lea.sflag [#allocation15], %s9413_s28  ;;  %s552_s5 = int_to_ptr.vmem [resolvable:$true] %s551_s5 }
  0x59   : > { %s9008_s10 = scalar_lea.vmem %s552_s5, 64  ;;  %s9278_s30 = smov [#allocation14]  }
  0x5a   : > { %p9009_p11 = scmp.ne.s32.totalorder %s552_s5, %s9008_s10  ;;  %s9013_s12 = sshll.u32 %s9278_s30, 4  ;;  %s9014_s12 = int_to_ptr.vmem [resolvable:$false] %s9013_s12 }
  0x5b   : > { %s9015_s13 = scalar_lea.vmem %s9014_s12, 128  ;;  %p9016_p1 = scmp.lt.s32.totalorder %s552_s5, %s9014_s12 }
  0x5c   : > { %p9011_p12 = pnand %p9009_p11, %p9432_p5  ;;  %p9017_p6 = scmp.lt.s32.totalorder %s9015_s13, %s9008_s10 }
  0x5d   : > { %s549_s8 = scalar_lea.hbm %s11627_s9, %s8720_s6 }
  0x5e   : > { %p9012_p13 = pneg %p9011_p12  ;;  %p9018_p7 = por %p9017_p6, %p9016_p1 }
  0x60   : > { %p9019_p8 = pnand %p9018_p7, %p9012_p13 }
  0x62   : > { %9022 = shalt.err (!%p9019_p8)
}
  0x63   : > { %8786 = dma.hbm_to_vmem [thread:$0]  (!%p9425_p4), %s549_s8, 64, %s552_s5, %s11594_s18  }
  0x64   : > { %s11593_s1 = sadd.s32 4294967295, %s9269_s27   ;;  %s11628_s23 = sld [smem:[#allocation22_spill]] }
  0x65   : > { %s45_s15 = sadd.s32 1, %s9261_s25  ;;  %s48_s2 = sadd.s32 1, %s9265_s26 }
  0x66   : > { %p46_p9 = scmp.ge.s32.totalorder %s45_s15, 2  ;;  %s83_s6 = sadd.s32 1, %s9249_s22 }
  0x67   : > { %p90_p10 = scmp.ne.s32.totalorder %s9249_s22, %s9245_s21  ;;  %p96_p13 = scmp.ne.s32.totalorder %s9245_s21, %s9241_s20 }
  0x68   : > { %s11667_s15 = smov (%p46_p9, %s45_s15), 0  ;;  %s11669_s2 = smov (!%p46_p9, %s48_s2), %s9265_s26 }
  0x69   : > { %11629 = sst [smem:[#allocation29_spill]] %s11667_s15  ;;  %s79_s16 = ssub.s32 %s9261_s25, %s11667_s15 }
  0x6a   : > { %p9497_p11 = por %p91_p0, %p90_p10  ;;  %p50_p12 = scmp.ge.s32.totalorder %s11669_s2, 2 }
  0x6b   : > { %p97_p1 = scmp.eq.s32.totalorder %s11593_s1, 0  ;;  %s109_s8 = sadd.s32 1, %s9237_s19 }
  0x6c   : > { %s11671_s2 = smov (%p50_p12, %s11669_s2), 0  ;;  %p122_p7 = scmp.ne.s32.totalorder %s11628_s23, %s9229_s17 }
  0x6d   : > { %11631 = sst [smem:[#allocation30_spill]] %s11671_s2  ;;  %p9508_p6 = por %p97_p1, %p96_p13 }
  0x6e   : > { %s78_s5 = ssub.s32 %s9265_s26, %s11671_s2  ;;  %s387_s10 = sand.u32 1, %s9249_s22  }
  0x6f   : > { %s80_s30 = sor.u32 %s79_s16, %s78_s5  ;;  %p107_p0 = scmp.eq.s32.totalorder %s78_s5, 0 }
  0x70   : > { %p81_p8 = scmp.eq.s32.totalorder %s80_s30, 0  ;;  %p9517_p9 = por %p122_p7, %p97_p1 }
  0x71   : > { %s9522_s12 = scalar_select %p107_p0, %s9237_s19, %s109_s8  }
  0x72   : > { %s9525_s13 = scalar_select %p81_p8, %s9249_s22, %s83_s6  }
  0x73   : > { %s8642_s1 = sshll.u32 %s387_s10, 12  ;;  %s8713_s18 = sshll.u32 %s9261_s25, 9 }
  0x74   : > { %11634 = sst [smem:[#allocation31_spill]] %s9525_s13  ;;  %s8645_s14 = sshll.u32 %s9265_s26, 10 }
  0x75   : > { %s391_s3 = scalar_lea.vmem [#allocation3], %s8642_s1  ;;  %s398_s23 = sadd.s32 %s8713_s18, %s8645_s14 }
  0x76   : > { %s401_s17 = sshll.u32 %s391_s3, 4  ;;  %s8646_s7 = sshll.u32 %s398_s23, 7  ;;  %s402_s17 = int_to_ptr.vmem [resolvable:$true] %s401_s17 }
  0x77   : > { %p9533_p10 = pnand %p8790_p2, %p9497_p11  ;;  %s11636_s8 = sld [smem:[#allocation33_spill]] }
  0x78   : > { %s388_s9 = scalar_lea.sflag [#allocation4], %s387_s10  ;;  %s9036_s2 = scalar_lea.vmem %s402_s17, 65536 }
  0x79   : > { %p9025_p12 = pneg %p9533_p10  ;;  %p9037_p13 = scmp.ne.s32.totalorder %s402_s17, %s9036_s2 }
  0x7a   : > { %s9279_s3 = smov [#allocation3]  }
  0x7b   : > { %p9039_p1 = pnand %p9037_p13, %p9025_p12  ;;  %s9041_s14 = sshll.u32 %s9279_s3, 4  ;;  %s9042_s14 = int_to_ptr.vmem [resolvable:$false] %s9041_s14 }
  0x7c   : > { %s9043_s18 = scalar_lea.vmem %s9042_s14, 131072  ;;  %p9044_p2 = scmp.lt.s32.totalorder %s402_s17, %s9042_s14 }
  0x7d   : > { %s400_s6 = scalar_lea.hbm %s11636_s8, %s8646_s7  ;;  %p9040_p7 = pneg %p9039_p1 }
  0x7e   : > { %p9045_p11 = scmp.lt.s32.totalorder %s9043_s18, %s9036_s2 }
  0x80   : > { %p9046_p0 = por %p9045_p11, %p9044_p2 }
  0x82   : > { %p9047_p8 = pnand %p9046_p0, %p9040_p7 }
  0x84   : > { %9050 = shalt.err (!%p9047_p8)
}
  0x85   : > { %s9280_s1 = smov 2048   ;;  %s9281_s7 = smov 128  }
  0x86   : > { %8765 = dma.hbm_to_vmem [thread:$0]  (!%p9533_p10), %s400_s6, 65536, %s402_s17, %s388_s9, %s9280_s1, %s9280_s1, %s9281_s7  }
  0x87   : > { %s8650_s4 = sshll.u32 %s9416_s29, 10  ;;  %s8715_s10 = sshll.u32 %s9265_s26, 14 }
  0x88   : > { %s11637_s30 = sld [smem:[#allocation35_spill]]  ;;  %s436_s3 = scalar_lea.vmem [#allocation7], %s8650_s4 }
  0x89   : > { %s443_s14 = sshll.u32 %s436_s3, 4  ;;  %s9282_s18 = smov [#allocation7]   ;;  %s444_s14 = int_to_ptr.vmem [resolvable:$true] %s443_s14 }
  0x8a   : > { %s9064_s2 = scalar_lea.vmem %s444_s14, 16384  ;;  %s9069_s15 = sshll.u32 %s9282_s18, 4  ;;  %s9070_s15 = int_to_ptr.vmem [resolvable:$false] %s9069_s15 }
  0x8b   : > { %p9065_p12 = scmp.ne.s32.totalorder %s444_s14, %s9064_s2  ;;  %s9071_s25 = scalar_lea.vmem %s9070_s15, 32768 }
  0x8c   : > { %p9072_p7 = scmp.lt.s32.totalorder %s444_s14, %s9070_s15  ;;  %p9073_p10 = scmp.lt.s32.totalorder %s9071_s25, %s9064_s2 }
  0x8d   : > { %p9067_p13 = pnand %p9065_p12, %p9432_p5 }
  0x8e   : > { %s442_s8 = scalar_lea.hbm %s11637_s30, %s8715_s10  ;;  %p9074_p2 = por %p9073_p10, %p9072_p7 }
  0x8f   : > { %p9068_p1 = pneg %p9067_p13 }
  0x91   : > { %p9075_p11 = pnand %p9074_p2, %p9068_p1 }
  0x93   : > { %9078 = shalt.err (!%p9075_p11)
}
  0x94   : > { %s9283_s9 = smov 512   ;;  %s9284_s17 = smov 32  }
  0x95   : > { %s11638_s16 = scalar_lea.sflag [#allocation6], %s9413_s28  ;;  %s8656_s6 = sshll.u32 %s9416_s29, 5 }
  0x96   : > { %8771 = dma.hbm_to_vmem [thread:$0]  (!%p9425_p4), %s442_s8, 16384, %s444_s14, %s11638_s16, %s9283_s9, %s9283_s9, %s9284_s17  }
  0x97   : > { %s8717_s1 = sshll.u32 %s9265_s26, 9  ;;  %s11639_s15 = sld [smem:[#allocation38_spill]] }
  0x98   : > { %s486_s10 = scalar_lea.vmem [#allocation10], %s8656_s6  ;;  %s8662_s5 = sshll.u32 %s9416_s29, 3 }
  0x99   : > { %s494_s23 = sshll.u32 %s486_s10, 4  ;;  %s9285_s3 = smov [#allocation10]   ;;  %s495_s23 = int_to_ptr.vmem [resolvable:$true] %s494_s23 }
  0x9a   : > { %s9092_s30 = scalar_lea.vmem %s495_s23, 512  ;;  %s9097_s2 = sshll.u32 %s9285_s3, 4  ;;  %s9098_s2 = int_to_ptr.vmem [resolvable:$false] %s9097_s2 }
  0x9b   : > { %p9093_p0 = scmp.ne.s32.totalorder %s495_s23, %s9092_s30  ;;  %s9099_s18 = scalar_lea.vmem %s9098_s2, 1024 }
  0x9c   : > { %p9100_p13 = scmp.lt.s32.totalorder %s495_s23, %s9098_s2  ;;  %p9101_p1 = scmp.lt.s32.totalorder %s9099_s18, %s9092_s30 }
  0x9d   : > { %s492_s25 = scalar_lea.hbm %s11639_s15, %s8717_s1  ;;  %p9095_p8 = pnand %p9093_p0, %p9432_p5 }
  0x9e   : > { %p9102_p7 = por %p9101_p1, %p9100_p13 }
  0x9f   : > { %p9096_p12 = pneg %p9095_p8 }
  0xa1   : > { %p9103_p10 = pnand %p9102_p7, %p9096_p12 }
  0xa3   : > { %9106 = shalt.err (!%p9103_p10)
}
  0xa4   : > { %s11640_s8 = scalar_lea.sflag [#allocation9], %s9413_s28  ;;  %s8719_s14 = sshll.u32 %s9265_s26, 7 }
  0xa5   : > { %8777 = dma.hbm_to_vmem [thread:$0]  (!%p9425_p4), %s492_s25, 512, %s495_s23, %s11640_s8  }
  0xa6   : > { %s524_s9 = scalar_lea.vmem [#allocation13], %s8662_s5  ;;  %s11641_s1 = sld [smem:[#allocation40_spill]] }
  0xa7   : > { %s532_s17 = sshll.u32 %s524_s9, 4  ;;  %s9286_s15 = smov [#allocation13]   ;;  %s533_s17 = int_to_ptr.vmem [resolvable:$true] %s532_s17 }
  0xa8   : > { %s9120_s4 = scalar_lea.vmem %s533_s17, 128  ;;  %s9125_s10 = sshll.u32 %s9286_s15, 4  ;;  %s9126_s10 = int_to_ptr.vmem [resolvable:$false] %s9125_s10 }
  0xa9   : > { %p9121_p2 = scmp.ne.s32.totalorder %s533_s17, %s9120_s4  ;;  %s9127_s30 = scalar_lea.vmem %s9126_s10, 256 }
  0xaa   : > { %p9128_p8 = scmp.lt.s32.totalorder %s533_s17, %s9126_s10  ;;  %p9129_p12 = scmp.lt.s32.totalorder %s9127_s30, %s9120_s4 }
  0xab   : > { %p9123_p11 = pnand %p9121_p2, %p9432_p5 }
  0xac   : > { %s530_s7 = scalar_lea.hbm %s11641_s1, %s8719_s14  ;;  %p9130_p13 = por %p9129_p12, %p9128_p8 }
  0xad   : > { %p9124_p0 = pneg %p9123_p11 }
  0xaf   : > { %p9131_p1 = pnand %p9130_p13, %p9124_p0 }
  0xb1   : > { %9134 = shalt.err (!%p9131_p1)
}
  0xb2   : > { %s11642_s25 = scalar_lea.sflag [#allocation12], %s9413_s28  ;;  %s8668_s23 = sshll.u32 %s9416_s29, 1 }
  0xb3   : > { %8783 = dma.hbm_to_vmem [thread:$0]  (!%p9425_p4), %s530_s7, 128, %s533_s17, %s11642_s25  }
  0xb4   : > { %s8669_s5 = sshll.u32 %s9265_s26, 5  ;;  %s11643_s18 = sld [smem:[#allocation42_spill]] }
  0xb5   : > { %s562_s14 = scalar_lea.vmem [#allocation16], %s8668_s23  ;;  %s9287_s6 = smov [#allocation16]  }
  0xb6   : > { %s569_s9 = sshll.u32 %s562_s14, 4  ;;  %s9153_s1 = sshll.u32 %s9287_s6, 4  ;;  %s570_s9 = int_to_ptr.vmem [resolvable:$true] %s569_s9  ;;  %s9154_s1 = int_to_ptr.vmem [resolvable:$false] %s9153_s1 }
  0xb7   : > { %s9148_s16 = scalar_lea.vmem %s570_s9, 32  ;;  %s9155_s4 = scalar_lea.vmem %s9154_s1, 64 }
  0xb8   : > { %p9149_p7 = scmp.ne.s32.totalorder %s570_s9, %s9148_s16  ;;  %p9156_p11 = scmp.lt.s32.totalorder %s570_s9, %s9154_s1 }
  0xb9   : > { %p9157_p0 = scmp.lt.s32.totalorder %s9155_s4, %s9148_s16 }
  0xba   : > { %s567_s8 = scalar_lea.hbm %s11643_s18, %s8669_s5  ;;  %p9151_p10 = pnand %p9149_p7, %p9432_p5 }
  0xbb   : > { %p9158_p8 = por %p9157_p0, %p9156_p11 }
  0xbc   : > { %p9152_p2 = pneg %p9151_p10 }
  0xbe   : > { %p9159_p12 = pnand %p9158_p8, %p9152_p2 }
  0xc0   : > { %9162 = shalt.err (!%p9159_p12)
}
  0xc1   : > { %s11644_s29 = scalar_lea.sflag [#allocation15], %s9413_s28  ;;  %578 = sbr.rel (%p9445_p3) target bundleno = 3617 (0xe21), region = 64 }
  0xc2   : > { %8789 = dma.hbm_to_vmem [thread:$0]  (!%p9425_p4), %s567_s8, 32, %s570_s9, %s11644_s29  }
  0xc3   : > { %s580_s0 = sand.u32 (!%p9445_p3), 1, %s9245_s21  }
  0xc4   : > { %s8671_s7 = sshll.u32 (!%p9445_p3), %s580_s0, 12  ;;  %s581_s15 = scalar_lea.sflag (!%p9445_p3), [#allocation4], %s580_s0 }
  0xc5   : > { %s9591_s10 = scalar_lea.vmem (!%p9445_p3), [#allocation3], %s8671_s7 }
  0xc6   : > { %9208 = dma.done.wait (%p9508_p6), %s581_s15, 65536  }
  0xc7   : > { %9210 = vsyncadd (%p9508_p6), %s581_s15, 4294901760  ;;  %s11646_s11 = sadd.s32 4294967295, %s9269_s27   ;;  %s11647_s30 = sld [smem:[#allocation22_spill]] }
  0xc8   : > { %s589_s28 = sand.u32 1, %s11646_s11  }
  0xc9   : > { %s590_s5 = scalar_lea.sflag [#allocation6], %s589_s28 }
  0xcd   : > { %s9600_s25 = sand.u32 1, %s11647_s30  }
  0xce   : > { %s8672_s23 = sshll.u32 %s9600_s25, 12 }
  0xcf   : > { %s9603_s3 = scalar_lea.vmem [#allocation5], %s8672_s23 }
  0xd0   : > { %9212 = dma.done.wait (%p9517_p9), %s590_s5, 81920  }
  0xd1   : > { %9214 = vsyncadd (%p9517_p9), %s590_s5, 4294885376  ;;  %s8673_s24 = sshll.u32 %s9600_s25, 10  ;;  %s8674_s2 = sshll.u32 %s9600_s25, 8 }
  0xd2   : > { %s9611_s18 = scalar_lea.vmem [#allocation7], %s8673_s24  ;;  %s608_s8 = scalar_lea.sflag [#allocation9], %s589_s28 }
  0xd3   : > { %s9613_s14 = scalar_lea.vmem [#allocation8], %s8674_s2 }
  0xd4   : > { %9216 = dma.done.wait (%p9517_p9), %s608_s8, 4608  }
  0xd5   : > { %9218 = vsyncadd (%p9517_p9), %s608_s8, 4294962688  ;;  %s8675_s9 = sshll.u32 %s9600_s25, 5  ;;  %s8676_s16 = sshll.u32 %s9600_s25, 4 }
  0xd6   : > { %s9621_s6 = scalar_lea.vmem [#allocation10], %s8675_s9  ;;  %s626_s1 = scalar_lea.sflag [#allocation12], %s589_s28 }
  0xd7   : > { %s9623_s4 = scalar_lea.vmem [#allocation11], %s8676_s16 }
  0xd8   : > { %9220 = dma.done.wait (%p9517_p9), %s626_s1, 384  }
  0xd9   : > { %9222 = vsyncadd (%p9517_p9), %s626_s1, 4294966912  ;;  %s8677_s29 = sshll.u32 %s9600_s25, 3  ;;  %s8678_s17 = sshll.u32 %s9600_s25, 2 }
  0xda   : > { %s9631_s0 = scalar_lea.vmem [#allocation13], %s8677_s29  ;;  %s644_s7 = scalar_lea.sflag [#allocation15], %s589_s28 }
  0xdb   : > { %s9633_s15 = scalar_lea.vmem [#allocation14], %s8678_s17 }
  0xdc   : > { %9224 = dma.done.wait (%p9517_p9), %s644_s7, 96  }
  0xdd   : > { %9226 = vsyncadd (%p9517_p9), %s644_s7, 4294967200  ;;  %s11648_s11 = sld [smem:[#allocation25_spill]]  ;;  %s8679_s30 = sshll.u32 %s9600_s25, 1 }
  0xde   : > { %s11649_s8 = sld [smem:[#allocation32_spill]]  ;;  %s9657_s25 = scalar_lea.vmem [#allocation16], %s8679_s30 }
  0xdf   : > { %s11650_s1 = sld [smem:[#allocation37_spill]] }
  0xe0   : > { %s11651_s26 = sld [smem:[#allocation43_spill]] }
  0xe1   : > { %s11652_s22 = sld [smem:[#allocation24_spill]] }
  0xe3   : > { %p743_p4 = scmp.lt.s32.totalorder %s11648_s11, 1 }
  0xe5   : > { %s11673_s11 = smov (!%p743_p4, %s11648_s11), 1 }
  0xe6   : > { %s8680_s23 = sshll.u32 %s11673_s11, 4  ;;  %s8721_s5 = sshll.u32 %s11673_s11, 7 }
  0xe7   : > { %s9645_s9 = scalar_lea.vmem %s11649_s8, %s8680_s23  ;;  %s9650_s29 = scalar_lea.vmem %s11650_s1, %s8721_s5 }
  0xe8   : > { %s8683_s20 = sshll.u32 %s11673_s11, 1  ;;  %p8684_p5 = scmp.ne.s32.totalorder %s11652_s22, 0 }
  0xe9   : > { %s9655_s13 = scalar_lea.vmem %s11651_s26, %s8683_s20 }
  0xea   : > { %761 = sbr.rel (%p8684_p5) target bundleno = 242 (0xf2), region = 104 }
  0xef   : > { %v9288_v0 = vmov 0.0  }
  0xf0   : > { %762 = vst [vmem:[#allocation2 + $0x10] sm:$0xff] %v9288_v0  ;;  %763 = vst [vmem:[#allocation2] sm:$0xff] %v9288_v0 }
  0xf1   : > { %764 = vst [vmem:[#allocation2 + $0x18] sm:$0xff] %v9288_v0  ;;  %765 = vst [vmem:[#allocation2 + $0x8] sm:$0xff] %v9288_v0 }
  0xf2 PF: > { %v818_v1 = vld [vmem:[%s9591_s10 + $0x188] sm:$0xff]  ;;  %v817_v3 = vld [vmem:[%s9591_s10 + $0x180] sm:$0xff]  ;;  %s11653_s22 = sld [smem:[#allocation24_spill]]  ;;  %v2314_v31 = vlaneseq  ;;  %v9289_v36 = vmov 1966171168  }
  0xf3   : > { %v946_v2 = vld [vmem:[%s9591_s10 + $0x588] sm:$0xff]  ;;  %v1378_v4 = vunpack.c.l.s8.bf16 %v818_v1  ;;  %v1394_v5 = vunpack.c.h.s8.bf16 %v818_v1  ;;  %v945_v8 = vld [vmem:[%s9591_s10 + $0x580] sm:$0xff]  ;;  %v1393_v9 = vunpack.c.h.s8.bf16 %v817_v3  ;;  %v1377_v13 = vunpack.c.l.s8.bf16 %v817_v3 }
  0xf4   : > { %v1634_v6 = vunpack.c.l.s8.bf16 %v946_v2  ;;  %v1650_v7 = vunpack.c.h.s8.bf16 %v946_v2  ;;  %v1649_v10 = vunpack.c.h.s8.bf16 %v945_v8  ;;  %v802_v11 = vld [vmem:[%s9591_s10 + $0x108] sm:$0xff]  ;;  %v1633_v14 = vunpack.c.l.s8.bf16 %v945_v8  ;;  %v801_v17 = vld [vmem:[%s9591_s10 + $0x100] sm:$0xff] }
  0xf5   : > { %v930_v12 = vld [vmem:[%s9591_s10 + $0x508] sm:$0xff]  ;;  %2367 = vmatprep.subr.bf16.mxu0 %v1394_v5  ;;  %v1362_v15 = vunpack.c.h.s8.bf16 %v802_v11  ;;  %v929_v18 = vld [vmem:[%s9591_s10 + $0x500] sm:$0xff]  ;;  %v1361_v19 = vunpack.c.h.s8.bf16 %v801_v17  ;;  %v1346_v21 = vunpack.c.l.s8.bf16 %v802_v11  ;;  %v1345_v25 = vunpack.c.l.s8.bf16 %v801_v17 }
  0xf6   : > { %2408 = vmatprep.subr.bf16.mxu1 %v1650_v7  ;;  %2368 = vmatpush1.bf16.msra.mxu0 %v1393_v9  ;;  %v1618_v16 = vunpack.c.h.s8.bf16 %v930_v12  ;;  %v1617_v20 = vunpack.c.h.s8.bf16 %v929_v18  ;;  %v1602_v22 = vunpack.c.l.s8.bf16 %v930_v12  ;;  %v786_v23 = vld [vmem:[%s9591_s10 + $0x88] sm:$0xff]  ;;  %v1601_v26 = vunpack.c.l.s8.bf16 %v929_v18  ;;  %v785_v29 = vld [vmem:[%s9591_s10 + $0x80] sm:$0xff] }
  0xf7   : > { %2409 = vmatpush1.bf16.msra.mxu1 %v1649_v10  ;;  %2369 = vmatprep.subr.bf16.mxu0 %v1378_v4  ;;  %v914_v24 = vld [vmem:[%s9591_s10 + $0x488] sm:$0xff]  ;;  %v1330_v27 = vunpack.c.h.s8.bf16 %v786_v23  ;;  %v913_v30 = vld [vmem:[%s9591_s10 + $0x480] sm:$0xff]  ;;  %v1329_v32 = vunpack.c.h.s8.bf16 %v785_v29  ;;  %v1314_v34 = vunpack.c.l.s8.bf16 %v786_v23  ;;  %v2312_v37 = vunpack.c.l.s4 %v9289_v36 }
  0xf8   : > { %2410 = vmatprep.subr.bf16.mxu1 %v1634_v6  ;;  %v1586_v28 = vunpack.c.h.s8.bf16 %v914_v24  ;;  %s8685_s26 = sshll.u32 %s11653_s22, 3  ;;  %v1585_v33 = vunpack.c.h.s8.bf16 %v913_v30  ;;  %v1570_v35 = vunpack.c.l.s8.bf16 %v914_v24  ;;  %v9674_v38 = vshrl.u32 %v2314_v31, 7  ;;  %v770_v39 = vld [vmem:[%s9591_s10 + $0x8] sm:$0xff]  ;;  %v769_v47 = vld [vmem:[%s9591_s10] sm:$0xff]  ;;  %p8686_p3 = scmp.ne.s32.totalorder %s11653_s22, 1 }
  0xf9   : > { %s767_s11 = scalar_lea.vmem %s9645_s9, %s8685_s26  ;;  %v898_v40 = vld [vmem:[%s9591_s10 + $0x408] sm:$0xff]  ;;  %v2313_v41 = vunpack.c.0.s8 %v2312_v37  ;;  %v1313_v42 = vunpack.c.l.s8.bf16 %v785_v29  ;;  %v1569_v43 = vunpack.c.l.s8.bf16 %v913_v30  ;;  %v1298_v45 = vunpack.c.h.s8.bf16 %v770_v39  ;;  %v897_v48 = vld [vmem:[%s9591_s10 + $0x400] sm:$0xff] }
  0xfa   : > { %2370 = vmatpush1.bf16.msra.mxu0 %v1377_v13  ;;  %v768_v44 = vld [vmem:[%s767_s11] sm:$0xff]  ;;  %v1554_v46 = vunpack.c.h.s8.bf16 %v898_v40  ;;  %v1297_v51 = vunpack.c.h.s8.bf16 %v769_v47  ;;  %v1553_v52 = vunpack.c.h.s8.bf16 %v897_v48  ;;  %v1282_v53 = vunpack.c.l.s8.bf16 %v770_v39  ;;  %v882_v56 = vld [vmem:[%s9591_s10 + $0x388] sm:$0xff] }
  0xfb   : > { %2411 = vmatpush1.bf16.msra.mxu1 %v1633_v14  ;;  %2371 = vmatprep.subr.bf16.mxu0 %v1362_v15  ;;  %v9681_v49 = vsub.s32 %v2313_v41, %v9674_v38  ;;  %v1538_v54 = vunpack.c.l.s8.bf16 %v898_v40  ;;  %v1010_v57 = vld [vmem:[%s9591_s10 + $0x788] sm:$0xff]  ;;  %v1281_v59 = vunpack.c.l.s8.bf16 %v769_v47  ;;  %v1537_v60 = vunpack.c.l.s8.bf16 %v897_v48  ;;  %v881_v63 = vld [vmem:[%s9591_s10 + $0x380] sm:$0xff] }
  0xfc   : > { %2412 = vmatprep.subr.bf16.mxu1 %v1618_v16  ;;  %v1522_v61 = vunpack.c.h.s8.bf16 %v882_v56  ;;  %v1778_v62 = vunpack.c.h.s8.bf16 %v1010_v57  ;;  %v1009_v0 = vld [vmem:[%s9591_s10 + $0x780] sm:$0xff]  ;;  %v1521_v2 = vunpack.c.h.s8.bf16 %v881_v63  ;;  %v1506_v4 = vunpack.c.l.s8.bf16 %v882_v56  ;;  %v866_v6 = vld [vmem:[%s9591_s10 + $0x308] sm:$0xff] }
  0xfd   : > { %v9684_v50 = vrot.slane %v768_v44, %v9681_v49  ;;  %v1777_v3 = vunpack.c.h.s8.bf16 %v1009_v0  ;;  %v1762_v5 = vunpack.c.l.s8.bf16 %v1010_v57  ;;  %v994_v7 = vld [vmem:[%s9591_s10 + $0x708] sm:$0xff]  ;;  %v2310_v8 = vcombine.high %v768_v44, %v768_v44  ;;  %v865_v13 = vld [vmem:[%s9591_s10 + $0x300] sm:$0xff] }
  0xfe   : > { %2372 = vmatpush1.bf16.msra.mxu0 %v1361_v19  ;;  %v1505_v9 = vunpack.c.l.s8.bf16 %v881_v63  ;;  %v1761_v10 = vunpack.c.l.s8.bf16 %v1009_v0  ;;  %v1490_v11 = vunpack.c.h.s8.bf16 %v866_v6  ;;  %v1746_v12 = vunpack.c.h.s8.bf16 %v994_v7  ;;  %v993_v14 = vld [vmem:[%s9591_s10 + $0x700] sm:$0xff]  ;;  %v1202_v47 = vld [vmem:[%s9591_s10 + $0xd88] sm:$0xff] }
  0xff   : > { %2413 = vmatpush1.bf16.msra.mxu1 %v1617_v20  ;;  %2373 = vmatprep.subr.bf16.mxu0 %v1346_v21  ;;  %v2325_v55 = vcombine.high %v9684_v50, %v9684_v50  ;;  %v9706_v15 = vrot.slane %v2310_v8, %v9681_v49  ;;  %v1489_v17 = vunpack.c.h.s8.bf16 %v865_v13  ;;  %v1745_v18 = vunpack.c.h.s8.bf16 %v993_v14  ;;  %v850_v21 = vld [vmem:[%s9591_s10 + $0x288] sm:$0xff]  ;;  %v833_v40 = vld [vmem:[%s9591_s10 + $0x200] sm:$0xff] }
 0x100   : > { %2414 = vmatprep.subr.bf16.mxu1 %v1602_v22  ;;  %v1474_v19 = vunpack.c.l.s8.bf16 %v866_v6  ;;  %v1730_v20 = vunpack.c.l.s8.bf16 %v994_v7  ;;  %v978_v22 = vld [vmem:[%s9591_s10 + $0x688] sm:$0xff]  ;;  %v1473_v23 = vunpack.c.l.s8.bf16 %v865_v13  ;;  %v1729_v24 = vunpack.c.l.s8.bf16 %v993_v14  ;;  %v961_v41 = vld [vmem:[%s9591_s10 + $0x600] sm:$0xff] }
 0x101   : > { %v9691_v58 = vrot.slane %v2325_v55, %v9681_v49  ;;  %v9710_v16 = vrot.slane %v9706_v15, %v9681_v49  ;;  %v1442_v31 = vunpack.c.l.s8.bf16 %v850_v21  ;;  %v2326_v48 = vcombine.high %v9706_v15, %v9706_v15  ;;  %v1073_v56 = vld [vmem:[%s9591_s10 + $0x980] sm:$0xff]  ;;  %v1058_v0 = vld [vmem:[%s9591_s10 + $0x908] sm:$0xff] }
 0x102   : > { %2374 = vmatpush1.bf16.msra.mxu0 %v1345_v25  ;;  %v1458_v25 = vunpack.c.h.s8.bf16 %v850_v21  ;;  %v2162_v55 = vunpack.c.h.s8.bf16 %v1202_v47  ;;  %v1201_v57 = vld [vmem:[%s9591_s10 + $0xd80] sm:$0xff]  ;;  %v2146_v63 = vunpack.c.l.s8.bf16 %v1202_v47  ;;  %v1042_v13 = vld [vmem:[%s9591_s10 + $0x888] sm:$0xff] }
 0x103   : > { %2415 = vmatpush1.bf16.msra.mxu1 %v1601_v26  ;;  %2375 = vmatprep.subr.bf16.mxu0 %v1330_v27  ;;  %v9697_v1 = vcombine.high %v9691_v58, %v9691_v58  ;;  %v1714_v26 = vunpack.c.h.s8.bf16 %v978_v22  ;;  %v849_v27 = vld [vmem:[%s9591_s10 + $0x280] sm:$0xff]  ;;  %v1170_v14 = vld [vmem:[%s9591_s10 + $0xc88] sm:$0xff] }
 0x104   : > { %2416 = vmatprep.subr.bf16.mxu1 %v1586_v28  ;;  %2399 = vmatprep.mubr.bf16.mxu0 %v9691_v58  ;;  %v977_v28 = vld [vmem:[%s9591_s10 + $0x680] sm:$0xff]  ;;  %v1457_v29 = vunpack.c.h.s8.bf16 %v849_v27 }
 0x105   : > { %2440 = vmatprep.mubr.bf16.mxu1 %v9697_v1  ;;  %v1713_v30 = vunpack.c.h.s8.bf16 %v977_v28  ;;  %v1697_v36 = vunpack.c.l.s8.bf16 %v977_v28  ;;  %v1057_v7 = vld [vmem:[%s9591_s10 + $0x900] sm:$0xff] }
 0x106   : > { %2376 = vmatpush1.bf16.msra.mxu0 %v1329_v32  ;;  %v1698_v32 = vunpack.c.l.s8.bf16 %v978_v22  ;;  %v1185_v8 = vld [vmem:[%s9591_s10 + $0xd00] sm:$0xff]  ;;  %v1857_v15 = vunpack.c.l.s8.bf16 %v1057_v7 }
 0x107   : > { %2417 = vmatpush1.bf16.msra.mxu1 %v1585_v33  ;;  %2377 = vmatprep.subr.bf16.mxu0 %v1314_v34  ;;  %v834_v33 = vld [vmem:[%s9591_s10 + $0x208] sm:$0xff]  ;;  %v1169_v21 = vld [vmem:[%s9591_s10 + $0xc80] sm:$0xff] }
 0x108   : > { %2418 = vmatprep.subr.bf16.mxu1 %v1570_v35  ;;  %v962_v34 = vld [vmem:[%s9591_s10 + $0x608] sm:$0xff]  ;;  %v1441_v35 = vunpack.c.l.s8.bf16 %v849_v27  ;;  %v1426_v37 = vunpack.c.h.s8.bf16 %v834_v33  ;;  %v1410_v44 = vunpack.c.l.s8.bf16 %v834_v33  ;;  %v1153_v33 = vld [vmem:[%s9591_s10 + $0xc00] sm:$0xff] }
 0x109   : > { %v1682_v39 = vunpack.c.h.s8.bf16 %v962_v34  ;;  %v1154_v27 = vld [vmem:[%s9591_s10 + $0xc08] sm:$0xff] }
 0x10a   : > { %2378 = vmatpush1.bf16.msra.mxu0 %v1313_v42  ;;  %v1425_v42 = vunpack.c.h.s8.bf16 %v833_v40 }
 0x10b   : > { %2419 = vmatpush1.bf16.msra.mxu1 %v1569_v43  ;;  %2379 = vmatprep.subr.bf16.mxu0 %v1298_v45  ;;  %v1681_v43 = vunpack.c.h.s8.bf16 %v961_v41  ;;  %v1666_v45 = vunpack.c.l.s8.bf16 %v962_v34 }
 0x10c   : > { %2420 = vmatprep.subr.bf16.mxu1 %v1554_v46  ;;  %v1074_v46 = vld [vmem:[%s9591_s10 + $0x988] sm:$0xff] }
 0x10e   : > { %2380 = vmatpush1.bf16.msra.mxu0 %v1297_v51  ;;  %v9726_v51 = vrot.slane %v9684_v50, %v9681_v49  ;;  %v1905_v50 = vunpack.c.h.s8.bf16 %v1073_v56 }
 0x10f   : > { %2421 = vmatpush1.bf16.msra.mxu1 %v1553_v52  ;;  %2381 = vmatprep.subr.bf16.mxu0 %v1282_v53  ;;  %v1409_v52 = vunpack.c.l.s8.bf16 %v833_v40  ;;  %v1665_v53 = vunpack.c.l.s8.bf16 %v961_v41  ;;  %v1266_v40 = vld [vmem:[%s9591_s10 + $0xf88] sm:$0xff] }
 0x110   : > { %2422 = vmatprep.subr.bf16.mxu1 %v1538_v54  ;;  %v1906_v54 = vunpack.c.h.s8.bf16 %v1074_v46 }
 0x112   : > { %2382 = vmatpush1.bf16.msra.mxu0 %v1281_v59  ;;  %v9731_v59 = vrot.slane %v2326_v48, %v9681_v49 }
 0x113   : > { %2423 = vmatpush1.bf16.msra.mxu1 %v1537_v60  ;;  %2383 = vmatprep.subr.bf16.mxu0 %v1522_v61  ;;  %v9735_v60 = vcombine.high %v9726_v51, %v9726_v51  ;;  %v2161_v61 = vunpack.c.h.s8.bf16 %v1201_v57 }
 0x114   : > { %2424 = vmatprep.subr.bf16.mxu1 %v1778_v62  ;;  %v1890_v62 = vunpack.c.l.s8.bf16 %v1074_v46  ;;  %v9741_v49 = vcombine.high %v9731_v59, %v9731_v59  ;;  %v1265_v46 = vld [vmem:[%s9591_s10 + $0xf80] sm:$0xff] }
 0x115   : > { %v2289_v48 = vunpack.c.h.s8.bf16 %v1265_v46 }
 0x116   : > { %2384 = vmatpush2.bf16.msra.mxu0 %v1521_v2  ;;  %v1186_v2 = vld [vmem:[%s9591_s10 + $0xd08] sm:$0xff] }
 0x117   : > { %2425 = vmatpush2.bf16.msra.mxu1 %v1777_v3  ;;  %2385 = vmatprep.subr.bf16.mxu0 %v1506_v4  ;;  %v1889_v3 = vunpack.c.l.s8.bf16 %v1073_v56  ;;  %v2145_v4 = vunpack.c.l.s8.bf16 %v1201_v57  ;;  %v2130_v6 = vunpack.c.h.s8.bf16 %v1186_v2  ;;  %v2273_v57 = vunpack.c.l.s8.bf16 %v1265_v46 }
 0x118   : > { %2426 = vmatprep.subr.bf16.mxu1 %v1762_v5  ;;  %v1874_v5 = vunpack.c.h.s8.bf16 %v1058_v0 }
 0x11a   : > { %2386 = vmatpush2.bf16.msra.mxu0 %v1505_v9  ;;  %v1873_v9 = vunpack.c.h.s8.bf16 %v1057_v7 }
 0x11b   : > { %2427 = vmatpush2.bf16.msra.mxu1 %v1761_v10  ;;  %2387 = vmatprep.subr.bf16.mxu0 %v1490_v11  ;;  %v2129_v10 = vunpack.c.h.s8.bf16 %v1185_v8  ;;  %v1858_v11 = vunpack.c.l.s8.bf16 %v1058_v0 }
 0x11c   : > { %2428 = vmatprep.subr.bf16.mxu1 %v1746_v12  ;;  %v2114_v12 = vunpack.c.l.s8.bf16 %v1186_v2 }
 0x11e   : > { %2388 = vmatpush2.bf16.msra.mxu0 %v1489_v17  ;;  %v2113_v17 = vunpack.c.l.s8.bf16 %v1185_v8 }
 0x11f   : > { %2429 = vmatpush2.bf16.msra.mxu1 %v1745_v18  ;;  %2389 = vmatprep.subr.bf16.mxu0 %v1474_v19  ;;  %v1842_v18 = vunpack.c.h.s8.bf16 %v1042_v13  ;;  %v2098_v19 = vunpack.c.h.s8.bf16 %v1170_v14 }
 0x120   : > { %2430 = vmatprep.subr.bf16.mxu1 %v1730_v20  ;;  %v1041_v20 = vld [vmem:[%s9591_s10 + $0x880] sm:$0xff] }
 0x121   : > { %v1841_v22 = vunpack.c.h.s8.bf16 %v1041_v20  ;;  %v1825_v28 = vunpack.c.l.s8.bf16 %v1041_v20 }
 0x122   : > { %2390 = vmatpush2.bf16.msra.mxu0 %v1473_v23  ;;  %v2097_v23 = vunpack.c.h.s8.bf16 %v1169_v21 }
 0x123   : > { %2431 = vmatpush2.bf16.msra.mxu1 %v1729_v24  ;;  %2391 = vmatprep.subr.bf16.mxu0 %v1458_v25  ;;  %v1826_v24 = vunpack.c.l.s8.bf16 %v1042_v13  ;;  %v2082_v25 = vunpack.c.l.s8.bf16 %v1170_v14 }
 0x124   : > { %2432 = vmatprep.subr.bf16.mxu1 %v1714_v26  ;;  %v1026_v26 = vld [vmem:[%s9591_s10 + $0x808] sm:$0xff] }
 0x126   : > { %2392 = vmatpush2.bf16.msra.mxu0 %v1457_v29  ;;  %v2081_v29 = vunpack.c.l.s8.bf16 %v1169_v21 }
 0x127   : > { %2433 = vmatpush2.bf16.msra.mxu1 %v1713_v30  ;;  %2393 = vmatprep.subr.bf16.mxu0 %v1442_v31  ;;  %v1810_v30 = vunpack.c.h.s8.bf16 %v1026_v26  ;;  %v2066_v31 = vunpack.c.h.s8.bf16 %v1154_v27 }
 0x128   : > { %2434 = vmatprep.subr.bf16.mxu1 %v1698_v32  ;;  %v1025_v32 = vld [vmem:[%s9591_s10 + $0x800] sm:$0xff] }
 0x129   : > { %v1809_v34 = vunpack.c.h.s8.bf16 %v1025_v32  ;;  %v1793_v41 = vunpack.c.l.s8.bf16 %v1025_v32 }
 0x12a   : > { %2394 = vmatpush2.bf16.msra.mxu0 %v1441_v35  ;;  %v2065_v35 = vunpack.c.h.s8.bf16 %v1153_v33 }
 0x12b   : > { %2435 = vmatpush2.bf16.msra.mxu1 %v1697_v36  ;;  %2395 = vmatprep.subr.bf16.mxu0 %v1426_v37  ;;  %v1794_v36 = vunpack.c.l.s8.bf16 %v1026_v26  ;;  %v2050_v37 = vunpack.c.l.s8.bf16 %v1154_v27 }
 0x12c   : > { %2436 = vmatprep.subr.bf16.mxu1 %v1682_v39  ;;  %v1138_v39 = vld [vmem:[%s9591_s10 + $0xb88] sm:$0xff] }
 0x12e   : > { %2396 = vmatpush2.bf16.msra.mxu0 %v1425_v42  ;;  %v2049_v42 = vunpack.c.l.s8.bf16 %v1153_v33 }
 0x12f   : > { %2437 = vmatpush2.bf16.msra.mxu1 %v1681_v43  ;;  %2397 = vmatprep.subr.bf16.mxu0 %v1410_v44  ;;  %v2034_v43 = vunpack.c.h.s8.bf16 %v1138_v39  ;;  %v2290_v44 = vunpack.c.h.s8.bf16 %v1266_v40 }
 0x130   : > { %2438 = vmatprep.subr.bf16.mxu1 %v1666_v45  ;;  %v1137_v45 = vld [vmem:[%s9591_s10 + $0xb80] sm:$0xff] }
 0x131   : > { %v2033_v47 = vunpack.c.h.s8.bf16 %v1137_v45  ;;  %v2017_v56 = vunpack.c.l.s8.bf16 %v1137_v45  ;;  %v932_v45 = vld [vmem:[%s9591_s10 + $0x518] sm:$0xff] }
 0x132   : > { %2398 = vmatpush2.bf16.msra.mxu0 %v1409_v52  ;;  %v2018_v52 = vunpack.c.l.s8.bf16 %v1138_v39  ;;  %v9779_v39 = vcombine.high %v9710_v16, %v9710_v16 }
 0x133   : > { %2439 = vmatpush2.bf16.msra.mxu1 %v1665_v53  ;;  %2449 = vmatprep.subr.bf16.mxu0 %v1906_v54  ;;  %v2274_v53 = vunpack.c.l.s8.bf16 %v1266_v40  ;;  %v1122_v54 = vld [vmem:[%s9591_s10 + $0xb08] sm:$0xff] }
 0x134   : > { %2490 = vmatprep.subr.bf16.mxu1 %v2162_v55  ;;  %v1250_v55 = vld [vmem:[%s9591_s10 + $0xf08] sm:$0xff] }
 0x135   : > { %2400 = vmatmul.mubr.bf16.vlgmr.msra.gmra.mxu0 %v9726_v51 }
 0x136   : > { %2441 = vmatmul.mubr.bf16.vlgmr.msra.gmra.mxu1 %v9735_v60  ;;  %2450 = vmatpush1.bf16.msra.mxu0 %v1905_v50  ;;  %v2002_v50 = vunpack.c.h.s8.bf16 %v1122_v54 }
 0x137   : > { %2491 = vmatpush1.bf16.msra.mxu1 %v2161_v61  ;;  %2451 = vmatprep.subr.bf16.mxu0 %v1890_v62  ;;  %v2258_v61 = vunpack.c.h.s8.bf16 %v1250_v55  ;;  %v1121_v62 = vld [vmem:[%s9591_s10 + $0xb00] sm:$0xff] }
 0x138   : > { %2492 = vmatprep.subr.bf16.mxu1 %v2146_v63  ;;  %2481 = vmatprep.mubr.bf16.mxu0 %v9731_v59  ;;  %v1249_v63 = vld [vmem:[%s9591_s10 + $0xf00] sm:$0xff]  ;;  %v2001_v0 = vunpack.c.h.s8.bf16 %v1121_v62  ;;  %v1985_v7 = vunpack.c.l.s8.bf16 %v1121_v62  ;;  %v916_v62 = vld [vmem:[%s9591_s10 + $0x498] sm:$0xff] }
 0x139   : > { %2522 = vmatprep.mubr.bf16.mxu1 %v9741_v49  ;;  %v2257_v2 = vunpack.c.h.s8.bf16 %v1249_v63  ;;  %v2241_v8 = vunpack.c.l.s8.bf16 %v1249_v63 }
 0x13a   : > { %2452 = vmatpush1.bf16.msra.mxu0 %v1889_v3  ;;  %v1986_v3 = vunpack.c.l.s8.bf16 %v1122_v54  ;;  %v931_v54 = vld [vmem:[%s9591_s10 + $0x510] sm:$0xff] }
 0x13b   : > { %2493 = vmatpush1.bf16.msra.mxu1 %v2145_v4  ;;  %2453 = vmatprep.subr.bf16.mxu0 %v1874_v5  ;;  %v2242_v4 = vunpack.c.l.s8.bf16 %v1250_v55  ;;  %v1106_v5 = vld [vmem:[%s9591_s10 + $0xa88] sm:$0xff] }
 0x13c   : > { %2494 = vmatprep.subr.bf16.mxu1 %v2130_v6  ;;  %v1234_v6 = vld [vmem:[%s9591_s10 + $0xe88] sm:$0xff] }
 0x13e   : > { %2454 = vmatpush1.bf16.msra.mxu0 %v1873_v9  ;;  %v1970_v9 = vunpack.c.h.s8.bf16 %v1106_v5 }
 0x13f   : > { %2495 = vmatpush1.bf16.msra.mxu1 %v2129_v10  ;;  %2455 = vmatprep.subr.bf16.mxu0 %v1858_v11  ;;  %v2226_v10 = vunpack.c.h.s8.bf16 %v1234_v6  ;;  %v1105_v11 = vld [vmem:[%s9591_s10 + $0xa80] sm:$0xff] }
 0x140   : > { %2496 = vmatprep.subr.bf16.mxu1 %v2114_v12  ;;  %v1233_v12 = vld [vmem:[%s9591_s10 + $0xe80] sm:$0xff]  ;;  %v1969_v13 = vunpack.c.h.s8.bf16 %v1105_v11  ;;  %v1953_v20 = vunpack.c.l.s8.bf16 %v1105_v11  ;;  %v900_v11 = vld [vmem:[%s9591_s10 + $0x418] sm:$0xff] }
 0x141   : > { %v2225_v14 = vunpack.c.h.s8.bf16 %v1233_v12  ;;  %v2209_v21 = vunpack.c.l.s8.bf16 %v1233_v12 }
 0x142   : > { %2456 = vmatpush1.bf16.msra.mxu0 %v1857_v15  ;;  %v1954_v15 = vunpack.c.l.s8.bf16 %v1106_v5  ;;  %v915_v5 = vld [vmem:[%s9591_s10 + $0x490] sm:$0xff] }
 0x143   : > { %2497 = vmatpush1.bf16.msra.mxu1 %v2113_v17  ;;  %2457 = vmatprep.subr.bf16.mxu0 %v1842_v18  ;;  %v2210_v17 = vunpack.c.l.s8.bf16 %v1234_v6  ;;  %v1090_v18 = vld [vmem:[%s9591_s10 + $0xa08] sm:$0xff] }
 0x144   : > { %2498 = vmatprep.subr.bf16.mxu1 %v2098_v19  ;;  %v1218_v19 = vld [vmem:[%s9591_s10 + $0xe08] sm:$0xff] }
 0x146   : > { %2458 = vmatpush1.bf16.msra.mxu0 %v1841_v22  ;;  %v1938_v22 = vunpack.c.h.s8.bf16 %v1090_v18 }
 0x147   : > { %2499 = vmatpush1.bf16.msra.mxu1 %v2097_v23  ;;  %2459 = vmatprep.subr.bf16.mxu0 %v1826_v24  ;;  %v2194_v23 = vunpack.c.h.s8.bf16 %v1218_v19  ;;  %v1089_v24 = vld [vmem:[%s9591_s10 + $0xa00] sm:$0xff] }
 0x148   : > { %2500 = vmatprep.subr.bf16.mxu1 %v2082_v25  ;;  %v1217_v25 = vld [vmem:[%s9591_s10 + $0xe00] sm:$0xff]  ;;  %v1937_v26 = vunpack.c.h.s8.bf16 %v1089_v24  ;;  %v1921_v32 = vunpack.c.l.s8.bf16 %v1089_v24  ;;  %v1012_v24 = vld [vmem:[%s9591_s10 + $0x798] sm:$0xff] }
 0x149   : > { %v2193_v27 = vunpack.c.h.s8.bf16 %v1217_v25  ;;  %v2177_v33 = vunpack.c.l.s8.bf16 %v1217_v25 }
 0x14a   : > { %2460 = vmatpush1.bf16.msra.mxu0 %v1825_v28  ;;  %v1922_v28 = vunpack.c.l.s8.bf16 %v1090_v18  ;;  %v899_v18 = vld [vmem:[%s9591_s10 + $0x410] sm:$0xff] }
 0x14b   : > { %2501 = vmatpush1.bf16.msra.mxu1 %v2081_v29  ;;  %2461 = vmatprep.subr.bf16.mxu0 %v1810_v30  ;;  %v2178_v29 = vunpack.c.l.s8.bf16 %v1218_v19  ;;  %v820_v30 = vld [vmem:[%s9591_s10 + $0x198] sm:$0xff] }
 0x14c   : > { %2502 = vmatprep.subr.bf16.mxu1 %v2066_v31  ;;  %v948_v31 = vld [vmem:[%s9591_s10 + $0x598] sm:$0xff] }
 0x14e   : > { %2462 = vmatpush1.bf16.msra.mxu0 %v1809_v34  ;;  %v1396_v34 = vunpack.c.h.s8.bf16 %v820_v30 }
 0x14f   : > { %2503 = vmatpush1.bf16.msra.mxu1 %v2065_v35  ;;  %2463 = vmatprep.subr.bf16.mxu0 %v1794_v36  ;;  %v1652_v35 = vunpack.c.h.s8.bf16 %v948_v31  ;;  %v819_v36 = vld [vmem:[%s9591_s10 + $0x190] sm:$0xff] }
 0x150   : > { %2504 = vmatprep.subr.bf16.mxu1 %v2050_v37  ;;  %v947_v37 = vld [vmem:[%s9591_s10 + $0x590] sm:$0xff]  ;;  %v1395_v40 = vunpack.c.h.s8.bf16 %v819_v36  ;;  %v1379_v46 = vunpack.c.l.s8.bf16 %v819_v36  ;;  %v996_v36 = vld [vmem:[%s9591_s10 + $0x718] sm:$0xff] }
 0x152   : > { %2464 = vmatpush1.bf16.msra.mxu0 %v1793_v41  ;;  %v1651_v41 = vunpack.c.h.s8.bf16 %v947_v37 }
 0x153   : > { %2505 = vmatpush1.bf16.msra.mxu1 %v2049_v42  ;;  %2465 = vmatprep.subr.bf16.mxu0 %v2034_v43  ;;  %v1380_v42 = vunpack.c.l.s8.bf16 %v820_v30  ;;  %v1636_v43 = vunpack.c.l.s8.bf16 %v948_v31  ;;  %v1011_v30 = vld [vmem:[%s9591_s10 + $0x790] sm:$0xff] }
 0x154   : > { %2506 = vmatprep.subr.bf16.mxu1 %v2290_v44  ;;  %v804_v44 = vld [vmem:[%s9591_s10 + $0x118] sm:$0xff] }
 0x156   : > { %2466 = vmatpush2.bf16.msra.mxu0 %v2033_v47  ;;  %v1635_v47 = vunpack.c.l.s8.bf16 %v947_v37 }
 0x157   : > { %2507 = vmatpush2.bf16.msra.mxu1 %v2289_v48  ;;  %2467 = vmatprep.subr.bf16.mxu0 %v2018_v52  ;;  %v1364_v48 = vunpack.c.h.s8.bf16 %v804_v44  ;;  %v1620_v52 = vunpack.c.h.s8.bf16 %v932_v45 }
 0x158   : > { %2508 = vmatprep.subr.bf16.mxu1 %v2274_v53  ;;  %v803_v53 = vld [vmem:[%s9591_s10 + $0x110] sm:$0xff] }
 0x159   : > { %v1363_v55 = vunpack.c.h.s8.bf16 %v803_v53  ;;  %v1347_v63 = vunpack.c.l.s8.bf16 %v803_v53  ;;  %v980_v53 = vld [vmem:[%s9591_s10 + $0x698] sm:$0xff] }
 0x15a   : > { %2468 = vmatpush2.bf16.msra.mxu0 %v2017_v56  ;;  %v1619_v56 = vunpack.c.h.s8.bf16 %v931_v54 }
 0x15b   : > { %2509 = vmatpush2.bf16.msra.mxu1 %v2273_v57  ;;  %2469 = vmatprep.subr.bf16.mxu0 %v2002_v50  ;;  %v1348_v57 = vunpack.c.l.s8.bf16 %v804_v44  ;;  %v1604_v50 = vunpack.c.l.s8.bf16 %v932_v45  ;;  %v995_v44 = vld [vmem:[%s9591_s10 + $0x710] sm:$0xff] }
 0x15c   : > { %2510 = vmatprep.subr.bf16.mxu1 %v2258_v61  ;;  %v788_v61 = vld [vmem:[%s9591_s10 + $0x98] sm:$0xff] }
 0x15e   : > { %2470 = vmatpush2.bf16.msra.mxu0 %v2001_v0  ;;  %v1603_v0 = vunpack.c.l.s8.bf16 %v931_v54 }
 0x15f   : > { %2511 = vmatpush2.bf16.msra.mxu1 %v2257_v2  ;;  %2471 = vmatprep.subr.bf16.mxu0 %v1986_v3  ;;  %v1332_v2 = vunpack.c.h.s8.bf16 %v788_v61  ;;  %v1588_v3 = vunpack.c.h.s8.bf16 %v916_v62 }
 0x160   : > { %2512 = vmatprep.subr.bf16.mxu1 %v2242_v4  ;;  %v787_v4 = vld [vmem:[%s9591_s10 + $0x90] sm:$0xff] }
 0x161   : > { %v1331_v6 = vunpack.c.h.s8.bf16 %v787_v4  ;;  %v1315_v12 = vunpack.c.l.s8.bf16 %v787_v4  ;;  %v964_v4 = vld [vmem:[%s9591_s10 + $0x618] sm:$0xff] }
 0x162   : > { %2472 = vmatpush2.bf16.msra.mxu0 %v1985_v7  ;;  %v1587_v7 = vunpack.c.h.s8.bf16 %v915_v5 }
 0x163   : > { %2513 = vmatpush2.bf16.msra.mxu1 %v2241_v8  ;;  %2473 = vmatprep.subr.bf16.mxu0 %v1970_v9  ;;  %v1316_v8 = vunpack.c.l.s8.bf16 %v788_v61  ;;  %v1572_v9 = vunpack.c.l.s8.bf16 %v916_v62  ;;  %v979_v61 = vld [vmem:[%s9591_s10 + $0x690] sm:$0xff] }
 0x164   : > { %2514 = vmatprep.subr.bf16.mxu1 %v2226_v10  ;;  %v772_v10 = vld [vmem:[%s9591_s10 + $0x18] sm:$0xff] }
 0x166   : > { %2474 = vmatpush2.bf16.msra.mxu0 %v1969_v13  ;;  %v1571_v13 = vunpack.c.l.s8.bf16 %v915_v5 }
 0x167   : > { %2515 = vmatpush2.bf16.msra.mxu1 %v2225_v14  ;;  %2475 = vmatprep.subr.bf16.mxu0 %v1954_v15  ;;  %v1300_v14 = vunpack.c.h.s8.bf16 %v772_v10  ;;  %v1556_v15 = vunpack.c.h.s8.bf16 %v900_v11 }
 0x168   : > { %2516 = vmatprep.subr.bf16.mxu1 %v2210_v17  ;;  %v771_v17 = vld [vmem:[%s9591_s10 + $0x10] sm:$0xff] }
 0x169   : > { %v1299_v19 = vunpack.c.h.s8.bf16 %v771_v17  ;;  %v1283_v25 = vunpack.c.l.s8.bf16 %v771_v17  ;;  %v1204_v17 = vld [vmem:[%s9591_s10 + $0xd98] sm:$0xff] }
 0x16a   : > { %2476 = vmatpush2.bf16.msra.mxu0 %v1953_v20  ;;  %v1555_v20 = vunpack.c.h.s8.bf16 %v899_v18 }
 0x16b   : > { %2517 = vmatpush2.bf16.msra.mxu1 %v2209_v21  ;;  %2477 = vmatprep.subr.bf16.mxu0 %v1938_v22  ;;  %v1284_v21 = vunpack.c.l.s8.bf16 %v772_v10  ;;  %v1540_v22 = vunpack.c.l.s8.bf16 %v900_v11  ;;  %v963_v10 = vld [vmem:[%s9591_s10 + $0x610] sm:$0xff] }
 0x16c   : > { %2518 = vmatprep.subr.bf16.mxu1 %v2194_v23  ;;  %v884_v23 = vld [vmem:[%s9591_s10 + $0x398] sm:$0xff] }
 0x16e   : > { %2478 = vmatpush2.bf16.msra.mxu0 %v1937_v26  ;;  %v1539_v26 = vunpack.c.l.s8.bf16 %v899_v18 }
 0x16f   : > { %2519 = vmatpush2.bf16.msra.mxu1 %v2193_v27  ;;  %2479 = vmatprep.subr.bf16.mxu0 %v1922_v28  ;;  %v1524_v27 = vunpack.c.h.s8.bf16 %v884_v23  ;;  %v1780_v28 = vunpack.c.h.s8.bf16 %v1012_v24 }
 0x170   : > { %2520 = vmatprep.subr.bf16.mxu1 %v2178_v29  ;;  %v883_v29 = vld [vmem:[%s9591_s10 + $0x390] sm:$0xff] }
 0x171   : > { %v1523_v31 = vunpack.c.h.s8.bf16 %v883_v29  ;;  %v1507_v37 = vunpack.c.l.s8.bf16 %v883_v29  ;;  %v1188_v29 = vld [vmem:[%s9591_s10 + $0xd18] sm:$0xff] }
 0x172   : > { %2480 = vmatpush2.bf16.msra.mxu0 %v1921_v32  ;;  %v1779_v32 = vunpack.c.h.s8.bf16 %v1011_v30 }
 0x173   : > { %2521 = vmatpush2.bf16.msra.mxu1 %v2177_v33  ;;  %2531 = vmatprep.subr.bf16.mxu0 %v1396_v34  ;;  %v1508_v33 = vunpack.c.l.s8.bf16 %v884_v23  ;;  %v1764_v34 = vunpack.c.l.s8.bf16 %v1012_v24  ;;  %v1203_v23 = vld [vmem:[%s9591_s10 + $0xd90] sm:$0xff] }
 0x174   : > { %2572 = vmatprep.subr.bf16.mxu1 %v1652_v35  ;;  %v868_v35 = vld [vmem:[%s9591_s10 + $0x318] sm:$0xff] }
 0x175   : > { %2482 = vmatmul.mubr.bf16.vlgmr.msra.gmra.mxu0 %v9710_v16 }
 0x176   : > { %2523 = vmatmul.mubr.bf16.vlgmr.msra.gmra.mxu1 %v9779_v39  ;;  %2532 = vmatpush1.bf16.msra.mxu0 %v1395_v40  ;;  %v1763_v40 = vunpack.c.l.s8.bf16 %v1011_v30 }
 0x177   : > { %2573 = vmatpush1.bf16.msra.mxu1 %v1651_v41  ;;  %2533 = vmatprep.subr.bf16.mxu0 %v1380_v42  ;;  %v1492_v41 = vunpack.c.h.s8.bf16 %v868_v35  ;;  %v1748_v42 = vunpack.c.h.s8.bf16 %v996_v36 }
 0x178   : > { %2574 = vmatprep.subr.bf16.mxu1 %v1636_v43  ;;  %2563 = vmatprep.mubr.bf16.mxu0 %v9691_v58  ;;  %v867_v43 = vld [vmem:[%s9591_s10 + $0x310] sm:$0xff] }
 0x179   : > { %2604 = vmatprep.mubr.bf16.mxu1 %v9697_v1  ;;  %v1491_v45 = vunpack.c.h.s8.bf16 %v867_v43  ;;  %v1475_v54 = vunpack.c.l.s8.bf16 %v867_v43  ;;  %v1172_v43 = vld [vmem:[%s9591_s10 + $0xc98] sm:$0xff] }
 0x17a   : > { %2534 = vmatpush1.bf16.msra.mxu0 %v1379_v46  ;;  %v1747_v46 = vunpack.c.h.s8.bf16 %v995_v44 }
 0x17b   : > { %2575 = vmatpush1.bf16.msra.mxu1 %v1635_v47  ;;  %2535 = vmatprep.subr.bf16.mxu0 %v1364_v48  ;;  %v1476_v47 = vunpack.c.l.s8.bf16 %v868_v35  ;;  %v1732_v48 = vunpack.c.l.s8.bf16 %v996_v36  ;;  %v1187_v35 = vld [vmem:[%s9591_s10 + $0xd10] sm:$0xff] }
 0x17c   : > { %2576 = vmatprep.subr.bf16.mxu1 %v1620_v52  ;;  %v852_v52 = vld [vmem:[%s9591_s10 + $0x298] sm:$0xff] }
 0x17e   : > { %2536 = vmatpush1.bf16.msra.mxu0 %v1363_v55  ;;  %v1731_v55 = vunpack.c.l.s8.bf16 %v995_v44 }
 0x17f   : > { %2577 = vmatpush1.bf16.msra.mxu1 %v1619_v56  ;;  %2537 = vmatprep.subr.bf16.mxu0 %v1348_v57  ;;  %v1460_v56 = vunpack.c.h.s8.bf16 %v852_v52  ;;  %v1716_v57 = vunpack.c.h.s8.bf16 %v980_v53 }
 0x180   : > { %2578 = vmatprep.subr.bf16.mxu1 %v1604_v50  ;;  %v851_v50 = vld [vmem:[%s9591_s10 + $0x290] sm:$0xff] }
 0x181   : > { %v1459_v62 = vunpack.c.h.s8.bf16 %v851_v50  ;;  %v1443_v5 = vunpack.c.l.s8.bf16 %v851_v50  ;;  %v1156_v50 = vld [vmem:[%s9591_s10 + $0xc18] sm:$0xff] }
 0x182   : > { %2538 = vmatpush1.bf16.msra.mxu0 %v1347_v63  ;;  %v1715_v63 = vunpack.c.h.s8.bf16 %v979_v61 }
 0x183   : > { %2579 = vmatpush1.bf16.msra.mxu1 %v1603_v0  ;;  %2539 = vmatprep.subr.bf16.mxu0 %v1332_v2  ;;  %v1444_v0 = vunpack.c.l.s8.bf16 %v852_v52  ;;  %v1700_v2 = vunpack.c.l.s8.bf16 %v980_v53  ;;  %v1171_v52 = vld [vmem:[%s9591_s10 + $0xc90] sm:$0xff] }
 0x184   : > { %2580 = vmatprep.subr.bf16.mxu1 %v1588_v3  ;;  %v836_v3 = vld [vmem:[%s9591_s10 + $0x218] sm:$0xff] }
 0x186   : > { %2540 = vmatpush1.bf16.msra.mxu0 %v1331_v6  ;;  %v1699_v6 = vunpack.c.l.s8.bf16 %v979_v61 }
 0x187   : > { %2581 = vmatpush1.bf16.msra.mxu1 %v1587_v7  ;;  %2541 = vmatprep.subr.bf16.mxu0 %v1316_v8  ;;  %v1428_v7 = vunpack.c.h.s8.bf16 %v836_v3  ;;  %v1684_v8 = vunpack.c.h.s8.bf16 %v964_v4 }
 0x188   : > { %2582 = vmatprep.subr.bf16.mxu1 %v1572_v9  ;;  %v835_v9 = vld [vmem:[%s9591_s10 + $0x210] sm:$0xff] }
 0x189   : > { %v1427_v11 = vunpack.c.h.s8.bf16 %v835_v9  ;;  %v1411_v18 = vunpack.c.l.s8.bf16 %v835_v9  ;;  %v1268_v9 = vld [vmem:[%s9591_s10 + $0xf98] sm:$0xff] }
 0x18a   : > { %2542 = vmatpush1.bf16.msra.mxu0 %v1315_v12  ;;  %v1683_v12 = vunpack.c.h.s8.bf16 %v963_v10 }
 0x18b   : > { %2583 = vmatpush1.bf16.msra.mxu1 %v1571_v13  ;;  %2543 = vmatprep.subr.bf16.mxu0 %v1300_v14  ;;  %v1412_v13 = vunpack.c.l.s8.bf16 %v836_v3  ;;  %v1668_v14 = vunpack.c.l.s8.bf16 %v964_v4  ;;  %v1155_v3 = vld [vmem:[%s9591_s10 + $0xc10] sm:$0xff] }
 0x18c   : > { %2584 = vmatprep.subr.bf16.mxu1 %v1556_v15  ;;  %v1076_v15 = vld [vmem:[%s9591_s10 + $0x998] sm:$0xff] }
 0x18e   : > { %2544 = vmatpush1.bf16.msra.mxu0 %v1299_v19  ;;  %v1667_v19 = vunpack.c.l.s8.bf16 %v963_v10 }
 0x18f   : > { %2585 = vmatpush1.bf16.msra.mxu1 %v1555_v20  ;;  %2545 = vmatprep.subr.bf16.mxu0 %v1284_v21  ;;  %v1908_v20 = vunpack.c.h.s8.bf16 %v1076_v15  ;;  %v2164_v21 = vunpack.c.h.s8.bf16 %v1204_v17 }
 0x190   : > { %2586 = vmatprep.subr.bf16.mxu1 %v1540_v22  ;;  %v1075_v22 = vld [vmem:[%s9591_s10 + $0x990] sm:$0xff] }
 0x191   : > { %v1907_v24 = vunpack.c.h.s8.bf16 %v1075_v22  ;;  %v1891_v30 = vunpack.c.l.s8.bf16 %v1075_v22  ;;  %v1252_v22 = vld [vmem:[%s9591_s10 + $0xf18] sm:$0xff] }
 0x192   : > { %2546 = vmatpush1.bf16.msra.mxu0 %v1283_v25  ;;  %v2163_v25 = vunpack.c.h.s8.bf16 %v1203_v23 }
 0x193   : > { %2587 = vmatpush1.bf16.msra.mxu1 %v1539_v26  ;;  %2547 = vmatprep.subr.bf16.mxu0 %v1524_v27  ;;  %v1892_v26 = vunpack.c.l.s8.bf16 %v1076_v15  ;;  %v2148_v27 = vunpack.c.l.s8.bf16 %v1204_v17  ;;  %v1267_v15 = vld [vmem:[%s9591_s10 + $0xf90] sm:$0xff] }
 0x194   : > { %2588 = vmatprep.subr.bf16.mxu1 %v1780_v28  ;;  %v1060_v28 = vld [vmem:[%s9591_s10 + $0x918] sm:$0xff] }
 0x196   : > { %2548 = vmatpush2.bf16.msra.mxu0 %v1523_v31  ;;  %v2147_v31 = vunpack.c.l.s8.bf16 %v1203_v23 }
 0x197   : > { %2589 = vmatpush2.bf16.msra.mxu1 %v1779_v32  ;;  %2549 = vmatprep.subr.bf16.mxu0 %v1508_v33  ;;  %v1876_v32 = vunpack.c.h.s8.bf16 %v1060_v28  ;;  %v2132_v33 = vunpack.c.h.s8.bf16 %v1188_v29 }
 0x198   : > { %2590 = vmatprep.subr.bf16.mxu1 %v1764_v34  ;;  %v1059_v34 = vld [vmem:[%s9591_s10 + $0x910] sm:$0xff] }
 0x199   : > { %v1875_v36 = vunpack.c.h.s8.bf16 %v1059_v34  ;;  %v1859_v44 = vunpack.c.l.s8.bf16 %v1059_v34  ;;  %v1236_v34 = vld [vmem:[%s9591_s10 + $0xe98] sm:$0xff] }
 0x19a   : > { %2550 = vmatpush2.bf16.msra.mxu0 %v1507_v37  ;;  %v2131_v37 = vunpack.c.h.s8.bf16 %v1187_v35 }
 0x19b   : > { %2591 = vmatpush2.bf16.msra.mxu1 %v1763_v40  ;;  %2551 = vmatprep.subr.bf16.mxu0 %v1492_v41  ;;  %v1860_v40 = vunpack.c.l.s8.bf16 %v1060_v28  ;;  %v2116_v41 = vunpack.c.l.s8.bf16 %v1188_v29  ;;  %v1251_v28 = vld [vmem:[%s9591_s10 + $0xf10] sm:$0xff] }
 0x19c   : > { %2592 = vmatprep.subr.bf16.mxu1 %v1748_v42  ;;  %v1044_v42 = vld [vmem:[%s9591_s10 + $0x898] sm:$0xff] }
 0x19e   : > { %2552 = vmatpush2.bf16.msra.mxu0 %v1491_v45  ;;  %v2115_v45 = vunpack.c.l.s8.bf16 %v1187_v35 }
 0x19f   : > { %2593 = vmatpush2.bf16.msra.mxu1 %v1747_v46  ;;  %2553 = vmatprep.subr.bf16.mxu0 %v1476_v47  ;;  %v1844_v46 = vunpack.c.h.s8.bf16 %v1044_v42  ;;  %v2100_v47 = vunpack.c.h.s8.bf16 %v1172_v43 }
 0x1a0   : > { %2594 = vmatprep.subr.bf16.mxu1 %v1732_v48  ;;  %v1043_v48 = vld [vmem:[%s9591_s10 + $0x890] sm:$0xff] }
 0x1a1   : > { %v1843_v53 = vunpack.c.h.s8.bf16 %v1043_v48  ;;  %v1827_v61 = vunpack.c.l.s8.bf16 %v1043_v48  ;;  %v1220_v48 = vld [vmem:[%s9591_s10 + $0xe18] sm:$0xff] }
 0x1a2   : > { %2554 = vmatpush2.bf16.msra.mxu0 %v1475_v54  ;;  %v2099_v54 = vunpack.c.h.s8.bf16 %v1171_v52 }
 0x1a3   : > { %2595 = vmatpush2.bf16.msra.mxu1 %v1731_v55  ;;  %2555 = vmatprep.subr.bf16.mxu0 %v1460_v56  ;;  %v1828_v55 = vunpack.c.l.s8.bf16 %v1044_v42  ;;  %v2084_v56 = vunpack.c.l.s8.bf16 %v1172_v43  ;;  %v1235_v42 = vld [vmem:[%s9591_s10 + $0xe90] sm:$0xff] }
 0x1a4   : > { %2596 = vmatprep.subr.bf16.mxu1 %v1716_v57  ;;  %v1028_v57 = vld [vmem:[%s9591_s10 + $0x818] sm:$0xff] }
 0x1a6   : > { %2556 = vmatpush2.bf16.msra.mxu0 %v1459_v62  ;;  %v2083_v62 = vunpack.c.l.s8.bf16 %v1171_v52 }
 0x1a7   : > { %2597 = vmatpush2.bf16.msra.mxu1 %v1715_v63  ;;  %2557 = vmatprep.subr.bf16.mxu0 %v1444_v0  ;;  %v1812_v63 = vunpack.c.h.s8.bf16 %v1028_v57  ;;  %v2068_v0 = vunpack.c.h.s8.bf16 %v1156_v50 }
 0x1a8   : > { %2598 = vmatprep.subr.bf16.mxu1 %v1700_v2  ;;  %v1027_v2 = vld [vmem:[%s9591_s10 + $0x810] sm:$0xff] }
 0x1a9   : > { %v1811_v4 = vunpack.c.h.s8.bf16 %v1027_v2  ;;  %v1795_v10 = vunpack.c.l.s8.bf16 %v1027_v2  ;;  %v950_v2 = vld [vmem:[%s9591_s10 + $0x5a8] sm:$0xff] }
 0x1aa   : > { %2558 = vmatpush2.bf16.msra.mxu0 %v1443_v5  ;;  %v2067_v5 = vunpack.c.h.s8.bf16 %v1155_v3 }
 0x1ab   : > { %2599 = vmatpush2.bf16.msra.mxu1 %v1699_v6  ;;  %2559 = vmatprep.subr.bf16.mxu0 %v1428_v7  ;;  %v1796_v6 = vunpack.c.l.s8.bf16 %v1028_v57  ;;  %v2052_v7 = vunpack.c.l.s8.bf16 %v1156_v50  ;;  %v1219_v57 = vld [vmem:[%s9591_s10 + $0xe10] sm:$0xff] }
 0x1ac   : > { %2600 = vmatprep.subr.bf16.mxu1 %v1684_v8  ;;  %v1140_v8 = vld [vmem:[%s9591_s10 + $0xb98] sm:$0xff] }
 0x1ae   : > { %2560 = vmatpush2.bf16.msra.mxu0 %v1427_v11  ;;  %v2051_v11 = vunpack.c.l.s8.bf16 %v1155_v3 }
 0x1af   : > { %2601 = vmatpush2.bf16.msra.mxu1 %v1683_v12  ;;  %2561 = vmatprep.subr.bf16.mxu0 %v1412_v13  ;;  %v2036_v12 = vunpack.c.h.s8.bf16 %v1140_v8  ;;  %v2292_v13 = vunpack.c.h.s8.bf16 %v1268_v9 }
 0x1b0   : > { %2602 = vmatprep.subr.bf16.mxu1 %v1668_v14  ;;  %v1139_v14 = vld [vmem:[%s9591_s10 + $0xb90] sm:$0xff] }
 0x1b1   : > { %v2035_v17 = vunpack.c.h.s8.bf16 %v1139_v14  ;;  %v2019_v23 = vunpack.c.l.s8.bf16 %v1139_v14  ;;  %v934_v14 = vld [vmem:[%s9591_s10 + $0x528] sm:$0xff] }
 0x1b2   : > { %2562 = vmatpush2.bf16.msra.mxu0 %v1411_v18  ;;  %v2291_v18 = vunpack.c.h.s8.bf16 %v1267_v15 }
 0x1b3   : > { %2603 = vmatpush2.bf16.msra.mxu1 %v1667_v19  ;;  %2613 = vmatprep.subr.bf16.mxu0 %v1908_v20  ;;  %v2020_v19 = vunpack.c.l.s8.bf16 %v1140_v8  ;;  %v2276_v20 = vunpack.c.l.s8.bf16 %v1268_v9  ;;  %v949_v8 = vld [vmem:[%s9591_s10 + $0x5a0] sm:$0xff] }
 0x1b4   : > { %2654 = vmatprep.subr.bf16.mxu1 %v2164_v21  ;;  %v1124_v21 = vld [vmem:[%s9591_s10 + $0xb18] sm:$0xff] }
 0x1b5   : > { %2564 = vmatmul.mubr.bf16.vlgmr.msra.gmra.mxu0 %v9726_v51 }
 0x1b6   : > { %2605 = vmatmul.mubr.bf16.vlgmr.msra.gmra.mxu1 %v9735_v60  ;;  %2614 = vmatpush1.bf16.msra.mxu0 %v1907_v24  ;;  %v2275_v24 = vunpack.c.l.s8.bf16 %v1267_v15 }
 0x1b7   : > { %2655 = vmatpush1.bf16.msra.mxu1 %v2163_v25  ;;  %2615 = vmatprep.subr.bf16.mxu0 %v1892_v26  ;;  %v2004_v25 = vunpack.c.h.s8.bf16 %v1124_v21  ;;  %v2260_v26 = vunpack.c.h.s8.bf16 %v1252_v22 }
 0x1b8   : > { %2656 = vmatprep.subr.bf16.mxu1 %v2148_v27  ;;  %2645 = vmatprep.mubr.bf16.mxu0 %v9731_v59  ;;  %v1123_v27 = vld [vmem:[%s9591_s10 + $0xb10] sm:$0xff] }
 0x1b9   : > { %2686 = vmatprep.mubr.bf16.mxu1 %v9741_v49  ;;  %v2003_v29 = vunpack.c.h.s8.bf16 %v1123_v27  ;;  %v1987_v35 = vunpack.c.l.s8.bf16 %v1123_v27 }
 0x1ba   : > { %2616 = vmatpush1.bf16.msra.mxu0 %v1891_v30  ;;  %v2259_v30 = vunpack.c.h.s8.bf16 %v1251_v28 }
 0x1bb   : > { %2657 = vmatpush1.bf16.msra.mxu1 %v2147_v31  ;;  %2617 = vmatprep.subr.bf16.mxu0 %v1876_v32  ;;  %v1988_v31 = vunpack.c.l.s8.bf16 %v1124_v21  ;;  %v2244_v32 = vunpack.c.l.s8.bf16 %v1252_v22 }
 0x1bc   : > { %2658 = vmatprep.subr.bf16.mxu1 %v2132_v33  ;;  %v1108_v33 = vld [vmem:[%s9591_s10 + $0xa98] sm:$0xff] }
 0x1be   : > { %2618 = vmatpush1.bf16.msra.mxu0 %v1875_v36  ;;  %v2243_v36 = vunpack.c.l.s8.bf16 %v1251_v28 }
 0x1bf   : > { %2659 = vmatpush1.bf16.msra.mxu1 %v2131_v37  ;;  %2619 = vmatprep.subr.bf16.mxu0 %v1860_v40  ;;  %v1972_v37 = vunpack.c.h.s8.bf16 %v1108_v33  ;;  %v2228_v40 = vunpack.c.h.s8.bf16 %v1236_v34 }
 0x1c0   : > { %2660 = vmatprep.subr.bf16.mxu1 %v2116_v41  ;;  %v1107_v41 = vld [vmem:[%s9591_s10 + $0xa90] sm:$0xff] }
 0x1c1   : > { %v1971_v43 = vunpack.c.h.s8.bf16 %v1107_v41  ;;  %v1955_v52 = vunpack.c.l.s8.bf16 %v1107_v41 }
 0x1c2   : > { %2620 = vmatpush1.bf16.msra.mxu0 %v1859_v44  ;;  %v2227_v44 = vunpack.c.h.s8.bf16 %v1235_v42 }
 0x1c3   : > { %2661 = vmatpush1.bf16.msra.mxu1 %v2115_v45  ;;  %2621 = vmatprep.subr.bf16.mxu0 %v1844_v46  ;;  %v1956_v45 = vunpack.c.l.s8.bf16 %v1108_v33  ;;  %v2212_v46 = vunpack.c.l.s8.bf16 %v1236_v34 }
 0x1c4   : > { %2662 = vmatprep.subr.bf16.mxu1 %v2100_v47  ;;  %v1092_v47 = vld [vmem:[%s9591_s10 + $0xa18] sm:$0xff] }
 0x1c6   : > { %2622 = vmatpush1.bf16.msra.mxu0 %v1843_v53  ;;  %v2211_v53 = vunpack.c.l.s8.bf16 %v1235_v42 }
 0x1c7   : > { %2663 = vmatpush1.bf16.msra.mxu1 %v2099_v54  ;;  %2623 = vmatprep.subr.bf16.mxu0 %v1828_v55  ;;  %v1940_v54 = vunpack.c.h.s8.bf16 %v1092_v47  ;;  %v2196_v55 = vunpack.c.h.s8.bf16 %v1220_v48 }
 0x1c8   : > { %2664 = vmatprep.subr.bf16.mxu1 %v2084_v56  ;;  %v1091_v56 = vld [vmem:[%s9591_s10 + $0xa10] sm:$0xff] }
 0x1c9   : > { %v1939_v50 = vunpack.c.h.s8.bf16 %v1091_v56  ;;  %v1923_v3 = vunpack.c.l.s8.bf16 %v1091_v56 }
 0x1ca   : > { %2624 = vmatpush1.bf16.msra.mxu0 %v1827_v61  ;;  %v2195_v61 = vunpack.c.h.s8.bf16 %v1219_v57 }
 0x1cb   : > { %2665 = vmatpush1.bf16.msra.mxu1 %v2083_v62  ;;  %2625 = vmatprep.subr.bf16.mxu0 %v1812_v63  ;;  %v1924_v62 = vunpack.c.l.s8.bf16 %v1092_v47  ;;  %v2180_v63 = vunpack.c.l.s8.bf16 %v1220_v48 }
 0x1cc   : > { %2666 = vmatprep.subr.bf16.mxu1 %v2068_v0  ;;  %v822_v0 = vld [vmem:[%s9591_s10 + $0x1a8] sm:$0xff] }
 0x1ce   : > { %2626 = vmatpush1.bf16.msra.mxu0 %v1811_v4  ;;  %v2179_v4 = vunpack.c.l.s8.bf16 %v1219_v57 }
 0x1cf   : > { %2667 = vmatpush1.bf16.msra.mxu1 %v2067_v5  ;;  %2627 = vmatprep.subr.bf16.mxu0 %v1796_v6  ;;  %v1398_v5 = vunpack.c.h.s8.bf16 %v822_v0  ;;  %v1654_v6 = vunpack.c.h.s8.bf16 %v950_v2 }
 0x1d0   : > { %2668 = vmatprep.subr.bf16.mxu1 %v2052_v7  ;;  %v821_v7 = vld [vmem:[%s9591_s10 + $0x1a0] sm:$0xff] }
 0x1d1   : > { %v1397_v9 = vunpack.c.h.s8.bf16 %v821_v7 }
 0x1d2   : > { %2628 = vmatpush1.bf16.msra.mxu0 %v1795_v10  ;;  %v1653_v10 = vunpack.c.h.s8.bf16 %v949_v8 }
 0x1d3   : > { %2669 = vmatpush1.bf16.msra.mxu1 %v2051_v11  ;;  %2629 = vmatprep.subr.bf16.mxu0 %v2036_v12  ;;  %v1382_v11 = vunpack.c.l.s8.bf16 %v822_v0  ;;  %v1638_v12 = vunpack.c.l.s8.bf16 %v950_v2 }
 0x1d4   : > { %2670 = vmatprep.subr.bf16.mxu1 %v2292_v13  ;;  %v806_v13 = vld [vmem:[%s9591_s10 + $0x128] sm:$0xff] }
 0x1d5   : > { %v1350_v34 = vunpack.c.l.s8.bf16 %v806_v13 }
 0x1d6   : > { %2630 = vmatpush2.bf16.msra.mxu0 %v2035_v17 }
 0x1d7   : > { %2671 = vmatpush2.bf16.msra.mxu1 %v2291_v18  ;;  %2631 = vmatprep.subr.bf16.mxu0 %v2020_v19  ;;  %v1381_v19 = vunpack.c.l.s8.bf16 %v821_v7 }
 0x1d8   : > { %2672 = vmatprep.subr.bf16.mxu1 %v2276_v20  ;;  %v1637_v20 = vunpack.c.l.s8.bf16 %v949_v8 }
 0x1da   : > { %2632 = vmatpush2.bf16.msra.mxu0 %v2019_v23  ;;  %v1366_v23 = vunpack.c.h.s8.bf16 %v806_v13 }
 0x1db   : > { %2673 = vmatpush2.bf16.msra.mxu1 %v2275_v24  ;;  %2633 = vmatprep.subr.bf16.mxu0 %v2004_v25  ;;  %v1622_v24 = vunpack.c.h.s8.bf16 %v934_v14  ;;  %v805_v25 = vld [vmem:[%s9591_s10 + $0x120] sm:$0xff] }
 0x1dc   : > { %2674 = vmatprep.subr.bf16.mxu1 %v2260_v26  ;;  %v933_v26 = vld [vmem:[%s9591_s10 + $0x520] sm:$0xff] }
 0x1dd   : > { %v1605_v41 = vunpack.c.l.s8.bf16 %v933_v26 }
 0x1de   : > { %2634 = vmatpush2.bf16.msra.mxu0 %v2003_v29 }
 0x1df   : > { %2675 = vmatpush2.bf16.msra.mxu1 %v2259_v30  ;;  %2635 = vmatprep.subr.bf16.mxu0 %v1988_v31  ;;  %v1365_v30 = vunpack.c.h.s8.bf16 %v805_v25  ;;  %v1621_v31 = vunpack.c.h.s8.bf16 %v933_v26 }
 0x1e0   : > { %2676 = vmatprep.subr.bf16.mxu1 %v2244_v32 }
 0x1e2   : > { %2636 = vmatpush2.bf16.msra.mxu0 %v1987_v35  ;;  %v1606_v35 = vunpack.c.l.s8.bf16 %v934_v14 }
 0x1e3   : > { %2677 = vmatpush2.bf16.msra.mxu1 %v2243_v36  ;;  %2637 = vmatprep.subr.bf16.mxu0 %v1972_v37  ;;  %v790_v36 = vld [vmem:[%s9591_s10 + $0xa8] sm:$0xff] }
 0x1e4   : > { %2678 = vmatprep.subr.bf16.mxu1 %v2228_v40  ;;  %v918_v37 = vld [vmem:[%s9591_s10 + $0x4a8] sm:$0xff]  ;;  %v1349_v40 = vunpack.c.l.s8.bf16 %v805_v25  ;;  %v1334_v42 = vunpack.c.h.s8.bf16 %v790_v36  ;;  %v1318_v48 = vunpack.c.l.s8.bf16 %v790_v36  ;;  %v997_v25 = vld [vmem:[%s9591_s10 + $0x720] sm:$0xff] }
 0x1e6   : > { %2638 = vmatpush2.bf16.msra.mxu0 %v1971_v43  ;;  %v1590_v43 = vunpack.c.h.s8.bf16 %v918_v37 }
 0x1e7   : > { %2679 = vmatpush2.bf16.msra.mxu1 %v2227_v44  ;;  %2639 = vmatprep.subr.bf16.mxu0 %v1956_v45  ;;  %v789_v44 = vld [vmem:[%s9591_s10 + $0xa0] sm:$0xff] }
 0x1e8   : > { %2680 = vmatprep.subr.bf16.mxu1 %v2212_v46  ;;  %v917_v45 = vld [vmem:[%s9591_s10 + $0x4a0] sm:$0xff]  ;;  %v1333_v46 = vunpack.c.h.s8.bf16 %v789_v44 }
 0x1e9   : > { %v1589_v47 = vunpack.c.h.s8.bf16 %v917_v45  ;;  %v1573_v56 = vunpack.c.l.s8.bf16 %v917_v45  ;;  %v838_v45 = vld [vmem:[%s9591_s10 + $0x228] sm:$0xff] }
 0x1ea   : > { %2640 = vmatpush2.bf16.msra.mxu0 %v1955_v52  ;;  %v1574_v52 = vunpack.c.l.s8.bf16 %v918_v37  ;;  %v853_v37 = vld [vmem:[%s9591_s10 + $0x2a0] sm:$0xff] }
 0x1eb   : > { %2681 = vmatpush2.bf16.msra.mxu1 %v2211_v53  ;;  %2641 = vmatprep.subr.bf16.mxu0 %v1940_v54  ;;  %v774_v53 = vld [vmem:[%s9591_s10 + $0x28] sm:$0xff] }
 0x1ec   : > { %2682 = vmatprep.subr.bf16.mxu1 %v2196_v55  ;;  %v902_v54 = vld [vmem:[%s9591_s10 + $0x428] sm:$0xff]  ;;  %v1317_v55 = vunpack.c.l.s8.bf16 %v789_v44  ;;  %v1302_v57 = vunpack.c.h.s8.bf16 %v774_v53  ;;  %v1286_v2 = vunpack.c.l.s8.bf16 %v774_v53 }
 0x1ee   : > { %2642 = vmatpush2.bf16.msra.mxu0 %v1939_v50  ;;  %v1558_v50 = vunpack.c.h.s8.bf16 %v902_v54 }
 0x1ef   : > { %2683 = vmatpush2.bf16.msra.mxu1 %v2195_v61  ;;  %2643 = vmatprep.subr.bf16.mxu0 %v1924_v62  ;;  %v773_v61 = vld [vmem:[%s9591_s10 + $0x20] sm:$0xff] }
 0x1f0   : > { %2684 = vmatprep.subr.bf16.mxu1 %v2180_v63  ;;  %v901_v62 = vld [vmem:[%s9591_s10 + $0x420] sm:$0xff]  ;;  %v1301_v63 = vunpack.c.h.s8.bf16 %v773_v61 }
 0x1f1   : > { %v1557_v0 = vunpack.c.h.s8.bf16 %v901_v62  ;;  %v1541_v7 = vunpack.c.l.s8.bf16 %v901_v62  ;;  %v1078_v62 = vld [vmem:[%s9591_s10 + $0x9a8] sm:$0xff] }
 0x1f2   : > { %2644 = vmatpush2.bf16.msra.mxu0 %v1923_v3  ;;  %v1542_v3 = vunpack.c.l.s8.bf16 %v902_v54  ;;  %v837_v54 = vld [vmem:[%s9591_s10 + $0x220] sm:$0xff] }
 0x1f3   : > { %2685 = vmatpush2.bf16.msra.mxu1 %v2179_v4  ;;  %2695 = vmatprep.subr.bf16.mxu0 %v1398_v5  ;;  %v886_v4 = vld [vmem:[%s9591_s10 + $0x3a8] sm:$0xff] }
 0x1f4   : > { %2736 = vmatprep.subr.bf16.mxu1 %v1654_v6  ;;  %v1014_v5 = vld [vmem:[%s9591_s10 + $0x7a8] sm:$0xff]  ;;  %v1285_v6 = vunpack.c.l.s8.bf16 %v773_v61  ;;  %v1526_v8 = vunpack.c.h.s8.bf16 %v886_v4  ;;  %v1510_v14 = vunpack.c.l.s8.bf16 %v886_v4 }
 0x1f5   : > { %v2401_v15 = vpop.f32.mrf.mxu0  ;;  %2646 = vmatmul.mubr.bf16.vlgmr.msra.gmra.mxu0 %v9710_v16 }
 0x1f6   : > { %v2442_v17 = vpop.f32.mrf.mxu1  ;;  %2687 = vmatmul.mubr.bf16.vlgmr.msra.gmra.mxu1 %v9779_v39  ;;  %2696 = vmatpush1.bf16.msra.mxu0 %v1397_v9  ;;  %v1782_v9 = vunpack.c.h.s8.bf16 %v1014_v5 }
 0x1f7   : > { %v9857_v18 = vadd.f32 %v2442_v17, %v2401_v15  ;;  %2737 = vmatpush1.bf16.msra.mxu1 %v1653_v10  ;;  %v2403_v21 = vpop.f32.mrf.mxu0  ;;  %2697 = vmatprep.subr.bf16.mxu0 %v1382_v11  ;;  %v885_v10 = vld [vmem:[%s9591_s10 + $0x3a0] sm:$0xff]  ;;  %v1766_v15 = vunpack.c.l.s8.bf16 %v1014_v5  ;;  %v870_v17 = vld [vmem:[%s9591_s10 + $0x328] sm:$0xff] }
 0x1f8   : > { %v2444_v22 = vpop.f32.mrf.mxu1  ;;  %2738 = vmatprep.subr.bf16.mxu1 %v1638_v12  ;;  %2727 = vmatprep.mubr.bf16.mxu0 %v9691_v58  ;;  %v1013_v11 = vld [vmem:[%s9591_s10 + $0x7a0] sm:$0xff]  ;;  %v1525_v12 = vunpack.c.h.s8.bf16 %v885_v10 }
 0x1f9   : > { %v9861_v27 = vadd.f32 %v2444_v22, %v2403_v21  ;;  %2768 = vmatprep.mubr.bf16.mxu1 %v9697_v1  ;;  %v2405_v28 = vpop.f32.mrf.mxu0  ;;  %v1781_v13 = vunpack.c.h.s8.bf16 %v1013_v11  ;;  %v1765_v21 = vunpack.c.l.s8.bf16 %v1013_v11  ;;  %v1494_v22 = vunpack.c.h.s8.bf16 %v870_v17  ;;  %v1077_v5 = vld [vmem:[%s9591_s10 + $0x9a0] sm:$0xff]  ;;  %v1062_v11 = vld [vmem:[%s9591_s10 + $0x928] sm:$0xff] }
 0x1fa   : > { %v2446_v29 = vpop.f32.mrf.mxu1  ;;  %2698 = vmatpush1.bf16.msra.mxu0 %v1381_v19  ;;  %v998_v19 = vld [vmem:[%s9591_s10 + $0x728] sm:$0xff]  ;;  %v1749_v28 = vunpack.c.h.s8.bf16 %v997_v25 }
 0x1fb   : > { %2739 = vmatpush1.bf16.msra.mxu1 %v1637_v20  ;;  %v2406_v32 = vpop.f32.mrf.mxu0  ;;  %2699 = vmatprep.subr.bf16.mxu0 %v1366_v23  ;;  %v1509_v20 = vunpack.c.l.s8.bf16 %v885_v10  ;;  %v1750_v23 = vunpack.c.h.s8.bf16 %v998_v19  ;;  %v1478_v29 = vunpack.c.l.s8.bf16 %v870_v17  ;;  %v1893_v17 = vunpack.c.l.s8.bf16 %v1077_v5 }
 0x1fc   : > { %v2447_v33 = vpop.f32.mrf.mxu1  ;;  %2740 = vmatprep.subr.bf16.mxu1 %v1622_v24  ;;  %v869_v24 = vld [vmem:[%s9591_s10 + $0x320] sm:$0xff]  ;;  %v982_v32 = vld [vmem:[%s9591_s10 + $0x6a8] sm:$0xff] }
 0x1fd   : > { %v1493_v26 = vunpack.c.h.s8.bf16 %v869_v24  ;;  %v1477_v33 = vunpack.c.l.s8.bf16 %v869_v24  ;;  %v1718_v36 = vunpack.c.h.s8.bf16 %v982_v32  ;;  %v1702_v44 = vunpack.c.l.s8.bf16 %v982_v32  ;;  %v1061_v24 = vld [vmem:[%s9591_s10 + $0x920] sm:$0xff] }
 0x1fe   : > { %2700 = vmatpush1.bf16.msra.mxu0 %v1365_v30  ;;  %v1734_v30 = vunpack.c.l.s8.bf16 %v998_v19 }
 0x1ff   : > { %2741 = vmatpush1.bf16.msra.mxu1 %v1621_v31  ;;  %2701 = vmatprep.subr.bf16.mxu0 %v1350_v34  ;;  %v854_v31 = vld [vmem:[%s9591_s10 + $0x2a8] sm:$0xff]  ;;  %v1733_v34 = vunpack.c.l.s8.bf16 %v997_v25  ;;  %v1189_v25 = vld [vmem:[%s9591_s10 + $0xd20] sm:$0xff] }
 0x200   : > { %2742 = vmatprep.subr.bf16.mxu1 %v1606_v35  ;;  %v1462_v35 = vunpack.c.h.s8.bf16 %v854_v31  ;;  %v2133_v32 = vunpack.c.h.s8.bf16 %v1189_v25 }
 0x202   : > { %2702 = vmatpush1.bf16.msra.mxu0 %v1349_v40  ;;  %v981_v40 = vld [vmem:[%s9591_s10 + $0x6a0] sm:$0xff] }
 0x203   : > { %2743 = vmatpush1.bf16.msra.mxu1 %v1605_v41  ;;  %2703 = vmatprep.subr.bf16.mxu0 %v1334_v42  ;;  %v1461_v41 = vunpack.c.h.s8.bf16 %v853_v37  ;;  %v1717_v42 = vunpack.c.h.s8.bf16 %v981_v40 }
 0x204   : > { %2744 = vmatprep.subr.bf16.mxu1 %v1590_v43  ;;  %v1446_v43 = vunpack.c.l.s8.bf16 %v854_v31  ;;  %v1877_v31 = vunpack.c.h.s8.bf16 %v1061_v24 }
 0x206   : > { %2704 = vmatpush1.bf16.msra.mxu0 %v1333_v46  ;;  %v966_v46 = vld [vmem:[%s9591_s10 + $0x628] sm:$0xff] }
 0x207   : > { %2745 = vmatpush1.bf16.msra.mxu1 %v1589_v47  ;;  %2705 = vmatprep.subr.bf16.mxu0 %v1318_v48  ;;  %v1445_v47 = vunpack.c.l.s8.bf16 %v853_v37  ;;  %v1701_v48 = vunpack.c.l.s8.bf16 %v981_v40  ;;  %v1686_v53 = vunpack.c.h.s8.bf16 %v966_v46  ;;  %v1670_v61 = vunpack.c.l.s8.bf16 %v966_v46  ;;  %v1046_v37 = vld [vmem:[%s9591_s10 + $0x8a8] sm:$0xff]  ;;  %v1173_v46 = vld [vmem:[%s9591_s10 + $0xca0] sm:$0xff] }
 0x208   : > { %2746 = vmatprep.subr.bf16.mxu1 %v1574_v52  ;;  %v1430_v52 = vunpack.c.h.s8.bf16 %v838_v45  ;;  %v1174_v40 = vld [vmem:[%s9591_s10 + $0xca8] sm:$0xff] }
 0x20a   : > { %2706 = vmatpush1.bf16.msra.mxu0 %v1317_v55  ;;  %v965_v55 = vld [vmem:[%s9591_s10 + $0x620] sm:$0xff] }
 0x20b   : > { %2747 = vmatpush1.bf16.msra.mxu1 %v1573_v56  ;;  %2707 = vmatprep.subr.bf16.mxu0 %v1302_v57  ;;  %v1429_v56 = vunpack.c.h.s8.bf16 %v837_v54  ;;  %v1685_v57 = vunpack.c.h.s8.bf16 %v965_v55 }
 0x20c   : > { %2748 = vmatprep.subr.bf16.mxu1 %v1558_v50  ;;  %v1414_v50 = vunpack.c.l.s8.bf16 %v838_v45  ;;  %v1045_v45 = vld [vmem:[%s9591_s10 + $0x8a0] sm:$0xff] }
 0x20e   : > { %2708 = vmatpush1.bf16.msra.mxu0 %v1301_v63  ;;  %v1206_v63 = vld [vmem:[%s9591_s10 + $0xda8] sm:$0xff] }
 0x20f   : > { %2749 = vmatpush1.bf16.msra.mxu1 %v1557_v0  ;;  %2709 = vmatprep.subr.bf16.mxu0 %v1286_v2  ;;  %v1413_v0 = vunpack.c.l.s8.bf16 %v837_v54  ;;  %v1669_v2 = vunpack.c.l.s8.bf16 %v965_v55  ;;  %v2166_v4 = vunpack.c.h.s8.bf16 %v1206_v63  ;;  %v2150_v10 = vunpack.c.l.s8.bf16 %v1206_v63  ;;  %v1030_v54 = vld [vmem:[%s9591_s10 + $0x828] sm:$0xff]  ;;  %v1157_v63 = vld [vmem:[%s9591_s10 + $0xc20] sm:$0xff] }
 0x210   : > { %2750 = vmatprep.subr.bf16.mxu1 %v1542_v3  ;;  %v1910_v3 = vunpack.c.h.s8.bf16 %v1078_v62  ;;  %v1158_v55 = vld [vmem:[%s9591_s10 + $0xc28] sm:$0xff] }
 0x212   : > { %2710 = vmatpush1.bf16.msra.mxu0 %v1285_v6  ;;  %v1205_v6 = vld [vmem:[%s9591_s10 + $0xda0] sm:$0xff] }
 0x213   : > { %2751 = vmatpush1.bf16.msra.mxu1 %v1541_v7  ;;  %2711 = vmatprep.subr.bf16.mxu0 %v1526_v8  ;;  %v1909_v7 = vunpack.c.h.s8.bf16 %v1077_v5  ;;  %v2165_v8 = vunpack.c.h.s8.bf16 %v1205_v6  ;;  %v2149_v19 = vunpack.c.l.s8.bf16 %v1205_v6  ;;  %v1142_v5 = vld [vmem:[%s9591_s10 + $0xba8] sm:$0xff] }
 0x214   : > { %2752 = vmatprep.subr.bf16.mxu1 %v1782_v9  ;;  %v1894_v9 = vunpack.c.l.s8.bf16 %v1078_v62  ;;  %v1029_v62 = vld [vmem:[%s9591_s10 + $0x820] sm:$0xff]  ;;  %v1270_v6 = vld [vmem:[%s9591_s10 + $0xfa8] sm:$0xff] }
 0x216   : > { %2712 = vmatpush2.bf16.msra.mxu0 %v1525_v12  ;;  %v1190_v12 = vld [vmem:[%s9591_s10 + $0xd28] sm:$0xff] }
 0x217   : > { %2753 = vmatpush2.bf16.msra.mxu1 %v1781_v13  ;;  %2713 = vmatprep.subr.bf16.mxu0 %v1510_v14 }
 0x218   : > { %2754 = vmatprep.subr.bf16.mxu1 %v1766_v15 }
 0x21a   : > { %2714 = vmatpush2.bf16.msra.mxu0 %v1509_v20 }
 0x21b   : > { %2755 = vmatpush2.bf16.msra.mxu1 %v1765_v21  ;;  %2715 = vmatprep.subr.bf16.mxu0 %v1494_v22  ;;  %v1878_v22 = vunpack.c.h.s8.bf16 %v1062_v11 }
 0x21c   : > { %2756 = vmatprep.subr.bf16.mxu1 %v1750_v23  ;;  %v2134_v23 = vunpack.c.h.s8.bf16 %v1190_v12 }
 0x21e   : > { %2716 = vmatpush2.bf16.msra.mxu0 %v1493_v26 }
 0x21f   : > { %2757 = vmatpush2.bf16.msra.mxu1 %v1749_v28  ;;  %2717 = vmatprep.subr.bf16.mxu0 %v1478_v29 }
 0x220   : > { %2758 = vmatprep.subr.bf16.mxu1 %v1734_v30 }
 0x222   : > { %2718 = vmatpush2.bf16.msra.mxu0 %v1477_v33 }
 0x223   : > { %2759 = vmatpush2.bf16.msra.mxu1 %v1733_v34  ;;  %2719 = vmatprep.subr.bf16.mxu0 %v1462_v35  ;;  %v2118_v35 = vunpack.c.l.s8.bf16 %v1190_v12  ;;  %v1269_v12 = vld [vmem:[%s9591_s10 + $0xfa0] sm:$0xff] }
 0x224   : > { %2760 = vmatprep.subr.bf16.mxu1 %v1718_v36 }
 0x226   : > { %2720 = vmatpush2.bf16.msra.mxu0 %v1461_v41  ;;  %v1861_v41 = vunpack.c.l.s8.bf16 %v1061_v24 }
 0x227   : > { %2761 = vmatpush2.bf16.msra.mxu1 %v1717_v42  ;;  %2721 = vmatprep.subr.bf16.mxu0 %v1446_v43  ;;  %v2117_v42 = vunpack.c.l.s8.bf16 %v1189_v25  ;;  %v1846_v43 = vunpack.c.h.s8.bf16 %v1046_v37  ;;  %v1125_v25 = vld [vmem:[%s9591_s10 + $0xb20] sm:$0xff] }
 0x228   : > { %2762 = vmatprep.subr.bf16.mxu1 %v1702_v44  ;;  %v2102_v44 = vunpack.c.h.s8.bf16 %v1174_v40 }
 0x22a   : > { %2722 = vmatpush2.bf16.msra.mxu0 %v1445_v47  ;;  %v1845_v47 = vunpack.c.h.s8.bf16 %v1045_v45 }
 0x22b   : > { %2763 = vmatpush2.bf16.msra.mxu1 %v1701_v48  ;;  %2723 = vmatprep.subr.bf16.mxu0 %v1430_v52  ;;  %v2101_v48 = vunpack.c.h.s8.bf16 %v1173_v46  ;;  %v1830_v52 = vunpack.c.l.s8.bf16 %v1046_v37 }
 0x22c   : > { %2764 = vmatprep.subr.bf16.mxu1 %v1686_v53  ;;  %v2086_v53 = vunpack.c.l.s8.bf16 %v1174_v40 }
 0x22e   : > { %2724 = vmatpush2.bf16.msra.mxu0 %v1429_v56  ;;  %v1829_v56 = vunpack.c.l.s8.bf16 %v1045_v45 }
 0x22f   : > { %2765 = vmatpush2.bf16.msra.mxu1 %v1685_v57  ;;  %2725 = vmatprep.subr.bf16.mxu0 %v1414_v50  ;;  %v2085_v57 = vunpack.c.l.s8.bf16 %v1173_v46  ;;  %v1814_v50 = vunpack.c.h.s8.bf16 %v1030_v54 }
 0x230   : > { %2766 = vmatprep.subr.bf16.mxu1 %v1670_v61  ;;  %v2070_v61 = vunpack.c.h.s8.bf16 %v1158_v55 }
 0x232   : > { %2726 = vmatpush2.bf16.msra.mxu0 %v1413_v0  ;;  %v1813_v0 = vunpack.c.h.s8.bf16 %v1029_v62 }
 0x233   : > { %2767 = vmatpush2.bf16.msra.mxu1 %v1669_v2  ;;  %2777 = vmatprep.subr.bf16.mxu0 %v1910_v3  ;;  %v2069_v2 = vunpack.c.h.s8.bf16 %v1157_v63  ;;  %v1798_v3 = vunpack.c.l.s8.bf16 %v1030_v54 }
 0x234   : > { %2818 = vmatprep.subr.bf16.mxu1 %v2166_v4  ;;  %v2054_v4 = vunpack.c.l.s8.bf16 %v1158_v55 }
 0x235   : > { %v2483_v13 = vpop.f32.mrf.mxu0  ;;  %2728 = vmatmul.mubr.bf16.vlgmr.msra.gmra.mxu0 %v9726_v51 }
 0x236   : > { %v2524_v14 = vpop.f32.mrf.mxu1  ;;  %2769 = vmatmul.mubr.bf16.vlgmr.msra.gmra.mxu1 %v9735_v60  ;;  %v2484_v15 = vadd.f32 %v2483_v13, %v9857_v18  ;;  %2778 = vmatpush1.bf16.msra.mxu0 %v1909_v7  ;;  %v1797_v7 = vunpack.c.l.s8.bf16 %v1029_v62 }
 0x237   : > { %2819 = vmatpush1.bf16.msra.mxu1 %v2165_v8  ;;  %v2485_v20 = vpop.f32.mrf.mxu0  ;;  %2779 = vmatprep.subr.bf16.mxu0 %v1894_v9  ;;  %v2053_v8 = vunpack.c.l.s8.bf16 %v1157_v63  ;;  %v2038_v9 = vunpack.c.h.s8.bf16 %v1142_v5 }
 0x238   : > { %v2526_v21 = vpop.f32.mrf.mxu1  ;;  %2820 = vmatprep.subr.bf16.mxu1 %v2150_v10  ;;  %v9900_v26 = vadd.f32 %v2524_v14, %v2484_v15  ;;  %v2486_v28 = vadd.f32 %v2485_v20, %v9861_v27  ;;  %2809 = vmatprep.mubr.bf16.mxu0 %v9731_v59  ;;  %v1862_v27 = vunpack.c.l.s8.bf16 %v1062_v11  ;;  %v2294_v10 = vunpack.c.h.s8.bf16 %v1270_v6  ;;  %v1141_v11 = vld [vmem:[%s9591_s10 + $0xba0] sm:$0xff]  ;;  %v1254_v20 = vld [vmem:[%s9591_s10 + $0xf28] sm:$0xff] }
 0x239   : > { %2850 = vmatprep.mubr.bf16.mxu1 %v9741_v49  ;;  %v2487_v18 = vpop.f32.mrf.mxu0  ;;  %v2037_v13 = vunpack.c.h.s8.bf16 %v1141_v11  ;;  %v2293_v14 = vunpack.c.h.s8.bf16 %v1269_v12  ;;  %v2022_v15 = vunpack.c.l.s8.bf16 %v1142_v5  ;;  %v2262_v24 = vunpack.c.h.s8.bf16 %v1254_v20 }
 0x23a   : > { %v2528_v29 = vpop.f32.mrf.mxu1  ;;  %v9905_v30 = vadd.f32 %v2526_v21, %v2486_v28  ;;  %2780 = vmatpush1.bf16.msra.mxu0 %v1893_v17  ;;  %v2278_v17 = vunpack.c.l.s8.bf16 %v1270_v6  ;;  %v2021_v21 = vunpack.c.l.s8.bf16 %v1141_v11  ;;  %v1253_v28 = vld [vmem:[%s9591_s10 + $0xf20] sm:$0xff]  ;;  %v2005_v18 = vunpack.c.h.s8.bf16 %v1125_v25 }
 0x23b   : > { %2821 = vmatpush1.bf16.msra.mxu1 %v2149_v19  ;;  %v2488_v33 = vpop.f32.mrf.mxu0  ;;  %2781 = vmatprep.subr.bf16.mxu0 %v1878_v22  ;;  %v1126_v19 = vld [vmem:[%s9591_s10 + $0xb28] sm:$0xff]  ;;  %v2277_v22 = vunpack.c.l.s8.bf16 %v1269_v12  ;;  %v2261_v29 = vunpack.c.h.s8.bf16 %v1253_v28 }
 0x23c   : > { %v2529_v34 = vpop.f32.mrf.mxu1  ;;  %2822 = vmatprep.subr.bf16.mxu1 %v2134_v23  ;;  %v3695_v36 = vcombine.low %v9900_v26, %v9905_v30  ;;  %v2006_v23 = vunpack.c.h.s8.bf16 %v1126_v19  ;;  %v1110_v33 = vld [vmem:[%s9591_s10 + $0xaa8] sm:$0xff] }
 0x23d   : > { %v1238_v34 = vld [vmem:[%s9591_s10 + $0xea8] sm:$0xff]  ;;  %v1974_v37 = vunpack.c.h.s8.bf16 %v1110_v33  ;;  %v1958_v45 = vunpack.c.l.s8.bf16 %v1110_v33 }
 0x23e   : > { %2782 = vmatpush1.bf16.msra.mxu0 %v1877_v31  ;;  %v1990_v31 = vunpack.c.l.s8.bf16 %v1126_v19  ;;  %v2230_v40 = vunpack.c.h.s8.bf16 %v1238_v34  ;;  %v2214_v46 = vunpack.c.l.s8.bf16 %v1238_v34 }
 0x23f   : > { %2823 = vmatpush1.bf16.msra.mxu1 %v2133_v32  ;;  %2783 = vmatprep.subr.bf16.mxu0 %v1862_v27  ;;  %v2246_v32 = vunpack.c.l.s8.bf16 %v1254_v20  ;;  %v1989_v27 = vunpack.c.l.s8.bf16 %v1125_v25 }
 0x240   : > { %2824 = vmatprep.subr.bf16.mxu1 %v2118_v35  ;;  %v2245_v35 = vunpack.c.l.s8.bf16 %v1253_v28  ;;  %v807_v28 = vld [vmem:[%s9591_s10 + $0x130] sm:$0xff] }
 0x242   : > { %2784 = vmatpush1.bf16.msra.mxu0 %v1861_v41  ;;  %v1109_v41 = vld [vmem:[%s9591_s10 + $0xaa0] sm:$0xff] }
 0x243   : > { %2825 = vmatpush1.bf16.msra.mxu1 %v2117_v42  ;;  %2785 = vmatprep.subr.bf16.mxu0 %v1846_v43  ;;  %v1237_v42 = vld [vmem:[%s9591_s10 + $0xea0] sm:$0xff]  ;;  %v1973_v43 = vunpack.c.h.s8.bf16 %v1109_v41 }
 0x244   : > { %2826 = vmatprep.subr.bf16.mxu1 %v2102_v44  ;;  %v2229_v44 = vunpack.c.h.s8.bf16 %v1237_v42 }
 0x246   : > { %2786 = vmatpush1.bf16.msra.mxu0 %v1845_v47  ;;  %v1094_v47 = vld [vmem:[%s9591_s10 + $0xa28] sm:$0xff] }
 0x247   : > { %2827 = vmatpush1.bf16.msra.mxu1 %v2101_v48  ;;  %2787 = vmatprep.subr.bf16.mxu0 %v1830_v52  ;;  %v1222_v48 = vld [vmem:[%s9591_s10 + $0xe28] sm:$0xff]  ;;  %v1957_v52 = vunpack.c.l.s8.bf16 %v1109_v41  ;;  %v1942_v54 = vunpack.c.h.s8.bf16 %v1094_v47  ;;  %v1926_v62 = vunpack.c.l.s8.bf16 %v1094_v47  ;;  %v920_v41 = vld [vmem:[%s9591_s10 + $0x4b8] sm:$0xff]  ;;  %v919_v47 = vld [vmem:[%s9591_s10 + $0x4b0] sm:$0xff] }
 0x248   : > { %2828 = vmatprep.subr.bf16.mxu1 %v2086_v53  ;;  %v2213_v53 = vunpack.c.l.s8.bf16 %v1237_v42  ;;  %v2198_v55 = vunpack.c.h.s8.bf16 %v1222_v48  ;;  %v2182_v63 = vunpack.c.l.s8.bf16 %v1222_v48  ;;  %v1351_v42 = vunpack.c.l.s8.bf16 %v807_v28 }
 0x24a   : > { %2788 = vmatpush1.bf16.msra.mxu0 %v1829_v56  ;;  %v1093_v56 = vld [vmem:[%s9591_s10 + $0xa20] sm:$0xff] }
 0x24b   : > { %2829 = vmatpush1.bf16.msra.mxu1 %v2085_v57  ;;  %2789 = vmatprep.subr.bf16.mxu0 %v1814_v50  ;;  %v1221_v57 = vld [vmem:[%s9591_s10 + $0xe20] sm:$0xff]  ;;  %v1941_v50 = vunpack.c.h.s8.bf16 %v1093_v56 }
 0x24c   : > { %2830 = vmatprep.subr.bf16.mxu1 %v2070_v61  ;;  %v2197_v61 = vunpack.c.h.s8.bf16 %v1221_v57 }
 0x24e   : > { %2790 = vmatpush1.bf16.msra.mxu0 %v1813_v0  ;;  %v824_v0 = vld [vmem:[%s9591_s10 + $0x1b8] sm:$0xff] }
 0x24f   : > { %2831 = vmatpush1.bf16.msra.mxu1 %v2069_v2  ;;  %2791 = vmatprep.subr.bf16.mxu0 %v1798_v3  ;;  %v952_v2 = vld [vmem:[%s9591_s10 + $0x5b8] sm:$0xff]  ;;  %v1925_v3 = vunpack.c.l.s8.bf16 %v1093_v56  ;;  %v1400_v5 = vunpack.c.h.s8.bf16 %v824_v0  ;;  %v1384_v11 = vunpack.c.l.s8.bf16 %v824_v0  ;;  %v903_v0 = vld [vmem:[%s9591_s10 + $0x430] sm:$0xff] }
 0x250   : > { %2832 = vmatprep.subr.bf16.mxu1 %v2054_v4  ;;  %v2181_v4 = vunpack.c.l.s8.bf16 %v1221_v57  ;;  %v1656_v6 = vunpack.c.h.s8.bf16 %v952_v2  ;;  %v1640_v12 = vunpack.c.l.s8.bf16 %v952_v2  ;;  %v904_v56 = vld [vmem:[%s9591_s10 + $0x438] sm:$0xff] }
 0x252   : > { %2792 = vmatpush1.bf16.msra.mxu0 %v1797_v7  ;;  %v823_v7 = vld [vmem:[%s9591_s10 + $0x1b0] sm:$0xff] }
 0x253   : > { %2833 = vmatpush1.bf16.msra.mxu1 %v2053_v8  ;;  %2793 = vmatprep.subr.bf16.mxu0 %v2038_v9  ;;  %v951_v8 = vld [vmem:[%s9591_s10 + $0x5b0] sm:$0xff]  ;;  %v1399_v9 = vunpack.c.h.s8.bf16 %v823_v7  ;;  %v1383_v20 = vunpack.c.l.s8.bf16 %v823_v7  ;;  %v1016_v7 = vld [vmem:[%s9591_s10 + $0x7b8] sm:$0xff] }
 0x254   : > { %2834 = vmatprep.subr.bf16.mxu1 %v2294_v10  ;;  %v1655_v10 = vunpack.c.h.s8.bf16 %v951_v8 }
 0x256   : > { %2794 = vmatpush2.bf16.msra.mxu0 %v2037_v13  ;;  %v808_v13 = vld [vmem:[%s9591_s10 + $0x138] sm:$0xff] }
 0x257   : > { %2835 = vmatpush2.bf16.msra.mxu1 %v2293_v14  ;;  %2795 = vmatprep.subr.bf16.mxu0 %v2022_v15  ;;  %v936_v14 = vld [vmem:[%s9591_s10 + $0x538] sm:$0xff] }
 0x258   : > { %2836 = vmatprep.subr.bf16.mxu1 %v2278_v17  ;;  %v1624_v25 = vunpack.c.h.s8.bf16 %v936_v14 }
 0x25a   : > { %2796 = vmatpush2.bf16.msra.mxu0 %v2021_v21  ;;  %v1639_v21 = vunpack.c.l.s8.bf16 %v951_v8 }
 0x25b   : > { %2837 = vmatpush2.bf16.msra.mxu1 %v2277_v22  ;;  %2797 = vmatprep.subr.bf16.mxu0 %v2006_v23 }
 0x25c   : > { %2838 = vmatprep.subr.bf16.mxu1 %v2262_v24  ;;  %v1368_v24 = vunpack.c.h.s8.bf16 %v808_v13 }
 0x25e   : > { %2798 = vmatpush2.bf16.msra.mxu0 %v2005_v18  ;;  %v935_v18 = vld [vmem:[%s9591_s10 + $0x530] sm:$0xff] }
 0x25f   : > { %2839 = vmatpush2.bf16.msra.mxu1 %v2261_v29  ;;  %2799 = vmatprep.subr.bf16.mxu0 %v1990_v31  ;;  %v1623_v33 = vunpack.c.h.s8.bf16 %v935_v18 }
 0x260   : > { %2840 = vmatprep.subr.bf16.mxu1 %v2246_v32  ;;  %v1367_v32 = vunpack.c.h.s8.bf16 %v807_v28 }
 0x262   : > { %2800 = vmatpush2.bf16.msra.mxu0 %v1989_v27 }
 0x263   : > { %2841 = vmatpush2.bf16.msra.mxu1 %v2245_v35  ;;  %2801 = vmatprep.subr.bf16.mxu0 %v1974_v37  ;;  %v1352_v35 = vunpack.c.l.s8.bf16 %v808_v13  ;;  %v1608_v37 = vunpack.c.l.s8.bf16 %v936_v14  ;;  %v1015_v13 = vld [vmem:[%s9591_s10 + $0x7b0] sm:$0xff] }
 0x264   : > { %2842 = vmatprep.subr.bf16.mxu1 %v2230_v40  ;;  %v792_v40 = vld [vmem:[%s9591_s10 + $0xb8] sm:$0xff]  ;;  %v1767_v28 = vunpack.c.l.s8.bf16 %v1015_v13 }
 0x266   : > { %2802 = vmatpush2.bf16.msra.mxu0 %v1973_v43  ;;  %v1607_v43 = vunpack.c.l.s8.bf16 %v935_v18 }
 0x267   : > { %2843 = vmatpush2.bf16.msra.mxu1 %v2229_v44  ;;  %2803 = vmatprep.subr.bf16.mxu0 %v1958_v45  ;;  %v1336_v44 = vunpack.c.h.s8.bf16 %v792_v40  ;;  %v1592_v45 = vunpack.c.h.s8.bf16 %v920_v41 }
 0x268   : > { %2844 = vmatprep.subr.bf16.mxu1 %v2214_v46  ;;  %v791_v46 = vld [vmem:[%s9591_s10 + $0xb0] sm:$0xff] }
 0x269   : > { %v1335_v48 = vunpack.c.h.s8.bf16 %v791_v46  ;;  %v1319_v57 = vunpack.c.l.s8.bf16 %v791_v46  ;;  %v983_v46 = vld [vmem:[%s9591_s10 + $0x6b0] sm:$0xff] }
 0x26a   : > { %2804 = vmatpush2.bf16.msra.mxu0 %v1957_v52  ;;  %v1591_v52 = vunpack.c.h.s8.bf16 %v919_v47 }
 0x26b   : > { %2845 = vmatpush2.bf16.msra.mxu1 %v2213_v53  ;;  %2805 = vmatprep.subr.bf16.mxu0 %v1942_v54  ;;  %v1320_v53 = vunpack.c.l.s8.bf16 %v792_v40  ;;  %v1576_v54 = vunpack.c.l.s8.bf16 %v920_v41  ;;  %v984_v40 = vld [vmem:[%s9591_s10 + $0x6b8] sm:$0xff] }
 0x26c   : > { %2846 = vmatprep.subr.bf16.mxu1 %v2198_v55  ;;  %v776_v55 = vld [vmem:[%s9591_s10 + $0x38] sm:$0xff] }
 0x26e   : > { %2806 = vmatpush2.bf16.msra.mxu0 %v1941_v50  ;;  %v1575_v50 = vunpack.c.l.s8.bf16 %v919_v47 }
 0x26f   : > { %2847 = vmatpush2.bf16.msra.mxu1 %v2197_v61  ;;  %2807 = vmatprep.subr.bf16.mxu0 %v1926_v62  ;;  %v1304_v61 = vunpack.c.h.s8.bf16 %v776_v55  ;;  %v1560_v62 = vunpack.c.h.s8.bf16 %v904_v56 }
 0x270   : > { %2848 = vmatprep.subr.bf16.mxu1 %v2182_v63  ;;  %v775_v63 = vld [vmem:[%s9591_s10 + $0x30] sm:$0xff] }
 0x271   : > { %v1303_v2 = vunpack.c.h.s8.bf16 %v775_v63  ;;  %v1287_v8 = vunpack.c.l.s8.bf16 %v775_v63  ;;  %v967_v63 = vld [vmem:[%s9591_s10 + $0x630] sm:$0xff] }
 0x272   : > { %2808 = vmatpush2.bf16.msra.mxu0 %v1925_v3  ;;  %v1559_v3 = vunpack.c.h.s8.bf16 %v903_v0 }
 0x273   : > { %2849 = vmatpush2.bf16.msra.mxu1 %v2181_v4  ;;  %2859 = vmatprep.subr.bf16.mxu0 %v1400_v5  ;;  %v1288_v4 = vunpack.c.l.s8.bf16 %v776_v55  ;;  %v1544_v5 = vunpack.c.l.s8.bf16 %v904_v56  ;;  %v968_v55 = vld [vmem:[%s9591_s10 + $0x638] sm:$0xff] }
 0x274   : > { %2900 = vmatprep.subr.bf16.mxu1 %v1656_v6  ;;  %v888_v6 = vld [vmem:[%s9591_s10 + $0x3b8] sm:$0xff] }
 0x275   : > { %v2565_v15 = vpop.f32.mrf.mxu0  ;;  %2810 = vmatmul.mubr.bf16.vlgmr.msra.gmra.mxu0 %v9710_v16 }
 0x276   : > { %v2606_v17 = vpop.f32.mrf.mxu1  ;;  %2851 = vmatmul.mubr.bf16.vlgmr.msra.gmra.mxu1 %v9779_v39  ;;  %2860 = vmatpush1.bf16.msra.mxu0 %v1399_v9  ;;  %v1543_v9 = vunpack.c.l.s8.bf16 %v903_v0 }
 0x277   : > { %v9941_v19 = vadd.f32 %v2606_v17, %v2565_v15  ;;  %2901 = vmatpush1.bf16.msra.mxu1 %v1655_v10  ;;  %v9943_v22 = vpop.f32.mrf.mxu0  ;;  %2861 = vmatprep.subr.bf16.mxu0 %v1384_v11  ;;  %v1528_v10 = vunpack.c.h.s8.bf16 %v888_v6  ;;  %v1784_v11 = vunpack.c.h.s8.bf16 %v1016_v7  ;;  %v1783_v15 = vunpack.c.h.s8.bf16 %v1015_v13 }
 0x278   : > { %v9945_v23 = vpop.f32.mrf.mxu1  ;;  %2902 = vmatprep.subr.bf16.mxu1 %v1640_v12  ;;  %2891 = vmatprep.mubr.bf16.mxu0 %v9691_v58  ;;  %v887_v12 = vld [vmem:[%s9591_s10 + $0x3b0] sm:$0xff]  ;;  %v1512_v17 = vunpack.c.l.s8.bf16 %v888_v6  ;;  %v1208_v6 = vld [vmem:[%s9591_s10 + $0xdb8] sm:$0xff]  ;;  %v9290_v13 = vmov 1983009808  }
 0x279   : > { %2932 = vmatprep.mubr.bf16.mxu1 %v9697_v1  ;;  %v2569_v29 = vpop.f32.mrf.mxu0  ;;  %v1527_v14 = vunpack.c.h.s8.bf16 %v887_v12 }
 0x27a   : > { %v2610_v31 = vpop.f32.mrf.mxu1  ;;  %2862 = vmatpush1.bf16.msra.mxu0 %v1383_v20  ;;  %v1768_v20 = vunpack.c.l.s8.bf16 %v1016_v7 }
 0x27b   : > { %2903 = vmatpush1.bf16.msra.mxu1 %v1639_v21  ;;  %v2570_v34 = vpop.f32.mrf.mxu0  ;;  %2863 = vmatprep.subr.bf16.mxu0 %v1368_v24  ;;  %v872_v21 = vld [vmem:[%s9591_s10 + $0x338] sm:$0xff]  ;;  %v871_v31 = vld [vmem:[%s9591_s10 + $0x330] sm:$0xff] }
 0x27c   : > { %v2611_v27 = vpop.f32.mrf.mxu1  ;;  %2904 = vmatprep.subr.bf16.mxu1 %v1624_v25  ;;  %v1000_v24 = vld [vmem:[%s9591_s10 + $0x738] sm:$0xff]  ;;  %v1511_v25 = vunpack.c.l.s8.bf16 %v887_v12  ;;  %v1496_v18 = vunpack.c.h.s8.bf16 %v872_v21  ;;  %v1479_v41 = vunpack.c.l.s8.bf16 %v871_v31  ;;  %v1207_v12 = vld [vmem:[%s9591_s10 + $0xdb0] sm:$0xff] }
 0x27d   : > { %v1752_v29 = vunpack.c.h.s8.bf16 %v1000_v24  ;;  %v1480_v27 = vunpack.c.l.s8.bf16 %v872_v21  ;;  %v2152_v21 = vunpack.c.l.s8.bf16 %v1208_v6 }
 0x27e   : > { %2864 = vmatpush1.bf16.msra.mxu0 %v1367_v32  ;;  %v999_v32 = vld [vmem:[%s9591_s10 + $0x730] sm:$0xff] }
 0x27f   : > { %2905 = vmatpush1.bf16.msra.mxu1 %v1623_v33  ;;  %2865 = vmatprep.subr.bf16.mxu0 %v1352_v35  ;;  %v1495_v33 = vunpack.c.h.s8.bf16 %v871_v31  ;;  %v1751_v34 = vunpack.c.h.s8.bf16 %v999_v32  ;;  %v1736_v35 = vunpack.c.l.s8.bf16 %v1000_v24  ;;  %v1064_v24 = vld [vmem:[%s9591_s10 + $0x938] sm:$0xff]  ;;  %v2609_v31 = vadd.f32 %v9945_v23, %v9943_v22 }
 0x280   : > { %2906 = vmatprep.subr.bf16.mxu1 %v1608_v37  ;;  %v856_v37 = vld [vmem:[%s9591_s10 + $0x2b8] sm:$0xff] }
 0x282   : > { %2866 = vmatpush1.bf16.msra.mxu0 %v1351_v42  ;;  %v1735_v42 = vunpack.c.l.s8.bf16 %v999_v32 }
 0x283   : > { %2907 = vmatpush1.bf16.msra.mxu1 %v1607_v43  ;;  %2867 = vmatprep.subr.bf16.mxu0 %v1336_v44  ;;  %v1464_v43 = vunpack.c.h.s8.bf16 %v856_v37  ;;  %v1720_v44 = vunpack.c.h.s8.bf16 %v984_v40 }
 0x284   : > { %2908 = vmatprep.subr.bf16.mxu1 %v1592_v45  ;;  %v855_v45 = vld [vmem:[%s9591_s10 + $0x2b0] sm:$0xff] }
 0x285   : > { %v1463_v47 = vunpack.c.h.s8.bf16 %v855_v45  ;;  %v1447_v56 = vunpack.c.l.s8.bf16 %v855_v45 }
 0x286   : > { %2868 = vmatpush1.bf16.msra.mxu0 %v1335_v48  ;;  %v1719_v48 = vunpack.c.h.s8.bf16 %v983_v46 }
 0x287   : > { %2909 = vmatpush1.bf16.msra.mxu1 %v1591_v52  ;;  %2869 = vmatprep.subr.bf16.mxu0 %v1320_v53  ;;  %v1448_v52 = vunpack.c.l.s8.bf16 %v856_v37  ;;  %v1704_v53 = vunpack.c.l.s8.bf16 %v984_v40  ;;  %v1880_v37 = vunpack.c.h.s8.bf16 %v1064_v24 }
 0x288   : > { %2910 = vmatprep.subr.bf16.mxu1 %v1576_v54  ;;  %v840_v54 = vld [vmem:[%s9591_s10 + $0x238] sm:$0xff] }
 0x28a   : > { %2870 = vmatpush1.bf16.msra.mxu0 %v1319_v57  ;;  %v1703_v57 = vunpack.c.l.s8.bf16 %v983_v46 }
 0x28b   : > { %2911 = vmatpush1.bf16.msra.mxu1 %v1575_v50  ;;  %2871 = vmatprep.subr.bf16.mxu0 %v1304_v61  ;;  %v1432_v50 = vunpack.c.h.s8.bf16 %v840_v54  ;;  %v1688_v61 = vunpack.c.h.s8.bf16 %v968_v55 }
 0x28c   : > { %2912 = vmatprep.subr.bf16.mxu1 %v1560_v62  ;;  %v839_v62 = vld [vmem:[%s9591_s10 + $0x230] sm:$0xff] }
 0x28d   : > { %v1431_v0 = vunpack.c.h.s8.bf16 %v839_v62  ;;  %v1415_v7 = vunpack.c.l.s8.bf16 %v839_v62 }
 0x28e   : > { %2872 = vmatpush1.bf16.msra.mxu0 %v1303_v2  ;;  %v1687_v2 = vunpack.c.h.s8.bf16 %v967_v63 }
 0x28f   : > { %2913 = vmatpush1.bf16.msra.mxu1 %v1559_v3  ;;  %2873 = vmatprep.subr.bf16.mxu0 %v1288_v4  ;;  %v1416_v3 = vunpack.c.l.s8.bf16 %v840_v54  ;;  %v1672_v4 = vunpack.c.l.s8.bf16 %v968_v55 }
 0x290   : > { %2914 = vmatprep.subr.bf16.mxu1 %v1544_v5  ;;  %v1080_v5 = vld [vmem:[%s9591_s10 + $0x9b8] sm:$0xff] }
 0x292   : > { %2874 = vmatpush1.bf16.msra.mxu0 %v1287_v8  ;;  %v1671_v8 = vunpack.c.l.s8.bf16 %v967_v63 }
 0x293   : > { %2915 = vmatpush1.bf16.msra.mxu1 %v1543_v9  ;;  %2875 = vmatprep.subr.bf16.mxu0 %v1528_v10  ;;  %v1912_v9 = vunpack.c.h.s8.bf16 %v1080_v5  ;;  %v2168_v10 = vunpack.c.h.s8.bf16 %v1208_v6 }
 0x294   : > { %2916 = vmatprep.subr.bf16.mxu1 %v1784_v11  ;;  %v1079_v11 = vld [vmem:[%s9591_s10 + $0x9b0] sm:$0xff] }
 0x296   : > { %2876 = vmatpush2.bf16.msra.mxu0 %v1527_v14  ;;  %v3698_v14 = vunpack.c.l.s4 %v9290_v13 }
 0x297   : > { %2917 = vmatpush2.bf16.msra.mxu1 %v1783_v15  ;;  %2877 = vmatprep.subr.bf16.mxu0 %v1512_v17  ;;  %v1911_v15 = vunpack.c.h.s8.bf16 %v1079_v11  ;;  %v2167_v17 = vunpack.c.h.s8.bf16 %v1207_v12 }
 0x298   : > { %2918 = vmatprep.subr.bf16.mxu1 %v1768_v20  ;;  %v1896_v20 = vunpack.c.l.s8.bf16 %v1080_v5  ;;  %v1175_v5 = vld [vmem:[%s9591_s10 + $0xcb0] sm:$0xff] }
 0x299   : > { %v2103_v30 = vunpack.c.h.s8.bf16 %v1175_v5 }
 0x29a   : > { %2878 = vmatpush2.bf16.msra.mxu0 %v1511_v25  ;;  %v1192_v25 = vld [vmem:[%s9591_s10 + $0xd38] sm:$0xff] }
 0x29b   : > { %2919 = vmatpush2.bf16.msra.mxu1 %v1767_v28  ;;  %2879 = vmatprep.subr.bf16.mxu0 %v1496_v18  ;;  %v3699_v28 = vunpack.c.0.s8 %v3698_v14  ;;  %v2136_v40 = vunpack.c.h.s8.bf16 %v1192_v25  ;;  %v2120_v54 = vunpack.c.l.s8.bf16 %v1192_v25 }
 0x29c   : > { %2920 = vmatprep.subr.bf16.mxu1 %v1752_v29 }
 0x29d   : > { %v9991_v22 = vsub.s32 %v3699_v28, %v9674_v38  ;;  %v1144_v28 = vld [vmem:[%s9591_s10 + $0xbb8] sm:$0xff] }
 0x29e   : > { %2880 = vmatpush2.bf16.msra.mxu0 %v1495_v33  ;;  %v1895_v33 = vunpack.c.l.s8.bf16 %v1079_v11 }
 0x29f   : > { %2921 = vmatpush2.bf16.msra.mxu1 %v1751_v34  ;;  %2881 = vmatprep.subr.bf16.mxu0 %v1480_v27  ;;  %v2151_v34 = vunpack.c.l.s8.bf16 %v1207_v12  ;;  %v2087_v12 = vunpack.c.l.s8.bf16 %v1175_v5 }
 0x2a0   : > { %2922 = vmatprep.subr.bf16.mxu1 %v1736_v35 }
 0x2a2   : > { %2882 = vmatpush2.bf16.msra.mxu0 %v1479_v41  ;;  %v1063_v41 = vld [vmem:[%s9591_s10 + $0x930] sm:$0xff] }
 0x2a3   : > { %2923 = vmatpush2.bf16.msra.mxu1 %v1735_v42  ;;  %2883 = vmatprep.subr.bf16.mxu0 %v1464_v43  ;;  %v1191_v42 = vld [vmem:[%s9591_s10 + $0xd30] sm:$0xff]  ;;  %v1879_v46 = vunpack.c.h.s8.bf16 %v1063_v41  ;;  %v1863_v62 = vunpack.c.l.s8.bf16 %v1063_v41 }
 0x2a4   : > { %2924 = vmatprep.subr.bf16.mxu1 %v1720_v44  ;;  %v2119_v63 = vunpack.c.l.s8.bf16 %v1191_v42 }
 0x2a6   : > { %2884 = vmatpush2.bf16.msra.mxu0 %v1463_v47  ;;  %v2135_v47 = vunpack.c.h.s8.bf16 %v1191_v42  ;;  %v1128_v42 = vld [vmem:[%s9591_s10 + $0xb38] sm:$0xff] }
 0x2a7   : > { %2925 = vmatpush2.bf16.msra.mxu1 %v1719_v48  ;;  %2885 = vmatprep.subr.bf16.mxu0 %v1448_v52 }
 0x2a8   : > { %2926 = vmatprep.subr.bf16.mxu1 %v1704_v53  ;;  %v1864_v53 = vunpack.c.l.s8.bf16 %v1064_v24 }
 0x2aa   : > { %2886 = vmatpush2.bf16.msra.mxu0 %v1447_v56  ;;  %v1048_v56 = vld [vmem:[%s9591_s10 + $0x8b8] sm:$0xff] }
 0x2ab   : > { %2927 = vmatpush2.bf16.msra.mxu1 %v1703_v57  ;;  %2887 = vmatprep.subr.bf16.mxu0 %v1432_v50  ;;  %v1176_v57 = vld [vmem:[%s9591_s10 + $0xcb8] sm:$0xff]  ;;  %v3703_v50 = vrot.slane %v3695_v36, %v9991_v22  ;;  %v1832_v36 = vunpack.c.l.s8.bf16 %v1048_v56 }
 0x2ac   : > { %2928 = vmatprep.subr.bf16.mxu1 %v1688_v61 }
 0x2ae   : > { %2888 = vmatpush2.bf16.msra.mxu0 %v1431_v0  ;;  %v2305_v0 = vld [vmem:[#allocation2 + $0x10] sm:$0xff] }
 0x2af   : > { %2929 = vmatpush2.bf16.msra.mxu1 %v1687_v2  ;;  %2889 = vmatprep.subr.bf16.mxu0 %v1416_v3  ;;  %v1848_v2 = vunpack.c.h.s8.bf16 %v1048_v56  ;;  %v2104_v3 = vunpack.c.h.s8.bf16 %v1176_v57  ;;  %v1240_v56 = vld [vmem:[%s9591_s10 + $0xeb8] sm:$0xff] }
 0x2b0   : > { %2930 = vmatprep.subr.bf16.mxu1 %v1672_v4  ;;  %v1047_v4 = vld [vmem:[%s9591_s10 + $0x8b0] sm:$0xff]  ;;  %v2216_v5 = vunpack.c.l.s8.bf16 %v1240_v56 }
 0x2b1   : > { %v1847_v26 = vunpack.c.h.s8.bf16 %v1047_v4  ;;  %v1831_v11 = vunpack.c.l.s8.bf16 %v1047_v4 }
 0x2b2   : > { %2890 = vmatpush2.bf16.msra.mxu0 %v1415_v7 }
 0x2b3   : > { %2931 = vmatpush2.bf16.msra.mxu1 %v1671_v8  ;;  %2941 = vmatprep.subr.bf16.mxu0 %v1912_v9  ;;  %v2088_v8 = vunpack.c.l.s8.bf16 %v1176_v57  ;;  %v1032_v9 = vld [vmem:[%s9591_s10 + $0x838] sm:$0xff] }
 0x2b4   : > { %2982 = vmatprep.subr.bf16.mxu1 %v2168_v10  ;;  %v1160_v10 = vld [vmem:[%s9591_s10 + $0xc38] sm:$0xff]  ;;  %v1816_v13 = vunpack.c.h.s8.bf16 %v1032_v9  ;;  %v1800_v24 = vunpack.c.l.s8.bf16 %v1032_v9  ;;  %v1095_v9 = vld [vmem:[%s9591_s10 + $0xa30] sm:$0xff] }
 0x2b5   : > { %v2647_v18 = vpop.f32.mrf.mxu0  ;;  %2892 = vmatmul.mubr.bf16.vlgmr.msra.gmra.mxu0 %v9726_v51  ;;  %v2072_v14 = vunpack.c.h.s8.bf16 %v1160_v10  ;;  %v2056_v25 = vunpack.c.l.s8.bf16 %v1160_v10  ;;  %v1223_v10 = vld [vmem:[%s9591_s10 + $0xe30] sm:$0xff] }
 0x2b6   : > { %v2688_v29 = vpop.f32.mrf.mxu1  ;;  %2933 = vmatmul.mubr.bf16.vlgmr.msra.gmra.mxu1 %v9735_v60  ;;  %v2648_v32 = vadd.f32 %v2647_v18, %v9941_v19  ;;  %2942 = vmatpush1.bf16.msra.mxu0 %v1911_v15  ;;  %v1031_v15 = vld [vmem:[%s9591_s10 + $0x830] sm:$0xff]  ;;  %v1272_v18 = vld [vmem:[%s9591_s10 + $0xfb8] sm:$0xff] }
 0x2b7   : > { %2983 = vmatpush1.bf16.msra.mxu1 %v2167_v17  ;;  %v2649_v27 = vpop.f32.mrf.mxu0  ;;  %2943 = vmatprep.subr.bf16.mxu0 %v1896_v20  ;;  %v1159_v17 = vld [vmem:[%s9591_s10 + $0xc30] sm:$0xff]  ;;  %v1815_v20 = vunpack.c.h.s8.bf16 %v1031_v15  ;;  %v2280_v41 = vunpack.c.l.s8.bf16 %v1272_v18 }
 0x2b8   : > { %v2690_v35 = vpop.f32.mrf.mxu1  ;;  %2984 = vmatprep.subr.bf16.mxu1 %v2152_v21  ;;  %v2650_v43 = vadd.f32 %v2649_v27, %v2609_v31  ;;  %2973 = vmatprep.mubr.bf16.mxu0 %v9731_v59  ;;  %v2689_v44 = vadd.f32 %v2688_v29, %v2648_v32  ;;  %v2071_v21 = vunpack.c.h.s8.bf16 %v1159_v17  ;;  %v1799_v29 = vunpack.c.l.s8.bf16 %v1031_v15  ;;  %v1271_v27 = vld [vmem:[%s9591_s10 + $0xfb0] sm:$0xff]  ;;  %v826_v15 = vld [vmem:[%s9591_s10 + $0x1c8] sm:$0xff] }
 0x2b9   : > { %3014 = vmatprep.mubr.bf16.mxu1 %v9741_v49  ;;  %v2651_v19 = vpop.f32.mrf.mxu0  ;;  %v2055_v31 = vunpack.c.l.s8.bf16 %v1159_v17  ;;  %v2040_v32 = vunpack.c.h.s8.bf16 %v1144_v28  ;;  %v954_v17 = vld [vmem:[%s9591_s10 + $0x5c8] sm:$0xff] }
 0x2ba   : > { %v2692_v23 = vpop.f32.mrf.mxu1  ;;  %v2691_v45 = vadd.f32 %v2690_v35, %v2650_v43  ;;  %2944 = vmatpush1.bf16.msra.mxu0 %v1895_v33  ;;  %v2296_v33 = vunpack.c.h.s8.bf16 %v1272_v18  ;;  %v1256_v43 = vld [vmem:[%s9591_s10 + $0xf38] sm:$0xff]  ;;  %v953_v18 = vld [vmem:[%s9591_s10 + $0x5c0] sm:$0xff] }
 0x2bb   : > { %2985 = vmatpush1.bf16.msra.mxu1 %v2151_v34  ;;  %v2652_v48 = vpop.f32.mrf.mxu0  ;;  %2945 = vmatprep.subr.bf16.mxu0 %v1880_v37  ;;  %v1143_v34 = vld [vmem:[%s9591_s10 + $0xbb0] sm:$0xff]  ;;  %v2295_v37 = vunpack.c.h.s8.bf16 %v1271_v27  ;;  %v2279_v23 = vunpack.c.l.s8.bf16 %v1271_v27  ;;  %v938_v27 = vld [vmem:[%s9591_s10 + $0x548] sm:$0xff] }
 0x2bc   : > { %v2693_v52 = vpop.f32.mrf.mxu1  ;;  %2986 = vmatprep.subr.bf16.mxu1 %v2136_v40  ;;  %v3696_v55 = vcombine.low %v2689_v44, %v2691_v45  ;;  %v2039_v35 = vunpack.c.h.s8.bf16 %v1143_v34  ;;  %v2024_v40 = vunpack.c.l.s8.bf16 %v1144_v28  ;;  %v2023_v19 = vunpack.c.l.s8.bf16 %v1143_v34  ;;  %v825_v28 = vld [vmem:[%s9591_s10 + $0x1c0] sm:$0xff]  ;;  %v810_v34 = vld [vmem:[%s9591_s10 + $0x148] sm:$0xff] }
 0x2bd   : > { %v2008_v44 = vunpack.c.h.s8.bf16 %v1128_v42  ;;  %v2264_v45 = vunpack.c.h.s8.bf16 %v1256_v43 }
 0x2be   : > { %v3710_v61 = vrot.slane %v3696_v55, %v9991_v22  ;;  %2946 = vmatpush1.bf16.msra.mxu0 %v1879_v46  ;;  %v1127_v46 = vld [vmem:[%s9591_s10 + $0xb30] sm:$0xff]  ;;  %v1112_v55 = vld [vmem:[%s9591_s10 + $0xab8] sm:$0xff] }
 0x2bf   : > { %2987 = vmatpush1.bf16.msra.mxu1 %v2135_v47  ;;  %2947 = vmatprep.subr.bf16.mxu0 %v1864_v53  ;;  %v1255_v47 = vld [vmem:[%s9591_s10 + $0xf30] sm:$0xff]  ;;  %v2007_v48 = vunpack.c.h.s8.bf16 %v1127_v46  ;;  %v1992_v53 = vunpack.c.l.s8.bf16 %v1128_v42  ;;  %v1991_v57 = vunpack.c.l.s8.bf16 %v1127_v46  ;;  %v1960_v4 = vunpack.c.l.s8.bf16 %v1112_v55  ;;  %v937_v46 = vld [vmem:[%s9591_s10 + $0x540] sm:$0xff] }
 0x2c0   : > { %2988 = vmatprep.subr.bf16.mxu1 %v2120_v54  ;;  %v3711_v6 = vcombine.low %v3703_v50, %v3710_v61  ;;  %v2263_v52 = vunpack.c.h.s8.bf16 %v1255_v47  ;;  %v2248_v54 = vunpack.c.l.s8.bf16 %v1256_v43  ;;  %v2247_v50 = vunpack.c.l.s8.bf16 %v1255_v47 }
 0x2c1   : > { %v1976_v61 = vunpack.c.h.s8.bf16 %v1112_v55  ;;  %v1641_v42 = vunpack.c.l.s8.bf16 %v953_v18 }
 0x2c2   : > { %v3767_v7 = vadd.f32 %v3711_v6, %v2305_v0  ;;  %2948 = vmatpush1.bf16.msra.mxu0 %v1863_v62  ;;  %v2232_v62 = vunpack.c.h.s8.bf16 %v1240_v56  ;;  %v1239_v0 = vld [vmem:[%s9591_s10 + $0xeb0] sm:$0xff]  ;;  %v1096_v6 = vld [vmem:[%s9591_s10 + $0xa38] sm:$0xff] }
 0x2c3   : > { %2989 = vmatpush1.bf16.msra.mxu1 %v2119_v63  ;;  %2949 = vmatprep.subr.bf16.mxu0 %v1848_v2  ;;  %v1111_v63 = vld [vmem:[%s9591_s10 + $0xab0] sm:$0xff] }
 0x2c4   : > { %2990 = vmatprep.subr.bf16.mxu1 %v2104_v3  ;;  %3771 = vst [vmem:[#allocation2 + $0x10] sm:$0xff] %v3767_v7  ;;  %v1975_v2 = vunpack.c.h.s8.bf16 %v1111_v63  ;;  %v2231_v3 = vunpack.c.h.s8.bf16 %v1239_v0  ;;  %v1224_v7 = vld [vmem:[%s9591_s10 + $0xe38] sm:$0xff] }
 0x2c6   : > { %2950 = vmatpush1.bf16.msra.mxu0 %v1847_v26  ;;  %v1959_v26 = vunpack.c.l.s8.bf16 %v1111_v63 }
 0x2c7   : > { %2991 = vmatpush1.bf16.msra.mxu1 %v2103_v30  ;;  %2951 = vmatprep.subr.bf16.mxu0 %v1832_v36  ;;  %v2215_v30 = vunpack.c.l.s8.bf16 %v1239_v0  ;;  %v1944_v36 = vunpack.c.h.s8.bf16 %v1096_v6  ;;  %v1609_v0 = vunpack.c.l.s8.bf16 %v937_v46 }
 0x2c8   : > { %2992 = vmatprep.subr.bf16.mxu1 %v2088_v8  ;;  %v2200_v8 = vunpack.c.h.s8.bf16 %v1224_v7 }
 0x2ca   : > { %2952 = vmatpush1.bf16.msra.mxu0 %v1831_v11  ;;  %v1943_v11 = vunpack.c.h.s8.bf16 %v1095_v9 }
 0x2cb   : > { %2993 = vmatpush1.bf16.msra.mxu1 %v2087_v12  ;;  %2953 = vmatprep.subr.bf16.mxu0 %v1816_v13  ;;  %v2199_v12 = vunpack.c.h.s8.bf16 %v1223_v10  ;;  %v1928_v13 = vunpack.c.l.s8.bf16 %v1096_v6 }
 0x2cc   : > { %2994 = vmatprep.subr.bf16.mxu1 %v2072_v14  ;;  %v2184_v14 = vunpack.c.l.s8.bf16 %v1224_v7 }
 0x2ce   : > { %2954 = vmatpush1.bf16.msra.mxu0 %v1815_v20  ;;  %v1927_v20 = vunpack.c.l.s8.bf16 %v1095_v9 }
 0x2cf   : > { %2995 = vmatpush1.bf16.msra.mxu1 %v2071_v21  ;;  %2955 = vmatprep.subr.bf16.mxu0 %v1800_v24  ;;  %v2183_v21 = vunpack.c.l.s8.bf16 %v1223_v10  ;;  %v1402_v24 = vunpack.c.h.s8.bf16 %v826_v15 }
 0x2d0   : > { %2996 = vmatprep.subr.bf16.mxu1 %v2056_v25  ;;  %v1658_v25 = vunpack.c.h.s8.bf16 %v954_v17 }
 0x2d2   : > { %2956 = vmatpush1.bf16.msra.mxu0 %v1799_v29  ;;  %v1401_v29 = vunpack.c.h.s8.bf16 %v825_v28 }
 0x2d3   : > { %2997 = vmatpush1.bf16.msra.mxu1 %v2055_v31  ;;  %2957 = vmatprep.subr.bf16.mxu0 %v2040_v32  ;;  %v1657_v31 = vunpack.c.h.s8.bf16 %v953_v18  ;;  %v1386_v32 = vunpack.c.l.s8.bf16 %v826_v15 }
 0x2d4   : > { %2998 = vmatprep.subr.bf16.mxu1 %v2296_v33  ;;  %v1642_v33 = vunpack.c.l.s8.bf16 %v954_v17 }
 0x2d6   : > { %2958 = vmatpush2.bf16.msra.mxu0 %v2039_v35 }
 0x2d7   : > { %2999 = vmatpush2.bf16.msra.mxu1 %v2295_v37  ;;  %2959 = vmatprep.subr.bf16.mxu0 %v2024_v40 }
 0x2d8   : > { %3000 = vmatprep.subr.bf16.mxu1 %v2280_v41  ;;  %v1385_v41 = vunpack.c.l.s8.bf16 %v825_v28 }
 0x2da   : > { %2960 = vmatpush2.bf16.msra.mxu0 %v2023_v19 }
 0x2db   : > { %3001 = vmatpush2.bf16.msra.mxu1 %v2279_v23  ;;  %2961 = vmatprep.subr.bf16.mxu0 %v2008_v44  ;;  %v1370_v23 = vunpack.c.h.s8.bf16 %v810_v34  ;;  %v1626_v44 = vunpack.c.h.s8.bf16 %v938_v27 }
 0x2dc   : > { %3002 = vmatprep.subr.bf16.mxu1 %v2264_v45  ;;  %v809_v45 = vld [vmem:[%s9591_s10 + $0x140] sm:$0xff] }
 0x2dd   : > { %v1353_v63 = vunpack.c.l.s8.bf16 %v809_v45 }
 0x2de   : > { %2962 = vmatpush2.bf16.msra.mxu0 %v2007_v48 }
 0x2df   : > { %3003 = vmatpush2.bf16.msra.mxu1 %v2263_v52  ;;  %2963 = vmatprep.subr.bf16.mxu0 %v1992_v53  ;;  %v1369_v53 = vunpack.c.h.s8.bf16 %v809_v45  ;;  %v873_v45 = vld [vmem:[%s9591_s10 + $0x340] sm:$0xff] }
 0x2e0   : > { %3004 = vmatprep.subr.bf16.mxu1 %v2248_v54  ;;  %v1625_v54 = vunpack.c.h.s8.bf16 %v937_v46  ;;  %v1001_v46 = vld [vmem:[%s9591_s10 + $0x740] sm:$0xff] }
 0x2e2   : > { %2964 = vmatpush2.bf16.msra.mxu0 %v1991_v57  ;;  %v1354_v57 = vunpack.c.l.s8.bf16 %v810_v34 }
 0x2e3   : > { %3005 = vmatpush2.bf16.msra.mxu1 %v2247_v50  ;;  %2965 = vmatprep.subr.bf16.mxu0 %v1976_v61  ;;  %v1610_v50 = vunpack.c.l.s8.bf16 %v938_v27  ;;  %v794_v61 = vld [vmem:[%s9591_s10 + $0xc8] sm:$0xff] }
 0x2e4   : > { %3006 = vmatprep.subr.bf16.mxu1 %v2232_v62  ;;  %v922_v62 = vld [vmem:[%s9591_s10 + $0x4c8] sm:$0xff] }
 0x2e6   : > { %2966 = vmatpush2.bf16.msra.mxu0 %v1975_v2  ;;  %v1338_v2 = vunpack.c.h.s8.bf16 %v794_v61 }
 0x2e7   : > { %3007 = vmatpush2.bf16.msra.mxu1 %v2231_v3  ;;  %2967 = vmatprep.subr.bf16.mxu0 %v1960_v4  ;;  %v1594_v3 = vunpack.c.h.s8.bf16 %v922_v62  ;;  %v793_v4 = vld [vmem:[%s9591_s10 + $0xc0] sm:$0xff] }
 0x2e8   : > { %3008 = vmatprep.subr.bf16.mxu1 %v2216_v5  ;;  %v921_v5 = vld [vmem:[%s9591_s10 + $0x4c0] sm:$0xff]  ;;  %v1337_v6 = vunpack.c.h.s8.bf16 %v793_v4  ;;  %v1321_v9 = vunpack.c.l.s8.bf16 %v793_v4 }
 0x2e9   : > { %v1593_v7 = vunpack.c.h.s8.bf16 %v921_v5  ;;  %v1577_v10 = vunpack.c.l.s8.bf16 %v921_v5 }
 0x2ea   : > { %2968 = vmatpush2.bf16.msra.mxu0 %v1959_v26  ;;  %v1322_v26 = vunpack.c.l.s8.bf16 %v794_v61 }
 0x2eb   : > { %3009 = vmatpush2.bf16.msra.mxu1 %v2215_v30  ;;  %2969 = vmatprep.subr.bf16.mxu0 %v1944_v36  ;;  %v1578_v30 = vunpack.c.l.s8.bf16 %v922_v62  ;;  %v778_v36 = vld [vmem:[%s9591_s10 + $0x48] sm:$0xff] }
 0x2ec   : > { %3010 = vmatprep.subr.bf16.mxu1 %v2200_v8  ;;  %v906_v8 = vld [vmem:[%s9591_s10 + $0x448] sm:$0xff] }
 0x2ee   : > { %2970 = vmatpush2.bf16.msra.mxu0 %v1943_v11  ;;  %v1306_v11 = vunpack.c.h.s8.bf16 %v778_v36 }
 0x2ef   : > { %3011 = vmatpush2.bf16.msra.mxu1 %v2199_v12  ;;  %2971 = vmatprep.subr.bf16.mxu0 %v1928_v13  ;;  %v1562_v12 = vunpack.c.h.s8.bf16 %v906_v8  ;;  %v777_v13 = vld [vmem:[%s9591_s10 + $0x40] sm:$0xff] }
 0x2f0   : > { %3012 = vmatprep.subr.bf16.mxu1 %v2184_v14  ;;  %v905_v14 = vld [vmem:[%s9591_s10 + $0x440] sm:$0xff]  ;;  %v1305_v15 = vunpack.c.h.s8.bf16 %v777_v13  ;;  %v1289_v28 = vunpack.c.l.s8.bf16 %v777_v13 }
 0x2f1   : > { %v1561_v17 = vunpack.c.h.s8.bf16 %v905_v14  ;;  %v1545_v18 = vunpack.c.l.s8.bf16 %v905_v14 }
 0x2f2   : > { %2972 = vmatpush2.bf16.msra.mxu0 %v1927_v20  ;;  %v1290_v20 = vunpack.c.l.s8.bf16 %v778_v36 }
 0x2f3   : > { %3013 = vmatpush2.bf16.msra.mxu1 %v2183_v21  ;;  %3023 = vmatprep.subr.bf16.mxu0 %v1402_v24  ;;  %v1546_v21 = vunpack.c.l.s8.bf16 %v906_v8  ;;  %v890_v24 = vld [vmem:[%s9591_s10 + $0x3c8] sm:$0xff] }
 0x2f4   : > { %3064 = vmatprep.subr.bf16.mxu1 %v1658_v25  ;;  %v1018_v25 = vld [vmem:[%s9591_s10 + $0x7c8] sm:$0xff] }
 0x2f5   : > { %v2729_v35 = vpop.f32.mrf.mxu0  ;;  %2974 = vmatmul.mubr.bf16.vlgmr.msra.gmra.mxu0 %v9710_v16 }
 0x2f6   : > { %v2770_v37 = vpop.f32.mrf.mxu1  ;;  %3015 = vmatmul.mubr.bf16.vlgmr.msra.gmra.mxu1 %v9779_v39  ;;  %3024 = vmatpush1.bf16.msra.mxu0 %v1401_v29  ;;  %v1530_v29 = vunpack.c.h.s8.bf16 %v890_v24 }
 0x2f7   : > { %v10030_v40 = vadd.f32 %v2770_v37, %v2729_v35  ;;  %3065 = vmatpush1.bf16.msra.mxu1 %v1657_v31  ;;  %v2731_v43 = vpop.f32.mrf.mxu0  ;;  %3025 = vmatprep.subr.bf16.mxu0 %v1386_v32  ;;  %v1786_v31 = vunpack.c.h.s8.bf16 %v1018_v25  ;;  %v889_v32 = vld [vmem:[%s9591_s10 + $0x3c0] sm:$0xff]  ;;  %v1514_v35 = vunpack.c.l.s8.bf16 %v890_v24  ;;  %v1770_v37 = vunpack.c.l.s8.bf16 %v1018_v25 }
 0x2f8   : > { %v2772_v19 = vpop.f32.mrf.mxu1  ;;  %3066 = vmatprep.subr.bf16.mxu1 %v1642_v33  ;;  %3055 = vmatprep.mubr.bf16.mxu0 %v9691_v58  ;;  %v1017_v33 = vld [vmem:[%s9591_s10 + $0x7c0] sm:$0xff]  ;;  %v1529_v34 = vunpack.c.h.s8.bf16 %v889_v32 }
 0x2f9   : > { %v10034_v47 = vadd.f32 %v2772_v19, %v2731_v43  ;;  %3096 = vmatprep.mubr.bf16.mxu1 %v9697_v1  ;;  %v2733_v48 = vpop.f32.mrf.mxu0  ;;  %v1785_v27 = vunpack.c.h.s8.bf16 %v1017_v33  ;;  %v1513_v43 = vunpack.c.l.s8.bf16 %v889_v32  ;;  %v1769_v19 = vunpack.c.l.s8.bf16 %v1017_v33 }
 0x2fa   : > { %v2774_v52 = vpop.f32.mrf.mxu1  ;;  %3026 = vmatpush1.bf16.msra.mxu0 %v1385_v41  ;;  %v874_v41 = vld [vmem:[%s9591_s10 + $0x348] sm:$0xff]  ;;  %v1497_v48 = vunpack.c.h.s8.bf16 %v873_v45 }
 0x2fb   : > { %3067 = vmatpush1.bf16.msra.mxu1 %v1641_v42  ;;  %v2734_v55 = vpop.f32.mrf.mxu0  ;;  %3027 = vmatprep.subr.bf16.mxu0 %v1370_v23  ;;  %v1002_v42 = vld [vmem:[%s9591_s10 + $0x748] sm:$0xff]  ;;  %v1498_v23 = vunpack.c.h.s8.bf16 %v874_v41  ;;  %v1753_v52 = vunpack.c.h.s8.bf16 %v1001_v46 }
 0x2fc   : > { %v2775_v56 = vpop.f32.mrf.mxu1  ;;  %3068 = vmatprep.subr.bf16.mxu1 %v1626_v44  ;;  %v1754_v44 = vunpack.c.h.s8.bf16 %v1002_v42  ;;  %v858_v55 = vld [vmem:[%s9591_s10 + $0x2c8] sm:$0xff] }
 0x2fd   : > { %v986_v56 = vld [vmem:[%s9591_s10 + $0x6c8] sm:$0xff]  ;;  %v1466_v61 = vunpack.c.h.s8.bf16 %v858_v55  ;;  %v1450_v4 = vunpack.c.l.s8.bf16 %v858_v55 }
 0x2fe   : > { %3028 = vmatpush1.bf16.msra.mxu0 %v1369_v53  ;;  %v1482_v53 = vunpack.c.l.s8.bf16 %v874_v41  ;;  %v1722_v62 = vunpack.c.h.s8.bf16 %v986_v56  ;;  %v1706_v5 = vunpack.c.l.s8.bf16 %v986_v56 }
 0x2ff   : > { %3069 = vmatpush1.bf16.msra.mxu1 %v1625_v54  ;;  %3029 = vmatprep.subr.bf16.mxu0 %v1354_v57  ;;  %v1738_v54 = vunpack.c.l.s8.bf16 %v1002_v42  ;;  %v1481_v57 = vunpack.c.l.s8.bf16 %v873_v45 }
 0x300   : > { %3070 = vmatprep.subr.bf16.mxu1 %v1610_v50  ;;  %v1737_v50 = vunpack.c.l.s8.bf16 %v1001_v46  ;;  %v1065_v46 = vld [vmem:[%s9591_s10 + $0x940] sm:$0xff] }
 0x301   : > { %v1881_v56 = vunpack.c.h.s8.bf16 %v1065_v46 }
 0x302   : > { %3030 = vmatpush1.bf16.msra.mxu0 %v1353_v63  ;;  %v857_v63 = vld [vmem:[%s9591_s10 + $0x2c0] sm:$0xff] }
 0x303   : > { %3071 = vmatpush1.bf16.msra.mxu1 %v1609_v0  ;;  %3031 = vmatprep.subr.bf16.mxu0 %v1338_v2  ;;  %v985_v0 = vld [vmem:[%s9591_s10 + $0x6c0] sm:$0xff]  ;;  %v1465_v2 = vunpack.c.h.s8.bf16 %v857_v63 }
 0x304   : > { %3072 = vmatprep.subr.bf16.mxu1 %v1594_v3  ;;  %v1721_v3 = vunpack.c.h.s8.bf16 %v985_v0 }
 0x306   : > { %3032 = vmatpush1.bf16.msra.mxu0 %v1337_v6  ;;  %v842_v6 = vld [vmem:[%s9591_s10 + $0x248] sm:$0xff] }
 0x307   : > { %3073 = vmatpush1.bf16.msra.mxu1 %v1593_v7  ;;  %3033 = vmatprep.subr.bf16.mxu0 %v1322_v26  ;;  %v970_v7 = vld [vmem:[%s9591_s10 + $0x648] sm:$0xff]  ;;  %v1449_v26 = vunpack.c.l.s8.bf16 %v857_v63  ;;  %v1434_v36 = vunpack.c.h.s8.bf16 %v842_v6  ;;  %v1418_v13 = vunpack.c.l.s8.bf16 %v842_v6 }
 0x308   : > { %3074 = vmatprep.subr.bf16.mxu1 %v1578_v30  ;;  %v1705_v30 = vunpack.c.l.s8.bf16 %v985_v0  ;;  %v1690_v8 = vunpack.c.h.s8.bf16 %v970_v7  ;;  %v1674_v14 = vunpack.c.l.s8.bf16 %v970_v7  ;;  %v1050_v0 = vld [vmem:[%s9591_s10 + $0x8c8] sm:$0xff]  ;;  %v1049_v7 = vld [vmem:[%s9591_s10 + $0x8c0] sm:$0xff] }
 0x30a   : > { %3034 = vmatpush1.bf16.msra.mxu0 %v1321_v9  ;;  %v841_v9 = vld [vmem:[%s9591_s10 + $0x240] sm:$0xff] }
 0x30b   : > { %3075 = vmatpush1.bf16.msra.mxu1 %v1577_v10  ;;  %3035 = vmatprep.subr.bf16.mxu0 %v1306_v11  ;;  %v969_v10 = vld [vmem:[%s9591_s10 + $0x640] sm:$0xff]  ;;  %v1433_v11 = vunpack.c.h.s8.bf16 %v841_v9 }
 0x30c   : > { %3076 = vmatprep.subr.bf16.mxu1 %v1562_v12  ;;  %v1689_v12 = vunpack.c.h.s8.bf16 %v969_v10 }
 0x30e   : > { %3036 = vmatpush1.bf16.msra.mxu0 %v1305_v15  ;;  %v1082_v15 = vld [vmem:[%s9591_s10 + $0x9c8] sm:$0xff] }
 0x30f   : > { %3077 = vmatpush1.bf16.msra.mxu1 %v1561_v17  ;;  %3037 = vmatprep.subr.bf16.mxu0 %v1290_v20  ;;  %v1210_v17 = vld [vmem:[%s9591_s10 + $0xdc8] sm:$0xff]  ;;  %v1417_v20 = vunpack.c.l.s8.bf16 %v841_v9  ;;  %v1914_v24 = vunpack.c.h.s8.bf16 %v1082_v15  ;;  %v1898_v32 = vunpack.c.l.s8.bf16 %v1082_v15 }
 0x310   : > { %3078 = vmatprep.subr.bf16.mxu1 %v1546_v21  ;;  %v1673_v21 = vunpack.c.l.s8.bf16 %v969_v10  ;;  %v2170_v25 = vunpack.c.h.s8.bf16 %v1210_v17  ;;  %v2154_v33 = vunpack.c.l.s8.bf16 %v1210_v17  ;;  %v1034_v10 = vld [vmem:[%s9591_s10 + $0x848] sm:$0xff]  ;;  %v1033_v17 = vld [vmem:[%s9591_s10 + $0x840] sm:$0xff] }
 0x312   : > { %3038 = vmatpush1.bf16.msra.mxu0 %v1289_v28  ;;  %v1081_v28 = vld [vmem:[%s9591_s10 + $0x9c0] sm:$0xff] }
 0x313   : > { %3079 = vmatpush1.bf16.msra.mxu1 %v1545_v18  ;;  %3039 = vmatprep.subr.bf16.mxu0 %v1530_v29  ;;  %v1209_v18 = vld [vmem:[%s9591_s10 + $0xdc0] sm:$0xff]  ;;  %v1913_v29 = vunpack.c.h.s8.bf16 %v1081_v28  ;;  %v1897_v42 = vunpack.c.l.s8.bf16 %v1081_v28 }
 0x314   : > { %3080 = vmatprep.subr.bf16.mxu1 %v1786_v31  ;;  %v2169_v31 = vunpack.c.h.s8.bf16 %v1209_v18 }
 0x316   : > { %3040 = vmatpush2.bf16.msra.mxu0 %v1529_v34  ;;  %v1066_v34 = vld [vmem:[%s9591_s10 + $0x948] sm:$0xff] }
 0x317   : > { %3081 = vmatpush2.bf16.msra.mxu1 %v1785_v27  ;;  %3041 = vmatprep.subr.bf16.mxu0 %v1514_v35  ;;  %v1194_v27 = vld [vmem:[%s9591_s10 + $0xd48] sm:$0xff] }
 0x318   : > { %3082 = vmatprep.subr.bf16.mxu1 %v1770_v37  ;;  %v2138_v45 = vunpack.c.h.s8.bf16 %v1194_v27 }
 0x31a   : > { %3042 = vmatpush2.bf16.msra.mxu0 %v1513_v43  ;;  %v2153_v43 = vunpack.c.l.s8.bf16 %v1209_v18  ;;  %v1146_v18 = vld [vmem:[%s9591_s10 + $0xbc8] sm:$0xff] }
 0x31b   : > { %3083 = vmatpush2.bf16.msra.mxu1 %v1769_v19  ;;  %3043 = vmatprep.subr.bf16.mxu0 %v1498_v23 }
 0x31c   : > { %3084 = vmatprep.subr.bf16.mxu1 %v1754_v44  ;;  %v1882_v44 = vunpack.c.h.s8.bf16 %v1066_v34 }
 0x31e   : > { %3044 = vmatpush2.bf16.msra.mxu0 %v1497_v48  ;;  %v1193_v48 = vld [vmem:[%s9591_s10 + $0xd40] sm:$0xff] }
 0x31f   : > { %3085 = vmatpush2.bf16.msra.mxu1 %v1753_v52  ;;  %3045 = vmatprep.subr.bf16.mxu0 %v1482_v53 }
 0x320   : > { %3086 = vmatprep.subr.bf16.mxu1 %v1738_v54 }
 0x322   : > { %3046 = vmatpush2.bf16.msra.mxu0 %v1481_v57  ;;  %v2137_v57 = vunpack.c.h.s8.bf16 %v1193_v48 }
 0x323   : > { %3087 = vmatpush2.bf16.msra.mxu1 %v1737_v50  ;;  %3047 = vmatprep.subr.bf16.mxu0 %v1466_v61 }
 0x324   : > { %3088 = vmatprep.subr.bf16.mxu1 %v1722_v62  ;;  %v2122_v62 = vunpack.c.l.s8.bf16 %v1194_v27  ;;  %v1145_v27 = vld [vmem:[%s9591_s10 + $0xbc0] sm:$0xff] }
 0x326   : > { %3048 = vmatpush2.bf16.msra.mxu0 %v1465_v2  ;;  %v1178_v2 = vld [vmem:[%s9591_s10 + $0xcc8] sm:$0xff] }
 0x327   : > { %3089 = vmatpush2.bf16.msra.mxu1 %v1721_v3  ;;  %3049 = vmatprep.subr.bf16.mxu0 %v1450_v4  ;;  %v1865_v3 = vunpack.c.l.s8.bf16 %v1065_v46  ;;  %v2121_v4 = vunpack.c.l.s8.bf16 %v1193_v48  ;;  %v2106_v6 = vunpack.c.h.s8.bf16 %v1178_v2  ;;  %v2090_v9 = vunpack.c.l.s8.bf16 %v1178_v2 }
 0x328   : > { %3090 = vmatprep.subr.bf16.mxu1 %v1706_v5  ;;  %v1850_v5 = vunpack.c.h.s8.bf16 %v1050_v0 }
 0x32a   : > { %3050 = vmatpush2.bf16.msra.mxu0 %v1449_v26  ;;  %v1177_v26 = vld [vmem:[%s9591_s10 + $0xcc0] sm:$0xff] }
 0x32b   : > { %3091 = vmatpush2.bf16.msra.mxu1 %v1705_v30  ;;  %3051 = vmatprep.subr.bf16.mxu0 %v1434_v36  ;;  %v1849_v30 = vunpack.c.h.s8.bf16 %v1049_v7  ;;  %v2105_v36 = vunpack.c.h.s8.bf16 %v1177_v26 }
 0x32c   : > { %3092 = vmatprep.subr.bf16.mxu1 %v1690_v8  ;;  %v1834_v8 = vunpack.c.l.s8.bf16 %v1050_v0 }
 0x32e   : > { %3052 = vmatpush2.bf16.msra.mxu0 %v1433_v11  ;;  %v1162_v11 = vld [vmem:[%s9591_s10 + $0xc48] sm:$0xff] }
 0x32f   : > { %3093 = vmatpush2.bf16.msra.mxu1 %v1689_v12  ;;  %3053 = vmatprep.subr.bf16.mxu0 %v1418_v13  ;;  %v1833_v12 = vunpack.c.l.s8.bf16 %v1049_v7  ;;  %v2089_v13 = vunpack.c.l.s8.bf16 %v1177_v26  ;;  %v2074_v15 = vunpack.c.h.s8.bf16 %v1162_v11  ;;  %v2058_v28 = vunpack.c.l.s8.bf16 %v1162_v11 }
 0x330   : > { %3094 = vmatprep.subr.bf16.mxu1 %v1674_v14  ;;  %v1818_v14 = vunpack.c.h.s8.bf16 %v1034_v10 }
 0x332   : > { %3054 = vmatpush2.bf16.msra.mxu0 %v1417_v20  ;;  %v1161_v20 = vld [vmem:[%s9591_s10 + $0xc40] sm:$0xff] }
 0x333   : > { %3095 = vmatpush2.bf16.msra.mxu1 %v1673_v21  ;;  %3105 = vmatprep.subr.bf16.mxu0 %v1914_v24  ;;  %v1817_v21 = vunpack.c.h.s8.bf16 %v1033_v17  ;;  %v2073_v24 = vunpack.c.h.s8.bf16 %v1161_v20 }
 0x334   : > { %3146 = vmatprep.subr.bf16.mxu1 %v2170_v25  ;;  %v1802_v25 = vunpack.c.l.s8.bf16 %v1034_v10 }
 0x335   : > { %v2811_v35 = vpop.f32.mrf.mxu0  ;;  %3056 = vmatmul.mubr.bf16.vlgmr.msra.gmra.mxu0 %v9726_v51 }
 0x336   : > { %v2852_v37 = vpop.f32.mrf.mxu1  ;;  %3097 = vmatmul.mubr.bf16.vlgmr.msra.gmra.mxu1 %v9735_v60  ;;  %v2812_v41 = vadd.f32 %v2811_v35, %v10030_v40  ;;  %3106 = vmatpush1.bf16.msra.mxu0 %v1913_v29  ;;  %v1274_v29 = vld [vmem:[%s9591_s10 + $0xfc8] sm:$0xff]  ;;  %v1273_v35 = vld [vmem:[%s9591_s10 + $0xfc0] sm:$0xff] }
 0x337   : > { %3147 = vmatpush1.bf16.msra.mxu1 %v2169_v31  ;;  %v2813_v19 = vpop.f32.mrf.mxu0  ;;  %3107 = vmatprep.subr.bf16.mxu0 %v1898_v32  ;;  %v1801_v31 = vunpack.c.l.s8.bf16 %v1033_v17  ;;  %v2057_v32 = vunpack.c.l.s8.bf16 %v1161_v20 }
 0x338   : > { %v2854_v23 = vpop.f32.mrf.mxu1  ;;  %3148 = vmatprep.subr.bf16.mxu1 %v2154_v33  ;;  %v10073_v52 = vadd.f32 %v2852_v37, %v2812_v41  ;;  %v2814_v53 = vadd.f32 %v2813_v19, %v10034_v47  ;;  %3137 = vmatprep.mubr.bf16.mxu0 %v9731_v59  ;;  %v1866_v47 = vunpack.c.l.s8.bf16 %v1066_v34  ;;  %v2042_v33 = vunpack.c.h.s8.bf16 %v1146_v18  ;;  %v1130_v19 = vld [vmem:[%s9591_s10 + $0xb48] sm:$0xff] }
 0x339   : > { %3178 = vmatprep.mubr.bf16.mxu1 %v9741_v49  ;;  %v2815_v40 = vpop.f32.mrf.mxu0  ;;  %v2298_v34 = vunpack.c.h.s8.bf16 %v1274_v29  ;;  %v2041_v37 = vunpack.c.h.s8.bf16 %v1145_v27  ;;  %v2297_v41 = vunpack.c.h.s8.bf16 %v1273_v35  ;;  %v2010_v46 = vunpack.c.h.s8.bf16 %v1130_v19 }
 0x33a   : > { %v2856_v54 = vpop.f32.mrf.mxu1  ;;  %v10078_v55 = vadd.f32 %v2854_v23, %v2814_v53  ;;  %3108 = vmatpush1.bf16.msra.mxu0 %v1897_v42  ;;  %v2026_v42 = vunpack.c.l.s8.bf16 %v1146_v18  ;;  %v1258_v23 = vld [vmem:[%s9591_s10 + $0xf48] sm:$0xff]  ;;  %v1129_v53 = vld [vmem:[%s9591_s10 + $0xb40] sm:$0xff] }
 0x33b   : > { %3149 = vmatpush1.bf16.msra.mxu1 %v2153_v43  ;;  %v2816_v50 = vpop.f32.mrf.mxu0  ;;  %3109 = vmatprep.subr.bf16.mxu0 %v1882_v44  ;;  %v2282_v43 = vunpack.c.l.s8.bf16 %v1274_v29  ;;  %v2025_v44 = vunpack.c.l.s8.bf16 %v1145_v27  ;;  %v2266_v48 = vunpack.c.h.s8.bf16 %v1258_v23  ;;  %v1257_v40 = vld [vmem:[%s9591_s10 + $0xf40] sm:$0xff]  ;;  %v2009_v54 = vunpack.c.h.s8.bf16 %v1129_v53 }
 0x33c   : > { %v2857_v61 = vpop.f32.mrf.mxu1  ;;  %3150 = vmatprep.subr.bf16.mxu1 %v2138_v45  ;;  %v3712_v63 = vcombine.low %v10073_v52, %v10078_v55  ;;  %v2281_v45 = vunpack.c.l.s8.bf16 %v1273_v35  ;;  %v2250_v50 = vunpack.c.l.s8.bf16 %v1258_v23  ;;  %v2249_v0 = vunpack.c.l.s8.bf16 %v1257_v40 }
 0x33d   : > { %v1114_v61 = vld [vmem:[%s9591_s10 + $0xac8] sm:$0xff] }
 0x33e   : > { %3110 = vmatpush1.bf16.msra.mxu0 %v1881_v56  ;;  %v2265_v56 = vunpack.c.h.s8.bf16 %v1257_v40  ;;  %v1978_v2 = vunpack.c.h.s8.bf16 %v1114_v61  ;;  %v1962_v26 = vunpack.c.l.s8.bf16 %v1114_v61 }
 0x33f   : > { %3151 = vmatpush1.bf16.msra.mxu1 %v2137_v57  ;;  %3111 = vmatprep.subr.bf16.mxu0 %v1866_v47  ;;  %v1994_v57 = vunpack.c.l.s8.bf16 %v1130_v19  ;;  %v1242_v47 = vld [vmem:[%s9591_s10 + $0xec8] sm:$0xff] }
 0x340   : > { %3152 = vmatprep.subr.bf16.mxu1 %v2122_v62  ;;  %v1993_v62 = vunpack.c.l.s8.bf16 %v1129_v53 }
 0x342   : > { %3112 = vmatpush1.bf16.msra.mxu0 %v1865_v3  ;;  %v2234_v3 = vunpack.c.h.s8.bf16 %v1242_v47 }
 0x343   : > { %3153 = vmatpush1.bf16.msra.mxu1 %v2121_v4  ;;  %3113 = vmatprep.subr.bf16.mxu0 %v1850_v5  ;;  %v1113_v4 = vld [vmem:[%s9591_s10 + $0xac0] sm:$0xff] }
 0x344   : > { %3154 = vmatprep.subr.bf16.mxu1 %v2106_v6  ;;  %v1241_v5 = vld [vmem:[%s9591_s10 + $0xec0] sm:$0xff]  ;;  %v1977_v6 = vunpack.c.h.s8.bf16 %v1113_v4 }
 0x345   : > { %v2233_v7 = vunpack.c.h.s8.bf16 %v1241_v5  ;;  %v2217_v10 = vunpack.c.l.s8.bf16 %v1241_v5  ;;  %v924_v5 = vld [vmem:[%s9591_s10 + $0x4d8] sm:$0xff] }
 0x346   : > { %3114 = vmatpush1.bf16.msra.mxu0 %v1849_v30  ;;  %v2218_v30 = vunpack.c.l.s8.bf16 %v1242_v47 }
 0x347   : > { %3155 = vmatpush1.bf16.msra.mxu1 %v2105_v36  ;;  %3115 = vmatprep.subr.bf16.mxu0 %v1834_v8  ;;  %v1098_v36 = vld [vmem:[%s9591_s10 + $0xa48] sm:$0xff] }
 0x348   : > { %3156 = vmatprep.subr.bf16.mxu1 %v2090_v9  ;;  %v1226_v8 = vld [vmem:[%s9591_s10 + $0xe48] sm:$0xff]  ;;  %v1961_v9 = vunpack.c.l.s8.bf16 %v1113_v4  ;;  %v1946_v11 = vunpack.c.h.s8.bf16 %v1098_v36  ;;  %v1930_v20 = vunpack.c.l.s8.bf16 %v1098_v36  ;;  %v796_v4 = vld [vmem:[%s9591_s10 + $0xd8] sm:$0xff]  ;;  %v795_v36 = vld [vmem:[%s9591_s10 + $0xd0] sm:$0xff] }
 0x34a   : > { %3116 = vmatpush1.bf16.msra.mxu0 %v1833_v12  ;;  %v2202_v12 = vunpack.c.h.s8.bf16 %v1226_v8 }
 0x34b   : > { %3157 = vmatpush1.bf16.msra.mxu1 %v2089_v13  ;;  %3117 = vmatprep.subr.bf16.mxu0 %v1818_v14  ;;  %v1097_v13 = vld [vmem:[%s9591_s10 + $0xa40] sm:$0xff] }
 0x34c   : > { %3158 = vmatprep.subr.bf16.mxu1 %v2074_v15  ;;  %v1225_v14 = vld [vmem:[%s9591_s10 + $0xe40] sm:$0xff]  ;;  %v1945_v15 = vunpack.c.h.s8.bf16 %v1097_v13 }
 0x34d   : > { %v2201_v17 = vunpack.c.h.s8.bf16 %v1225_v14  ;;  %v2185_v18 = vunpack.c.l.s8.bf16 %v1225_v14  ;;  %v908_v14 = vld [vmem:[%s9591_s10 + $0x458] sm:$0xff] }
 0x34e   : > { %3118 = vmatpush1.bf16.msra.mxu0 %v1817_v21  ;;  %v2186_v21 = vunpack.c.l.s8.bf16 %v1226_v8  ;;  %v923_v8 = vld [vmem:[%s9591_s10 + $0x4d0] sm:$0xff] }
 0x34f   : > { %3159 = vmatpush1.bf16.msra.mxu1 %v2073_v24  ;;  %3119 = vmatprep.subr.bf16.mxu0 %v1802_v25  ;;  %v828_v24 = vld [vmem:[%s9591_s10 + $0x1d8] sm:$0xff] }
 0x350   : > { %3160 = vmatprep.subr.bf16.mxu1 %v2058_v28  ;;  %v956_v25 = vld [vmem:[%s9591_s10 + $0x5d8] sm:$0xff]  ;;  %v1929_v28 = vunpack.c.l.s8.bf16 %v1097_v13  ;;  %v1404_v29 = vunpack.c.h.s8.bf16 %v828_v24  ;;  %v1388_v35 = vunpack.c.l.s8.bf16 %v828_v24  ;;  %v779_v24 = vld [vmem:[%s9591_s10 + $0x50] sm:$0xff] }
 0x351   : > { %v780_v13 = vld [vmem:[%s9591_s10 + $0x58] sm:$0xff] }
 0x352   : > { %3120 = vmatpush1.bf16.msra.mxu0 %v1801_v31  ;;  %v1660_v31 = vunpack.c.h.s8.bf16 %v956_v25 }
 0x353   : > { %3161 = vmatpush1.bf16.msra.mxu1 %v2057_v32  ;;  %3121 = vmatprep.subr.bf16.mxu0 %v2042_v33  ;;  %v827_v32 = vld [vmem:[%s9591_s10 + $0x1d0] sm:$0xff] }
 0x354   : > { %3162 = vmatprep.subr.bf16.mxu1 %v2298_v34  ;;  %v955_v33 = vld [vmem:[%s9591_s10 + $0x5d0] sm:$0xff]  ;;  %v1403_v34 = vunpack.c.h.s8.bf16 %v827_v32 }
 0x355   : > { %v1659_v27 = vunpack.c.h.s8.bf16 %v955_v33 }
 0x356   : > { %3122 = vmatpush2.bf16.msra.mxu0 %v2041_v37  ;;  %v1644_v37 = vunpack.c.l.s8.bf16 %v956_v25  ;;  %v907_v25 = vld [vmem:[%s9591_s10 + $0x450] sm:$0xff] }
 0x357   : > { %3163 = vmatpush2.bf16.msra.mxu1 %v2297_v41  ;;  %3123 = vmatprep.subr.bf16.mxu0 %v2026_v42  ;;  %v812_v41 = vld [vmem:[%s9591_s10 + $0x158] sm:$0xff] }
 0x358   : > { %3164 = vmatprep.subr.bf16.mxu1 %v2282_v43  ;;  %v940_v42 = vld [vmem:[%s9591_s10 + $0x558] sm:$0xff]  ;;  %v1372_v53 = vunpack.c.h.s8.bf16 %v812_v41 }
 0x359   : > { %v1628_v40 = vunpack.c.h.s8.bf16 %v940_v42 }
 0x35a   : > { %3124 = vmatpush2.bf16.msra.mxu0 %v2025_v44  ;;  %v1387_v44 = vunpack.c.l.s8.bf16 %v827_v32  ;;  %v892_v32 = vld [vmem:[%s9591_s10 + $0x3d8] sm:$0xff] }
 0x35b   : > { %3165 = vmatpush2.bf16.msra.mxu1 %v2281_v45  ;;  %3125 = vmatprep.subr.bf16.mxu0 %v2010_v46  ;;  %v1643_v45 = vunpack.c.l.s8.bf16 %v955_v33  ;;  %v1020_v33 = vld [vmem:[%s9591_s10 + $0x7d8] sm:$0xff] }
 0x35c   : > { %3166 = vmatprep.subr.bf16.mxu1 %v2266_v48 }
 0x35e   : > { %3126 = vmatpush2.bf16.msra.mxu0 %v2009_v54  ;;  %v811_v54 = vld [vmem:[%s9591_s10 + $0x150] sm:$0xff] }
 0x35f   : > { %3167 = vmatpush2.bf16.msra.mxu1 %v2265_v56  ;;  %3127 = vmatprep.subr.bf16.mxu0 %v1994_v57  ;;  %v939_v56 = vld [vmem:[%s9591_s10 + $0x550] sm:$0xff]  ;;  %v1371_v61 = vunpack.c.h.s8.bf16 %v811_v54 }
 0x360   : > { %3168 = vmatprep.subr.bf16.mxu1 %v2250_v50  ;;  %v1627_v47 = vunpack.c.h.s8.bf16 %v939_v56 }
 0x362   : > { %3128 = vmatpush2.bf16.msra.mxu0 %v1993_v62 }
 0x363   : > { %3169 = vmatpush2.bf16.msra.mxu1 %v2249_v0  ;;  %3129 = vmatprep.subr.bf16.mxu0 %v1978_v2  ;;  %v1356_v2 = vunpack.c.l.s8.bf16 %v812_v41  ;;  %v891_v41 = vld [vmem:[%s9591_s10 + $0x3d0] sm:$0xff] }
 0x364   : > { %3170 = vmatprep.subr.bf16.mxu1 %v2234_v3  ;;  %v1612_v3 = vunpack.c.l.s8.bf16 %v940_v42  ;;  %v1019_v42 = vld [vmem:[%s9591_s10 + $0x7d0] sm:$0xff] }
 0x366   : > { %3130 = vmatpush2.bf16.msra.mxu0 %v1977_v6  ;;  %v1355_v6 = vunpack.c.l.s8.bf16 %v811_v54  ;;  %v1515_v54 = vunpack.c.l.s8.bf16 %v891_v41 }
 0x367   : > { %3171 = vmatpush2.bf16.msra.mxu1 %v2233_v7  ;;  %3131 = vmatprep.subr.bf16.mxu0 %v1962_v26  ;;  %v1611_v7 = vunpack.c.l.s8.bf16 %v939_v56  ;;  %v1340_v26 = vunpack.c.h.s8.bf16 %v796_v4  ;;  %v1771_v56 = vunpack.c.l.s8.bf16 %v1019_v42 }
 0x368   : > { %3172 = vmatprep.subr.bf16.mxu1 %v2218_v30  ;;  %v1596_v30 = vunpack.c.h.s8.bf16 %v924_v5 }
 0x36a   : > { %3132 = vmatpush2.bf16.msra.mxu0 %v1961_v9  ;;  %v1339_v9 = vunpack.c.h.s8.bf16 %v795_v36 }
 0x36b   : > { %3173 = vmatpush2.bf16.msra.mxu1 %v2217_v10  ;;  %3133 = vmatprep.subr.bf16.mxu0 %v1946_v11  ;;  %v1595_v10 = vunpack.c.h.s8.bf16 %v923_v8  ;;  %v1324_v11 = vunpack.c.l.s8.bf16 %v796_v4  ;;  %v860_v4 = vld [vmem:[%s9591_s10 + $0x2d8] sm:$0xff] }
 0x36c   : > { %3174 = vmatprep.subr.bf16.mxu1 %v2202_v12  ;;  %v1580_v12 = vunpack.c.l.s8.bf16 %v924_v5  ;;  %v988_v5 = vld [vmem:[%s9591_s10 + $0x6d8] sm:$0xff] }
 0x36e   : > { %3134 = vmatpush2.bf16.msra.mxu0 %v1945_v15  ;;  %v1323_v15 = vunpack.c.l.s8.bf16 %v795_v36  ;;  %v859_v36 = vld [vmem:[%s9591_s10 + $0x2d0] sm:$0xff] }
 0x36f   : > { %3175 = vmatpush2.bf16.msra.mxu1 %v2201_v17  ;;  %3135 = vmatprep.subr.bf16.mxu0 %v1930_v20  ;;  %v1579_v17 = vunpack.c.l.s8.bf16 %v923_v8  ;;  %v1308_v20 = vunpack.c.h.s8.bf16 %v780_v13  ;;  %v987_v8 = vld [vmem:[%s9591_s10 + $0x6d0] sm:$0xff] }
 0x370   : > { %3176 = vmatprep.subr.bf16.mxu1 %v2186_v21  ;;  %v1564_v21 = vunpack.c.h.s8.bf16 %v908_v14 }
 0x372   : > { %3136 = vmatpush2.bf16.msra.mxu0 %v1929_v28  ;;  %v1307_v28 = vunpack.c.h.s8.bf16 %v779_v24 }
 0x373   : > { %3177 = vmatpush2.bf16.msra.mxu1 %v2185_v18  ;;  %3187 = vmatprep.subr.bf16.mxu0 %v1404_v29  ;;  %v1563_v18 = vunpack.c.h.s8.bf16 %v907_v25  ;;  %v1292_v29 = vunpack.c.l.s8.bf16 %v780_v13  ;;  %v844_v13 = vld [vmem:[%s9591_s10 + $0x258] sm:$0xff] }
 0x374   : > { %3228 = vmatprep.subr.bf16.mxu1 %v1660_v31  ;;  %v1548_v31 = vunpack.c.l.s8.bf16 %v908_v14  ;;  %v972_v14 = vld [vmem:[%s9591_s10 + $0x658] sm:$0xff] }
 0x375   : > { %v2893_v43 = vpop.f32.mrf.mxu0  ;;  %3138 = vmatmul.mubr.bf16.vlgmr.msra.gmra.mxu0 %v9710_v16 }
 0x376   : > { %v2934_v19 = vpop.f32.mrf.mxu1  ;;  %3179 = vmatmul.mubr.bf16.vlgmr.msra.gmra.mxu1 %v9779_v39  ;;  %3188 = vmatpush1.bf16.msra.mxu0 %v1403_v34  ;;  %v1291_v34 = vunpack.c.l.s8.bf16 %v779_v24  ;;  %v843_v24 = vld [vmem:[%s9591_s10 + $0x250] sm:$0xff] }
 0x377   : > { %v10114_v23 = vadd.f32 %v2934_v19, %v2893_v43  ;;  %3229 = vmatpush1.bf16.msra.mxu1 %v1659_v27  ;;  %v10116_v46 = vpop.f32.mrf.mxu0  ;;  %3189 = vmatprep.subr.bf16.mxu0 %v1388_v35  ;;  %v1547_v27 = vunpack.c.l.s8.bf16 %v907_v25  ;;  %v1532_v35 = vunpack.c.h.s8.bf16 %v892_v32  ;;  %v1531_v43 = vunpack.c.h.s8.bf16 %v891_v41  ;;  %v971_v25 = vld [vmem:[%s9591_s10 + $0x650] sm:$0xff] }
 0x378   : > { %v10118_v48 = vpop.f32.mrf.mxu1  ;;  %3230 = vmatprep.subr.bf16.mxu1 %v1644_v37  ;;  %3219 = vmatprep.mubr.bf16.mxu0 %v9691_v58  ;;  %v1788_v37 = vunpack.c.h.s8.bf16 %v1020_v33  ;;  %v1787_v19 = vunpack.c.h.s8.bf16 %v1019_v42  ;;  %v1083_v41 = vld [vmem:[%s9591_s10 + $0x9d0] sm:$0xff] }
 0x379   : > { %3260 = vmatprep.mubr.bf16.mxu1 %v9697_v1  ;;  %v2897_v57 = vpop.f32.mrf.mxu0  ;;  %v1211_v42 = vld [vmem:[%s9591_s10 + $0xdd0] sm:$0xff] }
 0x37a   : > { %v2938_v50 = vpop.f32.mrf.mxu1  ;;  %3190 = vmatpush1.bf16.msra.mxu0 %v1387_v44  ;;  %v1516_v44 = vunpack.c.l.s8.bf16 %v892_v32  ;;  %v1084_v32 = vld [vmem:[%s9591_s10 + $0x9d8] sm:$0xff] }
 0x37b   : > { %3231 = vmatpush1.bf16.msra.mxu1 %v1643_v45  ;;  %v2898_v62 = vpop.f32.mrf.mxu0  ;;  %3191 = vmatprep.subr.bf16.mxu0 %v1372_v53  ;;  %v1772_v45 = vunpack.c.l.s8.bf16 %v1020_v33  ;;  %v876_v53 = vld [vmem:[%s9591_s10 + $0x358] sm:$0xff] }
 0x37c   : > { %v2939_v0 = vpop.f32.mrf.mxu1  ;;  %3232 = vmatprep.subr.bf16.mxu1 %v1628_v40  ;;  %v1004_v40 = vld [vmem:[%s9591_s10 + $0x758] sm:$0xff]  ;;  %v1500_v57 = vunpack.c.h.s8.bf16 %v876_v53 }
 0x37d   : > { %v1756_v50 = vunpack.c.h.s8.bf16 %v1004_v40  ;;  %v1212_v33 = vld [vmem:[%s9591_s10 + $0xdd8] sm:$0xff] }
 0x37e   : > { %3192 = vmatpush1.bf16.msra.mxu0 %v1371_v61  ;;  %v875_v61 = vld [vmem:[%s9591_s10 + $0x350] sm:$0xff] }
 0x37f   : > { %3233 = vmatpush1.bf16.msra.mxu1 %v1627_v47  ;;  %3193 = vmatprep.subr.bf16.mxu0 %v1356_v2  ;;  %v1003_v47 = vld [vmem:[%s9591_s10 + $0x750] sm:$0xff]  ;;  %v1499_v62 = vunpack.c.h.s8.bf16 %v875_v61  ;;  %v1484_v2 = vunpack.c.l.s8.bf16 %v876_v53  ;;  %v1068_v53 = vld [vmem:[%s9591_s10 + $0x958] sm:$0xff] }
 0x380   : > { %3234 = vmatprep.subr.bf16.mxu1 %v1612_v3  ;;  %v1755_v0 = vunpack.c.h.s8.bf16 %v1003_v47  ;;  %v1740_v3 = vunpack.c.l.s8.bf16 %v1004_v40  ;;  %v1196_v40 = vld [vmem:[%s9591_s10 + $0xd58] sm:$0xff] }
 0x382   : > { %3194 = vmatpush1.bf16.msra.mxu0 %v1355_v6  ;;  %v1483_v6 = vunpack.c.l.s8.bf16 %v875_v61  ;;  %v1899_v61 = vunpack.c.l.s8.bf16 %v1083_v41 }
 0x383   : > { %3235 = vmatpush1.bf16.msra.mxu1 %v1611_v7  ;;  %3195 = vmatprep.subr.bf16.mxu0 %v1340_v26  ;;  %v1739_v7 = vunpack.c.l.s8.bf16 %v1003_v47  ;;  %v1468_v26 = vunpack.c.h.s8.bf16 %v860_v4  ;;  %v2155_v47 = vunpack.c.l.s8.bf16 %v1211_v42 }
 0x384   : > { %3236 = vmatprep.subr.bf16.mxu1 %v1596_v30  ;;  %v1724_v30 = vunpack.c.h.s8.bf16 %v988_v5 }
 0x386   : > { %3196 = vmatpush1.bf16.msra.mxu0 %v1339_v9  ;;  %v1467_v9 = vunpack.c.h.s8.bf16 %v859_v36 }
 0x387   : > { %3237 = vmatpush1.bf16.msra.mxu1 %v1595_v10  ;;  %3197 = vmatprep.subr.bf16.mxu0 %v1324_v11  ;;  %v1723_v10 = vunpack.c.h.s8.bf16 %v987_v8  ;;  %v1452_v11 = vunpack.c.l.s8.bf16 %v860_v4  ;;  %v1067_v4 = vld [vmem:[%s9591_s10 + $0x950] sm:$0xff] }
 0x388   : > { %3238 = vmatprep.subr.bf16.mxu1 %v1580_v12  ;;  %v1708_v12 = vunpack.c.l.s8.bf16 %v988_v5  ;;  %v1195_v5 = vld [vmem:[%s9591_s10 + $0xd50] sm:$0xff] }
 0x38a   : > { %3198 = vmatpush1.bf16.msra.mxu0 %v1323_v15  ;;  %v1451_v15 = vunpack.c.l.s8.bf16 %v859_v36 }
 0x38b   : > { %3239 = vmatpush1.bf16.msra.mxu1 %v1579_v17  ;;  %3199 = vmatprep.subr.bf16.mxu0 %v1308_v20  ;;  %v1707_v17 = vunpack.c.l.s8.bf16 %v987_v8  ;;  %v1436_v20 = vunpack.c.h.s8.bf16 %v844_v13 }
 0x38c   : > { %3240 = vmatprep.subr.bf16.mxu1 %v1564_v21  ;;  %v1692_v21 = vunpack.c.h.s8.bf16 %v972_v14 }
 0x38e   : > { %3200 = vmatpush1.bf16.msra.mxu0 %v1307_v28  ;;  %v1435_v28 = vunpack.c.h.s8.bf16 %v843_v24 }
 0x38f   : > { %3241 = vmatpush1.bf16.msra.mxu1 %v1563_v18  ;;  %3201 = vmatprep.subr.bf16.mxu0 %v1292_v29  ;;  %v1691_v18 = vunpack.c.h.s8.bf16 %v971_v25  ;;  %v1420_v29 = vunpack.c.l.s8.bf16 %v844_v13  ;;  %v1180_v13 = vld [vmem:[%s9591_s10 + $0xcd8] sm:$0xff] }
 0x390   : > { %3242 = vmatprep.subr.bf16.mxu1 %v1548_v31  ;;  %v1676_v31 = vunpack.c.l.s8.bf16 %v972_v14  ;;  %v3720_v14 = vrot.slane %v3712_v63, %v9991_v22 }
 0x392   : > { %3202 = vmatpush1.bf16.msra.mxu0 %v1291_v34  ;;  %v1419_v34 = vunpack.c.l.s8.bf16 %v843_v24 }
 0x393   : > { %3243 = vmatpush1.bf16.msra.mxu1 %v1547_v27  ;;  %3203 = vmatprep.subr.bf16.mxu0 %v1532_v35  ;;  %v1675_v27 = vunpack.c.l.s8.bf16 %v971_v25  ;;  %v1916_v35 = vunpack.c.h.s8.bf16 %v1084_v32  ;;  %v2108_v25 = vunpack.c.h.s8.bf16 %v1180_v13 }
 0x394   : > { %3244 = vmatprep.subr.bf16.mxu1 %v1788_v37  ;;  %v2172_v37 = vunpack.c.h.s8.bf16 %v1212_v33 }
 0x396   : > { %3204 = vmatpush2.bf16.msra.mxu0 %v1531_v43  ;;  %v1915_v43 = vunpack.c.h.s8.bf16 %v1083_v41 }
 0x397   : > { %3245 = vmatpush2.bf16.msra.mxu1 %v1787_v19  ;;  %3205 = vmatprep.subr.bf16.mxu0 %v1516_v44  ;;  %v2171_v19 = vunpack.c.h.s8.bf16 %v1211_v42  ;;  %v1900_v44 = vunpack.c.l.s8.bf16 %v1084_v32  ;;  %v2092_v32 = vunpack.c.l.s8.bf16 %v1180_v13  ;;  %v1035_v42 = vld [vmem:[%s9591_s10 + $0x850] sm:$0xff] }
 0x398   : > { %3246 = vmatprep.subr.bf16.mxu1 %v1772_v45  ;;  %v2156_v45 = vunpack.c.l.s8.bf16 %v1212_v33  ;;  %v1036_v33 = vld [vmem:[%s9591_s10 + $0x858] sm:$0xff] }
 0x39a   : > { %3206 = vmatpush2.bf16.msra.mxu0 %v1515_v54 }
 0x39b   : > { %3247 = vmatpush2.bf16.msra.mxu1 %v1771_v56  ;;  %3207 = vmatprep.subr.bf16.mxu0 %v1500_v57  ;;  %v2937_v57 = vadd.f32 %v10118_v48, %v10116_v46 }
 0x39c   : > { %3248 = vmatprep.subr.bf16.mxu1 %v1756_v50 }
 0x39e   : > { %3208 = vmatpush2.bf16.msra.mxu0 %v1499_v62 }
 0x39f   : > { %3249 = vmatpush2.bf16.msra.mxu1 %v1755_v0  ;;  %3209 = vmatprep.subr.bf16.mxu0 %v1484_v2  ;;  %v1884_v2 = vunpack.c.h.s8.bf16 %v1068_v53 }
 0x3a0   : > { %3250 = vmatprep.subr.bf16.mxu1 %v1740_v3  ;;  %v2140_v3 = vunpack.c.h.s8.bf16 %v1196_v40 }
 0x3a2   : > { %3210 = vmatpush2.bf16.msra.mxu0 %v1483_v6 }
 0x3a3   : > { %3251 = vmatpush2.bf16.msra.mxu1 %v1739_v7  ;;  %3211 = vmatprep.subr.bf16.mxu0 %v1468_v26  ;;  %v1883_v26 = vunpack.c.h.s8.bf16 %v1067_v4 }
 0x3a4   : > { %3252 = vmatprep.subr.bf16.mxu1 %v1724_v30  ;;  %v2139_v30 = vunpack.c.h.s8.bf16 %v1195_v5 }
 0x3a6   : > { %3212 = vmatpush2.bf16.msra.mxu0 %v1467_v9  ;;  %v1868_v9 = vunpack.c.l.s8.bf16 %v1068_v53 }
 0x3a7   : > { %3253 = vmatpush2.bf16.msra.mxu1 %v1723_v10  ;;  %3213 = vmatprep.subr.bf16.mxu0 %v1452_v11  ;;  %v2124_v10 = vunpack.c.l.s8.bf16 %v1196_v40  ;;  %v1148_v40 = vld [vmem:[%s9591_s10 + $0xbd8] sm:$0xff] }
 0x3a8   : > { %3254 = vmatprep.subr.bf16.mxu1 %v1708_v12  ;;  %v1052_v12 = vld [vmem:[%s9591_s10 + $0x8d8] sm:$0xff] }
 0x3a9   : > { %v1852_v24 = vunpack.c.h.s8.bf16 %v1052_v12  ;;  %v1836_v63 = vunpack.c.l.s8.bf16 %v1052_v12  ;;  %v1244_v12 = vld [vmem:[%s9591_s10 + $0xed8] sm:$0xff] }
 0x3aa   : > { %3214 = vmatpush2.bf16.msra.mxu0 %v1451_v15 }
 0x3ab   : > { %3255 = vmatpush2.bf16.msra.mxu1 %v1707_v17  ;;  %3215 = vmatprep.subr.bf16.mxu0 %v1436_v20  ;;  %v1867_v17 = vunpack.c.l.s8.bf16 %v1067_v4  ;;  %v2123_v20 = vunpack.c.l.s8.bf16 %v1195_v5  ;;  %v1132_v5 = vld [vmem:[%s9591_s10 + $0xb58] sm:$0xff] }
 0x3ac   : > { %3256 = vmatprep.subr.bf16.mxu1 %v1692_v21  ;;  %v2306_v21 = vld [vmem:[#allocation2] sm:$0xff] }
 0x3ae   : > { %3216 = vmatpush2.bf16.msra.mxu0 %v1435_v28  ;;  %v1051_v28 = vld [vmem:[%s9591_s10 + $0x8d0] sm:$0xff] }
 0x3af   : > { %3257 = vmatpush2.bf16.msra.mxu1 %v1691_v18  ;;  %3217 = vmatprep.subr.bf16.mxu0 %v1420_v29  ;;  %v1179_v18 = vld [vmem:[%s9591_s10 + $0xcd0] sm:$0xff]  ;;  %v1851_v52 = vunpack.c.h.s8.bf16 %v1051_v28 }
 0x3b0   : > { %3258 = vmatprep.subr.bf16.mxu1 %v1676_v31  ;;  %v2107_v55 = vunpack.c.h.s8.bf16 %v1179_v18 }
 0x3b2   : > { %3218 = vmatpush2.bf16.msra.mxu0 %v1419_v34  ;;  %v1164_v34 = vld [vmem:[%s9591_s10 + $0xc58] sm:$0xff] }
 0x3b3   : > { %3259 = vmatpush2.bf16.msra.mxu1 %v1675_v27  ;;  %3269 = vmatprep.subr.bf16.mxu0 %v1916_v35  ;;  %v1835_v27 = vunpack.c.l.s8.bf16 %v1051_v28  ;;  %v2091_v35 = vunpack.c.l.s8.bf16 %v1179_v18  ;;  %v2076_v41 = vunpack.c.h.s8.bf16 %v1164_v34  ;;  %v2060_v53 = vunpack.c.l.s8.bf16 %v1164_v34  ;;  %v1227_v34 = vld [vmem:[%s9591_s10 + $0xe50] sm:$0xff] }
 0x3b4   : > { %3310 = vmatprep.subr.bf16.mxu1 %v2172_v37  ;;  %v1820_v37 = vunpack.c.h.s8.bf16 %v1036_v33  ;;  %v2220_v18 = vunpack.c.l.s8.bf16 %v1244_v12 }
 0x3b5   : > { %v2975_v54 = vpop.f32.mrf.mxu0  ;;  %3220 = vmatmul.mubr.bf16.vlgmr.msra.gmra.mxu0 %v9726_v51 }
 0x3b6   : > { %v3016_v56 = vpop.f32.mrf.mxu1  ;;  %3261 = vmatmul.mubr.bf16.vlgmr.msra.gmra.mxu1 %v9735_v60  ;;  %v2976_v50 = vadd.f32 %v2975_v54, %v10114_v23  ;;  %3270 = vmatpush1.bf16.msra.mxu0 %v1915_v43  ;;  %v1163_v43 = vld [vmem:[%s9591_s10 + $0xc50] sm:$0xff]  ;;  %v1276_v54 = vld [vmem:[%s9591_s10 + $0xfd8] sm:$0xff] }
 0x3b7   : > { %3311 = vmatpush1.bf16.msra.mxu1 %v2171_v19  ;;  %v2977_v62 = vpop.f32.mrf.mxu0  ;;  %3271 = vmatprep.subr.bf16.mxu0 %v1900_v44  ;;  %v1819_v19 = vunpack.c.h.s8.bf16 %v1035_v42  ;;  %v2075_v44 = vunpack.c.h.s8.bf16 %v1163_v43  ;;  %v2284_v4 = vunpack.c.l.s8.bf16 %v1276_v54 }
 0x3b8   : > { %v3018_v0 = vpop.f32.mrf.mxu1  ;;  %3312 = vmatprep.subr.bf16.mxu1 %v2156_v45  ;;  %v2978_v6 = vadd.f32 %v2977_v62, %v2937_v57  ;;  %3301 = vmatprep.mubr.bf16.mxu0 %v9731_v59  ;;  %v3017_v48 = vadd.f32 %v3016_v56, %v2976_v50  ;;  %v1804_v45 = vunpack.c.l.s8.bf16 %v1036_v33  ;;  %v1803_v56 = vunpack.c.l.s8.bf16 %v1035_v42  ;;  %v1275_v62 = vld [vmem:[%s9591_s10 + $0xfd0] sm:$0xff]  ;;  %v830_v42 = vld [vmem:[%s9591_s10 + $0x1e8] sm:$0xff] }
 0x3b9   : > { %3342 = vmatprep.mubr.bf16.mxu1 %v9741_v49  ;;  %v2979_v46 = vpop.f32.mrf.mxu0  ;;  %v2059_v57 = vunpack.c.l.s8.bf16 %v1163_v43  ;;  %v2044_v50 = vunpack.c.h.s8.bf16 %v1148_v40  ;;  %v1099_v33 = vld [vmem:[%s9591_s10 + $0xa50] sm:$0xff]  ;;  %v958_v43 = vld [vmem:[%s9591_s10 + $0x5e8] sm:$0xff] }
 0x3ba   : > { %v3020_v23 = vpop.f32.mrf.mxu1  ;;  %v3019_v7 = vadd.f32 %v3018_v0, %v2978_v6  ;;  %3272 = vmatpush1.bf16.msra.mxu0 %v1899_v61  ;;  %v2300_v61 = vunpack.c.h.s8.bf16 %v1276_v54  ;;  %v1260_v6 = vld [vmem:[%s9591_s10 + $0xf58] sm:$0xff]  ;;  %v957_v54 = vld [vmem:[%s9591_s10 + $0x5e0] sm:$0xff] }
 0x3bb   : > { %3313 = vmatpush1.bf16.msra.mxu1 %v2155_v47  ;;  %v2980_v36 = vpop.f32.mrf.mxu0  ;;  %3273 = vmatprep.subr.bf16.mxu0 %v1884_v2  ;;  %v1147_v47 = vld [vmem:[%s9591_s10 + $0xbd0] sm:$0xff]  ;;  %v2299_v2 = vunpack.c.h.s8.bf16 %v1275_v62  ;;  %v2283_v23 = vunpack.c.l.s8.bf16 %v1275_v62  ;;  %v942_v62 = vld [vmem:[%s9591_s10 + $0x568] sm:$0xff] }
 0x3bc   : > { %v3021_v8 = vpop.f32.mrf.mxu1  ;;  %3314 = vmatprep.subr.bf16.mxu1 %v2140_v3  ;;  %v3713_v11 = vcombine.low %v3017_v48, %v3019_v7  ;;  %v2043_v0 = vunpack.c.h.s8.bf16 %v1147_v47  ;;  %v2028_v3 = vunpack.c.l.s8.bf16 %v1148_v40  ;;  %v2027_v46 = vunpack.c.l.s8.bf16 %v1147_v47  ;;  %v829_v40 = vld [vmem:[%s9591_s10 + $0x1e0] sm:$0xff]  ;;  %v814_v47 = vld [vmem:[%s9591_s10 + $0x168] sm:$0xff] }
 0x3bd   : > { %v2012_v48 = vunpack.c.h.s8.bf16 %v1132_v5  ;;  %v2268_v7 = vunpack.c.h.s8.bf16 %v1260_v6 }
 0x3be   : > { %v3727_v15 = vrot.slane %v3713_v11, %v9991_v22  ;;  %3274 = vmatpush1.bf16.msra.mxu0 %v1883_v26  ;;  %v1131_v26 = vld [vmem:[%s9591_s10 + $0xb50] sm:$0xff]  ;;  %v1116_v11 = vld [vmem:[%s9591_s10 + $0xad8] sm:$0xff] }
 0x3bf   : > { %3315 = vmatpush1.bf16.msra.mxu1 %v2139_v30  ;;  %3275 = vmatprep.subr.bf16.mxu0 %v1868_v9  ;;  %v1259_v30 = vld [vmem:[%s9591_s10 + $0xf50] sm:$0xff]  ;;  %v2011_v36 = vunpack.c.h.s8.bf16 %v1131_v26  ;;  %v1996_v9 = vunpack.c.l.s8.bf16 %v1132_v5  ;;  %v1995_v13 = vunpack.c.l.s8.bf16 %v1131_v26  ;;  %v1964_v28 = vunpack.c.l.s8.bf16 %v1116_v11  ;;  %v941_v26 = vld [vmem:[%s9591_s10 + $0x560] sm:$0xff] }
 0x3c0   : > { %3316 = vmatprep.subr.bf16.mxu1 %v2124_v10  ;;  %v3728_v29 = vcombine.low %v3720_v14, %v3727_v15  ;;  %v2267_v8 = vunpack.c.h.s8.bf16 %v1259_v30  ;;  %v2252_v10 = vunpack.c.l.s8.bf16 %v1260_v6  ;;  %v2251_v14 = vunpack.c.l.s8.bf16 %v1259_v30 }
 0x3c1   : > { %v1980_v15 = vunpack.c.h.s8.bf16 %v1116_v11  ;;  %v1645_v5 = vunpack.c.l.s8.bf16 %v957_v54 }
 0x3c2   : > { %v3768_v31 = vadd.f32 %v3728_v29, %v2306_v21  ;;  %3276 = vmatpush1.bf16.msra.mxu0 %v1867_v17  ;;  %v2236_v17 = vunpack.c.h.s8.bf16 %v1244_v12  ;;  %v1243_v21 = vld [vmem:[%s9591_s10 + $0xed0] sm:$0xff]  ;;  %v1100_v29 = vld [vmem:[%s9591_s10 + $0xa58] sm:$0xff] }
 0x3c3   : > { %3317 = vmatpush1.bf16.msra.mxu1 %v2123_v20  ;;  %3277 = vmatprep.subr.bf16.mxu0 %v1852_v24  ;;  %v1115_v20 = vld [vmem:[%s9591_s10 + $0xad0] sm:$0xff] }
 0x3c4   : > { %3318 = vmatprep.subr.bf16.mxu1 %v2108_v25  ;;  %3772 = vst [vmem:[#allocation2] sm:$0xff] %v3768_v31  ;;  %v1979_v24 = vunpack.c.h.s8.bf16 %v1115_v20  ;;  %v2235_v25 = vunpack.c.h.s8.bf16 %v1243_v21  ;;  %v1228_v31 = vld [vmem:[%s9591_s10 + $0xe58] sm:$0xff] }
 0x3c6   : > { %3278 = vmatpush1.bf16.msra.mxu0 %v1851_v52  ;;  %v1963_v52 = vunpack.c.l.s8.bf16 %v1115_v20 }
 0x3c7   : > { %3319 = vmatpush1.bf16.msra.mxu1 %v2107_v55  ;;  %3279 = vmatprep.subr.bf16.mxu0 %v1836_v63  ;;  %v2219_v55 = vunpack.c.l.s8.bf16 %v1243_v21  ;;  %v1948_v63 = vunpack.c.h.s8.bf16 %v1100_v29  ;;  %v1613_v21 = vunpack.c.l.s8.bf16 %v941_v26 }
 0x3c8   : > { %3320 = vmatprep.subr.bf16.mxu1 %v2092_v32  ;;  %v2204_v32 = vunpack.c.h.s8.bf16 %v1228_v31 }
 0x3ca   : > { %3280 = vmatpush1.bf16.msra.mxu0 %v1835_v27  ;;  %v1947_v27 = vunpack.c.h.s8.bf16 %v1099_v33 }
 0x3cb   : > { %3321 = vmatpush1.bf16.msra.mxu1 %v2091_v35  ;;  %3281 = vmatprep.subr.bf16.mxu0 %v1820_v37  ;;  %v2203_v35 = vunpack.c.h.s8.bf16 %v1227_v34  ;;  %v1932_v37 = vunpack.c.l.s8.bf16 %v1100_v29 }
 0x3cc   : > { %3322 = vmatprep.subr.bf16.mxu1 %v2076_v41  ;;  %v2188_v41 = vunpack.c.l.s8.bf16 %v1228_v31 }
 0x3ce   : > { %3282 = vmatpush1.bf16.msra.mxu0 %v1819_v19  ;;  %v1931_v19 = vunpack.c.l.s8.bf16 %v1099_v33 }
 0x3cf   : > { %3323 = vmatpush1.bf16.msra.mxu1 %v2075_v44  ;;  %3283 = vmatprep.subr.bf16.mxu0 %v1804_v45  ;;  %v2187_v44 = vunpack.c.l.s8.bf16 %v1227_v34  ;;  %v1406_v45 = vunpack.c.h.s8.bf16 %v830_v42 }
 0x3d0   : > { %3324 = vmatprep.subr.bf16.mxu1 %v2060_v53  ;;  %v1662_v53 = vunpack.c.h.s8.bf16 %v958_v43 }
 0x3d2   : > { %3284 = vmatpush1.bf16.msra.mxu0 %v1803_v56  ;;  %v1405_v56 = vunpack.c.h.s8.bf16 %v829_v40 }
 0x3d3   : > { %3325 = vmatpush1.bf16.msra.mxu1 %v2059_v57  ;;  %3285 = vmatprep.subr.bf16.mxu0 %v2044_v50  ;;  %v1661_v57 = vunpack.c.h.s8.bf16 %v957_v54  ;;  %v1390_v50 = vunpack.c.l.s8.bf16 %v830_v42 }
 0x3d4   : > { %3326 = vmatprep.subr.bf16.mxu1 %v2300_v61  ;;  %v1646_v61 = vunpack.c.l.s8.bf16 %v958_v43 }
 0x3d6   : > { %3286 = vmatpush2.bf16.msra.mxu0 %v2043_v0 }
 0x3d7   : > { %3327 = vmatpush2.bf16.msra.mxu1 %v2299_v2  ;;  %3287 = vmatprep.subr.bf16.mxu0 %v2028_v3 }
 0x3d8   : > { %3328 = vmatprep.subr.bf16.mxu1 %v2284_v4  ;;  %v1389_v4 = vunpack.c.l.s8.bf16 %v829_v40 }
 0x3da   : > { %3288 = vmatpush2.bf16.msra.mxu0 %v2027_v46 }
 0x3db   : > { %3329 = vmatpush2.bf16.msra.mxu1 %v2283_v23  ;;  %3289 = vmatprep.subr.bf16.mxu0 %v2012_v48  ;;  %v1374_v23 = vunpack.c.h.s8.bf16 %v814_v47  ;;  %v1630_v48 = vunpack.c.h.s8.bf16 %v942_v62 }
 0x3dc   : > { %3330 = vmatprep.subr.bf16.mxu1 %v2268_v7  ;;  %v813_v7 = vld [vmem:[%s9591_s10 + $0x160] sm:$0xff] }
 0x3dd   : > { %v1357_v20 = vunpack.c.l.s8.bf16 %v813_v7 }
 0x3de   : > { %3290 = vmatpush2.bf16.msra.mxu0 %v2011_v36 }
 0x3df   : > { %3331 = vmatpush2.bf16.msra.mxu1 %v2267_v8  ;;  %3291 = vmatprep.subr.bf16.mxu0 %v1996_v9  ;;  %v1373_v9 = vunpack.c.h.s8.bf16 %v813_v7  ;;  %v877_v7 = vld [vmem:[%s9591_s10 + $0x360] sm:$0xff] }
 0x3e0   : > { %3332 = vmatprep.subr.bf16.mxu1 %v2252_v10  ;;  %v1629_v10 = vunpack.c.h.s8.bf16 %v941_v26  ;;  %v1005_v26 = vld [vmem:[%s9591_s10 + $0x760] sm:$0xff] }
 0x3e2   : > { %3292 = vmatpush2.bf16.msra.mxu0 %v1995_v13  ;;  %v1358_v13 = vunpack.c.l.s8.bf16 %v814_v47 }
 0x3e3   : > { %3333 = vmatpush2.bf16.msra.mxu1 %v2251_v14  ;;  %3293 = vmatprep.subr.bf16.mxu0 %v1980_v15  ;;  %v1614_v14 = vunpack.c.l.s8.bf16 %v942_v62  ;;  %v798_v15 = vld [vmem:[%s9591_s10 + $0xe8] sm:$0xff] }
 0x3e4   : > { %3334 = vmatprep.subr.bf16.mxu1 %v2236_v17  ;;  %v926_v17 = vld [vmem:[%s9591_s10 + $0x4e8] sm:$0xff] }
 0x3e6   : > { %3294 = vmatpush2.bf16.msra.mxu0 %v1979_v24  ;;  %v1342_v24 = vunpack.c.h.s8.bf16 %v798_v15 }
 0x3e7   : > { %3335 = vmatpush2.bf16.msra.mxu1 %v2235_v25  ;;  %3295 = vmatprep.subr.bf16.mxu0 %v1964_v28  ;;  %v1598_v25 = vunpack.c.h.s8.bf16 %v926_v17  ;;  %v797_v28 = vld [vmem:[%s9591_s10 + $0xe0] sm:$0xff] }
 0x3e8   : > { %3336 = vmatprep.subr.bf16.mxu1 %v2220_v18  ;;  %v925_v18 = vld [vmem:[%s9591_s10 + $0x4e0] sm:$0xff]  ;;  %v1341_v29 = vunpack.c.h.s8.bf16 %v797_v28  ;;  %v1325_v33 = vunpack.c.l.s8.bf16 %v797_v28 }
 0x3e9   : > { %v1597_v31 = vunpack.c.h.s8.bf16 %v925_v18  ;;  %v1581_v34 = vunpack.c.l.s8.bf16 %v925_v18 }
 0x3ea   : > { %3296 = vmatpush2.bf16.msra.mxu0 %v1963_v52  ;;  %v1326_v52 = vunpack.c.l.s8.bf16 %v798_v15 }
 0x3eb   : > { %3337 = vmatpush2.bf16.msra.mxu1 %v2219_v55  ;;  %3297 = vmatprep.subr.bf16.mxu0 %v1948_v63  ;;  %v1582_v55 = vunpack.c.l.s8.bf16 %v926_v17  ;;  %v782_v63 = vld [vmem:[%s9591_s10 + $0x68] sm:$0xff] }
 0x3ec   : > { %3338 = vmatprep.subr.bf16.mxu1 %v2204_v32  ;;  %v910_v32 = vld [vmem:[%s9591_s10 + $0x468] sm:$0xff] }
 0x3ee   : > { %3298 = vmatpush2.bf16.msra.mxu0 %v1947_v27  ;;  %v1310_v27 = vunpack.c.h.s8.bf16 %v782_v63 }
 0x3ef   : > { %3339 = vmatpush2.bf16.msra.mxu1 %v2203_v35  ;;  %3299 = vmatprep.subr.bf16.mxu0 %v1932_v37  ;;  %v1566_v35 = vunpack.c.h.s8.bf16 %v910_v32  ;;  %v781_v37 = vld [vmem:[%s9591_s10 + $0x60] sm:$0xff] }
 0x3f0   : > { %3340 = vmatprep.subr.bf16.mxu1 %v2188_v41  ;;  %v909_v41 = vld [vmem:[%s9591_s10 + $0x460] sm:$0xff]  ;;  %v1309_v42 = vunpack.c.h.s8.bf16 %v781_v37  ;;  %v1293_v40 = vunpack.c.l.s8.bf16 %v781_v37 }
 0x3f1   : > { %v1565_v43 = vunpack.c.h.s8.bf16 %v909_v41  ;;  %v1549_v54 = vunpack.c.l.s8.bf16 %v909_v41 }
 0x3f2   : > { %3300 = vmatpush2.bf16.msra.mxu0 %v1931_v19  ;;  %v1294_v19 = vunpack.c.l.s8.bf16 %v782_v63 }
 0x3f3   : > { %3341 = vmatpush2.bf16.msra.mxu1 %v2187_v44  ;;  %3351 = vmatprep.subr.bf16.mxu0 %v1406_v45  ;;  %v1550_v44 = vunpack.c.l.s8.bf16 %v910_v32  ;;  %v894_v45 = vld [vmem:[%s9591_s10 + $0x3e8] sm:$0xff] }
 0x3f4   : > { %3392 = vmatprep.subr.bf16.mxu1 %v1662_v53  ;;  %v1022_v53 = vld [vmem:[%s9591_s10 + $0x7e8] sm:$0xff] }
 0x3f5   : > { %v3057_v0 = vpop.f32.mrf.mxu0  ;;  %3302 = vmatmul.mubr.bf16.vlgmr.msra.gmra.mxu0 %v9710_v16 }
 0x3f6   : > { %v3098_v2 = vpop.f32.mrf.mxu1  ;;  %3343 = vmatmul.mubr.bf16.vlgmr.msra.gmra.mxu1 %v9779_v39  ;;  %3352 = vmatpush1.bf16.msra.mxu0 %v1405_v56  ;;  %v1534_v56 = vunpack.c.h.s8.bf16 %v894_v45 }
 0x3f7   : > { %v10200_v3 = vadd.f32 %v3098_v2, %v3057_v0  ;;  %3393 = vmatpush1.bf16.msra.mxu1 %v1661_v57  ;;  %v3059_v6 = vpop.f32.mrf.mxu0  ;;  %3353 = vmatprep.subr.bf16.mxu0 %v1390_v50  ;;  %v1790_v57 = vunpack.c.h.s8.bf16 %v1022_v53  ;;  %v893_v50 = vld [vmem:[%s9591_s10 + $0x3e0] sm:$0xff]  ;;  %v1518_v0 = vunpack.c.l.s8.bf16 %v894_v45  ;;  %v1774_v2 = vunpack.c.l.s8.bf16 %v1022_v53 }
 0x3f8   : > { %v3100_v46 = vpop.f32.mrf.mxu1  ;;  %3394 = vmatprep.subr.bf16.mxu1 %v1646_v61  ;;  %3383 = vmatprep.mubr.bf16.mxu0 %v9691_v58  ;;  %v1021_v61 = vld [vmem:[%s9591_s10 + $0x7e0] sm:$0xff]  ;;  %v1533_v47 = vunpack.c.h.s8.bf16 %v893_v50 }
 0x3f9   : > { %v10204_v30 = vadd.f32 %v3100_v46, %v3059_v6  ;;  %3424 = vmatprep.mubr.bf16.mxu1 %v9697_v1  ;;  %v3061_v36 = vpop.f32.mrf.mxu0  ;;  %v1789_v62 = vunpack.c.h.s8.bf16 %v1021_v61  ;;  %v1517_v6 = vunpack.c.l.s8.bf16 %v893_v50  ;;  %v1773_v46 = vunpack.c.l.s8.bf16 %v1021_v61 }
 0x3fa   : > { %v3102_v8 = vpop.f32.mrf.mxu1  ;;  %3354 = vmatpush1.bf16.msra.mxu0 %v1389_v4  ;;  %v878_v4 = vld [vmem:[%s9591_s10 + $0x368] sm:$0xff]  ;;  %v1501_v36 = vunpack.c.h.s8.bf16 %v877_v7 }
 0x3fb   : > { %3395 = vmatpush1.bf16.msra.mxu1 %v1645_v5  ;;  %v3062_v11 = vpop.f32.mrf.mxu0  ;;  %3355 = vmatprep.subr.bf16.mxu0 %v1374_v23  ;;  %v1006_v5 = vld [vmem:[%s9591_s10 + $0x768] sm:$0xff]  ;;  %v1502_v23 = vunpack.c.h.s8.bf16 %v878_v4  ;;  %v1757_v8 = vunpack.c.h.s8.bf16 %v1005_v26 }
 0x3fc   : > { %v3103_v12 = vpop.f32.mrf.mxu1  ;;  %3396 = vmatprep.subr.bf16.mxu1 %v1630_v48  ;;  %v1758_v48 = vunpack.c.h.s8.bf16 %v1006_v5  ;;  %v862_v11 = vld [vmem:[%s9591_s10 + $0x2e8] sm:$0xff] }
 0x3fd   : > { %v990_v12 = vld [vmem:[%s9591_s10 + $0x6e8] sm:$0xff]  ;;  %v1470_v15 = vunpack.c.h.s8.bf16 %v862_v11  ;;  %v1454_v28 = vunpack.c.l.s8.bf16 %v862_v11 }
 0x3fe   : > { %3356 = vmatpush1.bf16.msra.mxu0 %v1373_v9  ;;  %v1486_v9 = vunpack.c.l.s8.bf16 %v878_v4  ;;  %v1726_v17 = vunpack.c.h.s8.bf16 %v990_v12  ;;  %v1710_v18 = vunpack.c.l.s8.bf16 %v990_v12 }
 0x3ff   : > { %3397 = vmatpush1.bf16.msra.mxu1 %v1629_v10  ;;  %3357 = vmatprep.subr.bf16.mxu0 %v1358_v13  ;;  %v1742_v10 = vunpack.c.l.s8.bf16 %v1006_v5  ;;  %v1485_v13 = vunpack.c.l.s8.bf16 %v877_v7 }
 0x400   : > { %3398 = vmatprep.subr.bf16.mxu1 %v1614_v14  ;;  %v1741_v14 = vunpack.c.l.s8.bf16 %v1005_v26  ;;  %v1069_v26 = vld [vmem:[%s9591_s10 + $0x960] sm:$0xff] }
 0x401   : > { %v1885_v12 = vunpack.c.h.s8.bf16 %v1069_v26 }
 0x402   : > { %3358 = vmatpush1.bf16.msra.mxu0 %v1357_v20  ;;  %v861_v20 = vld [vmem:[%s9591_s10 + $0x2e0] sm:$0xff] }
 0x403   : > { %3399 = vmatpush1.bf16.msra.mxu1 %v1613_v21  ;;  %3359 = vmatprep.subr.bf16.mxu0 %v1342_v24  ;;  %v989_v21 = vld [vmem:[%s9591_s10 + $0x6e0] sm:$0xff]  ;;  %v1469_v24 = vunpack.c.h.s8.bf16 %v861_v20 }
 0x404   : > { %3400 = vmatprep.subr.bf16.mxu1 %v1598_v25  ;;  %v1725_v25 = vunpack.c.h.s8.bf16 %v989_v21 }
 0x406   : > { %3360 = vmatpush1.bf16.msra.mxu0 %v1341_v29  ;;  %v846_v29 = vld [vmem:[%s9591_s10 + $0x268] sm:$0xff] }
 0x407   : > { %3401 = vmatpush1.bf16.msra.mxu1 %v1597_v31  ;;  %3361 = vmatprep.subr.bf16.mxu0 %v1326_v52  ;;  %v974_v31 = vld [vmem:[%s9591_s10 + $0x668] sm:$0xff]  ;;  %v1453_v52 = vunpack.c.l.s8.bf16 %v861_v20  ;;  %v1438_v63 = vunpack.c.h.s8.bf16 %v846_v29  ;;  %v1422_v37 = vunpack.c.l.s8.bf16 %v846_v29 }
 0x408   : > { %3402 = vmatprep.subr.bf16.mxu1 %v1582_v55  ;;  %v1709_v55 = vunpack.c.l.s8.bf16 %v989_v21  ;;  %v1694_v32 = vunpack.c.h.s8.bf16 %v974_v31  ;;  %v1678_v41 = vunpack.c.l.s8.bf16 %v974_v31  ;;  %v1054_v21 = vld [vmem:[%s9591_s10 + $0x8e8] sm:$0xff]  ;;  %v1053_v31 = vld [vmem:[%s9591_s10 + $0x8e0] sm:$0xff] }
 0x40a   : > { %3362 = vmatpush1.bf16.msra.mxu0 %v1325_v33  ;;  %v845_v33 = vld [vmem:[%s9591_s10 + $0x260] sm:$0xff] }
 0x40b   : > { %3403 = vmatpush1.bf16.msra.mxu1 %v1581_v34  ;;  %3363 = vmatprep.subr.bf16.mxu0 %v1310_v27  ;;  %v973_v34 = vld [vmem:[%s9591_s10 + $0x660] sm:$0xff]  ;;  %v1437_v27 = vunpack.c.h.s8.bf16 %v845_v33 }
 0x40c   : > { %3404 = vmatprep.subr.bf16.mxu1 %v1566_v35  ;;  %v1693_v35 = vunpack.c.h.s8.bf16 %v973_v34 }
 0x40e   : > { %3364 = vmatpush1.bf16.msra.mxu0 %v1309_v42  ;;  %v1086_v42 = vld [vmem:[%s9591_s10 + $0x9e8] sm:$0xff] }
 0x40f   : > { %3405 = vmatpush1.bf16.msra.mxu1 %v1565_v43  ;;  %3365 = vmatprep.subr.bf16.mxu0 %v1294_v19  ;;  %v1214_v43 = vld [vmem:[%s9591_s10 + $0xde8] sm:$0xff]  ;;  %v1421_v19 = vunpack.c.l.s8.bf16 %v845_v33  ;;  %v1918_v45 = vunpack.c.h.s8.bf16 %v1086_v42  ;;  %v1902_v50 = vunpack.c.l.s8.bf16 %v1086_v42 }
 0x410   : > { %3406 = vmatprep.subr.bf16.mxu1 %v1550_v44  ;;  %v1677_v44 = vunpack.c.l.s8.bf16 %v973_v34  ;;  %v2174_v53 = vunpack.c.h.s8.bf16 %v1214_v43  ;;  %v2158_v61 = vunpack.c.l.s8.bf16 %v1214_v43  ;;  %v1038_v34 = vld [vmem:[%s9591_s10 + $0x868] sm:$0xff]  ;;  %v1037_v43 = vld [vmem:[%s9591_s10 + $0x860] sm:$0xff] }
 0x412   : > { %3366 = vmatpush1.bf16.msra.mxu0 %v1293_v40  ;;  %v1085_v40 = vld [vmem:[%s9591_s10 + $0x9e0] sm:$0xff] }
 0x413   : > { %3407 = vmatpush1.bf16.msra.mxu1 %v1549_v54  ;;  %3367 = vmatprep.subr.bf16.mxu0 %v1534_v56  ;;  %v1213_v54 = vld [vmem:[%s9591_s10 + $0xde0] sm:$0xff]  ;;  %v1917_v56 = vunpack.c.h.s8.bf16 %v1085_v40  ;;  %v1901_v5 = vunpack.c.l.s8.bf16 %v1085_v40 }
 0x414   : > { %3408 = vmatprep.subr.bf16.mxu1 %v1790_v57  ;;  %v2173_v57 = vunpack.c.h.s8.bf16 %v1213_v54 }
 0x416   : > { %3368 = vmatpush2.bf16.msra.mxu0 %v1533_v47  ;;  %v1070_v47 = vld [vmem:[%s9591_s10 + $0x968] sm:$0xff] }
 0x417   : > { %3409 = vmatpush2.bf16.msra.mxu1 %v1789_v62  ;;  %3369 = vmatprep.subr.bf16.mxu0 %v1518_v0  ;;  %v1198_v62 = vld [vmem:[%s9591_s10 + $0xd68] sm:$0xff] }
 0x418   : > { %3410 = vmatprep.subr.bf16.mxu1 %v1774_v2  ;;  %v2142_v7 = vunpack.c.h.s8.bf16 %v1198_v62 }
 0x41a   : > { %3370 = vmatpush2.bf16.msra.mxu0 %v1517_v6  ;;  %v2157_v6 = vunpack.c.l.s8.bf16 %v1213_v54  ;;  %v1150_v54 = vld [vmem:[%s9591_s10 + $0xbe8] sm:$0xff] }
 0x41b   : > { %3411 = vmatpush2.bf16.msra.mxu1 %v1773_v46  ;;  %3371 = vmatprep.subr.bf16.mxu0 %v1502_v23 }
 0x41c   : > { %3412 = vmatprep.subr.bf16.mxu1 %v1758_v48  ;;  %v1886_v48 = vunpack.c.h.s8.bf16 %v1070_v47 }
 0x41e   : > { %3372 = vmatpush2.bf16.msra.mxu0 %v1501_v36  ;;  %v1197_v36 = vld [vmem:[%s9591_s10 + $0xd60] sm:$0xff] }
 0x41f   : > { %3413 = vmatpush2.bf16.msra.mxu1 %v1757_v8  ;;  %3373 = vmatprep.subr.bf16.mxu0 %v1486_v9 }
 0x420   : > { %3414 = vmatprep.subr.bf16.mxu1 %v1742_v10 }
 0x422   : > { %3374 = vmatpush2.bf16.msra.mxu0 %v1485_v13  ;;  %v2141_v13 = vunpack.c.h.s8.bf16 %v1197_v36 }
 0x423   : > { %3415 = vmatpush2.bf16.msra.mxu1 %v1741_v14  ;;  %3375 = vmatprep.subr.bf16.mxu0 %v1470_v15 }
 0x424   : > { %3416 = vmatprep.subr.bf16.mxu1 %v1726_v17  ;;  %v2126_v17 = vunpack.c.l.s8.bf16 %v1198_v62  ;;  %v1149_v62 = vld [vmem:[%s9591_s10 + $0xbe0] sm:$0xff] }
 0x426   : > { %3376 = vmatpush2.bf16.msra.mxu0 %v1469_v24  ;;  %v1182_v24 = vld [vmem:[%s9591_s10 + $0xce8] sm:$0xff] }
 0x427   : > { %3417 = vmatpush2.bf16.msra.mxu1 %v1725_v25  ;;  %3377 = vmatprep.subr.bf16.mxu0 %v1454_v28  ;;  %v1869_v25 = vunpack.c.l.s8.bf16 %v1069_v26  ;;  %v2125_v28 = vunpack.c.l.s8.bf16 %v1197_v36  ;;  %v2110_v29 = vunpack.c.h.s8.bf16 %v1182_v24  ;;  %v2094_v33 = vunpack.c.l.s8.bf16 %v1182_v24 }
 0x428   : > { %3418 = vmatprep.subr.bf16.mxu1 %v1710_v18  ;;  %v1854_v18 = vunpack.c.h.s8.bf16 %v1054_v21 }
 0x42a   : > { %3378 = vmatpush2.bf16.msra.mxu0 %v1453_v52  ;;  %v1181_v52 = vld [vmem:[%s9591_s10 + $0xce0] sm:$0xff] }
 0x42b   : > { %3419 = vmatpush2.bf16.msra.mxu1 %v1709_v55  ;;  %3379 = vmatprep.subr.bf16.mxu0 %v1438_v63  ;;  %v1853_v55 = vunpack.c.h.s8.bf16 %v1053_v31  ;;  %v2109_v63 = vunpack.c.h.s8.bf16 %v1181_v52 }
 0x42c   : > { %3420 = vmatprep.subr.bf16.mxu1 %v1694_v32  ;;  %v1838_v32 = vunpack.c.l.s8.bf16 %v1054_v21 }
 0x42e   : > { %3380 = vmatpush2.bf16.msra.mxu0 %v1437_v27  ;;  %v1166_v27 = vld [vmem:[%s9591_s10 + $0xc68] sm:$0xff] }
 0x42f   : > { %3421 = vmatpush2.bf16.msra.mxu1 %v1693_v35  ;;  %3381 = vmatprep.subr.bf16.mxu0 %v1422_v37  ;;  %v1837_v35 = vunpack.c.l.s8.bf16 %v1053_v31  ;;  %v2093_v37 = vunpack.c.l.s8.bf16 %v1181_v52  ;;  %v2078_v42 = vunpack.c.h.s8.bf16 %v1166_v27  ;;  %v2062_v40 = vunpack.c.l.s8.bf16 %v1166_v27 }
 0x430   : > { %3422 = vmatprep.subr.bf16.mxu1 %v1678_v41  ;;  %v1822_v41 = vunpack.c.h.s8.bf16 %v1038_v34 }
 0x432   : > { %3382 = vmatpush2.bf16.msra.mxu0 %v1421_v19  ;;  %v1165_v19 = vld [vmem:[%s9591_s10 + $0xc60] sm:$0xff] }
 0x433   : > { %3423 = vmatpush2.bf16.msra.mxu1 %v1677_v44  ;;  %3433 = vmatprep.subr.bf16.mxu0 %v1918_v45  ;;  %v1821_v44 = vunpack.c.h.s8.bf16 %v1037_v43  ;;  %v2077_v45 = vunpack.c.h.s8.bf16 %v1165_v19 }
 0x434   : > { %3474 = vmatprep.subr.bf16.mxu1 %v2174_v53  ;;  %v1806_v53 = vunpack.c.l.s8.bf16 %v1038_v34 }
 0x435   : > { %v3139_v0 = vpop.f32.mrf.mxu0  ;;  %3384 = vmatmul.mubr.bf16.vlgmr.msra.gmra.mxu0 %v9726_v51 }
 0x436   : > { %v3180_v2 = vpop.f32.mrf.mxu1  ;;  %3425 = vmatmul.mubr.bf16.vlgmr.msra.gmra.mxu1 %v9735_v60  ;;  %v3140_v4 = vadd.f32 %v3139_v0, %v10200_v3  ;;  %3434 = vmatpush1.bf16.msra.mxu0 %v1917_v56  ;;  %v1278_v56 = vld [vmem:[%s9591_s10 + $0xfe8] sm:$0xff]  ;;  %v1277_v0 = vld [vmem:[%s9591_s10 + $0xfe0] sm:$0xff] }
 0x437   : > { %3475 = vmatpush1.bf16.msra.mxu1 %v2173_v57  ;;  %v3141_v46 = vpop.f32.mrf.mxu0  ;;  %3435 = vmatprep.subr.bf16.mxu0 %v1902_v50  ;;  %v1805_v57 = vunpack.c.l.s8.bf16 %v1037_v43  ;;  %v2061_v50 = vunpack.c.l.s8.bf16 %v1165_v19 }
 0x438   : > { %v3182_v23 = vpop.f32.mrf.mxu1  ;;  %3476 = vmatprep.subr.bf16.mxu1 %v2158_v61  ;;  %v10243_v8 = vadd.f32 %v3180_v2, %v3140_v4  ;;  %v3142_v9 = vadd.f32 %v3141_v46, %v10204_v30  ;;  %3465 = vmatprep.mubr.bf16.mxu0 %v9731_v59  ;;  %v1870_v30 = vunpack.c.l.s8.bf16 %v1070_v47  ;;  %v2046_v61 = vunpack.c.h.s8.bf16 %v1150_v54  ;;  %v1134_v46 = vld [vmem:[%s9591_s10 + $0xb68] sm:$0xff] }
 0x439   : > { %3506 = vmatprep.mubr.bf16.mxu1 %v9741_v49  ;;  %v3143_v3 = vpop.f32.mrf.mxu0  ;;  %v2302_v47 = vunpack.c.h.s8.bf16 %v1278_v56  ;;  %v2045_v2 = vunpack.c.h.s8.bf16 %v1149_v62  ;;  %v2301_v4 = vunpack.c.h.s8.bf16 %v1277_v0  ;;  %v2014_v26 = vunpack.c.h.s8.bf16 %v1134_v46 }
 0x43a   : > { %v3184_v10 = vpop.f32.mrf.mxu1  ;;  %v10248_v11 = vadd.f32 %v3182_v23, %v3142_v9  ;;  %3436 = vmatpush1.bf16.msra.mxu0 %v1901_v5  ;;  %v2030_v5 = vunpack.c.l.s8.bf16 %v1150_v54  ;;  %v1262_v23 = vld [vmem:[%s9591_s10 + $0xf68] sm:$0xff]  ;;  %v1133_v9 = vld [vmem:[%s9591_s10 + $0xb60] sm:$0xff] }
 0x43b   : > { %3477 = vmatpush1.bf16.msra.mxu1 %v2157_v6  ;;  %v3144_v14 = vpop.f32.mrf.mxu0  ;;  %3437 = vmatprep.subr.bf16.mxu0 %v1886_v48  ;;  %v2286_v6 = vunpack.c.l.s8.bf16 %v1278_v56  ;;  %v2029_v48 = vunpack.c.l.s8.bf16 %v1149_v62  ;;  %v2270_v36 = vunpack.c.h.s8.bf16 %v1262_v23  ;;  %v1261_v3 = vld [vmem:[%s9591_s10 + $0xf60] sm:$0xff]  ;;  %v2013_v10 = vunpack.c.h.s8.bf16 %v1133_v9 }
 0x43c   : > { %v3185_v15 = vpop.f32.mrf.mxu1  ;;  %3478 = vmatprep.subr.bf16.mxu1 %v2142_v7  ;;  %v3729_v20 = vcombine.low %v10243_v8, %v10248_v11  ;;  %v2285_v7 = vunpack.c.l.s8.bf16 %v1277_v0  ;;  %v2254_v14 = vunpack.c.l.s8.bf16 %v1262_v23  ;;  %v2253_v21 = vunpack.c.l.s8.bf16 %v1261_v3 }
 0x43d   : > { %v1118_v15 = vld [vmem:[%s9591_s10 + $0xae8] sm:$0xff] }
 0x43e   : > { %3438 = vmatpush1.bf16.msra.mxu0 %v1885_v12  ;;  %v2269_v12 = vunpack.c.h.s8.bf16 %v1261_v3  ;;  %v1982_v24 = vunpack.c.h.s8.bf16 %v1118_v15  ;;  %v1966_v52 = vunpack.c.l.s8.bf16 %v1118_v15 }
 0x43f   : > { %3479 = vmatpush1.bf16.msra.mxu1 %v2141_v13  ;;  %3439 = vmatprep.subr.bf16.mxu0 %v1870_v30  ;;  %v1998_v13 = vunpack.c.l.s8.bf16 %v1134_v46  ;;  %v1246_v30 = vld [vmem:[%s9591_s10 + $0xee8] sm:$0xff] }
 0x440   : > { %3480 = vmatprep.subr.bf16.mxu1 %v2126_v17  ;;  %v1997_v17 = vunpack.c.l.s8.bf16 %v1133_v9 }
 0x442   : > { %3440 = vmatpush1.bf16.msra.mxu0 %v1869_v25  ;;  %v2238_v25 = vunpack.c.h.s8.bf16 %v1246_v30 }
 0x443   : > { %3481 = vmatpush1.bf16.msra.mxu1 %v2125_v28  ;;  %3441 = vmatprep.subr.bf16.mxu0 %v1854_v18  ;;  %v1117_v28 = vld [vmem:[%s9591_s10 + $0xae0] sm:$0xff] }
 0x444   : > { %3482 = vmatprep.subr.bf16.mxu1 %v2110_v29  ;;  %v1245_v18 = vld [vmem:[%s9591_s10 + $0xee0] sm:$0xff]  ;;  %v1981_v29 = vunpack.c.h.s8.bf16 %v1117_v28 }
 0x445   : > { %v2237_v31 = vunpack.c.h.s8.bf16 %v1245_v18  ;;  %v2221_v34 = vunpack.c.l.s8.bf16 %v1245_v18  ;;  %v928_v18 = vld [vmem:[%s9591_s10 + $0x4f8] sm:$0xff] }
 0x446   : > { %3442 = vmatpush1.bf16.msra.mxu0 %v1853_v55  ;;  %v2222_v55 = vunpack.c.l.s8.bf16 %v1246_v30 }
 0x447   : > { %3483 = vmatpush1.bf16.msra.mxu1 %v2109_v63  ;;  %3443 = vmatprep.subr.bf16.mxu0 %v1838_v32  ;;  %v1102_v63 = vld [vmem:[%s9591_s10 + $0xa68] sm:$0xff] }
 0x448   : > { %3484 = vmatprep.subr.bf16.mxu1 %v2094_v33  ;;  %v1230_v32 = vld [vmem:[%s9591_s10 + $0xe68] sm:$0xff]  ;;  %v1965_v33 = vunpack.c.l.s8.bf16 %v1117_v28  ;;  %v1950_v27 = vunpack.c.h.s8.bf16 %v1102_v63  ;;  %v1934_v19 = vunpack.c.l.s8.bf16 %v1102_v63  ;;  %v800_v28 = vld [vmem:[%s9591_s10 + $0xf8] sm:$0xff] }
 0x44a   : > { %3444 = vmatpush1.bf16.msra.mxu0 %v1837_v35  ;;  %v2206_v35 = vunpack.c.h.s8.bf16 %v1230_v32 }
 0x44b   : > { %3485 = vmatpush1.bf16.msra.mxu1 %v2093_v37  ;;  %3445 = vmatprep.subr.bf16.mxu0 %v1822_v41  ;;  %v1101_v37 = vld [vmem:[%s9591_s10 + $0xa60] sm:$0xff] }
 0x44c   : > { %3486 = vmatprep.subr.bf16.mxu1 %v2078_v42  ;;  %v1229_v41 = vld [vmem:[%s9591_s10 + $0xe60] sm:$0xff]  ;;  %v1949_v42 = vunpack.c.h.s8.bf16 %v1101_v37 }
 0x44d   : > { %v2205_v43 = vunpack.c.h.s8.bf16 %v1229_v41  ;;  %v2189_v54 = vunpack.c.l.s8.bf16 %v1229_v41 }
 0x44e   : > { %3446 = vmatpush1.bf16.msra.mxu0 %v1821_v44  ;;  %v2190_v44 = vunpack.c.l.s8.bf16 %v1230_v32 }
 0x44f   : > { %3487 = vmatpush1.bf16.msra.mxu1 %v2077_v45  ;;  %3447 = vmatprep.subr.bf16.mxu0 %v1806_v53  ;;  %v832_v45 = vld [vmem:[%s9591_s10 + $0x1f8] sm:$0xff] }
 0x450   : > { %3488 = vmatprep.subr.bf16.mxu1 %v2062_v40  ;;  %v960_v53 = vld [vmem:[%s9591_s10 + $0x5f8] sm:$0xff]  ;;  %v1933_v40 = vunpack.c.l.s8.bf16 %v1101_v37  ;;  %v1408_v56 = vunpack.c.h.s8.bf16 %v832_v45  ;;  %v1392_v0 = vunpack.c.l.s8.bf16 %v832_v45 }
 0x452   : > { %3448 = vmatpush1.bf16.msra.mxu0 %v1805_v57  ;;  %v1664_v57 = vunpack.c.h.s8.bf16 %v960_v53 }
 0x453   : > { %3489 = vmatpush1.bf16.msra.mxu1 %v2061_v50  ;;  %3449 = vmatprep.subr.bf16.mxu0 %v2046_v61  ;;  %v831_v50 = vld [vmem:[%s9591_s10 + $0x1f0] sm:$0xff] }
 0x454   : > { %3490 = vmatprep.subr.bf16.mxu1 %v2302_v47  ;;  %v959_v61 = vld [vmem:[%s9591_s10 + $0x5f0] sm:$0xff]  ;;  %v1407_v47 = vunpack.c.h.s8.bf16 %v831_v50 }
 0x455   : > { %v1663_v62 = vunpack.c.h.s8.bf16 %v959_v61 }
 0x456   : > { %3450 = vmatpush2.bf16.msra.mxu0 %v2045_v2  ;;  %v1648_v2 = vunpack.c.l.s8.bf16 %v960_v53 }
 0x457   : > { %3491 = vmatpush2.bf16.msra.mxu1 %v2301_v4  ;;  %3451 = vmatprep.subr.bf16.mxu0 %v2030_v5  ;;  %v816_v4 = vld [vmem:[%s9591_s10 + $0x178] sm:$0xff] }
 0x458   : > { %3492 = vmatprep.subr.bf16.mxu1 %v2286_v6  ;;  %v944_v5 = vld [vmem:[%s9591_s10 + $0x578] sm:$0xff]  ;;  %v1376_v9 = vunpack.c.h.s8.bf16 %v816_v4 }
 0x459   : > { %v1632_v3 = vunpack.c.h.s8.bf16 %v944_v5 }
 0x45a   : > { %3452 = vmatpush2.bf16.msra.mxu0 %v2029_v48  ;;  %v1391_v48 = vunpack.c.l.s8.bf16 %v831_v50 }
 0x45b   : > { %3493 = vmatpush2.bf16.msra.mxu1 %v2285_v7  ;;  %3453 = vmatprep.subr.bf16.mxu0 %v2014_v26  ;;  %v1647_v7 = vunpack.c.l.s8.bf16 %v959_v61 }
 0x45c   : > { %3494 = vmatprep.subr.bf16.mxu1 %v2270_v36 }
 0x45e   : > { %3454 = vmatpush2.bf16.msra.mxu0 %v2013_v10  ;;  %v815_v10 = vld [vmem:[%s9591_s10 + $0x170] sm:$0xff] }
 0x45f   : > { %3495 = vmatpush2.bf16.msra.mxu1 %v2269_v12  ;;  %3455 = vmatprep.subr.bf16.mxu0 %v1998_v13  ;;  %v943_v12 = vld [vmem:[%s9591_s10 + $0x570] sm:$0xff]  ;;  %v1375_v15 = vunpack.c.h.s8.bf16 %v815_v10 }
 0x460   : > { %3496 = vmatprep.subr.bf16.mxu1 %v2254_v14  ;;  %v1631_v30 = vunpack.c.h.s8.bf16 %v943_v12 }
 0x462   : > { %3456 = vmatpush2.bf16.msra.mxu0 %v1997_v17 }
 0x463   : > { %3497 = vmatpush2.bf16.msra.mxu1 %v2253_v21  ;;  %3457 = vmatprep.subr.bf16.mxu0 %v1982_v24  ;;  %v1360_v24 = vunpack.c.l.s8.bf16 %v816_v4 }
 0x464   : > { %3498 = vmatprep.subr.bf16.mxu1 %v2238_v25  ;;  %v1616_v25 = vunpack.c.l.s8.bf16 %v944_v5 }
 0x466   : > { %3458 = vmatpush2.bf16.msra.mxu0 %v1981_v29  ;;  %v1344_v29 = vunpack.c.h.s8.bf16 %v800_v28 }
 0x467   : > { %3499 = vmatpush2.bf16.msra.mxu1 %v2237_v31  ;;  %3459 = vmatprep.subr.bf16.mxu0 %v1966_v52  ;;  %v1600_v31 = vunpack.c.h.s8.bf16 %v928_v18  ;;  %v799_v52 = vld [vmem:[%s9591_s10 + $0xf0] sm:$0xff] }
 0x468   : > { %3500 = vmatprep.subr.bf16.mxu1 %v2222_v55  ;;  %v927_v55 = vld [vmem:[%s9591_s10 + $0x4f0] sm:$0xff]  ;;  %v1343_v63 = vunpack.c.h.s8.bf16 %v799_v52  ;;  %v1327_v37 = vunpack.c.l.s8.bf16 %v799_v52 }
 0x469   : > { %v1599_v32 = vunpack.c.h.s8.bf16 %v927_v55  ;;  %v1583_v41 = vunpack.c.l.s8.bf16 %v927_v55 }
 0x46a   : > { %3460 = vmatpush2.bf16.msra.mxu0 %v1965_v33  ;;  %v1328_v33 = vunpack.c.l.s8.bf16 %v800_v28 }
 0x46b   : > { %3501 = vmatpush2.bf16.msra.mxu1 %v2221_v34  ;;  %3461 = vmatprep.subr.bf16.mxu0 %v1950_v27  ;;  %v1584_v34 = vunpack.c.l.s8.bf16 %v928_v18  ;;  %v784_v27 = vld [vmem:[%s9591_s10 + $0x78] sm:$0xff] }
 0x46c   : > { %3502 = vmatprep.subr.bf16.mxu1 %v2206_v35  ;;  %v912_v35 = vld [vmem:[%s9591_s10 + $0x478] sm:$0xff] }
 0x46e   : > { %3462 = vmatpush2.bf16.msra.mxu0 %v1949_v42  ;;  %v1312_v42 = vunpack.c.h.s8.bf16 %v784_v27 }
 0x46f   : > { %3503 = vmatpush2.bf16.msra.mxu1 %v2205_v43  ;;  %3463 = vmatprep.subr.bf16.mxu0 %v1934_v19  ;;  %v1568_v43 = vunpack.c.h.s8.bf16 %v912_v35  ;;  %v783_v19 = vld [vmem:[%s9591_s10 + $0x70] sm:$0xff] }
 0x470   : > { %3504 = vmatprep.subr.bf16.mxu1 %v2190_v44  ;;  %v911_v44 = vld [vmem:[%s9591_s10 + $0x470] sm:$0xff]  ;;  %v1311_v45 = vunpack.c.h.s8.bf16 %v783_v19  ;;  %v1295_v50 = vunpack.c.l.s8.bf16 %v783_v19 }
 0x471   : > { %v1567_v53 = vunpack.c.h.s8.bf16 %v911_v44  ;;  %v1551_v61 = vunpack.c.l.s8.bf16 %v911_v44 }
 0x472   : > { %3464 = vmatpush2.bf16.msra.mxu0 %v1933_v40  ;;  %v1296_v40 = vunpack.c.l.s8.bf16 %v784_v27 }
 0x473   : > { %3505 = vmatpush2.bf16.msra.mxu1 %v2189_v54  ;;  %3515 = vmatprep.subr.bf16.mxu0 %v1408_v56  ;;  %v1552_v54 = vunpack.c.l.s8.bf16 %v912_v35  ;;  %v896_v56 = vld [vmem:[%s9591_s10 + $0x3f8] sm:$0xff] }
 0x474   : > { %3556 = vmatprep.subr.bf16.mxu1 %v1664_v57  ;;  %v1024_v57 = vld [vmem:[%s9591_s10 + $0x7f8] sm:$0xff] }
 0x475   : > { %v3221_v6 = vpop.f32.mrf.mxu0  ;;  %3466 = vmatmul.mubr.bf16.vlgmr.msra.gmra.mxu0 %v9710_v16 }
 0x476   : > { %v3262_v46 = vpop.f32.mrf.mxu1  ;;  %3507 = vmatmul.mubr.bf16.vlgmr.msra.gmra.mxu1 %v9779_v39  ;;  %3516 = vmatpush1.bf16.msra.mxu0 %v1407_v47  ;;  %v1536_v47 = vunpack.c.h.s8.bf16 %v896_v56 }
 0x477   : > { %v10284_v23 = vadd.f32 %v3262_v46, %v3221_v6  ;;  %3557 = vmatpush1.bf16.msra.mxu1 %v1663_v62  ;;  %v10286_v26 = vpop.f32.mrf.mxu0  ;;  %3517 = vmatprep.subr.bf16.mxu0 %v1392_v0  ;;  %v1792_v62 = vunpack.c.h.s8.bf16 %v1024_v57  ;;  %v895_v0 = vld [vmem:[%s9591_s10 + $0x3f0] sm:$0xff]  ;;  %v1520_v6 = vunpack.c.l.s8.bf16 %v896_v56  ;;  %v1776_v46 = vunpack.c.l.s8.bf16 %v1024_v57 }
 0x478   : > { %v10288_v36 = vpop.f32.mrf.mxu1  ;;  %3558 = vmatprep.subr.bf16.mxu1 %v1648_v2  ;;  %3547 = vmatprep.mubr.bf16.mxu0 %v9691_v58  ;;  %v1359_v58 = vunpack.c.l.s8.bf16 %v815_v10  ;;  %v1023_v2 = vld [vmem:[%s9591_s10 + $0x7f0] sm:$0xff]  ;;  %v1535_v4 = vunpack.c.h.s8.bf16 %v895_v0 }
 0x479   : > { %3588 = vmatprep.mubr.bf16.mxu1 %v9697_v1  ;;  %v3225_v13 = vpop.f32.mrf.mxu0  ;;  %v1615_v1 = vunpack.c.l.s8.bf16 %v943_v12  ;;  %v1791_v5 = vunpack.c.h.s8.bf16 %v1023_v2 }
 0x47a   : > { %v3266_v14 = vpop.f32.mrf.mxu1  ;;  %3518 = vmatpush1.bf16.msra.mxu0 %v1391_v48  ;;  %v880_v48 = vld [vmem:[%s9591_s10 + $0x378] sm:$0xff]  ;;  %v879_v13 = vld [vmem:[%s9591_s10 + $0x370] sm:$0xff] }
 0x47b   : > { %3559 = vmatpush1.bf16.msra.mxu1 %v1647_v7  ;;  %v3226_v17 = vpop.f32.mrf.mxu0  ;;  %3519 = vmatprep.subr.bf16.mxu0 %v1376_v9  ;;  %v1008_v7 = vld [vmem:[%s9591_s10 + $0x778] sm:$0xff]  ;;  %v1519_v9 = vunpack.c.l.s8.bf16 %v895_v0  ;;  %v1504_v10 = vunpack.c.h.s8.bf16 %v880_v48  ;;  %v1007_v14 = vld [vmem:[%s9591_s10 + $0x770] sm:$0xff]  ;;  %v1487_v28 = vunpack.c.l.s8.bf16 %v879_v13 }
 0x47c   : > { %v3267_v21 = vpop.f32.mrf.mxu1  ;;  %3560 = vmatprep.subr.bf16.mxu1 %v1632_v3  ;;  %v1775_v3 = vunpack.c.l.s8.bf16 %v1023_v2  ;;  %v1760_v12 = vunpack.c.h.s8.bf16 %v1008_v7  ;;  %v1488_v17 = vunpack.c.l.s8.bf16 %v880_v48  ;;  %v1743_v18 = vunpack.c.l.s8.bf16 %v1007_v14 }
 0x47d   : > { %v1744_v21 = vunpack.c.l.s8.bf16 %v1008_v7 }
 0x47e   : > { %3520 = vmatpush1.bf16.msra.mxu0 %v1375_v15  ;;  %v1503_v15 = vunpack.c.h.s8.bf16 %v879_v13 }
 0x47f   : > { %3561 = vmatpush1.bf16.msra.mxu1 %v1631_v30  ;;  %3521 = vmatprep.subr.bf16.mxu0 %v1360_v24  ;;  %v1759_v30 = vunpack.c.h.s8.bf16 %v1007_v14  ;;  %v864_v24 = vld [vmem:[%s9591_s10 + $0x2f8] sm:$0xff] }
 0x480   : > { %3562 = vmatprep.subr.bf16.mxu1 %v1616_v25  ;;  %v992_v25 = vld [vmem:[%s9591_s10 + $0x6f8] sm:$0xff] }
 0x482   : > { %3522 = vmatpush1.bf16.msra.mxu0 %v1359_v58  ;;  %v1472_v58 = vunpack.c.h.s8.bf16 %v864_v24 }
 0x483   : > { %3563 = vmatpush1.bf16.msra.mxu1 %v1615_v1  ;;  %3523 = vmatprep.subr.bf16.mxu0 %v1344_v29  ;;  %v1728_v1 = vunpack.c.h.s8.bf16 %v992_v25  ;;  %v863_v29 = vld [vmem:[%s9591_s10 + $0x2f0] sm:$0xff] }
 0x484   : > { %3564 = vmatprep.subr.bf16.mxu1 %v1600_v31  ;;  %v991_v31 = vld [vmem:[%s9591_s10 + $0x6f0] sm:$0xff]  ;;  %v1471_v52 = vunpack.c.h.s8.bf16 %v863_v29  ;;  %v1455_v27 = vunpack.c.l.s8.bf16 %v863_v29  ;;  %v1184_v29 = vld [vmem:[%s9591_s10 + $0xcf8] sm:$0xff] }
 0x485   : > { %v1727_v55 = vunpack.c.h.s8.bf16 %v991_v31  ;;  %v1711_v35 = vunpack.c.l.s8.bf16 %v991_v31  ;;  %v3737_v31 = vrot.slane %v3729_v20, %v9991_v22 }
 0x486   : > { %3524 = vmatpush1.bf16.msra.mxu0 %v1343_v63  ;;  %v1456_v63 = vunpack.c.l.s8.bf16 %v864_v24 }
 0x487   : > { %3565 = vmatpush1.bf16.msra.mxu1 %v1599_v32  ;;  %3525 = vmatprep.subr.bf16.mxu0 %v1328_v33  ;;  %v1712_v32 = vunpack.c.l.s8.bf16 %v992_v25  ;;  %v848_v33 = vld [vmem:[%s9591_s10 + $0x278] sm:$0xff] }
 0x488   : > { %3566 = vmatprep.subr.bf16.mxu1 %v1584_v34  ;;  %v976_v34 = vld [vmem:[%s9591_s10 + $0x678] sm:$0xff] }
 0x48a   : > { %3526 = vmatpush1.bf16.msra.mxu0 %v1327_v37  ;;  %v1440_v37 = vunpack.c.h.s8.bf16 %v848_v33 }
 0x48b   : > { %3567 = vmatpush1.bf16.msra.mxu1 %v1583_v41  ;;  %3527 = vmatprep.subr.bf16.mxu0 %v1312_v42  ;;  %v1696_v41 = vunpack.c.h.s8.bf16 %v976_v34  ;;  %v847_v42 = vld [vmem:[%s9591_s10 + $0x270] sm:$0xff] }
 0x48c   : > { %3568 = vmatprep.subr.bf16.mxu1 %v1568_v43  ;;  %v975_v43 = vld [vmem:[%s9591_s10 + $0x670] sm:$0xff]  ;;  %v1439_v19 = vunpack.c.h.s8.bf16 %v847_v42  ;;  %v1423_v56 = vunpack.c.l.s8.bf16 %v847_v42  ;;  %v2096_v42 = vunpack.c.l.s8.bf16 %v1184_v29 }
 0x48d   : > { %v1695_v44 = vunpack.c.h.s8.bf16 %v975_v43  ;;  %v1679_v57 = vunpack.c.l.s8.bf16 %v975_v43  ;;  %v1040_v43 = vld [vmem:[%s9591_s10 + $0x878] sm:$0xff] }
 0x48e   : > { %3528 = vmatpush1.bf16.msra.mxu0 %v1311_v45  ;;  %v1424_v45 = vunpack.c.l.s8.bf16 %v848_v33 }
 0x48f   : > { %3569 = vmatpush1.bf16.msra.mxu1 %v1567_v53  ;;  %3529 = vmatprep.subr.bf16.mxu0 %v1296_v40  ;;  %v1680_v53 = vunpack.c.l.s8.bf16 %v976_v34  ;;  %v1088_v40 = vld [vmem:[%s9591_s10 + $0x9f8] sm:$0xff]  ;;  %v2112_v34 = vunpack.c.h.s8.bf16 %v1184_v29 }
 0x490   : > { %3570 = vmatprep.subr.bf16.mxu1 %v1552_v54  ;;  %v1216_v54 = vld [vmem:[%s9591_s10 + $0xdf8] sm:$0xff] }
 0x492   : > { %3530 = vmatpush1.bf16.msra.mxu0 %v1295_v50  ;;  %v1920_v50 = vunpack.c.h.s8.bf16 %v1088_v40 }
 0x493   : > { %3571 = vmatpush1.bf16.msra.mxu1 %v1551_v61  ;;  %3531 = vmatprep.subr.bf16.mxu0 %v1536_v47  ;;  %v2176_v61 = vunpack.c.h.s8.bf16 %v1216_v54  ;;  %v1087_v47 = vld [vmem:[%s9591_s10 + $0x9f0] sm:$0xff] }
 0x494   : > { %3572 = vmatprep.subr.bf16.mxu1 %v1792_v62  ;;  %v1215_v62 = vld [vmem:[%s9591_s10 + $0xdf0] sm:$0xff]  ;;  %v1919_v0 = vunpack.c.h.s8.bf16 %v1087_v47 }
 0x495   : > { %v2175_v2 = vunpack.c.h.s8.bf16 %v1215_v62 }
 0x496   : > { %3532 = vmatpush2.bf16.msra.mxu0 %v1535_v4  ;;  %v1904_v4 = vunpack.c.l.s8.bf16 %v1088_v40 }
 0x497   : > { %3573 = vmatpush2.bf16.msra.mxu1 %v1791_v5  ;;  %3533 = vmatprep.subr.bf16.mxu0 %v1520_v6  ;;  %v2160_v5 = vunpack.c.l.s8.bf16 %v1216_v54  ;;  %v1072_v6 = vld [vmem:[%s9591_s10 + $0x978] sm:$0xff]  ;;  %v1039_v54 = vld [vmem:[%s9591_s10 + $0x870] sm:$0xff] }
 0x498   : > { %3574 = vmatprep.subr.bf16.mxu1 %v1776_v46  ;;  %v1200_v46 = vld [vmem:[%s9591_s10 + $0xd78] sm:$0xff] }
 0x49a   : > { %3534 = vmatpush2.bf16.msra.mxu0 %v1519_v9  ;;  %v3265_v9 = vadd.f32 %v10288_v36, %v10286_v26 }
 0x49b   : > { %3575 = vmatpush2.bf16.msra.mxu1 %v1775_v3  ;;  %3535 = vmatprep.subr.bf16.mxu0 %v1504_v10  ;;  %v1903_v10 = vunpack.c.l.s8.bf16 %v1087_v47 }
 0x49c   : > { %3576 = vmatprep.subr.bf16.mxu1 %v1760_v12  ;;  %v2159_v12 = vunpack.c.l.s8.bf16 %v1215_v62  ;;  %v1152_v62 = vld [vmem:[%s9591_s10 + $0xbf8] sm:$0xff] }
 0x49e   : > { %3536 = vmatpush2.bf16.msra.mxu0 %v1503_v15  ;;  %v1888_v15 = vunpack.c.h.s8.bf16 %v1072_v6 }
 0x49f   : > { %3577 = vmatpush2.bf16.msra.mxu1 %v1759_v30  ;;  %3537 = vmatprep.subr.bf16.mxu0 %v1488_v17  ;;  %v2144_v30 = vunpack.c.h.s8.bf16 %v1200_v46  ;;  %v1071_v17 = vld [vmem:[%s9591_s10 + $0x970] sm:$0xff] }
 0x4a0   : > { %3578 = vmatprep.subr.bf16.mxu1 %v1744_v21  ;;  %v1199_v21 = vld [vmem:[%s9591_s10 + $0xd70] sm:$0xff]  ;;  %v1887_v24 = vunpack.c.h.s8.bf16 %v1071_v17 }
 0x4a1   : > { %v2143_v25 = vunpack.c.h.s8.bf16 %v1199_v21 }
 0x4a2   : > { %3538 = vmatpush2.bf16.msra.mxu0 %v1487_v28 }
 0x4a3   : > { %3579 = vmatpush2.bf16.msra.mxu1 %v1743_v18  ;;  %3539 = vmatprep.subr.bf16.mxu0 %v1472_v58  ;;  %v1872_v58 = vunpack.c.l.s8.bf16 %v1072_v6 }
 0x4a4   : > { %3580 = vmatprep.subr.bf16.mxu1 %v1728_v1  ;;  %v2128_v1 = vunpack.c.l.s8.bf16 %v1200_v46  ;;  %v1151_v46 = vld [vmem:[%s9591_s10 + $0xbf0] sm:$0xff] }
 0x4a6   : > { %3540 = vmatpush2.bf16.msra.mxu0 %v1471_v52 }
 0x4a7   : > { %3581 = vmatpush2.bf16.msra.mxu1 %v1727_v55  ;;  %3541 = vmatprep.subr.bf16.mxu0 %v1456_v63  ;;  %v1871_v55 = vunpack.c.l.s8.bf16 %v1071_v17  ;;  %v2127_v63 = vunpack.c.l.s8.bf16 %v1199_v21  ;;  %v1135_v21 = vld [vmem:[%s9591_s10 + $0xb70] sm:$0xff] }
 0x4a8   : > { %3582 = vmatprep.subr.bf16.mxu1 %v1712_v32  ;;  %v2307_v32 = vld [vmem:[#allocation2 + $0x18] sm:$0xff] }
 0x4aa   : > { %3542 = vmatpush2.bf16.msra.mxu0 %v1455_v27  ;;  %v1055_v27 = vld [vmem:[%s9591_s10 + $0x8f0] sm:$0xff] }
 0x4ab   : > { %3583 = vmatpush2.bf16.msra.mxu1 %v1711_v35  ;;  %3543 = vmatprep.subr.bf16.mxu0 %v1440_v37  ;;  %v1183_v35 = vld [vmem:[%s9591_s10 + $0xcf0] sm:$0xff]  ;;  %v1855_v8 = vunpack.c.h.s8.bf16 %v1055_v27 }
 0x4ac   : > { %3584 = vmatprep.subr.bf16.mxu1 %v1696_v41  ;;  %v2111_v11 = vunpack.c.h.s8.bf16 %v1183_v35 }
 0x4ae   : > { %3544 = vmatpush2.bf16.msra.mxu0 %v1439_v19  ;;  %v1168_v19 = vld [vmem:[%s9591_s10 + $0xc78] sm:$0xff] }
 0x4af   : > { %3585 = vmatpush2.bf16.msra.mxu1 %v1695_v44  ;;  %3545 = vmatprep.subr.bf16.mxu0 %v1424_v45  ;;  %v1839_v44 = vunpack.c.l.s8.bf16 %v1055_v27  ;;  %v2095_v45 = vunpack.c.l.s8.bf16 %v1183_v35  ;;  %v2080_v40 = vunpack.c.h.s8.bf16 %v1168_v19  ;;  %v2064_v47 = vunpack.c.l.s8.bf16 %v1168_v19 }
 0x4b0   : > { %3586 = vmatprep.subr.bf16.mxu1 %v1680_v53  ;;  %v1824_v53 = vunpack.c.h.s8.bf16 %v1040_v43 }
 0x4b2   : > { %3546 = vmatpush2.bf16.msra.mxu0 %v1423_v56  ;;  %v1167_v56 = vld [vmem:[%s9591_s10 + $0xc70] sm:$0xff] }
 0x4b3   : > { %3587 = vmatpush2.bf16.msra.mxu1 %v1679_v57  ;;  %3597 = vmatprep.subr.bf16.mxu0 %v1920_v50  ;;  %v1823_v57 = vunpack.c.h.s8.bf16 %v1039_v54  ;;  %v2079_v50 = vunpack.c.h.s8.bf16 %v1167_v56 }
 0x4b4   : > { %3638 = vmatprep.subr.bf16.mxu1 %v2176_v61  ;;  %v1808_v61 = vunpack.c.l.s8.bf16 %v1040_v43 }
 0x4b5   : > { %v3303_v48 = vpop.f32.mrf.mxu0  ;;  %3548 = vmatmul.mubr.bf16.vlgmr.msra.gmra.mxu0 %v9726_v51 }
 0x4b6   : > { %v3344_v7 = vpop.f32.mrf.mxu1  ;;  %3589 = vmatmul.mubr.bf16.vlgmr.msra.gmra.mxu1 %v9735_v60  ;;  %v3304_v3 = vadd.f32 %v3303_v48, %v10284_v23  ;;  %3598 = vmatpush1.bf16.msra.mxu0 %v1919_v0  ;;  %v1280_v0 = vld [vmem:[%s9591_s10 + $0xff8] sm:$0xff]  ;;  %v1279_v48 = vld [vmem:[%s9591_s10 + $0xff0] sm:$0xff] }
 0x4b7   : > { %3639 = vmatpush1.bf16.msra.mxu1 %v2175_v2  ;;  %v3305_v13 = vpop.f32.mrf.mxu0  ;;  %3599 = vmatprep.subr.bf16.mxu0 %v1904_v4  ;;  %v1807_v2 = vunpack.c.l.s8.bf16 %v1039_v54  ;;  %v2063_v4 = vunpack.c.l.s8.bf16 %v1167_v56  ;;  %v2304_v6 = vunpack.c.h.s8.bf16 %v1280_v0 }
 0x4b8   : > { %v3346_v14 = vpop.f32.mrf.mxu1  ;;  %3640 = vmatprep.subr.bf16.mxu1 %v2160_v5  ;;  %v3306_v51 = vadd.f32 %v3305_v13, %v3265_v9  ;;  %3629 = vmatprep.mubr.bf16.mxu0 %v9731_v59  ;;  %v3345_v26 = vadd.f32 %v3344_v7, %v3304_v3  ;;  %v2048_v5 = vunpack.c.h.s8.bf16 %v1152_v62  ;;  %v2047_v7 = vunpack.c.h.s8.bf16 %v1151_v46  ;;  %v1264_v13 = vld [vmem:[%s9591_s10 + $0xf78] sm:$0xff] }
 0x4b9   : > { %3670 = vmatprep.mubr.bf16.mxu1 %v9741_v49  ;;  %v3307_v60 = vpop.f32.mrf.mxu0  ;;  %v1056_v49 = vld [vmem:[%s9591_s10 + $0x8f8] sm:$0xff]  ;;  %v2303_v9 = vunpack.c.h.s8.bf16 %v1279_v48  ;;  %v2032_v3 = vunpack.c.l.s8.bf16 %v1152_v62  ;;  %v2272_v17 = vunpack.c.h.s8.bf16 %v1264_v13 }
 0x4ba   : > { %v3348_v23 = vpop.f32.mrf.mxu1  ;;  %v3347_v36 = vadd.f32 %v3346_v14, %v3306_v51  ;;  %3600 = vmatpush1.bf16.msra.mxu0 %v1903_v10  ;;  %v1856_v33 = vunpack.c.h.s8.bf16 %v1056_v49  ;;  %v1840_v20 = vunpack.c.l.s8.bf16 %v1056_v49  ;;  %v2288_v10 = vunpack.c.l.s8.bf16 %v1280_v0  ;;  %v1263_v51 = vld [vmem:[%s9591_s10 + $0xf70] sm:$0xff] }
 0x4bb   : > { %3641 = vmatpush1.bf16.msra.mxu1 %v2159_v12  ;;  %v3308_v28 = vpop.f32.mrf.mxu0  ;;  %3601 = vmatprep.subr.bf16.mxu0 %v1888_v15  ;;  %v1136_v12 = vld [vmem:[%s9591_s10 + $0xb78] sm:$0xff]  ;;  %v2031_v14 = vunpack.c.l.s8.bf16 %v1151_v46  ;;  %v2287_v15 = vunpack.c.l.s8.bf16 %v1279_v48  ;;  %v2015_v60 = vunpack.c.h.s8.bf16 %v1135_v21  ;;  %v2271_v23 = vunpack.c.h.s8.bf16 %v1263_v51  ;;  %v1247_v49 = vld [vmem:[%s9591_s10 + $0xef0] sm:$0xff] }
 0x4bc   : > { %v3349_v18 = vpop.f32.mrf.mxu1  ;;  %3642 = vmatprep.subr.bf16.mxu1 %v2144_v30  ;;  %v3730_v59 = vcombine.low %v3345_v26, %v3347_v36  ;;  %v2016_v30 = vunpack.c.h.s8.bf16 %v1136_v12  ;;  %v2000_v26 = vunpack.c.l.s8.bf16 %v1136_v12  ;;  %v2256_v36 = vunpack.c.l.s8.bf16 %v1264_v13 }
 0x4bd   : > { %v1999_v28 = vunpack.c.l.s8.bf16 %v1135_v21  ;;  %v2255_v18 = vunpack.c.l.s8.bf16 %v1263_v51 }
 0x4be   : > { %v3744_v52 = vrot.slane %v3730_v59, %v9991_v22  ;;  %3602 = vmatpush1.bf16.msra.mxu0 %v1887_v24  ;;  %v1120_v24 = vld [vmem:[%s9591_s10 + $0xaf8] sm:$0xff]  ;;  %v1119_v59 = vld [vmem:[%s9591_s10 + $0xaf0] sm:$0xff] }
 0x4bf   : > { %3643 = vmatpush1.bf16.msra.mxu1 %v2143_v25  ;;  %3603 = vmatprep.subr.bf16.mxu0 %v1872_v58  ;;  %v1248_v25 = vld [vmem:[%s9591_s10 + $0xef8] sm:$0xff]  ;;  %v1984_v58 = vunpack.c.h.s8.bf16 %v1120_v24  ;;  %v1983_v29 = vunpack.c.h.s8.bf16 %v1119_v59 }
 0x4c0   : > { %3644 = vmatprep.subr.bf16.mxu1 %v2128_v1  ;;  %v3745_v37 = vcombine.low %v3737_v31, %v3744_v52  ;;  %v2240_v1 = vunpack.c.h.s8.bf16 %v1248_v25  ;;  %v2239_v31 = vunpack.c.h.s8.bf16 %v1247_v49  ;;  %v1968_v52 = vunpack.c.l.s8.bf16 %v1120_v24 }
 0x4c2   : > { %v3769_v41 = vadd.f32 %v3745_v37, %v2307_v32  ;;  %3604 = vmatpush1.bf16.msra.mxu0 %v1871_v55  ;;  %v2224_v55 = vunpack.c.l.s8.bf16 %v1248_v25  ;;  %v1232_v32 = vld [vmem:[%s9591_s10 + $0xe78] sm:$0xff]  ;;  %v1103_v37 = vld [vmem:[%s9591_s10 + $0xa70] sm:$0xff] }
 0x4c3   : > { %3645 = vmatpush1.bf16.msra.mxu1 %v2127_v63  ;;  %3605 = vmatprep.subr.bf16.mxu0 %v1856_v33  ;;  %v1104_v63 = vld [vmem:[%s9591_s10 + $0xa78] sm:$0xff]  ;;  %v1967_v33 = vunpack.c.l.s8.bf16 %v1119_v59  ;;  %v2208_v35 = vunpack.c.h.s8.bf16 %v1232_v32  ;;  %v1935_v43 = vunpack.c.l.s8.bf16 %v1103_v37 }
 0x4c4   : > { %3646 = vmatprep.subr.bf16.mxu1 %v2112_v34  ;;  %3773 = vst [vmem:[#allocation2 + $0x18] sm:$0xff] %v3769_v41  ;;  %v2223_v34 = vunpack.c.l.s8.bf16 %v1247_v49  ;;  %v1952_v27 = vunpack.c.h.s8.bf16 %v1104_v63  ;;  %v1231_v41 = vld [vmem:[%s9591_s10 + $0xe70] sm:$0xff]  ;;  %s11654_s10 = sld [smem:[#allocation25_spill]] (!%p8686_p3) }
 0x4c5   : > { %v2191_v19 = vunpack.c.l.s8.bf16 %v1231_v41 }
 0x4c6   : > { %3606 = vmatpush1.bf16.msra.mxu0 %v1855_v8  ;;  %v1951_v8 = vunpack.c.h.s8.bf16 %v1103_v37 }
 0x4c7   : > { %3647 = vmatpush1.bf16.msra.mxu1 %v2111_v11  ;;  %3607 = vmatprep.subr.bf16.mxu0 %v1840_v20  ;;  %v2207_v11 = vunpack.c.h.s8.bf16 %v1231_v41  ;;  %v1936_v20 = vunpack.c.l.s8.bf16 %v1104_v63  ;;  %v2308_v63 = vld [vmem:[#allocation2 + $0x8] sm:$0xff] }
 0x4c8   : > { %3648 = vmatprep.subr.bf16.mxu1 %v2096_v42  ;;  %v2192_v42 = vunpack.c.l.s8.bf16 %v1232_v32 }
 0x4ca   : > { %3608 = vmatpush1.bf16.msra.mxu0 %v1839_v44  ;;  %p8354_p6 = scmp.eq.s32.totalorder (!%p8686_p3), %s11654_s10, 0 }
 0x4cb   : > { %3649 = vmatpush1.bf16.msra.mxu1 %v2095_v45  ;;  %3609 = vmatprep.subr.bf16.mxu0 %v1824_v53 }
 0x4cc   : > { %3650 = vmatprep.subr.bf16.mxu1 %v2080_v40 }
 0x4ce   : > { %3610 = vmatpush1.bf16.msra.mxu0 %v1823_v57 }
 0x4cf   : > { %3651 = vmatpush1.bf16.msra.mxu1 %v2079_v50  ;;  %3611 = vmatprep.subr.bf16.mxu0 %v1808_v61 }
 0x4d0   : > { %3652 = vmatprep.subr.bf16.mxu1 %v2064_v47 }
 0x4d2   : > { %3612 = vmatpush1.bf16.msra.mxu0 %v1807_v2 }
 0x4d3   : > { %3653 = vmatpush1.bf16.msra.mxu1 %v2063_v4  ;;  %3613 = vmatprep.subr.bf16.mxu0 %v2048_v5 }
 0x4d4   : > { %3654 = vmatprep.subr.bf16.mxu1 %v2304_v6 }
 0x4d6   : > { %3614 = vmatpush2.bf16.msra.mxu0 %v2047_v7 }
 0x4d7   : > { %3655 = vmatpush2.bf16.msra.mxu1 %v2303_v9  ;;  %3615 = vmatprep.subr.bf16.mxu0 %v2032_v3 }
 0x4d8   : > { %3656 = vmatprep.subr.bf16.mxu1 %v2288_v10 }
 0x4da   : > { %3616 = vmatpush2.bf16.msra.mxu0 %v2031_v14 }
 0x4db   : > { %3657 = vmatpush2.bf16.msra.mxu1 %v2287_v15  ;;  %3617 = vmatprep.subr.bf16.mxu0 %v2016_v30 }
 0x4dc   : > { %3658 = vmatprep.subr.bf16.mxu1 %v2272_v17 }
 0x4de   : > { %3618 = vmatpush2.bf16.msra.mxu0 %v2015_v60 }
 0x4df   : > { %3659 = vmatpush2.bf16.msra.mxu1 %v2271_v23  ;;  %3619 = vmatprep.subr.bf16.mxu0 %v2000_v26 }
 0x4e0   : > { %3660 = vmatprep.subr.bf16.mxu1 %v2256_v36 }
 0x4e2   : > { %3620 = vmatpush2.bf16.msra.mxu0 %v1999_v28 }
 0x4e3   : > { %3661 = vmatpush2.bf16.msra.mxu1 %v2255_v18  ;;  %3621 = vmatprep.subr.bf16.mxu0 %v1984_v58 }
 0x4e4   : > { %3662 = vmatprep.subr.bf16.mxu1 %v2240_v1 }
 0x4e6   : > { %3622 = vmatpush2.bf16.msra.mxu0 %v1983_v29 }
 0x4e7   : > { %3663 = vmatpush2.bf16.msra.mxu1 %v2239_v31  ;;  %3623 = vmatprep.subr.bf16.mxu0 %v1968_v52 }
 0x4e8   : > { %3664 = vmatprep.subr.bf16.mxu1 %v2224_v55 }
 0x4ea   : > { %3624 = vmatpush2.bf16.msra.mxu0 %v1967_v33 }
 0x4eb   : > { %3665 = vmatpush2.bf16.msra.mxu1 %v2223_v34  ;;  %3625 = vmatprep.subr.bf16.mxu0 %v1952_v27 }
 0x4ec   : > { %3666 = vmatprep.subr.bf16.mxu1 %v2208_v35 }
 0x4ee   : > { %3626 = vmatpush2.bf16.msra.mxu0 %v1951_v8 }
 0x4ef   : > { %3667 = vmatpush2.bf16.msra.mxu1 %v2207_v11  ;;  %3627 = vmatprep.subr.bf16.mxu0 %v1936_v20 }
 0x4f0   : > { %3668 = vmatprep.subr.bf16.mxu1 %v2192_v42 }
 0x4f2   : > { %3628 = vmatpush2.bf16.msra.mxu0 %v1935_v43 }
 0x4f3   : > { %3669 = vmatpush2.bf16.msra.mxu1 %v2191_v19 }
 0x4f5   : > { %v3385_v44 = vpop.f32.mrf.mxu0  ;;  %3630 = vmatmul.mubr.bf16.vlgmr.msra.gmra.mxu0 %v9710_v16 }
 0x4f6   : > { %v3426_v45 = vpop.f32.mrf.mxu1  ;;  %3671 = vmatmul.mubr.bf16.vlgmr.msra.gmra.mxu1 %v9779_v39 }
 0x4f7   : > { %v3427_v53 = vadd.f32 %v3426_v45, %v3385_v44  ;;  %v3387_v40 = vpop.f32.mrf.mxu0 }
 0x4f8   : > { %v3428_v54 = vpop.f32.mrf.mxu1 }
 0x4f9   : > { %v3429_v56 = vadd.f32 %v3428_v54, %v3387_v40  ;;  %v3389_v57 = vpop.f32.mrf.mxu0 }
 0x4fa   : > { %v3430_v50 = vpop.f32.mrf.mxu1 }
 0x4fb   : > { %v3390_v61 = vpop.f32.mrf.mxu0 }
 0x4fc   : > { %v3431_v47 = vpop.f32.mrf.mxu1 }
 0x535   : > { %v3467_v62 = vpop.f32.mrf.mxu0 }
 0x536   : > { %v3508_v0 = vpop.f32.mrf.mxu1  ;;  %v3468_v2 = vadd.f32 %v3467_v62, %v3427_v53 }
 0x537   : > { %v3469_v4 = vpop.f32.mrf.mxu0 }
 0x538   : > { %v3510_v5 = vpop.f32.mrf.mxu1  ;;  %v3509_v6 = vadd.f32 %v3508_v0, %v3468_v2  ;;  %v3470_v46 = vadd.f32 %v3469_v4, %v3429_v56 }
 0x539   : > { %v3471_v48 = vpop.f32.mrf.mxu0 }
 0x53a   : > { %v3512_v7 = vpop.f32.mrf.mxu1  ;;  %v3511_v16 = vadd.f32 %v3510_v5, %v3470_v46 }
 0x53b   : > { %v3472_v9 = vpop.f32.mrf.mxu0 }
 0x53c   : > { %v3513_v39 = vpop.f32.mrf.mxu1  ;;  %v3746_v3 = vcombine.low %v3509_v6, %v3511_v16 }
 0x53e   : > { %v3754_v52 = vrot.slane %v3746_v3, %v9991_v22 }
 0x575   : > { %v3549_v10 = vpop.f32.mrf.mxu0 }
 0x576   : > { %v3590_v12 = vpop.f32.mrf.mxu1 }
 0x577   : > { %v3591_v13 = vadd.f32 %v3590_v12, %v3549_v10  ;;  %v3551_v14 = vpop.f32.mrf.mxu0 }
 0x578   : > { %v3592_v15 = vpop.f32.mrf.mxu1 }
 0x579   : > { %v3553_v30 = vpop.f32.mrf.mxu0  ;;  %v3593_v26 = vadd.f32 %v3592_v15, %v3551_v14 }
 0x57a   : > { %v3594_v17 = vpop.f32.mrf.mxu1 }
 0x57b   : > { %v3554_v21 = vpop.f32.mrf.mxu0 }
 0x57c   : > { %v3595_v51 = vpop.f32.mrf.mxu1 }
 0x5b5   : > { %v3631_v60 = vpop.f32.mrf.mxu0 }
 0x5b6   : > { %v3672_v23 = vpop.f32.mrf.mxu1  ;;  %v3632_v36 = vadd.f32 %v3631_v60, %v3591_v13 }
 0x5b7   : > { %v3633_v24 = vpop.f32.mrf.mxu0 }
 0x5b8   : > { %v3674_v25 = vpop.f32.mrf.mxu1  ;;  %v3634_v28 = vadd.f32 %v3633_v24, %v3593_v26  ;;  %v3673_v1 = vadd.f32 %v3672_v23, %v3632_v36 }
 0x5b9   : > { %v3635_v18 = vpop.f32.mrf.mxu0 }
 0x5ba   : > { %v3676_v58 = vpop.f32.mrf.mxu1  ;;  %v3675_v59 = vadd.f32 %v3674_v25, %v3634_v28 }
 0x5bb   : > { %v3636_v49 = vpop.f32.mrf.mxu0 }
 0x5bc   : > { %v3677_v29 = vpop.f32.mrf.mxu1  ;;  %v3747_v31 = vcombine.low %v3673_v1, %v3675_v59 }
 0x5be   : > { %v3761_v55 = vrot.slane %v3747_v31, %v9991_v22 }
 0x5c0   : > { %v3762_v32 = vcombine.low %v3754_v52, %v3761_v55  ;;  %3778 = sbr.rel (%p8686_p3) target bundleno = 3617 (0xe21), region = 108 }
 0x5c2   : > { %v3770_v33 = vadd.f32 %v3762_v32, %v2308_v63 }
 0x5c4   : > { %3774 = vst [vmem:[#allocation2 + $0x8] sm:$0xff] %v3770_v33 }
 0x5c5   : > { %v4215_v34 = vld [vmem:[%s9603_s3 + $0xc8] sm:$0xff]  ;;  %v4214_v35 = vld [vmem:[%s9603_s3 + $0xc0] sm:$0xff]  ;;  %v10378_v6 = vsub.s32 0, %v9674_v38  ;;  %v10383_v9 = vsub.s32 1, %v9674_v38  ;;  %v10386_v39 = vsub.s32 2, %v9674_v38  ;;  %v10402_v60 = vsub.s32 3, %v9674_v38 }
 0x5c6   : > { %v4279_v27 = vld [vmem:[%s9603_s3 + $0x2c8] sm:$0xff]  ;;  %v4751_v37 = vunpack.c.l.s8.bf16 %v4215_v34  ;;  %v4759_v41 = vunpack.c.h.s8.bf16 %v4215_v34  ;;  %v4278_v20 = vld [vmem:[%s9603_s3 + $0x2c0] sm:$0xff]  ;;  %v4758_v42 = vunpack.c.h.s8.bf16 %v4214_v35  ;;  %v4750_v45 = vunpack.c.l.s8.bf16 %v4214_v35 }
 0x5c7   : > { %v4879_v8 = vunpack.c.l.s8.bf16 %v4279_v27  ;;  %v4887_v11 = vunpack.c.h.s8.bf16 %v4279_v27  ;;  %v4886_v43 = vunpack.c.h.s8.bf16 %v4278_v20  ;;  %v4207_v19 = vld [vmem:[%s9603_s3 + $0x88] sm:$0xff]  ;;  %v4878_v53 = vunpack.c.l.s8.bf16 %v4278_v20  ;;  %v4206_v56 = vld [vmem:[%s9603_s3 + $0x80] sm:$0xff] }
 0x5c8   : > { %v4271_v44 = vld [vmem:[%s9603_s3 + $0x288] sm:$0xff]  ;;  %5726 = vmatprep.subr.bf16.mxu0 %v4759_v41  ;;  %v4743_v40 = vunpack.c.h.s8.bf16 %v4207_v19  ;;  %v4270_v57 = vld [vmem:[%s9603_s3 + $0x280] sm:$0xff]  ;;  %v4742_v50 = vunpack.c.h.s8.bf16 %v4206_v56  ;;  %v4735_v47 = vunpack.c.l.s8.bf16 %v4207_v19  ;;  %v4734_v4 = vunpack.c.l.s8.bf16 %v4206_v56  ;;  %v3779_v41 = vld [vmem:[#allocation2 + $0x10] sm:$0xff] }
 0x5c9   : > { %5767 = vmatprep.subr.bf16.mxu1 %v4887_v11  ;;  %5727 = vmatpush1.bf16.msra.mxu0 %v4758_v42  ;;  %v4871_v54 = vunpack.c.h.s8.bf16 %v4271_v44  ;;  %v4870_v61 = vunpack.c.h.s8.bf16 %v4270_v57  ;;  %v4863_v62 = vunpack.c.l.s8.bf16 %v4271_v44  ;;  %v4199_v0 = vld [vmem:[%s9603_s3 + $0x48] sm:$0xff]  ;;  %v4862_v5 = vunpack.c.l.s8.bf16 %v4270_v57  ;;  %v4198_v7 = vld [vmem:[%s9603_s3 + $0x40] sm:$0xff] }
 0x5ca   : > { %5768 = vmatpush1.bf16.msra.mxu1 %v4886_v43  ;;  %5728 = vmatprep.subr.bf16.mxu0 %v4751_v37  ;;  %v4263_v2 = vld [vmem:[%s9603_s3 + $0x248] sm:$0xff]  ;;  %v4727_v46 = vunpack.c.h.s8.bf16 %v4199_v0  ;;  %v4262_v16 = vld [vmem:[%s9603_s3 + $0x240] sm:$0xff]  ;;  %v4726_v12 = vunpack.c.h.s8.bf16 %v4198_v7  ;;  %v4719_v14 = vunpack.c.l.s8.bf16 %v4199_v0  ;;  %v4718_v58 = vunpack.c.l.s8.bf16 %v4198_v7 }
 0x5cb   : > { %5769 = vmatprep.subr.bf16.mxu1 %v4879_v8  ;;  %v4855_v48 = vunpack.c.h.s8.bf16 %v4263_v2  ;;  %v10389_v3 = vld [vmem:[%s9621_s6] ss:$2 sm:$0xff]  ;;  %v10392_v10 = vld [vmem:[%s9621_s6 + $0x1] ss:$2 sm:$0xff]  ;;  %v4854_v13 = vunpack.c.h.s8.bf16 %v4262_v16  ;;  %v4847_v15 = vunpack.c.l.s8.bf16 %v4263_v2  ;;  %v4846_v1 = vunpack.c.l.s8.bf16 %v4262_v16 }
 0x5cc   : > { %v4191_v30 = vld [vmem:[%s9603_s3 + $0x8] sm:$0xff]  ;;  %v3791_v17 = vrot.slane %v10389_v3, %v10378_v6  ;;  %v3795_v21 = vrot.slane %v10389_v3, %v10383_v9  ;;  %v3799_v51 = vrot.slane %v10389_v3, %v10386_v39  ;;  %v3937_v26 = vrot.slane %v10392_v10, %v10378_v6  ;;  %v4190_v31 = vld [vmem:[%s9603_s3] sm:$0xff] }
 0x5cd   : > { %5729 = vmatpush1.bf16.msra.mxu0 %v4750_v45  ;;  %v4255_v23 = vld [vmem:[%s9603_s3 + $0x208] sm:$0xff]  ;;  %v3941_v36 = vrot.slane %v10392_v10, %v10383_v9  ;;  %v3945_v24 = vrot.slane %v10392_v10, %v10386_v39  ;;  %v3803_v25 = vrot.slane %v10389_v3, %v10402_v60  ;;  %v3949_v18 = vrot.slane %v10392_v10, %v10402_v60  ;;  %v4254_v52 = vld [vmem:[%s9603_s3 + $0x200] sm:$0xff] }
 0x5ce   : > { %5770 = vmatpush1.bf16.msra.mxu1 %v4878_v53  ;;  %5730 = vmatprep.subr.bf16.mxu0 %v4743_v40  ;;  %v3852_v28 = vcombine.low %v3791_v17, %v3795_v21  ;;  %v4711_v59 = vunpack.c.h.s8.bf16 %v4191_v30  ;;  %v4839_v29 = vunpack.c.h.s8.bf16 %v4255_v23  ;;  %v4710_v35 = vunpack.c.h.s8.bf16 %v4190_v31  ;;  %v4247_v43 = vld [vmem:[%s9603_s3 + $0x1c8] sm:$0xff]  ;;  %v4246_v44 = vld [vmem:[%s9603_s3 + $0x1c0] sm:$0xff] }
 0x5cf   : > { %5771 = vmatprep.subr.bf16.mxu1 %v4871_v54  ;;  %v3998_v49 = vcombine.low %v3937_v26, %v3941_v36  ;;  %v3853_v55 = vcombine.low %v3799_v51, %v3803_v25  ;;  %v3999_v32 = vcombine.low %v3945_v24, %v3949_v18  ;;  %v4838_v37 = vunpack.c.h.s8.bf16 %v4254_v52  ;;  %v4311_v19 = vld [vmem:[%s9603_s3 + $0x3c8] sm:$0xff]  ;;  %v4310_v45 = vld [vmem:[%s9603_s3 + $0x3c0] sm:$0xff] }
 0x5d0   : > { %v3860_v63 = vrot.slane %v3852_v28, %v9991_v22  ;;  %v4703_v8 = vunpack.c.l.s8.bf16 %v4191_v30  ;;  %v4831_v11 = vunpack.c.l.s8.bf16 %v4255_v23  ;;  %v4702_v40 = vunpack.c.l.s8.bf16 %v4190_v31  ;;  %v4238_v16 = vld [vmem:[%s9603_s3 + $0x180] sm:$0xff] }
 0x5d1   : > { %5731 = vmatpush1.bf16.msra.mxu0 %v4742_v50  ;;  %v4006_v33 = vrot.slane %v3998_v49, %v9991_v22  ;;  %v3867_v34 = vrot.slane %v3853_v55, %v9991_v22  ;;  %v4013_v27 = vrot.slane %v3999_v32, %v9991_v22  ;;  %v4830_v54 = vunpack.c.l.s8.bf16 %v4254_v52  ;;  %v4231_v49 = vld [vmem:[%s9603_s3 + $0x148] sm:$0xff] }
 0x5d2   : > { %5772 = vmatpush1.bf16.msra.mxu1 %v4870_v61  ;;  %5732 = vmatprep.subr.bf16.mxu0 %v4735_v47  ;;  %v4823_v56 = vunpack.c.h.s8.bf16 %v4247_v43  ;;  %v4951_v57 = vunpack.c.h.s8.bf16 %v4311_v19  ;;  %v4822_v47 = vunpack.c.h.s8.bf16 %v4246_v44  ;;  %v4815_v0 = vunpack.c.l.s8.bf16 %v4247_v43 }
 0x5d3   : > { %5773 = vmatprep.subr.bf16.mxu1 %v4863_v62  ;;  %v3868_v20 = vcombine.low %v3860_v63, %v3867_v34  ;;  %v4014_v42 = vcombine.low %v4006_v33, %v4013_v27  ;;  %v4950_v62 = vunpack.c.h.s8.bf16 %v4310_v45  ;;  %v4943_v2 = vunpack.c.l.s8.bf16 %v4311_v19 }
 0x5d4   : > { %v4806_v26 = vunpack.c.h.s8.bf16 %v4238_v16  ;;  %v10444_v18 = vsub.s32 4, %v9674_v38  ;;  %v10457_v31 = vsub.s32 7, %v9674_v38 }
 0x5d5   : > { %5733 = vmatpush1.bf16.msra.mxu0 %v4734_v4  ;;  %v3924_v53 = vmul.f32 %v3868_v20, %v3779_v41  ;;  %v4239_v4 = vld [vmem:[%s9603_s3 + $0x188] sm:$0xff]  ;;  %v4230_v41 = vld [vmem:[%s9603_s3 + $0x140] sm:$0xff] }
 0x5d6   : > { %5774 = vmatpush1.bf16.msra.mxu1 %v4862_v5  ;;  %5734 = vmatprep.subr.bf16.mxu0 %v4727_v46  ;;  %v4303_v5 = vld [vmem:[%s9603_s3 + $0x388] sm:$0xff]  ;;  %v4807_v17 = vunpack.c.h.s8.bf16 %v4239_v4  ;;  %v4799_v24 = vunpack.c.l.s8.bf16 %v4239_v4  ;;  %v3807_v52 = vrot.slane %v10389_v3, %v10444_v18  ;;  %v3953_v32 = vrot.slane %v10392_v10, %v10444_v18 }
 0x5d7   : > { %5775 = vmatprep.subr.bf16.mxu1 %v4855_v48  ;;  %v4070_v50 = vadd.f32 %v4014_v42, %v3924_v53  ;;  %v4935_v21 = vunpack.c.h.s8.bf16 %v4303_v5  ;;  %v4927_v28 = vunpack.c.l.s8.bf16 %v4303_v5  ;;  %v3965_v20 = vrot.slane %v10392_v10, %v10457_v31 }
 0x5d9   : > { %5735 = vmatpush1.bf16.msra.mxu0 %v4726_v12  ;;  %vm4074_vm0 = vcmp.gt.f32.partialorder %v4070_v50, 0.0  ;;  %v4078_v61 = vmul.f32 0.1, %v4070_v50  ;;  %v4302_v12 = vld [vmem:[%s9603_s3 + $0x380] sm:$0xff] }
 0x5da   : > { %5776 = vmatpush1.bf16.msra.mxu1 %v4854_v13  ;;  %5736 = vmatprep.subr.bf16.mxu0 %v4719_v14  ;;  %v4814_v13 = vunpack.c.l.s8.bf16 %v4246_v44  ;;  %v4942_v14 = vunpack.c.l.s8.bf16 %v4310_v45  ;;  %v4934_v36 = vunpack.c.h.s8.bf16 %v4302_v12  ;;  %v4926_v33 = vunpack.c.l.s8.bf16 %v4302_v12 }
 0x5db   : > { %5777 = vmatprep.subr.bf16.mxu1 %v4847_v15  ;;  %v4082_v46 = vsel %vm4074_vm0, %v4070_v50, %v4078_v61  ;;  %v4790_v44 = vunpack.c.h.s8.bf16 %v4230_v41  ;;  %v4223_v50 = vld [vmem:[%s9603_s3 + $0x108] sm:$0xff] }
 0x5dc   : > { %v10428_v48 = vrot.slane %v4082_v46, %v9991_v22  ;;  %v4090_v7 = vcombine.high %v4082_v46, %v4082_v46  ;;  %v4287_v61 = vld [vmem:[%s9603_s3 + $0x308] sm:$0xff]  ;;  %v4775_v5 = vunpack.c.h.s8.bf16 %v4223_v50 }
 0x5dd   : > { %5737 = vmatpush1.bf16.msra.mxu0 %v4718_v58  ;;  %v10447_v58 = vsub.s32 5, %v9674_v38  ;;  %v4903_v46 = vunpack.c.h.s8.bf16 %v4287_v61 }
 0x5de   : > { %5778 = vmatpush1.bf16.msra.mxu1 %v4846_v1  ;;  %5738 = vmatprep.subr.bf16.mxu0 %v4711_v59  ;;  %v4105_v15 = vcombine.high %v10428_v48, %v10428_v48  ;;  %v10435_v30 = vrot.slane %v4090_v7, %v9991_v22  ;;  %v10450_v1 = vsub.s32 6, %v9674_v38  ;;  %v4798_v59 = vunpack.c.l.s8.bf16 %v4238_v16  ;;  %v4222_v7 = vld [vmem:[%s9603_s3 + $0x100] sm:$0xff] }
 0x5df   : > { %5779 = vmatprep.subr.bf16.mxu1 %v4839_v29  ;;  %v4295_v29 = vld [vmem:[%s9603_s3 + $0x348] sm:$0xff]  ;;  %v3811_v55 = vrot.slane %v10389_v3, %v10447_v58  ;;  %v3819_v38 = vrot.slane %v10389_v3, %v10457_v31  ;;  %v3957_v34 = vrot.slane %v10392_v10, %v10447_v58  ;;  %v4286_v16 = vld [vmem:[%s9603_s3 + $0x300] sm:$0xff] }
 0x5e0   : > { %v10437_v51 = vpack.c.bf16 %v4105_v15, %v4105_v15  ;;  %v4106_v23 = vcombine.high %v10435_v30, %v10435_v30  ;;  %v3815_v63 = vrot.slane %v10389_v3, %v10450_v1  ;;  %v3961_v27 = vrot.slane %v10392_v10, %v10450_v1  ;;  %v3780_v10 = vld [vmem:[#allocation2] sm:$0xff] }
 0x5e1   : > { %5739 = vmatpush1.bf16.msra.mxu0 %v4710_v35  ;;  %v4791_v35 = vunpack.c.h.s8.bf16 %v4231_v49  ;;  %v4015_v43 = vcombine.low %v3953_v32, %v3957_v34  ;;  %v10503_v34 = vpack.c.bf16 %v10435_v30, %v10435_v30 }
 0x5e2   : > { %5780 = vmatpush1.bf16.msra.mxu1 %v4838_v37  ;;  %5740 = vmatprep.subr.bf16.mxu0 %v4703_v8  ;;  %v10441_v25 = vpack.c.bf16 %v4106_v23, %v4106_v23  ;;  %v4919_v37 = vunpack.c.h.s8.bf16 %v4295_v29  ;;  %v4294_v8 = vld [vmem:[%s9603_s3 + $0x340] sm:$0xff]  ;;  %v3870_v42 = vcombine.low %v3815_v63, %v3819_v38  ;;  %v4016_v19 = vcombine.low %v3961_v27, %v3965_v20  ;;  %v4343_v23 = vld [vmem:[%s9603_s3 + $0x4c8] sm:$0xff] }
 0x5e3   : > { %5781 = vmatprep.subr.bf16.mxu1 %v4831_v11  ;;  %5758 = vmatprep.mubr.bf16.mxu0 %v10437_v51  ;;  %v3869_v11 = vcombine.low %v3807_v52, %v3811_v55  ;;  %v4918_v45 = vunpack.c.h.s8.bf16 %v4294_v8  ;;  %v4342_v55 = vld [vmem:[%s9603_s3 + $0x4c0] sm:$0xff]  ;;  %v10499_v38 = vpack.c.bf16 %v10428_v48, %v10428_v48  ;;  %v4399_v48 = vld [vmem:[%s9603_s3 + $0x688] sm:$0xff] }
 0x5e4   : > { %5799 = vmatprep.mubr.bf16.mxu1 %v10441_v25  ;;  %v3884_v53 = vrot.slane %v3870_v42, %v9991_v22  ;;  %v4406_v63 = vld [vmem:[%s9603_s3 + $0x6c0] sm:$0xff]  ;;  %v5006_v30 = vunpack.c.l.s8.bf16 %v4342_v55 }
 0x5e5   : > { %5741 = vmatpush1.bf16.msra.mxu0 %v4702_v40  ;;  %v3877_v3 = vrot.slane %v3869_v11, %v9991_v22  ;;  %v4023_v40 = vrot.slane %v4015_v43, %v9991_v22  ;;  %v4335_v11 = vld [vmem:[%s9603_s3 + $0x488] sm:$0xff]  ;;  %v5134_v43 = vunpack.c.l.s8.bf16 %v4406_v63 }
 0x5e6   : > { %5782 = vmatpush1.bf16.msra.mxu1 %v4830_v54  ;;  %5742 = vmatprep.subr.bf16.mxu0 %v4823_v56  ;;  %v4783_v54 = vunpack.c.l.s8.bf16 %v4231_v49  ;;  %v4911_v56 = vunpack.c.l.s8.bf16 %v4295_v29  ;;  %v4894_v49 = vunpack.c.l.s8.bf16 %v4286_v16  ;;  %v5015_v29 = vunpack.c.h.s8.bf16 %v4343_v23 }
 0x5e7   : > { %5783 = vmatprep.subr.bf16.mxu1 %v4951_v57  ;;  %v4030_v57 = vrot.slane %v4016_v19, %v9991_v22  ;;  %v5127_v19 = vunpack.c.h.s8.bf16 %v4399_v48 }
 0x5e9   : > { %5743 = vmatpush2.bf16.msra.mxu0 %v4822_v47  ;;  %v3885_v47 = vcombine.low %v3877_v3, %v3884_v53  ;;  %v4999_v3 = vunpack.c.h.s8.bf16 %v4335_v11 }
 0x5ea   : > { %5784 = vmatpush2.bf16.msra.mxu1 %v4950_v62  ;;  %5744 = vmatprep.subr.bf16.mxu0 %v4815_v0  ;;  %v4031_v62 = vcombine.low %v4023_v40, %v4030_v57  ;;  %v4782_v0 = vunpack.c.l.s8.bf16 %v4230_v41  ;;  %v5007_v41 = vunpack.c.l.s8.bf16 %v4343_v23  ;;  %v4391_v57 = vld [vmem:[%s9603_s3 + $0x648] sm:$0xff]  ;;  %v4318_v23 = vld [vmem:[%s9603_s3 + $0x400] sm:$0xff] }
 0x5eb   : > { %5785 = vmatprep.subr.bf16.mxu1 %v4943_v2  ;;  %v4910_v2 = vunpack.c.l.s8.bf16 %v4294_v8  ;;  %v3925_v4 = vmul.f32 %v3885_v47, %v3780_v10  ;;  %v4327_v10 = vld [vmem:[%s9603_s3 + $0x448] sm:$0xff] }
 0x5ec   : > { %v4983_v47 = vunpack.c.h.s8.bf16 %v4327_v10 }
 0x5ed   : > { %5745 = vmatpush2.bf16.msra.mxu0 %v4814_v13  ;;  %v4071_v12 = vadd.f32 %v4031_v62, %v3925_v4  ;;  %v4774_v13 = vunpack.c.h.s8.bf16 %v4222_v7  ;;  %v5111_v62 = vunpack.c.h.s8.bf16 %v4391_v57 }
 0x5ee   : > { %5786 = vmatpush2.bf16.msra.mxu1 %v4942_v14  ;;  %5746 = vmatprep.subr.bf16.mxu0 %v4807_v17  ;;  %v4902_v14 = vunpack.c.h.s8.bf16 %v4286_v16  ;;  %v4767_v17 = vunpack.c.l.s8.bf16 %v4223_v50  ;;  %v4319_v16 = vld [vmem:[%s9603_s3 + $0x408] sm:$0xff] }
 0x5ef   : > { %5787 = vmatprep.subr.bf16.mxu1 %v4935_v21  ;;  %vm4075_vm1 = vcmp.gt.f32.partialorder %v4071_v12, 0.0  ;;  %v4079_v15 = vmul.f32 0.1, %v4071_v12  ;;  %v4895_v21 = vunpack.c.l.s8.bf16 %v4287_v61 }
 0x5f1   : > { %5747 = vmatpush2.bf16.msra.mxu0 %v4806_v26  ;;  %v4407_v26 = vld [vmem:[%s9603_s3 + $0x6c8] sm:$0xff] }
 0x5f2   : > { %5788 = vmatpush2.bf16.msra.mxu1 %v4934_v36  ;;  %5748 = vmatprep.subr.bf16.mxu0 %v4799_v24  ;;  %v4083_v36 = vsel %vm4075_vm1, %v4071_v12, %v4079_v15  ;;  %v5143_v52 = vunpack.c.h.s8.bf16 %v4407_v26  ;;  %v5135_v8 = vunpack.c.l.s8.bf16 %v4407_v26  ;;  %v4383_v12 = vld [vmem:[%s9603_s3 + $0x608] sm:$0xff]  ;;  %v4382_v26 = vld [vmem:[%s9603_s3 + $0x600] sm:$0xff] }
 0x5f3   : > { %5789 = vmatprep.subr.bf16.mxu1 %v4927_v28  ;;  %v10488_v24 = vrot.slane %v4083_v36, %v9991_v22  ;;  %v4107_v28 = vcombine.high %v4083_v36, %v4083_v36 }
 0x5f5   : > { %5749 = vmatpush2.bf16.msra.mxu0 %v4798_v59  ;;  %v4766_v59 = vunpack.c.l.s8.bf16 %v4222_v7  ;;  %v10493_v32 = vrot.slane %v4107_v28, %v9991_v22  ;;  %v5103_v7 = vunpack.c.l.s8.bf16 %v4391_v57 }
 0x5f6   : > { %5790 = vmatpush2.bf16.msra.mxu1 %v4926_v33  ;;  %5750 = vmatprep.subr.bf16.mxu0 %v4791_v35  ;;  %v4122_v33 = vcombine.high %v10488_v24, %v10488_v24  ;;  %v5014_v35 = vunpack.c.h.s8.bf16 %v4342_v55  ;;  %v5094_v55 = vunpack.c.h.s8.bf16 %v4382_v26 }
 0x5f7   : > { %5791 = vmatprep.subr.bf16.mxu1 %v4919_v37  ;;  %v4123_v27 = vcombine.high %v10493_v32, %v10493_v32  ;;  %v5142_v37 = vunpack.c.h.s8.bf16 %v4406_v63  ;;  %v4959_v63 = vunpack.c.l.s8.bf16 %v4319_v16 }
 0x5f8   : > { %v10509_v20 = vpack.c.bf16 %v4122_v33, %v4122_v33  ;;  %v5087_v33 = vunpack.c.l.s8.bf16 %v4383_v12 }
 0x5f9   : > { %5751 = vmatpush2.bf16.msra.mxu0 %v4790_v44  ;;  %v10511_v42 = vpack.c.bf16 %v4123_v27, %v4123_v27  ;;  %v4334_v44 = vld [vmem:[%s9603_s3 + $0x480] sm:$0xff] }
 0x5fa   : > { %5792 = vmatpush2.bf16.msra.mxu1 %v4918_v45  ;;  %5752 = vmatprep.subr.bf16.mxu0 %v4783_v54  ;;  %v4398_v45 = vld [vmem:[%s9603_s3 + $0x680] sm:$0xff]  ;;  %v4998_v53 = vunpack.c.h.s8.bf16 %v4334_v44  ;;  %v4991_v54 = vunpack.c.l.s8.bf16 %v4335_v11  ;;  %v4990_v50 = vunpack.c.l.s8.bf16 %v4334_v44 }
 0x5fb   : > { %5793 = vmatprep.subr.bf16.mxu1 %v4911_v56  ;;  %v5126_v40 = vunpack.c.h.s8.bf16 %v4398_v45  ;;  %v5119_v56 = vunpack.c.l.s8.bf16 %v4399_v48  ;;  %v5118_v61 = vunpack.c.l.s8.bf16 %v4398_v45  ;;  %v4374_v45 = vld [vmem:[%s9603_s3 + $0x5c0] sm:$0xff] }
 0x5fc   : > { %v5078_v57 = vunpack.c.h.s8.bf16 %v4374_v45 }
 0x5fd   : > { %5753 = vmatpush2.bf16.msra.mxu0 %v4782_v0  ;;  %v4326_v0 = vld [vmem:[%s9603_s3 + $0x440] sm:$0xff] }
 0x5fe   : > { %5794 = vmatpush2.bf16.msra.mxu1 %v4910_v2  ;;  %5754 = vmatprep.subr.bf16.mxu0 %v4775_v5  ;;  %v4390_v2 = vld [vmem:[%s9603_s3 + $0x640] sm:$0xff]  ;;  %v4982_v4 = vunpack.c.h.s8.bf16 %v4326_v0 }
 0x5ff   : > { %5795 = vmatprep.subr.bf16.mxu1 %v4903_v46  ;;  %v5110_v5 = vunpack.c.h.s8.bf16 %v4390_v2  ;;  %v4975_v46 = vunpack.c.l.s8.bf16 %v4327_v10  ;;  %v5102_v15 = vunpack.c.l.s8.bf16 %v4390_v2 }
 0x601   : > { %5755 = vmatpush2.bf16.msra.mxu0 %v4774_v13  ;;  %v10526_v13 = vld [vmem:[%s9621_s6 + $0x10] ss:$2 sm:$0xff] }
 0x602   : > { %5796 = vmatpush2.bf16.msra.mxu1 %v4902_v14  ;;  %5756 = vmatprep.subr.bf16.mxu0 %v4767_v17  ;;  %v4974_v14 = vunpack.c.l.s8.bf16 %v4326_v0  ;;  %v4967_v17 = vunpack.c.h.s8.bf16 %v4319_v16  ;;  %v3823_v36 = vrot.slane %v10526_v13, %v10378_v6  ;;  %v3827_v28 = vrot.slane %v10526_v13, %v10383_v9  ;;  %v4431_v0 = vld [vmem:[%s9603_s3 + $0x788] sm:$0xff] }
 0x603   : > { %5797 = vmatprep.subr.bf16.mxu1 %v4895_v21  ;;  %v5095_v21 = vunpack.c.h.s8.bf16 %v4383_v12 }
 0x605   : > { %5757 = vmatpush2.bf16.msra.mxu0 %v4766_v59  ;;  %v3831_v59 = vrot.slane %v10526_v13, %v10386_v39 }
 0x606   : > { %5798 = vmatpush2.bf16.msra.mxu1 %v4894_v49  ;;  %5808 = vmatprep.subr.bf16.mxu0 %v5015_v29  ;;  %v3835_v49 = vrot.slane %v10526_v13, %v10402_v60  ;;  %v10539_v29 = vld [vmem:[%s9621_s6 + $0x11] ss:$2 sm:$0xff] }
 0x607   : > { %5849 = vmatprep.subr.bf16.mxu1 %v5143_v52  ;;  %v4966_v52 = vunpack.c.h.s8.bf16 %v4318_v23  ;;  %v3969_v27 = vrot.slane %v10539_v29, %v10378_v6  ;;  %v3977_v48 = vrot.slane %v10539_v29, %v10386_v39 }
 0x608   : > { %5759 = vmatmul.mubr.bf16.vlgmr.msra.gmra.mxu0 %v10499_v38  ;;  %v3887_v11 = vcombine.low %v3831_v59, %v3835_v49  ;;  %v5183_v59 = vunpack.c.l.s8.bf16 %v4431_v0  ;;  %v4359_v49 = vld [vmem:[%s9603_s3 + $0x548] sm:$0xff] }
 0x609   : > { %5800 = vmatmul.mubr.bf16.vlgmr.msra.gmra.mxu1 %v10503_v34  ;;  %5809 = vmatpush1.bf16.msra.mxu0 %v5014_v35  ;;  %v3973_v35 = vrot.slane %v10539_v29, %v10383_v9 }
 0x60a   : > { %5850 = vmatpush1.bf16.msra.mxu1 %v5142_v37  ;;  %5810 = vmatprep.subr.bf16.mxu0 %v5007_v41  ;;  %v4375_v37 = vld [vmem:[%s9603_s3 + $0x5c8] sm:$0xff] }
 0x60b   : > { %5851 = vmatprep.subr.bf16.mxu1 %v5135_v8  ;;  %5840 = vmatprep.mubr.bf16.mxu0 %v10509_v20  ;;  %v4439_v41 = vld [vmem:[%s9603_s3 + $0x7c8] sm:$0xff]  ;;  %v3886_v8 = vcombine.low %v3823_v36, %v3827_v28 }
 0x60c   : > { %5881 = vmatprep.mubr.bf16.mxu1 %v10511_v42  ;;  %v5207_v44 = vunpack.c.h.s8.bf16 %v4439_v41 }
 0x60d   : > { %5811 = vmatpush1.bf16.msra.mxu0 %v5006_v30  ;;  %v3981_v30 = vrot.slane %v10539_v29, %v10402_v60 }
 0x60e   : > { %5852 = vmatpush1.bf16.msra.mxu1 %v5134_v43  ;;  %5812 = vmatprep.subr.bf16.mxu0 %v4999_v3  ;;  %v4958_v43 = vunpack.c.l.s8.bf16 %v4318_v23  ;;  %v5086_v3 = vunpack.c.l.s8.bf16 %v4382_v26 }
 0x60f   : > { %5853 = vmatprep.subr.bf16.mxu1 %v5127_v19  ;;  %v5079_v19 = vunpack.c.h.s8.bf16 %v4375_v37  ;;  %v4033_v10 = vcombine.low %v3977_v48, %v3981_v30  ;;  %v4358_v48 = vld [vmem:[%s9603_s3 + $0x540] sm:$0xff] }
 0x610   : > { %v4422_v30 = vld [vmem:[%s9603_s3 + $0x740] sm:$0xff] }
 0x611   : > { %5813 = vmatpush1.bf16.msra.mxu0 %v4998_v53  ;;  %v4438_v53 = vld [vmem:[%s9603_s3 + $0x7c0] sm:$0xff] }
 0x612   : > { %5854 = vmatpush1.bf16.msra.mxu1 %v5126_v40  ;;  %5814 = vmatprep.subr.bf16.mxu0 %v4991_v54  ;;  %v3894_v40 = vrot.slane %v3886_v8, %v9991_v22  ;;  %v3901_v54 = vrot.slane %v3887_v11, %v9991_v22  ;;  %v5198_v16 = vunpack.c.l.s8.bf16 %v4438_v53  ;;  %v5047_v8 = vunpack.c.h.s8.bf16 %v4359_v49 }
 0x613   : > { %5855 = vmatprep.subr.bf16.mxu1 %v5119_v56  ;;  %v4032_v56 = vcombine.low %v3969_v27, %v3973_v35  ;;  %v3847_v27 = vrot.slane %v10526_v13, %v10450_v1  ;;  %v3851_v35 = vrot.slane %v10526_v13, %v10457_v31 }
 0x614   : > { %v3902_v2 = vcombine.low %v3894_v40, %v3901_v54  ;;  %v3997_v54 = vrot.slane %v10539_v29, %v10457_v31 }
 0x615   : > { %5815 = vmatpush1.bf16.msra.mxu0 %v4990_v50  ;;  %v5206_v50 = vunpack.c.h.s8.bf16 %v4438_v53 }
 0x616   : > { %5856 = vmatpush1.bf16.msra.mxu1 %v5118_v61  ;;  %5816 = vmatprep.subr.bf16.mxu0 %v4983_v47  ;;  %v5071_v61 = vunpack.c.l.s8.bf16 %v4375_v37  ;;  %v5199_v47 = vunpack.c.l.s8.bf16 %v4439_v41 }
 0x617   : > { %5857 = vmatprep.subr.bf16.mxu1 %v5111_v62  ;;  %v4367_v62 = vld [vmem:[%s9603_s3 + $0x588] sm:$0xff] }
 0x618   : > { %v5063_v12 = vunpack.c.h.s8.bf16 %v4367_v62  ;;  %v5055_v28 = vunpack.c.l.s8.bf16 %v4367_v62 }
 0x619   : > { %5817 = vmatpush1.bf16.msra.mxu0 %v4982_v4  ;;  %v4040_v4 = vrot.slane %v4032_v56, %v9991_v22  ;;  %v5046_v56 = vunpack.c.h.s8.bf16 %v4358_v48 }
 0x61a   : > { %5858 = vmatpush1.bf16.msra.mxu1 %v5110_v5  ;;  %5818 = vmatprep.subr.bf16.mxu0 %v4975_v46  ;;  %v4047_v5 = vrot.slane %v4033_v10, %v9991_v22  ;;  %v3781_v46 = vld [vmem:[#allocation2 + $0x18] sm:$0xff]  ;;  %v5174_v10 = vunpack.c.h.s8.bf16 %v4422_v30 }
 0x61b   : > { %5859 = vmatprep.subr.bf16.mxu1 %v5103_v7  ;;  %v5070_v7 = vunpack.c.l.s8.bf16 %v4374_v45 }
 0x61c   : > { %v4048_v23 = vcombine.low %v4040_v4, %v4047_v5  ;;  %v3782_v4 = vld [vmem:[#allocation2 + $0x8] sm:$0xff] }
 0x61d   : > { %5819 = vmatpush1.bf16.msra.mxu0 %v4974_v14  ;;  %v5191_v14 = vunpack.c.h.s8.bf16 %v4431_v0  ;;  %v4351_v0 = vld [vmem:[%s9603_s3 + $0x508] sm:$0xff] }
 0x61e   : > { %5860 = vmatpush1.bf16.msra.mxu1 %v5102_v15  ;;  %5820 = vmatprep.subr.bf16.mxu0 %v4967_v17  ;;  %v4366_v15 = vld [vmem:[%s9603_s3 + $0x580] sm:$0xff] }
 0x61f   : > { %5861 = vmatprep.subr.bf16.mxu1 %v5095_v21  ;;  %v4430_v17 = vld [vmem:[%s9603_s3 + $0x780] sm:$0xff]  ;;  %v3926_v21 = vmul.f32 %v3902_v2, %v3781_v46  ;;  %v5062_v26 = vunpack.c.h.s8.bf16 %v4366_v15  ;;  %v5054_v37 = vunpack.c.l.s8.bf16 %v4366_v15  ;;  %v4415_v2 = vld [vmem:[%s9603_s3 + $0x708] sm:$0xff] }
 0x620   : > { %v5190_v36 = vunpack.c.h.s8.bf16 %v4430_v17  ;;  %v5182_v41 = vunpack.c.l.s8.bf16 %v4430_v17  ;;  %v5159_v15 = vunpack.c.h.s8.bf16 %v4415_v2  ;;  %v4350_v17 = vld [vmem:[%s9603_s3 + $0x500] sm:$0xff] }
 0x621   : > { %5821 = vmatpush1.bf16.msra.mxu0 %v4966_v52  ;;  %v4423_v52 = vld [vmem:[%s9603_s3 + $0x748] sm:$0xff] }
 0x622   : > { %5862 = vmatpush1.bf16.msra.mxu1 %v5094_v55  ;;  %5822 = vmatprep.subr.bf16.mxu0 %v4959_v63  ;;  %v4072_v55 = vadd.f32 %v4048_v23, %v3926_v21  ;;  %v3839_v63 = vrot.slane %v10526_v13, %v10444_v18  ;;  %v5175_v11 = vunpack.c.h.s8.bf16 %v4423_v52  ;;  %v4414_v21 = vld [vmem:[%s9603_s3 + $0x700] sm:$0xff] }
 0x623   : > { %5863 = vmatprep.subr.bf16.mxu1 %v5087_v33  ;;  %v3843_v33 = vrot.slane %v10526_v13, %v10447_v58  ;;  %v3993_v13 = vrot.slane %v10539_v29, %v10450_v1 }
 0x624   : > { %v4080_v45 = vmul.f32 0.1, %v4072_v55  ;;  %vm4076_vm2 = vcmp.gt.f32.partialorder %v4072_v55, 0.0 }
 0x625   : > { %5823 = vmatpush1.bf16.msra.mxu0 %v4958_v43  ;;  %v3903_v43 = vcombine.low %v3839_v63, %v3843_v33  ;;  %v4050_v62 = vcombine.low %v3993_v13, %v3997_v54  ;;  %v4535_v63 = vld [vmem:[%s9603_s3 + $0xac8] sm:$0xff] }
 0x626   : > { %5864 = vmatpush1.bf16.msra.mxu1 %v5086_v3  ;;  %5824 = vmatprep.subr.bf16.mxu0 %v5079_v19  ;;  %v3904_v3 = vcombine.low %v3847_v27, %v3851_v35  ;;  %v3985_v19 = vrot.slane %v10539_v29, %v10444_v18  ;;  %v5022_v35 = vunpack.c.l.s8.bf16 %v4350_v17  ;;  %v4527_v54 = vld [vmem:[%s9603_s3 + $0xa88] sm:$0xff] }
 0x627   : > { %5865 = vmatprep.subr.bf16.mxu1 %v5207_v44  ;;  %v3989_v44 = vrot.slane %v10539_v29, %v10447_v58  ;;  %v3911_v53 = vrot.slane %v3903_v43, %v9991_v22  ;;  %v4084_v29 = vsel %vm4076_vm2, %v4072_v55, %v4080_v45  ;;  %v4471_v55 = vld [vmem:[%s9603_s3 + $0x8c8] sm:$0xff]  ;;  %vm8348_vm2 = vcmask 25600  }
 0x628   : > { %v3918_v40 = vrot.slane %v3904_v3, %v9991_v22  ;;  %v10594_v33 = vrot.slane %v4084_v29, %v9991_v22  ;;  %v10607_v3 = vpack.c.bf16 %v10488_v24, %v10488_v24  ;;  %v5263_v45 = vunpack.c.l.s8.bf16 %v4471_v55 }
 0x629   : > { %5825 = vmatpush2.bf16.msra.mxu0 %v5078_v57  ;;  %v4049_v57 = vcombine.low %v3985_v19, %v3989_v44  ;;  %v10611_v19 = vpack.c.bf16 %v10493_v32, %v10493_v32 }
 0x62a   : > { %5866 = vmatpush2.bf16.msra.mxu1 %v5206_v50  ;;  %5826 = vmatprep.subr.bf16.mxu0 %v5071_v61  ;;  %v5039_v50 = vunpack.c.l.s8.bf16 %v4359_v49  ;;  %v5167_v61 = vunpack.c.l.s8.bf16 %v4423_v52  ;;  %v5023_v49 = vunpack.c.l.s8.bf16 %v4351_v0  ;;  %v5151_v52 = vunpack.c.l.s8.bf16 %v4415_v2 }
 0x62b   : > { %5867 = vmatprep.subr.bf16.mxu1 %v5199_v47  ;;  %v3919_v47 = vcombine.low %v3911_v53, %v3918_v40  ;;  %v4057_v5 = vrot.slane %v4049_v57, %v9991_v22  ;;  %v5391_v53 = vunpack.c.l.s8.bf16 %v4535_v63  ;;  %v4463_v40 = vld [vmem:[%s9603_s3 + $0x888] sm:$0xff] }
 0x62c   : > { %v5255_v57 = vunpack.c.h.s8.bf16 %v4463_v40  ;;  %v5247_v2 = vunpack.c.l.s8.bf16 %v4463_v40  ;;  %v4502_v40 = vld [vmem:[%s9603_s3 + $0x9c0] sm:$0xff] }
 0x62d   : > { %5827 = vmatpush2.bf16.msra.mxu0 %v5070_v7  ;;  %v3927_v46 = vmul.f32 %v3919_v47, %v3782_v4  ;;  %v4064_v7 = vrot.slane %v4050_v62, %v9991_v22  ;;  %v4526_v47 = vld [vmem:[%s9603_s3 + $0xa80] sm:$0xff]  ;;  %v5375_v4 = vunpack.c.l.s8.bf16 %v4527_v54 }
 0x62e   : > { %5868 = vmatpush2.bf16.msra.mxu1 %v5198_v16  ;;  %5828 = vmatprep.subr.bf16.mxu0 %v5063_v12  ;;  %v5038_v16 = vunpack.c.l.s8.bf16 %v4358_v48  ;;  %v5166_v12 = vunpack.c.l.s8.bf16 %v4422_v30  ;;  %v4534_v48 = vld [vmem:[%s9603_s3 + $0xac0] sm:$0xff]  ;;  %v4139_v30 = vcombine.high %v10594_v33, %v10594_v33 }
 0x62f   : > { %5869 = vmatprep.subr.bf16.mxu1 %v5191_v14  ;;  %v5031_v14 = vunpack.c.h.s8.bf16 %v4351_v0  ;;  %v4065_v23 = vcombine.low %v4057_v5, %v4064_v7  ;;  %v5398_v13 = vunpack.c.h.s8.bf16 %v4534_v48  ;;  %v5382_v0 = vunpack.c.h.s8.bf16 %v4526_v47  ;;  %v4455_v5 = vld [vmem:[%s9603_s3 + $0x848] sm:$0xff] }
 0x630   : > { %v5374_v7 = vunpack.c.l.s8.bf16 %v4526_v47  ;;  %v4559_v47 = vld [vmem:[%s9603_s3 + $0xb88] sm:$0xff] }
 0x631   : > { %5829 = vmatpush2.bf16.msra.mxu0 %v5062_v26  ;;  %v4124_v26 = vcombine.high %v4084_v29, %v4084_v29  ;;  %v4519_v29 = vld [vmem:[%s9603_s3 + $0xa48] sm:$0xff] }
 0x632   : > { %5870 = vmatpush2.bf16.msra.mxu1 %v5190_v36  ;;  %5830 = vmatprep.subr.bf16.mxu0 %v5055_v28  ;;  %v10589_v36 = vadd.f32 %v4065_v23, %v3927_v46  ;;  %v5030_v28 = vunpack.c.h.s8.bf16 %v4350_v17  ;;  %v5231_v23 = vunpack.c.l.s8.bf16 %v4455_v5 }
 0x633   : > { %5871 = vmatprep.subr.bf16.mxu1 %v5183_v59  ;;  %v5158_v59 = vunpack.c.h.s8.bf16 %v4414_v21  ;;  %v10597_v27 = vrot.slane %v4124_v26, %v9991_v22  ;;  %v5359_v26 = vunpack.c.l.s8.bf16 %v4519_v29 }
 0x634   : > { %vm4077_vm3 = vcmp.gt.f32.partialorder %v10589_v36, 0.0 }
 0x635   : > { %5831 = vmatpush2.bf16.msra.mxu0 %v5054_v37  ;;  %v5150_v37 = vunpack.c.l.s8.bf16 %v4414_v21  ;;  %v4140_v43 = vcombine.high %v10597_v27, %v10597_v27 }
 0x636   : > { %5872 = vmatpush2.bf16.msra.mxu1 %v5182_v41  ;;  %5832 = vmatprep.subr.bf16.mxu0 %v5047_v8  ;;  %v5271_v41 = vunpack.c.h.s8.bf16 %v4471_v55  ;;  %v5399_v8 = vunpack.c.h.s8.bf16 %v4535_v63 }
 0x637   : > { %5873 = vmatprep.subr.bf16.mxu1 %v5175_v11  ;;  %v4470_v11 = vld [vmem:[%s9603_s3 + $0x8c0] sm:$0xff]  ;;  %v10617_v24 = vpack.c.bf16 %v4140_v43, %v4140_v43  ;;  %v4567_v43 = vld [vmem:[%s9603_s3 + $0xbc8] sm:$0xff] }
 0x638   : > { %v5270_v44 = vunpack.c.h.s8.bf16 %v4470_v11  ;;  %v5262_v32 = vunpack.c.l.s8.bf16 %v4470_v11 }
 0x639   : > { %5833 = vmatpush2.bf16.msra.mxu0 %v5046_v56  ;;  %v10615_v56 = vpack.c.bf16 %v4139_v30, %v4139_v30  ;;  %v4503_v30 = vld [vmem:[%s9603_s3 + $0x9c8] sm:$0xff] }
 0x63a   : > { %5874 = vmatpush2.bf16.msra.mxu1 %v5174_v10  ;;  %5834 = vmatprep.subr.bf16.mxu0 %v5039_v50  ;;  %v5390_v10 = vunpack.c.l.s8.bf16 %v4534_v48  ;;  %v5383_v50 = vunpack.c.h.s8.bf16 %v4527_v54  ;;  %v4566_v54 = vld [vmem:[%s9603_s3 + $0xbc0] sm:$0xff] }
 0x63b   : > { %5875 = vmatprep.subr.bf16.mxu1 %v5167_v61  ;;  %v4462_v61 = vld [vmem:[%s9603_s3 + $0x880] sm:$0xff] }
 0x63c   : > { %v5254_v62 = vunpack.c.h.s8.bf16 %v4462_v61  ;;  %v5246_v46 = vunpack.c.l.s8.bf16 %v4462_v61  ;;  %v4495_v61 = vld [vmem:[%s9603_s3 + $0x988] sm:$0xff] }
 0x63d   : > { %5835 = vmatpush2.bf16.msra.mxu0 %v5038_v16  ;;  %v5239_v16 = vunpack.c.h.s8.bf16 %v4455_v5  ;;  %v4494_v5 = vld [vmem:[%s9603_s3 + $0x980] sm:$0xff] }
 0x63e   : > { %5876 = vmatpush2.bf16.msra.mxu1 %v5166_v12  ;;  %5836 = vmatprep.subr.bf16.mxu0 %v5031_v14  ;;  %v5367_v12 = vunpack.c.h.s8.bf16 %v4519_v29  ;;  %v4454_v14 = vld [vmem:[%s9603_s3 + $0x840] sm:$0xff] }
 0x63f   : > { %5877 = vmatprep.subr.bf16.mxu1 %v5159_v15  ;;  %v4518_v15 = vld [vmem:[%s9603_s3 + $0xa40] sm:$0xff]  ;;  %v5238_v17 = vunpack.c.h.s8.bf16 %v4454_v14 }
 0x640   : > { %v5366_v21 = vunpack.c.h.s8.bf16 %v4518_v15  ;;  %v4558_v29 = vld [vmem:[%s9603_s3 + $0xb80] sm:$0xff] }
 0x641   : > { %5837 = vmatpush2.bf16.msra.mxu0 %v5030_v28  ;;  %v4447_v28 = vld [vmem:[%s9603_s3 + $0x808] sm:$0xff] }
 0x642   : > { %5878 = vmatpush2.bf16.msra.mxu1 %v5158_v59  ;;  %5838 = vmatprep.subr.bf16.mxu0 %v5023_v49  ;;  %v4511_v59 = vld [vmem:[%s9603_s3 + $0xa08] sm:$0xff]  ;;  %v5230_v49 = vunpack.c.l.s8.bf16 %v4454_v14  ;;  %v5223_v55 = vunpack.c.h.s8.bf16 %v4447_v28  ;;  %v5215_v11 = vunpack.c.l.s8.bf16 %v4447_v28  ;;  %v4486_v28 = vld [vmem:[%s9603_s3 + $0x940] sm:$0xff] }
 0x643   : > { %5879 = vmatprep.subr.bf16.mxu1 %v5151_v52  ;;  %v5358_v52 = vunpack.c.l.s8.bf16 %v4518_v15  ;;  %v5351_v63 = vunpack.c.h.s8.bf16 %v4511_v59  ;;  %v5343_v48 = vunpack.c.l.s8.bf16 %v4511_v59  ;;  %v4487_v14 = vld [vmem:[%s9603_s3 + $0x948] sm:$0xff]  ;;  %v4550_v59 = vld [vmem:[%s9603_s3 + $0xb40] sm:$0xff] }
 0x644   : > { %v4551_v15 = vld [vmem:[%s9603_s3 + $0xb48] sm:$0xff] }
 0x645   : > { %5839 = vmatpush2.bf16.msra.mxu0 %v5022_v35  ;;  %v4446_v35 = vld [vmem:[%s9603_s3 + $0x800] sm:$0xff] }
 0x646   : > { %5880 = vmatpush2.bf16.msra.mxu1 %v5150_v37  ;;  %5890 = vmatprep.subr.bf16.mxu0 %v5271_v41  ;;  %v4510_v37 = vld [vmem:[%s9603_s3 + $0xa00] sm:$0xff]  ;;  %v5222_v41 = vunpack.c.h.s8.bf16 %v4446_v35 }
 0x647   : > { %5931 = vmatprep.subr.bf16.mxu1 %v5399_v8  ;;  %v5350_v8 = vunpack.c.h.s8.bf16 %v4510_v37 }
 0x648   : > { %5841 = vmatmul.mubr.bf16.vlgmr.msra.gmra.mxu0 %v10607_v3 }
 0x649   : > { %5882 = vmatmul.mubr.bf16.vlgmr.msra.gmra.mxu1 %v10611_v19  ;;  %5891 = vmatpush1.bf16.msra.mxu0 %v5270_v44  ;;  %v5214_v44 = vunpack.c.l.s8.bf16 %v4446_v35  ;;  %v5423_v35 = vunpack.c.l.s8.bf16 %v4551_v15 }
 0x64a   : > { %5932 = vmatpush1.bf16.msra.mxu1 %v5398_v13  ;;  %5892 = vmatprep.subr.bf16.mxu0 %v5263_v45  ;;  %v5342_v13 = vunpack.c.l.s8.bf16 %v4510_v37  ;;  %v5335_v45 = vunpack.c.h.s8.bf16 %v4503_v30  ;;  %v4479_v37 = vld [vmem:[%s9603_s3 + $0x908] sm:$0xff] }
 0x64b   : > { %5933 = vmatprep.subr.bf16.mxu1 %v5391_v53  ;;  %5922 = vmatprep.mubr.bf16.mxu0 %v10615_v56  ;;  %v5463_v53 = vunpack.c.h.s8.bf16 %v4567_v43 }
 0x64c   : > { %5963 = vmatprep.mubr.bf16.mxu1 %v10617_v24 }
 0x64d   : > { %5893 = vmatpush1.bf16.msra.mxu0 %v5262_v32  ;;  %v5334_v32 = vunpack.c.h.s8.bf16 %v4502_v40 }
 0x64e   : > { %5934 = vmatpush1.bf16.msra.mxu1 %v5390_v10  ;;  %5894 = vmatprep.subr.bf16.mxu0 %v5255_v57  ;;  %v5462_v10 = vunpack.c.h.s8.bf16 %v4566_v54  ;;  %v5327_v57 = vunpack.c.l.s8.bf16 %v4503_v30  ;;  %v5287_v30 = vunpack.c.h.s8.bf16 %v4479_v37 }
 0x64f   : > { %5935 = vmatprep.subr.bf16.mxu1 %v5383_v50  ;;  %v5455_v50 = vunpack.c.l.s8.bf16 %v4567_v43 }
 0x651   : > { %5895 = vmatpush1.bf16.msra.mxu0 %v5254_v62  ;;  %v5326_v62 = vunpack.c.l.s8.bf16 %v4502_v40 }
 0x652   : > { %5936 = vmatpush1.bf16.msra.mxu1 %v5382_v0  ;;  %5896 = vmatprep.subr.bf16.mxu0 %v5247_v2  ;;  %v5454_v0 = vunpack.c.l.s8.bf16 %v4566_v54  ;;  %v5319_v2 = vunpack.c.h.s8.bf16 %v4495_v61 }
 0x653   : > { %5937 = vmatprep.subr.bf16.mxu1 %v5375_v4  ;;  %v5447_v4 = vunpack.c.h.s8.bf16 %v4559_v47 }
 0x655   : > { %5897 = vmatpush1.bf16.msra.mxu0 %v5246_v46  ;;  %v5318_v46 = vunpack.c.h.s8.bf16 %v4494_v5 }
 0x656   : > { %5938 = vmatpush1.bf16.msra.mxu1 %v5374_v7  ;;  %5898 = vmatprep.subr.bf16.mxu0 %v5239_v16  ;;  %v5446_v7 = vunpack.c.h.s8.bf16 %v4558_v29  ;;  %v5311_v16 = vunpack.c.l.s8.bf16 %v4495_v61 }
 0x657   : > { %5939 = vmatprep.subr.bf16.mxu1 %v5367_v12  ;;  %v5439_v12 = vunpack.c.l.s8.bf16 %v4559_v47 }
 0x659   : > { %5899 = vmatpush1.bf16.msra.mxu0 %v5238_v17  ;;  %v5310_v17 = vunpack.c.l.s8.bf16 %v4494_v5 }
 0x65a   : > { %5940 = vmatpush1.bf16.msra.mxu1 %v5366_v21  ;;  %5900 = vmatprep.subr.bf16.mxu0 %v5231_v23  ;;  %v5438_v21 = vunpack.c.l.s8.bf16 %v4558_v29  ;;  %v5303_v23 = vunpack.c.h.s8.bf16 %v4487_v14 }
 0x65b   : > { %5941 = vmatprep.subr.bf16.mxu1 %v5359_v26  ;;  %v5431_v26 = vunpack.c.h.s8.bf16 %v4551_v15  ;;  %v4591_v15 = vld [vmem:[%s9603_s3 + $0xc88] sm:$0xff] }
 0x65d   : > { %5901 = vmatpush1.bf16.msra.mxu0 %v5230_v49  ;;  %v4081_v49 = vmul.f32 0.1, %v10589_v36 }
 0x65e   : > { %5942 = vmatpush1.bf16.msra.mxu1 %v5358_v52  ;;  %5902 = vmatprep.subr.bf16.mxu0 %v5223_v55  ;;  %v5302_v52 = vunpack.c.h.s8.bf16 %v4486_v28  ;;  %v5430_v55 = vunpack.c.h.s8.bf16 %v4550_v59 }
 0x65f   : > { %5943 = vmatprep.subr.bf16.mxu1 %v5351_v63  ;;  %v5295_v63 = vunpack.c.l.s8.bf16 %v4487_v14 }
 0x661   : > { %5903 = vmatpush1.bf16.msra.mxu0 %v5222_v41  ;;  %v4543_v41 = vld [vmem:[%s9603_s3 + $0xb08] sm:$0xff] }
 0x662   : > { %5944 = vmatpush1.bf16.msra.mxu1 %v5350_v8  ;;  %5904 = vmatprep.subr.bf16.mxu0 %v5215_v11  ;;  %v4085_v8 = vsel %vm4077_vm3, %v10589_v36, %v4081_v49  ;;  %v5294_v11 = vunpack.c.l.s8.bf16 %v4486_v28  ;;  %v5415_v43 = vunpack.c.h.s8.bf16 %v4543_v41  ;;  %v5279_v36 = vunpack.c.l.s8.bf16 %v4479_v37  ;;  %v4654_v49 = vld [vmem:[%s9603_s3 + $0xe80] sm:$0xff]  ;;  %v4583_v37 = vld [vmem:[%s9603_s3 + $0xc48] sm:$0xff] }
 0x663   : > { %5945 = vmatprep.subr.bf16.mxu1 %v5343_v48  ;;  %v5422_v48 = vunpack.c.l.s8.bf16 %v4550_v59  ;;  %v5407_v54 = vunpack.c.l.s8.bf16 %v4543_v41  ;;  %v4590_v59 = vld [vmem:[%s9603_s3 + $0xc80] sm:$0xff]  ;;  %v4647_v41 = vld [vmem:[%s9603_s3 + $0xe48] sm:$0xff] }
 0x665   : > { %5905 = vmatpush1.bf16.msra.mxu0 %v5214_v44  ;;  %v4478_v44 = vld [vmem:[%s9603_s3 + $0x900] sm:$0xff] }
 0x666   : > { %5946 = vmatpush1.bf16.msra.mxu1 %v5342_v13  ;;  %5906 = vmatprep.subr.bf16.mxu0 %v5335_v45  ;;  %v4542_v13 = vld [vmem:[%s9603_s3 + $0xb00] sm:$0xff]  ;;  %v4141_v45 = vcombine.high %v4085_v8, %v4085_v8  ;;  %v5278_v61 = vunpack.c.l.s8.bf16 %v4478_v44 }
 0x667   : > { %5947 = vmatprep.subr.bf16.mxu1 %v5463_v53  ;;  %v5286_v53 = vunpack.c.h.s8.bf16 %v4478_v44  ;;  %v5414_v40 = vunpack.c.h.s8.bf16 %v4542_v13  ;;  %v5406_v47 = vunpack.c.l.s8.bf16 %v4542_v13  ;;  %v4646_v44 = vld [vmem:[%s9603_s3 + $0xe40] sm:$0xff] }
 0x669   : > { %5907 = vmatpush2.bf16.msra.mxu0 %v5334_v32  ;;  %v4599_v32 = vld [vmem:[%s9603_s3 + $0xcc8] sm:$0xff] }
 0x66a   : > { %5948 = vmatpush2.bf16.msra.mxu1 %v5462_v10  ;;  %5908 = vmatprep.subr.bf16.mxu0 %v5327_v57  ;;  %v4663_v10 = vld [vmem:[%s9603_s3 + $0xec8] sm:$0xff]  ;;  %v10655_v57 = vrot.slane %v4085_v8, %v9991_v22  ;;  %v5502_v8 = vunpack.c.l.s8.bf16 %v4590_v59 }
 0x66b   : > { %5949 = vmatprep.subr.bf16.mxu1 %v5455_v50  ;;  %v10658_v50 = vrot.slane %v4141_v45, %v9991_v22  ;;  %v10668_v22 = vpack.c.bf16 %v10594_v33, %v10594_v33  ;;  %v5647_v14 = vunpack.c.l.s8.bf16 %v4663_v10  ;;  %v5622_v45 = vunpack.c.h.s8.bf16 %v4646_v44 }
 0x66c   : > { %v4156_v5 = vcombine.high %v10655_v57, %v10655_v57 }
 0x66d   : > { %5909 = vmatpush2.bf16.msra.mxu0 %v5326_v62  ;;  %v5527_v62 = vunpack.c.h.s8.bf16 %v4599_v32  ;;  %v4157_v29 = vcombine.high %v10658_v50, %v10658_v50 }
 0x66e   : > { %5950 = vmatpush2.bf16.msra.mxu1 %v5454_v0  ;;  %5910 = vmatprep.subr.bf16.mxu0 %v5319_v2  ;;  %v5655_v0 = vunpack.c.h.s8.bf16 %v4663_v10  ;;  %v4598_v2 = vld [vmem:[%s9603_s3 + $0xcc0] sm:$0xff]  ;;  %v5614_v10 = vunpack.c.l.s8.bf16 %v4646_v44 }
 0x66f   : > { %5951 = vmatprep.subr.bf16.mxu1 %v5447_v4  ;;  %v4662_v4 = vld [vmem:[%s9603_s3 + $0xec0] sm:$0xff]  ;;  %v10678_v33 = vpack.c.bf16 %v4157_v29, %v4157_v29 }
 0x671   : > { %5911 = vmatpush2.bf16.msra.mxu0 %v5318_v46  ;;  %v10672_v46 = vpack.c.bf16 %v10597_v27, %v10597_v27  ;;  %v5518_v27 = vunpack.c.l.s8.bf16 %v4598_v2 }
 0x672   : > { %5952 = vmatpush2.bf16.msra.mxu1 %v5446_v7  ;;  %5912 = vmatprep.subr.bf16.mxu0 %v5311_v16  ;;  %v5526_v7 = vunpack.c.h.s8.bf16 %v4598_v2  ;;  %v5654_v16 = vunpack.c.h.s8.bf16 %v4662_v4 }
 0x673   : > { %5953 = vmatprep.subr.bf16.mxu1 %v5439_v12  ;;  %v5519_v12 = vunpack.c.l.s8.bf16 %v4599_v32 }
 0x675   : > { %5913 = vmatpush2.bf16.msra.mxu0 %v5310_v17  ;;  %v4655_v17 = vld [vmem:[%s9603_s3 + $0xe88] sm:$0xff] }
 0x676   : > { %5954 = vmatpush2.bf16.msra.mxu1 %v5438_v21  ;;  %5914 = vmatprep.subr.bf16.mxu0 %v5303_v23  ;;  %v10676_v21 = vpack.c.bf16 %v4156_v5, %v4156_v5  ;;  %v5646_v23 = vunpack.c.l.s8.bf16 %v4662_v4  ;;  %v5639_v28 = vunpack.c.h.s8.bf16 %v4655_v17 }
 0x677   : > { %5955 = vmatprep.subr.bf16.mxu1 %v5431_v26  ;;  %v5511_v26 = vunpack.c.h.s8.bf16 %v4591_v15 }
 0x679   : > { %5915 = vmatpush2.bf16.msra.mxu0 %v5302_v52  ;;  %v5510_v52 = vunpack.c.h.s8.bf16 %v4590_v59 }
 0x67a   : > { %5956 = vmatpush2.bf16.msra.mxu1 %v5430_v55  ;;  %5916 = vmatprep.subr.bf16.mxu0 %v5295_v63  ;;  %v5638_v55 = vunpack.c.h.s8.bf16 %v4654_v49  ;;  %v5503_v63 = vunpack.c.l.s8.bf16 %v4591_v15 }
 0x67b   : > { %5957 = vmatprep.subr.bf16.mxu1 %v5423_v35  ;;  %v5631_v35 = vunpack.c.l.s8.bf16 %v4655_v17 }
 0x67d   : > { %5917 = vmatpush2.bf16.msra.mxu0 %v5294_v11  ;;  %v5630_v11 = vunpack.c.l.s8.bf16 %v4654_v49 }
 0x67e   : > { %5958 = vmatpush2.bf16.msra.mxu1 %v5422_v48  ;;  %5918 = vmatprep.subr.bf16.mxu0 %v5287_v30  ;;  %v5495_v48 = vunpack.c.h.s8.bf16 %v4583_v37  ;;  %v5623_v30 = vunpack.c.h.s8.bf16 %v4647_v41 }
 0x67f   : > { %5959 = vmatprep.subr.bf16.mxu1 %v5415_v43  ;;  %v4582_v43 = vld [vmem:[%s9603_s3 + $0xc40] sm:$0xff] }
 0x680   : > { %v5494_v13 = vunpack.c.h.s8.bf16 %v4582_v43  ;;  %v5486_v32 = vunpack.c.l.s8.bf16 %v4582_v43 }
 0x681   : > { %5919 = vmatpush2.bf16.msra.mxu0 %v5286_v53  ;;  %v5487_v53 = vunpack.c.l.s8.bf16 %v4583_v37 }
 0x682   : > { %5960 = vmatpush2.bf16.msra.mxu1 %v5414_v40  ;;  %5920 = vmatprep.subr.bf16.mxu0 %v5279_v36  ;;  %v5615_v40 = vunpack.c.l.s8.bf16 %v4647_v41  ;;  %v4575_v36 = vld [vmem:[%s9603_s3 + $0xc08] sm:$0xff] }
 0x683   : > { %5961 = vmatprep.subr.bf16.mxu1 %v5407_v54  ;;  %v4639_v54 = vld [vmem:[%s9603_s3 + $0xe08] sm:$0xff]  ;;  %v5471_v5 = vunpack.c.l.s8.bf16 %v4575_v36 }
 0x684   : > { %v5599_v29 = vunpack.c.l.s8.bf16 %v4639_v54 }
 0x685   : > { %5921 = vmatpush2.bf16.msra.mxu0 %v5278_v61  ;;  %v5479_v61 = vunpack.c.h.s8.bf16 %v4575_v36 }
 0x686   : > { %5962 = vmatpush2.bf16.msra.mxu1 %v5406_v47  ;;  %5972 = vmatprep.subr.bf16.mxu0 %v5527_v62  ;;  %v5607_v47 = vunpack.c.h.s8.bf16 %v4639_v54  ;;  %v4574_v62 = vld [vmem:[%s9603_s3 + $0xc00] sm:$0xff] }
 0x687   : > { %6013 = vmatprep.subr.bf16.mxu1 %v5655_v0  ;;  %v4638_v0 = vld [vmem:[%s9603_s3 + $0xe00] sm:$0xff]  ;;  %v5478_v2 = vunpack.c.h.s8.bf16 %v4574_v62 }
 0x688   : > { %5923 = vmatmul.mubr.bf16.vlgmr.msra.gmra.mxu0 %v10668_v22  ;;  %v5606_v4 = vunpack.c.h.s8.bf16 %v4638_v0 }
 0x689   : > { %5964 = vmatmul.mubr.bf16.vlgmr.msra.gmra.mxu1 %v10672_v46  ;;  %5973 = vmatpush1.bf16.msra.mxu0 %v5526_v7  ;;  %v4631_v7 = vld [vmem:[%s9603_s3 + $0xdc8] sm:$0xff] }
 0x68a   : > { %6014 = vmatpush1.bf16.msra.mxu1 %v5654_v16  ;;  %5974 = vmatprep.subr.bf16.mxu0 %v5519_v12  ;;  %v4695_v16 = vld [vmem:[%s9603_s3 + $0xfc8] sm:$0xff]  ;;  %v5470_v12 = vunpack.c.l.s8.bf16 %v4574_v62  ;;  %v5591_v15 = vunpack.c.h.s8.bf16 %v4631_v7  ;;  %v5583_v59 = vunpack.c.l.s8.bf16 %v4631_v7 }
 0x68b   : > { %6015 = vmatprep.subr.bf16.mxu1 %v5647_v14  ;;  %6004 = vmatprep.mubr.bf16.mxu0 %v10676_v21  ;;  %v5598_v14 = vunpack.c.l.s8.bf16 %v4638_v0  ;;  %v5719_v17 = vunpack.c.h.s8.bf16 %v4695_v16  ;;  %v5711_v49 = vunpack.c.l.s8.bf16 %v4695_v16 }
 0x68c   : > { %6045 = vmatprep.mubr.bf16.mxu1 %v10678_v33 }
 0x68d   : > { %5975 = vmatpush1.bf16.msra.mxu0 %v5518_v27  ;;  %v4630_v27 = vld [vmem:[%s9603_s3 + $0xdc0] sm:$0xff] }
 0x68e   : > { %6016 = vmatpush1.bf16.msra.mxu1 %v5646_v23  ;;  %5976 = vmatprep.subr.bf16.mxu0 %v5511_v26  ;;  %v4694_v23 = vld [vmem:[%s9603_s3 + $0xfc0] sm:$0xff]  ;;  %v5590_v26 = vunpack.c.h.s8.bf16 %v4630_v27 }
 0x68f   : > { %6017 = vmatprep.subr.bf16.mxu1 %v5639_v28  ;;  %v5718_v28 = vunpack.c.h.s8.bf16 %v4694_v23 }
 0x691   : > { %5977 = vmatpush1.bf16.msra.mxu0 %v5510_v52  ;;  %v4623_v52 = vld [vmem:[%s9603_s3 + $0xd88] sm:$0xff] }
 0x692   : > { %6018 = vmatpush1.bf16.msra.mxu1 %v5638_v55  ;;  %5978 = vmatprep.subr.bf16.mxu0 %v5503_v63  ;;  %v4687_v55 = vld [vmem:[%s9603_s3 + $0xf88] sm:$0xff]  ;;  %v5582_v63 = vunpack.c.l.s8.bf16 %v4630_v27  ;;  %v5575_v37 = vunpack.c.h.s8.bf16 %v4623_v52  ;;  %v5567_v43 = vunpack.c.l.s8.bf16 %v4623_v52 }
 0x693   : > { %6019 = vmatprep.subr.bf16.mxu1 %v5631_v35  ;;  %v5710_v35 = vunpack.c.l.s8.bf16 %v4694_v23  ;;  %v5703_v41 = vunpack.c.h.s8.bf16 %v4687_v55  ;;  %v5695_v44 = vunpack.c.l.s8.bf16 %v4687_v55 }
 0x695   : > { %5979 = vmatpush1.bf16.msra.mxu0 %v5502_v8  ;;  %v4622_v8 = vld [vmem:[%s9603_s3 + $0xd80] sm:$0xff] }
 0x696   : > { %6020 = vmatpush1.bf16.msra.mxu1 %v5630_v11  ;;  %5980 = vmatprep.subr.bf16.mxu0 %v5495_v48  ;;  %v4686_v11 = vld [vmem:[%s9603_s3 + $0xf80] sm:$0xff]  ;;  %v5574_v48 = vunpack.c.h.s8.bf16 %v4622_v8 }
 0x697   : > { %6021 = vmatprep.subr.bf16.mxu1 %v5623_v30  ;;  %v5702_v30 = vunpack.c.h.s8.bf16 %v4686_v11 }
 0x699   : > { %5981 = vmatpush1.bf16.msra.mxu0 %v5494_v13  ;;  %v4615_v13 = vld [vmem:[%s9603_s3 + $0xd48] sm:$0xff] }
 0x69a   : > { %6022 = vmatpush1.bf16.msra.mxu1 %v5622_v45  ;;  %5982 = vmatprep.subr.bf16.mxu0 %v5487_v53  ;;  %v4679_v45 = vld [vmem:[%s9603_s3 + $0xf48] sm:$0xff]  ;;  %v5566_v53 = vunpack.c.l.s8.bf16 %v4622_v8  ;;  %v5559_v36 = vunpack.c.h.s8.bf16 %v4615_v13  ;;  %v5551_v62 = vunpack.c.l.s8.bf16 %v4615_v13 }
 0x69b   : > { %6023 = vmatprep.subr.bf16.mxu1 %v5615_v40  ;;  %v5694_v40 = vunpack.c.l.s8.bf16 %v4686_v11  ;;  %v5687_v54 = vunpack.c.h.s8.bf16 %v4679_v45  ;;  %v5679_v0 = vunpack.c.l.s8.bf16 %v4679_v45 }
 0x69d   : > { %5983 = vmatpush1.bf16.msra.mxu0 %v5486_v32  ;;  %v4614_v32 = vld [vmem:[%s9603_s3 + $0xd40] sm:$0xff] }
 0x69e   : > { %6024 = vmatpush1.bf16.msra.mxu1 %v5614_v10  ;;  %5984 = vmatprep.subr.bf16.mxu0 %v5479_v61  ;;  %v4678_v10 = vld [vmem:[%s9603_s3 + $0xf40] sm:$0xff]  ;;  %v5558_v61 = vunpack.c.h.s8.bf16 %v4614_v32 }
 0x69f   : > { %6025 = vmatprep.subr.bf16.mxu1 %v5607_v47  ;;  %v5686_v47 = vunpack.c.h.s8.bf16 %v4678_v10 }
 0x6a1   : > { %5985 = vmatpush1.bf16.msra.mxu0 %v5478_v2  ;;  %v4607_v2 = vld [vmem:[%s9603_s3 + $0xd08] sm:$0xff] }
 0x6a2   : > { %6026 = vmatpush1.bf16.msra.mxu1 %v5606_v4  ;;  %5986 = vmatprep.subr.bf16.mxu0 %v5471_v5  ;;  %v4671_v4 = vld [vmem:[%s9603_s3 + $0xf08] sm:$0xff]  ;;  %v5550_v5 = vunpack.c.l.s8.bf16 %v4614_v32  ;;  %v5543_v7 = vunpack.c.h.s8.bf16 %v4607_v2  ;;  %v5535_v27 = vunpack.c.l.s8.bf16 %v4607_v2 }
 0x6a3   : > { %6027 = vmatprep.subr.bf16.mxu1 %v5599_v29  ;;  %v5678_v29 = vunpack.c.l.s8.bf16 %v4678_v10  ;;  %v5671_v16 = vunpack.c.h.s8.bf16 %v4671_v4  ;;  %v5663_v23 = vunpack.c.l.s8.bf16 %v4671_v4  ;;  %v4208_v10 = vld [vmem:[%s9603_s3 + $0x90] sm:$0xff] }
 0x6a4   : > { %v4744_v2 = vunpack.c.h.s8.bf16 %v4208_v10 }
 0x6a5   : > { %5987 = vmatpush1.bf16.msra.mxu0 %v5470_v12  ;;  %v4606_v12 = vld [vmem:[%s9603_s3 + $0xd00] sm:$0xff] }
 0x6a6   : > { %6028 = vmatpush1.bf16.msra.mxu1 %v5598_v14  ;;  %5988 = vmatprep.subr.bf16.mxu0 %v5591_v15  ;;  %v4670_v14 = vld [vmem:[%s9603_s3 + $0xf00] sm:$0xff]  ;;  %v5542_v15 = vunpack.c.h.s8.bf16 %v4606_v12 }
 0x6a7   : > { %6029 = vmatprep.subr.bf16.mxu1 %v5719_v17  ;;  %v5670_v17 = vunpack.c.h.s8.bf16 %v4670_v14 }
 0x6a9   : > { %5989 = vmatpush2.bf16.msra.mxu0 %v5590_v26  ;;  %v4217_v26 = vld [vmem:[%s9603_s3 + $0xd8] sm:$0xff] }
 0x6aa   : > { %6030 = vmatpush2.bf16.msra.mxu1 %v5718_v28  ;;  %5990 = vmatprep.subr.bf16.mxu0 %v5583_v59  ;;  %v4281_v28 = vld [vmem:[%s9603_s3 + $0x2d8] sm:$0xff]  ;;  %v5534_v59 = vunpack.c.l.s8.bf16 %v4606_v12  ;;  %v4761_v52 = vunpack.c.h.s8.bf16 %v4217_v26 }
 0x6ab   : > { %6031 = vmatprep.subr.bf16.mxu1 %v5711_v49  ;;  %v5662_v49 = vunpack.c.l.s8.bf16 %v4670_v14  ;;  %v4889_v55 = vunpack.c.h.s8.bf16 %v4281_v28  ;;  %v4201_v12 = vld [vmem:[%s9603_s3 + $0x58] sm:$0xff] }
 0x6ac   : > { %v4265_v14 = vld [vmem:[%s9603_s3 + $0x258] sm:$0xff] }
 0x6ad   : > { %5991 = vmatpush2.bf16.msra.mxu0 %v5582_v63  ;;  %v4216_v63 = vld [vmem:[%s9603_s3 + $0xd0] sm:$0xff] }
 0x6ae   : > { %6032 = vmatpush2.bf16.msra.mxu1 %v5710_v35  ;;  %5992 = vmatprep.subr.bf16.mxu0 %v5575_v37  ;;  %v4280_v35 = vld [vmem:[%s9603_s3 + $0x2d0] sm:$0xff]  ;;  %v10716_v37 = vpack.c.bf16 %v10655_v57, %v10655_v57  ;;  %v4760_v8 = vunpack.c.h.s8.bf16 %v4216_v63 }
 0x6af   : > { %6033 = vmatprep.subr.bf16.mxu1 %v5703_v41  ;;  %v10720_v41 = vpack.c.bf16 %v10658_v50, %v10658_v50  ;;  %v4888_v11 = vunpack.c.h.s8.bf16 %v4280_v35  ;;  %v4752_v50 = vunpack.c.l.s8.bf16 %v4216_v63  ;;  %v4193_v63 = vld [vmem:[%s9603_s3 + $0x18] sm:$0xff] }
 0x6b1   : > { %5993 = vmatpush2.bf16.msra.mxu0 %v5574_v48  ;;  %v4753_v48 = vunpack.c.l.s8.bf16 %v4217_v26  ;;  %v4200_v26 = vld [vmem:[%s9603_s3 + $0x50] sm:$0xff] }
 0x6b2   : > { %6034 = vmatpush2.bf16.msra.mxu1 %v5702_v30  ;;  %5994 = vmatprep.subr.bf16.mxu0 %v5567_v43  ;;  %v4881_v30 = vunpack.c.l.s8.bf16 %v4281_v28  ;;  %v4209_v43 = vld [vmem:[%s9603_s3 + $0x98] sm:$0xff]  ;;  %v4264_v28 = vld [vmem:[%s9603_s3 + $0x250] sm:$0xff] }
 0x6b3   : > { %6035 = vmatprep.subr.bf16.mxu1 %v5695_v44  ;;  %v4273_v44 = vld [vmem:[%s9603_s3 + $0x298] sm:$0xff] }
 0x6b4   : > { %v4873_v32 = vunpack.c.h.s8.bf16 %v4273_v44 }
 0x6b5   : > { %5995 = vmatpush2.bf16.msra.mxu0 %v5566_v53  ;;  %v4880_v53 = vunpack.c.l.s8.bf16 %v4280_v35  ;;  %v4257_v35 = vld [vmem:[%s9603_s3 + $0x218] sm:$0xff] }
 0x6b6   : > { %6036 = vmatpush2.bf16.msra.mxu1 %v5694_v40  ;;  %5996 = vmatprep.subr.bf16.mxu0 %v5559_v36 }
 0x6b7   : > { %6037 = vmatprep.subr.bf16.mxu1 %v5687_v54  ;;  %v4745_v54 = vunpack.c.h.s8.bf16 %v4209_v43 }
 0x6b9   : > { %5997 = vmatpush2.bf16.msra.mxu0 %v5558_v61  ;;  %v4272_v61 = vld [vmem:[%s9603_s3 + $0x290] sm:$0xff] }
 0x6ba   : > { %6038 = vmatpush2.bf16.msra.mxu1 %v5686_v47  ;;  %5998 = vmatprep.subr.bf16.mxu0 %v5551_v62  ;;  %v4872_v4 = vunpack.c.h.s8.bf16 %v4272_v61 }
 0x6bb   : > { %6039 = vmatprep.subr.bf16.mxu1 %v5679_v0 }
 0x6bd   : > { %5999 = vmatpush2.bf16.msra.mxu0 %v5550_v5 }
 0x6be   : > { %6040 = vmatpush2.bf16.msra.mxu1 %v5678_v29  ;;  %6000 = vmatprep.subr.bf16.mxu0 %v5543_v7  ;;  %v4737_v7 = vunpack.c.l.s8.bf16 %v4209_v43  ;;  %v4192_v43 = vld [vmem:[%s9603_s3 + $0x10] sm:$0xff] }
 0x6bf   : > { %6041 = vmatprep.subr.bf16.mxu1 %v5671_v16  ;;  %v4865_v16 = vunpack.c.l.s8.bf16 %v4273_v44  ;;  %v4256_v44 = vld [vmem:[%s9603_s3 + $0x210] sm:$0xff] }
 0x6c1   : > { %6001 = vmatpush2.bf16.msra.mxu0 %v5542_v15  ;;  %v4736_v15 = vunpack.c.l.s8.bf16 %v4208_v10 }
 0x6c2   : > { %6042 = vmatpush2.bf16.msra.mxu1 %v5670_v17  ;;  %6002 = vmatprep.subr.bf16.mxu0 %v5535_v27  ;;  %v4864_v17 = vunpack.c.l.s8.bf16 %v4272_v61  ;;  %v4729_v27 = vunpack.c.h.s8.bf16 %v4201_v12 }
 0x6c3   : > { %6043 = vmatprep.subr.bf16.mxu1 %v5663_v23  ;;  %v4857_v23 = vunpack.c.h.s8.bf16 %v4265_v14 }
 0x6c5   : > { %6003 = vmatpush2.bf16.msra.mxu0 %v5534_v59  ;;  %v4728_v59 = vunpack.c.h.s8.bf16 %v4200_v26 }
 0x6c6   : > { %6044 = vmatpush2.bf16.msra.mxu1 %v5662_v49  ;;  %6054 = vmatprep.subr.bf16.mxu0 %v4761_v52  ;;  %v4856_v49 = vunpack.c.h.s8.bf16 %v4264_v28  ;;  %v4721_v52 = vunpack.c.l.s8.bf16 %v4201_v12 }
 0x6c7   : > { %6095 = vmatprep.subr.bf16.mxu1 %v4889_v55  ;;  %v4849_v55 = vunpack.c.l.s8.bf16 %v4265_v14 }
 0x6c8   : > { %v5760_v13 = vpop.f32.mrf.mxu0  ;;  %6005 = vmatmul.mubr.bf16.vlgmr.msra.gmra.mxu0 %v10716_v37 }
 0x6c9   : > { %v5801_v45 = vpop.f32.mrf.mxu1  ;;  %6046 = vmatmul.mubr.bf16.vlgmr.msra.gmra.mxu1 %v10720_v41  ;;  %6055 = vmatpush1.bf16.msra.mxu0 %v4760_v8  ;;  %v4720_v8 = vunpack.c.l.s8.bf16 %v4200_v26 }
 0x6ca   : > { %v10726_v57 = vadd.f32 %v5801_v45, %v5760_v13  ;;  %6096 = vmatpush1.bf16.msra.mxu1 %v4888_v11  ;;  %v5762_v40 = vpop.f32.mrf.mxu0  ;;  %6056 = vmatprep.subr.bf16.mxu0 %v4753_v48  ;;  %v4848_v11 = vunpack.c.l.s8.bf16 %v4264_v28  ;;  %v4713_v48 = vunpack.c.h.s8.bf16 %v4193_v63  ;;  %v4712_v13 = vunpack.c.h.s8.bf16 %v4192_v43 }
 0x6cb   : > { %v5803_v36 = vpop.f32.mrf.mxu1  ;;  %6097 = vmatprep.subr.bf16.mxu1 %v4881_v30  ;;  %6086 = vmatprep.mubr.bf16.mxu0 %v10437_v51  ;;  %v4841_v30 = vunpack.c.h.s8.bf16 %v4257_v35  ;;  %v4840_v45 = vunpack.c.h.s8.bf16 %v4256_v44 }
 0x6cc   : > { %v10730_v47 = vadd.f32 %v5803_v36, %v5762_v40  ;;  %6127 = vmatprep.mubr.bf16.mxu1 %v10441_v25  ;;  %v5764_v62 = vpop.f32.mrf.mxu0  ;;  %v4249_v40 = vld [vmem:[%s9603_s3 + $0x1d8] sm:$0xff] }
 0x6cd   : > { %v5805_v0 = vpop.f32.mrf.mxu1  ;;  %6057 = vmatpush1.bf16.msra.mxu0 %v4752_v50  ;;  %v4705_v50 = vunpack.c.l.s8.bf16 %v4193_v63  ;;  %v4313_v36 = vld [vmem:[%s9603_s3 + $0x3d8] sm:$0xff]  ;;  %v4825_v10 = vunpack.c.h.s8.bf16 %v4249_v40  ;;  %v4248_v62 = vld [vmem:[%s9603_s3 + $0x1d0] sm:$0xff] }
 0x6ce   : > { %6098 = vmatpush1.bf16.msra.mxu1 %v4880_v53  ;;  %v5765_v5 = vpop.f32.mrf.mxu0  ;;  %6058 = vmatprep.subr.bf16.mxu0 %v4745_v54  ;;  %v4833_v53 = vunpack.c.l.s8.bf16 %v4257_v35  ;;  %v4704_v54 = vunpack.c.l.s8.bf16 %v4192_v43  ;;  %v4953_v61 = vunpack.c.h.s8.bf16 %v4313_v36  ;;  %v4312_v0 = vld [vmem:[%s9603_s3 + $0x3d0] sm:$0xff]  ;;  %v4816_v12 = vunpack.c.l.s8.bf16 %v4248_v62 }
 0x6cf   : > { %v5806_v29 = vpop.f32.mrf.mxu1  ;;  %6099 = vmatprep.subr.bf16.mxu1 %v4873_v32  ;;  %v4832_v32 = vunpack.c.l.s8.bf16 %v4256_v44  ;;  %v4817_v5 = vunpack.c.l.s8.bf16 %v4249_v40  ;;  %v4944_v14 = vunpack.c.l.s8.bf16 %v4312_v0 }
 0x6d0   : > { %v4945_v29 = vunpack.c.l.s8.bf16 %v4313_v36 }
 0x6d1   : > { %6059 = vmatpush1.bf16.msra.mxu0 %v4744_v2  ;;  %v4824_v2 = vunpack.c.h.s8.bf16 %v4248_v62 }
 0x6d2   : > { %6100 = vmatpush1.bf16.msra.mxu1 %v4872_v4  ;;  %6060 = vmatprep.subr.bf16.mxu0 %v4737_v7  ;;  %v4952_v4 = vunpack.c.h.s8.bf16 %v4312_v0  ;;  %v4241_v7 = vld [vmem:[%s9603_s3 + $0x198] sm:$0xff] }
 0x6d3   : > { %6101 = vmatprep.subr.bf16.mxu1 %v4865_v16  ;;  %v4305_v16 = vld [vmem:[%s9603_s3 + $0x398] sm:$0xff] }
 0x6d5   : > { %6061 = vmatpush1.bf16.msra.mxu0 %v4736_v15  ;;  %v4809_v15 = vunpack.c.h.s8.bf16 %v4241_v7 }
 0x6d6   : > { %6102 = vmatpush1.bf16.msra.mxu1 %v4864_v17  ;;  %6062 = vmatprep.subr.bf16.mxu0 %v4729_v27  ;;  %v4937_v17 = vunpack.c.h.s8.bf16 %v4305_v16  ;;  %v4240_v27 = vld [vmem:[%s9603_s3 + $0x190] sm:$0xff] }
 0x6d7   : > { %6103 = vmatprep.subr.bf16.mxu1 %v4857_v23  ;;  %v4304_v23 = vld [vmem:[%s9603_s3 + $0x390] sm:$0xff]  ;;  %v4808_v26 = vunpack.c.h.s8.bf16 %v4240_v27  ;;  %v4800_v63 = vunpack.c.l.s8.bf16 %v4240_v27 }
 0x6d8   : > { %v4936_v28 = vunpack.c.h.s8.bf16 %v4304_v23  ;;  %v4928_v35 = vunpack.c.l.s8.bf16 %v4304_v23 }
 0x6d9   : > { %6063 = vmatpush1.bf16.msra.mxu0 %v4728_v59  ;;  %v4801_v59 = vunpack.c.l.s8.bf16 %v4241_v7 }
 0x6da   : > { %6104 = vmatpush1.bf16.msra.mxu1 %v4856_v49  ;;  %6064 = vmatprep.subr.bf16.mxu0 %v4721_v52  ;;  %v4929_v49 = vunpack.c.l.s8.bf16 %v4305_v16  ;;  %v4233_v52 = vld [vmem:[%s9603_s3 + $0x158] sm:$0xff] }
 0x6db   : > { %6105 = vmatprep.subr.bf16.mxu1 %v4849_v55  ;;  %v4297_v55 = vld [vmem:[%s9603_s3 + $0x358] sm:$0xff] }
 0x6dd   : > { %6065 = vmatpush1.bf16.msra.mxu0 %v4720_v8  ;;  %v4793_v8 = vunpack.c.h.s8.bf16 %v4233_v52 }
 0x6de   : > { %6106 = vmatpush1.bf16.msra.mxu1 %v4848_v11  ;;  %6066 = vmatprep.subr.bf16.mxu0 %v4713_v48  ;;  %v4921_v11 = vunpack.c.h.s8.bf16 %v4297_v55  ;;  %v4232_v48 = vld [vmem:[%s9603_s3 + $0x150] sm:$0xff] }
 0x6df   : > { %6107 = vmatprep.subr.bf16.mxu1 %v4841_v30  ;;  %v4296_v30 = vld [vmem:[%s9603_s3 + $0x350] sm:$0xff]  ;;  %v4792_v43 = vunpack.c.h.s8.bf16 %v4232_v48  ;;  %v4784_v40 = vunpack.c.l.s8.bf16 %v4232_v48 }
 0x6e0   : > { %v4920_v44 = vunpack.c.h.s8.bf16 %v4296_v30  ;;  %v4912_v36 = vunpack.c.l.s8.bf16 %v4296_v30 }
 0x6e1   : > { %6067 = vmatpush1.bf16.msra.mxu0 %v4712_v13  ;;  %v4785_v13 = vunpack.c.l.s8.bf16 %v4233_v52 }
 0x6e2   : > { %6108 = vmatpush1.bf16.msra.mxu1 %v4840_v45  ;;  %6068 = vmatprep.subr.bf16.mxu0 %v4705_v50  ;;  %v4913_v45 = vunpack.c.l.s8.bf16 %v4297_v55  ;;  %v4225_v50 = vld [vmem:[%s9603_s3 + $0x118] sm:$0xff] }
 0x6e3   : > { %6109 = vmatprep.subr.bf16.mxu1 %v4833_v53  ;;  %v4289_v53 = vld [vmem:[%s9603_s3 + $0x318] sm:$0xff] }
 0x6e5   : > { %6069 = vmatpush1.bf16.msra.mxu0 %v4704_v54  ;;  %v4777_v54 = vunpack.c.h.s8.bf16 %v4225_v50 }
 0x6e6   : > { %6110 = vmatpush1.bf16.msra.mxu1 %v4832_v32  ;;  %6070 = vmatprep.subr.bf16.mxu0 %v4825_v10  ;;  %v4905_v32 = vunpack.c.h.s8.bf16 %v4289_v53  ;;  %v4224_v10 = vld [vmem:[%s9603_s3 + $0x110] sm:$0xff] }
 0x6e7   : > { %6111 = vmatprep.subr.bf16.mxu1 %v4953_v61  ;;  %v4288_v61 = vld [vmem:[%s9603_s3 + $0x310] sm:$0xff]  ;;  %v4776_v62 = vunpack.c.h.s8.bf16 %v4224_v10  ;;  %v4768_v7 = vunpack.c.l.s8.bf16 %v4224_v10 }
 0x6e8   : > { %v4904_v0 = vunpack.c.h.s8.bf16 %v4288_v61  ;;  %v4896_v16 = vunpack.c.l.s8.bf16 %v4288_v61 }
 0x6e9   : > { %6071 = vmatpush2.bf16.msra.mxu0 %v4824_v2  ;;  %v4769_v2 = vunpack.c.l.s8.bf16 %v4225_v50 }
 0x6ea   : > { %6112 = vmatpush2.bf16.msra.mxu1 %v4952_v4  ;;  %6072 = vmatprep.subr.bf16.mxu0 %v4817_v5  ;;  %v4897_v4 = vunpack.c.l.s8.bf16 %v4289_v53  ;;  %v4345_v5 = vld [vmem:[%s9603_s3 + $0x4d8] sm:$0xff] }
 0x6eb   : > { %6113 = vmatprep.subr.bf16.mxu1 %v4945_v29  ;;  %v4409_v29 = vld [vmem:[%s9603_s3 + $0x6d8] sm:$0xff] }
 0x6ed   : > { %6073 = vmatpush2.bf16.msra.mxu0 %v4816_v12  ;;  %v5017_v12 = vunpack.c.h.s8.bf16 %v4345_v5 }
 0x6ee   : > { %6114 = vmatpush2.bf16.msra.mxu1 %v4944_v14  ;;  %6074 = vmatprep.subr.bf16.mxu0 %v4809_v15  ;;  %v5145_v14 = vunpack.c.h.s8.bf16 %v4409_v29  ;;  %v4344_v15 = vld [vmem:[%s9603_s3 + $0x4d0] sm:$0xff] }
 0x6ef   : > { %6115 = vmatprep.subr.bf16.mxu1 %v4937_v17  ;;  %v4408_v17 = vld [vmem:[%s9603_s3 + $0x6d0] sm:$0xff]  ;;  %v5016_v27 = vunpack.c.h.s8.bf16 %v4344_v15 }
 0x6f0   : > { %v5144_v23 = vunpack.c.h.s8.bf16 %v4408_v17 }
 0x6f1   : > { %6075 = vmatpush2.bf16.msra.mxu0 %v4808_v26  ;;  %v5009_v26 = vunpack.c.l.s8.bf16 %v4345_v5 }
 0x6f2   : > { %6116 = vmatpush2.bf16.msra.mxu1 %v4936_v28  ;;  %6076 = vmatprep.subr.bf16.mxu0 %v4801_v59  ;;  %v5137_v28 = vunpack.c.l.s8.bf16 %v4409_v29  ;;  %v4337_v59 = vld [vmem:[%s9603_s3 + $0x498] sm:$0xff] }
 0x6f3   : > { %6117 = vmatprep.subr.bf16.mxu1 %v4929_v49  ;;  %v4401_v49 = vld [vmem:[%s9603_s3 + $0x698] sm:$0xff]  ;;  %v5001_v30 = vunpack.c.h.s8.bf16 %v4337_v59 }
 0x6f4   : > { %v5121_v61 = vunpack.c.l.s8.bf16 %v4401_v49 }
 0x6f5   : > { %6077 = vmatpush2.bf16.msra.mxu0 %v4800_v63 }
 0x6f6   : > { %6118 = vmatpush2.bf16.msra.mxu1 %v4928_v35  ;;  %6078 = vmatprep.subr.bf16.mxu0 %v4793_v8  ;;  %v5008_v35 = vunpack.c.l.s8.bf16 %v4344_v15  ;;  %v5136_v8 = vunpack.c.l.s8.bf16 %v4408_v17 }
 0x6f7   : > { %6119 = vmatprep.subr.bf16.mxu1 %v4921_v11 }
 0x6f9   : > { %6079 = vmatpush2.bf16.msra.mxu0 %v4792_v43  ;;  %v5129_v43 = vunpack.c.h.s8.bf16 %v4401_v49 }
 0x6fa   : > { %6120 = vmatpush2.bf16.msra.mxu1 %v4920_v44  ;;  %6080 = vmatprep.subr.bf16.mxu0 %v4785_v13  ;;  %v4336_v44 = vld [vmem:[%s9603_s3 + $0x490] sm:$0xff] }
 0x6fb   : > { %6121 = vmatprep.subr.bf16.mxu1 %v4913_v45  ;;  %v4400_v13 = vld [vmem:[%s9603_s3 + $0x690] sm:$0xff] }
 0x6fd   : > { %6081 = vmatpush2.bf16.msra.mxu0 %v4784_v40 }
 0x6fe   : > { %6122 = vmatpush2.bf16.msra.mxu1 %v4912_v36  ;;  %6082 = vmatprep.subr.bf16.mxu0 %v4777_v54  ;;  %v5000_v36 = vunpack.c.h.s8.bf16 %v4336_v44  ;;  %v5128_v54 = vunpack.c.h.s8.bf16 %v4400_v13 }
 0x6ff   : > { %6123 = vmatprep.subr.bf16.mxu1 %v4905_v32 }
 0x701   : > { %6083 = vmatpush2.bf16.msra.mxu0 %v4776_v62  ;;  %v4329_v62 = vld [vmem:[%s9603_s3 + $0x458] sm:$0xff] }
 0x702   : > { %6124 = vmatpush2.bf16.msra.mxu1 %v4904_v0  ;;  %6084 = vmatprep.subr.bf16.mxu0 %v4769_v2  ;;  %v4393_v0 = vld [vmem:[%s9603_s3 + $0x658] sm:$0xff]  ;;  %v4992_v2 = vunpack.c.l.s8.bf16 %v4336_v44  ;;  %v4985_v5 = vunpack.c.h.s8.bf16 %v4329_v62  ;;  %v4977_v15 = vunpack.c.l.s8.bf16 %v4329_v62 }
 0x703   : > { %6125 = vmatprep.subr.bf16.mxu1 %v4897_v4  ;;  %v5120_v4 = vunpack.c.l.s8.bf16 %v4400_v13  ;;  %v5113_v29 = vunpack.c.h.s8.bf16 %v4393_v0  ;;  %v5105_v17 = vunpack.c.l.s8.bf16 %v4393_v0 }
 0x705   : > { %6085 = vmatpush2.bf16.msra.mxu0 %v4768_v7  ;;  %v4328_v7 = vld [vmem:[%s9603_s3 + $0x450] sm:$0xff] }
 0x706   : > { %6126 = vmatpush2.bf16.msra.mxu1 %v4896_v16  ;;  %6136 = vmatprep.subr.bf16.mxu0 %v5017_v12  ;;  %v4392_v16 = vld [vmem:[%s9603_s3 + $0x650] sm:$0xff]  ;;  %v4984_v12 = vunpack.c.h.s8.bf16 %v4328_v7 }
 0x707   : > { %6177 = vmatprep.subr.bf16.mxu1 %v5145_v14  ;;  %v5112_v14 = vunpack.c.h.s8.bf16 %v4392_v16 }
 0x708   : > { %v5842_v52 = vpop.f32.mrf.mxu0  ;;  %6087 = vmatmul.mubr.bf16.vlgmr.msra.gmra.mxu0 %v10499_v38 }
 0x709   : > { %v5883_v55 = vpop.f32.mrf.mxu1  ;;  %6128 = vmatmul.mubr.bf16.vlgmr.msra.gmra.mxu1 %v10503_v34  ;;  %v5843_v63 = vadd.f32 %v5842_v52, %v10726_v57  ;;  %6137 = vmatpush1.bf16.msra.mxu0 %v5016_v27  ;;  %v4321_v27 = vld [vmem:[%s9603_s3 + $0x418] sm:$0xff]  ;;  %v4320_v52 = vld [vmem:[%s9603_s3 + $0x410] sm:$0xff] }
 0x70a   : > { %6178 = vmatpush1.bf16.msra.mxu1 %v5144_v23  ;;  %v5844_v11 = vpop.f32.mrf.mxu0  ;;  %6138 = vmatprep.subr.bf16.mxu0 %v5009_v26  ;;  %v4385_v23 = vld [vmem:[%s9603_s3 + $0x618] sm:$0xff]  ;;  %v4976_v26 = vunpack.c.l.s8.bf16 %v4328_v7 }
 0x70b   : > { %v5885_v48 = vpop.f32.mrf.mxu1  ;;  %6179 = vmatprep.subr.bf16.mxu1 %v5137_v28  ;;  %v10769_v45 = vadd.f32 %v5883_v55, %v5843_v63  ;;  %v5845_v50 = vadd.f32 %v5844_v11, %v10730_v47  ;;  %6168 = vmatprep.mubr.bf16.mxu0 %v10509_v20  ;;  %v4993_v47 = vunpack.c.l.s8.bf16 %v4337_v59  ;;  %v5104_v28 = vunpack.c.l.s8.bf16 %v4392_v16  ;;  %v4384_v55 = vld [vmem:[%s9603_s3 + $0x610] sm:$0xff] }
 0x70c   : > { %6209 = vmatprep.mubr.bf16.mxu1 %v10511_v42  ;;  %v5846_v57 = vpop.f32.mrf.mxu0  ;;  %v4969_v59 = vunpack.c.h.s8.bf16 %v4321_v27  ;;  %v5097_v49 = vunpack.c.h.s8.bf16 %v4385_v23  ;;  %v4968_v63 = vunpack.c.h.s8.bf16 %v4320_v52  ;;  %v5089_v11 = vunpack.c.l.s8.bf16 %v4385_v23 }
 0x70d   : > { %v5887_v53 = vpop.f32.mrf.mxu1  ;;  %v10774_v40 = vadd.f32 %v5885_v48, %v5845_v50  ;;  %6139 = vmatpush1.bf16.msra.mxu0 %v5008_v35  ;;  %v5096_v35 = vunpack.c.h.s8.bf16 %v4384_v55  ;;  %v4377_v48 = vld [vmem:[%s9603_s3 + $0x5d8] sm:$0xff]  ;;  %v5088_v44 = vunpack.c.l.s8.bf16 %v4384_v55  ;;  %v4376_v57 = vld [vmem:[%s9603_s3 + $0x5d0] sm:$0xff] }
 0x70e   : > { %6180 = vmatpush1.bf16.msra.mxu1 %v5136_v8  ;;  %v5847_v32 = vpop.f32.mrf.mxu0  ;;  %6140 = vmatprep.subr.bf16.mxu0 %v5001_v30  ;;  %v4961_v8 = vunpack.c.l.s8.bf16 %v4321_v27  ;;  %v4441_v30 = vld [vmem:[%s9603_s3 + $0x7d8] sm:$0xff]  ;;  %v5081_v13 = vunpack.c.h.s8.bf16 %v4377_v48  ;;  %v4440_v53 = vld [vmem:[%s9603_s3 + $0x7d0] sm:$0xff]  ;;  %v5072_v62 = vunpack.c.l.s8.bf16 %v4376_v57 }
 0x70f   : > { %v5888_v10 = vpop.f32.mrf.mxu1  ;;  %6181 = vmatprep.subr.bf16.mxu1 %v5129_v43  ;;  %v4960_v43 = vunpack.c.l.s8.bf16 %v4320_v52  ;;  %v5209_v50 = vunpack.c.h.s8.bf16 %v4441_v30  ;;  %v5073_v32 = vunpack.c.l.s8.bf16 %v4377_v48  ;;  %v5200_v0 = vunpack.c.l.s8.bf16 %v4440_v53 }
 0x710   : > { %v5201_v10 = vunpack.c.l.s8.bf16 %v4441_v30 }
 0x711   : > { %6141 = vmatpush1.bf16.msra.mxu0 %v5000_v36  ;;  %v5080_v36 = vunpack.c.h.s8.bf16 %v4376_v57 }
 0x712   : > { %6182 = vmatpush1.bf16.msra.mxu1 %v5128_v54  ;;  %6142 = vmatprep.subr.bf16.mxu0 %v4993_v47  ;;  %v5208_v54 = vunpack.c.h.s8.bf16 %v4440_v53  ;;  %v4369_v47 = vld [vmem:[%s9603_s3 + $0x598] sm:$0xff] }
 0x713   : > { %6183 = vmatprep.subr.bf16.mxu1 %v5121_v61  ;;  %v4433_v61 = vld [vmem:[%s9603_s3 + $0x798] sm:$0xff] }
 0x715   : > { %6143 = vmatpush1.bf16.msra.mxu0 %v4992_v2  ;;  %v5065_v2 = vunpack.c.h.s8.bf16 %v4369_v47 }
 0x716   : > { %6184 = vmatpush1.bf16.msra.mxu1 %v5120_v4  ;;  %6144 = vmatprep.subr.bf16.mxu0 %v4985_v5  ;;  %v5193_v4 = vunpack.c.h.s8.bf16 %v4433_v61  ;;  %v4368_v5 = vld [vmem:[%s9603_s3 + $0x590] sm:$0xff] }
 0x717   : > { %6185 = vmatprep.subr.bf16.mxu1 %v5113_v29  ;;  %v4432_v29 = vld [vmem:[%s9603_s3 + $0x790] sm:$0xff]  ;;  %v5064_v7 = vunpack.c.h.s8.bf16 %v4368_v5  ;;  %v5056_v27 = vunpack.c.l.s8.bf16 %v4368_v5 }
 0x718   : > { %v5192_v16 = vunpack.c.h.s8.bf16 %v4432_v29  ;;  %v5184_v23 = vunpack.c.l.s8.bf16 %v4432_v29 }
 0x719   : > { %6145 = vmatpush1.bf16.msra.mxu0 %v4984_v12  ;;  %v5057_v12 = vunpack.c.l.s8.bf16 %v4369_v47 }
 0x71a   : > { %6186 = vmatpush1.bf16.msra.mxu1 %v5112_v14  ;;  %6146 = vmatprep.subr.bf16.mxu0 %v4977_v15  ;;  %v5185_v14 = vunpack.c.l.s8.bf16 %v4433_v61  ;;  %v4361_v15 = vld [vmem:[%s9603_s3 + $0x558] sm:$0xff] }
 0x71b   : > { %6187 = vmatprep.subr.bf16.mxu1 %v5105_v17  ;;  %v4425_v17 = vld [vmem:[%s9603_s3 + $0x758] sm:$0xff] }
 0x71d   : > { %6147 = vmatpush1.bf16.msra.mxu0 %v4976_v26  ;;  %v5049_v26 = vunpack.c.h.s8.bf16 %v4361_v15 }
 0x71e   : > { %6188 = vmatpush1.bf16.msra.mxu1 %v5104_v28  ;;  %6148 = vmatprep.subr.bf16.mxu0 %v4969_v59  ;;  %v5177_v28 = vunpack.c.h.s8.bf16 %v4425_v17  ;;  %v4360_v59 = vld [vmem:[%s9603_s3 + $0x550] sm:$0xff] }
 0x71f   : > { %6189 = vmatprep.subr.bf16.mxu1 %v5097_v49  ;;  %v4424_v49 = vld [vmem:[%s9603_s3 + $0x750] sm:$0xff]  ;;  %v5048_v52 = vunpack.c.h.s8.bf16 %v4360_v59  ;;  %v5040_v48 = vunpack.c.l.s8.bf16 %v4360_v59 }
 0x720   : > { %v5176_v55 = vunpack.c.h.s8.bf16 %v4424_v49  ;;  %v5168_v30 = vunpack.c.l.s8.bf16 %v4424_v49 }
 0x721   : > { %6149 = vmatpush1.bf16.msra.mxu0 %v4968_v63  ;;  %v5041_v63 = vunpack.c.l.s8.bf16 %v4361_v15 }
 0x722   : > { %6190 = vmatpush1.bf16.msra.mxu1 %v5096_v35  ;;  %6150 = vmatprep.subr.bf16.mxu0 %v4961_v8  ;;  %v5169_v35 = vunpack.c.l.s8.bf16 %v4425_v17  ;;  %v4353_v8 = vld [vmem:[%s9603_s3 + $0x518] sm:$0xff] }
 0x723   : > { %6191 = vmatprep.subr.bf16.mxu1 %v5089_v11  ;;  %v4417_v11 = vld [vmem:[%s9603_s3 + $0x718] sm:$0xff] }
 0x725   : > { %6151 = vmatpush1.bf16.msra.mxu0 %v4960_v43  ;;  %v5033_v43 = vunpack.c.h.s8.bf16 %v4353_v8 }
 0x726   : > { %6192 = vmatpush1.bf16.msra.mxu1 %v5088_v44  ;;  %6152 = vmatprep.subr.bf16.mxu0 %v5081_v13  ;;  %v5161_v44 = vunpack.c.h.s8.bf16 %v4417_v11  ;;  %v4352_v13 = vld [vmem:[%s9603_s3 + $0x510] sm:$0xff] }
 0x727   : > { %6193 = vmatprep.subr.bf16.mxu1 %v5209_v50  ;;  %v4416_v50 = vld [vmem:[%s9603_s3 + $0x710] sm:$0xff]  ;;  %v5032_v57 = vunpack.c.h.s8.bf16 %v4352_v13  ;;  %v5024_v47 = vunpack.c.l.s8.bf16 %v4352_v13 }
 0x728   : > { %v5160_v53 = vunpack.c.h.s8.bf16 %v4416_v50  ;;  %v5152_v61 = vunpack.c.l.s8.bf16 %v4416_v50 }
 0x729   : > { %6153 = vmatpush2.bf16.msra.mxu0 %v5080_v36  ;;  %v5025_v36 = vunpack.c.l.s8.bf16 %v4353_v8 }
 0x72a   : > { %6194 = vmatpush2.bf16.msra.mxu1 %v5208_v54  ;;  %6154 = vmatprep.subr.bf16.mxu0 %v5073_v32  ;;  %v5153_v54 = vunpack.c.l.s8.bf16 %v4417_v11  ;;  %v4473_v32 = vld [vmem:[%s9603_s3 + $0x8d8] sm:$0xff] }
 0x72b   : > { %6195 = vmatprep.subr.bf16.mxu1 %v5201_v10  ;;  %v4537_v10 = vld [vmem:[%s9603_s3 + $0xad8] sm:$0xff] }
 0x72d   : > { %6155 = vmatpush2.bf16.msra.mxu0 %v5072_v62  ;;  %v5273_v62 = vunpack.c.h.s8.bf16 %v4473_v32 }
 0x72e   : > { %6196 = vmatpush2.bf16.msra.mxu1 %v5200_v0  ;;  %6156 = vmatprep.subr.bf16.mxu0 %v5065_v2  ;;  %v5401_v0 = vunpack.c.h.s8.bf16 %v4537_v10  ;;  %v4472_v2 = vld [vmem:[%s9603_s3 + $0x8d0] sm:$0xff] }
 0x72f   : > { %6197 = vmatprep.subr.bf16.mxu1 %v5193_v4  ;;  %v4536_v4 = vld [vmem:[%s9603_s3 + $0xad0] sm:$0xff]  ;;  %v5272_v5 = vunpack.c.h.s8.bf16 %v4472_v2 }
 0x730   : > { %v5400_v29 = vunpack.c.h.s8.bf16 %v4536_v4 }
 0x731   : > { %6157 = vmatpush2.bf16.msra.mxu0 %v5064_v7  ;;  %v5265_v7 = vunpack.c.l.s8.bf16 %v4473_v32 }
 0x732   : > { %6198 = vmatpush2.bf16.msra.mxu1 %v5192_v16  ;;  %6158 = vmatprep.subr.bf16.mxu0 %v5057_v12  ;;  %v5393_v16 = vunpack.c.l.s8.bf16 %v4537_v10  ;;  %v4465_v12 = vld [vmem:[%s9603_s3 + $0x898] sm:$0xff] }
 0x733   : > { %6199 = vmatprep.subr.bf16.mxu1 %v5185_v14  ;;  %v4529_v14 = vld [vmem:[%s9603_s3 + $0xa98] sm:$0xff]  ;;  %v5257_v49 = vunpack.c.h.s8.bf16 %v4465_v12 }
 0x734   : > { %v5377_v50 = vunpack.c.l.s8.bf16 %v4529_v14 }
 0x735   : > { %6159 = vmatpush2.bf16.msra.mxu0 %v5056_v27 }
 0x736   : > { %6200 = vmatpush2.bf16.msra.mxu1 %v5184_v23  ;;  %6160 = vmatprep.subr.bf16.mxu0 %v5049_v26  ;;  %v5264_v23 = vunpack.c.l.s8.bf16 %v4472_v2  ;;  %v5392_v26 = vunpack.c.l.s8.bf16 %v4536_v4 }
 0x737   : > { %6201 = vmatprep.subr.bf16.mxu1 %v5177_v28 }
 0x739   : > { %6161 = vmatpush2.bf16.msra.mxu0 %v5048_v52  ;;  %v5385_v52 = vunpack.c.h.s8.bf16 %v4529_v14 }
 0x73a   : > { %6202 = vmatpush2.bf16.msra.mxu1 %v5176_v55  ;;  %6162 = vmatprep.subr.bf16.mxu0 %v5041_v63  ;;  %v4464_v55 = vld [vmem:[%s9603_s3 + $0x890] sm:$0xff] }
 0x73b   : > { %6203 = vmatprep.subr.bf16.mxu1 %v5169_v35  ;;  %v4528_v63 = vld [vmem:[%s9603_s3 + $0xa90] sm:$0xff] }
 0x73d   : > { %6163 = vmatpush2.bf16.msra.mxu0 %v5040_v48 }
 0x73e   : > { %6204 = vmatpush2.bf16.msra.mxu1 %v5168_v30  ;;  %6164 = vmatprep.subr.bf16.mxu0 %v5033_v43  ;;  %v5256_v30 = vunpack.c.h.s8.bf16 %v4464_v55  ;;  %v5384_v43 = vunpack.c.h.s8.bf16 %v4528_v63 }
 0x73f   : > { %6205 = vmatprep.subr.bf16.mxu1 %v5161_v44 }
 0x741   : > { %6165 = vmatpush2.bf16.msra.mxu0 %v5032_v57  ;;  %v4457_v57 = vld [vmem:[%s9603_s3 + $0x858] sm:$0xff] }
 0x742   : > { %6206 = vmatpush2.bf16.msra.mxu1 %v5160_v53  ;;  %6166 = vmatprep.subr.bf16.mxu0 %v5025_v36  ;;  %v4521_v53 = vld [vmem:[%s9603_s3 + $0xa58] sm:$0xff]  ;;  %v5248_v36 = vunpack.c.l.s8.bf16 %v4464_v55  ;;  %v5241_v32 = vunpack.c.h.s8.bf16 %v4457_v57  ;;  %v5233_v2 = vunpack.c.l.s8.bf16 %v4457_v57 }
 0x743   : > { %6207 = vmatprep.subr.bf16.mxu1 %v5153_v54  ;;  %v5376_v54 = vunpack.c.l.s8.bf16 %v4528_v63  ;;  %v5369_v10 = vunpack.c.h.s8.bf16 %v4521_v53  ;;  %v5361_v4 = vunpack.c.l.s8.bf16 %v4521_v53 }
 0x745   : > { %6167 = vmatpush2.bf16.msra.mxu0 %v5024_v47  ;;  %v4456_v47 = vld [vmem:[%s9603_s3 + $0x850] sm:$0xff] }
 0x746   : > { %6208 = vmatpush2.bf16.msra.mxu1 %v5152_v61  ;;  %6218 = vmatprep.subr.bf16.mxu0 %v5273_v62  ;;  %v4520_v61 = vld [vmem:[%s9603_s3 + $0xa50] sm:$0xff]  ;;  %v5240_v62 = vunpack.c.h.s8.bf16 %v4456_v47 }
 0x747   : > { %6259 = vmatprep.subr.bf16.mxu1 %v5401_v0  ;;  %v5368_v0 = vunpack.c.h.s8.bf16 %v4520_v61 }
 0x748   : > { %v5924_v15 = vpop.f32.mrf.mxu0  ;;  %6169 = vmatmul.mubr.bf16.vlgmr.msra.gmra.mxu0 %v10607_v3 }
 0x749   : > { %v5965_v17 = vpop.f32.mrf.mxu1  ;;  %6210 = vmatmul.mubr.bf16.vlgmr.msra.gmra.mxu1 %v10611_v19  ;;  %v5925_v27 = vadd.f32 %v5924_v15, %v10769_v45  ;;  %6219 = vmatpush1.bf16.msra.mxu0 %v5272_v5  ;;  %v4449_v5 = vld [vmem:[%s9603_s3 + $0x818] sm:$0xff]  ;;  %v4448_v15 = vld [vmem:[%s9603_s3 + $0x810] sm:$0xff] }
 0x74a   : > { %6260 = vmatpush1.bf16.msra.mxu1 %v5400_v29  ;;  %v5926_v28 = vpop.f32.mrf.mxu0  ;;  %6220 = vmatprep.subr.bf16.mxu0 %v5265_v7  ;;  %v4513_v29 = vld [vmem:[%s9603_s3 + $0xa18] sm:$0xff]  ;;  %v5232_v7 = vunpack.c.l.s8.bf16 %v4456_v47 }
 0x74b   : > { %v5967_v59 = vpop.f32.mrf.mxu1  ;;  %6261 = vmatprep.subr.bf16.mxu1 %v5393_v16  ;;  %v10811_v35 = vadd.f32 %v5965_v17, %v5925_v27  ;;  %v5927_v8 = vadd.f32 %v5926_v28, %v10774_v40  ;;  %6250 = vmatprep.mubr.bf16.mxu0 %v10615_v56  ;;  %v5249_v40 = vunpack.c.l.s8.bf16 %v4465_v12  ;;  %v5360_v16 = vunpack.c.l.s8.bf16 %v4520_v61  ;;  %v4512_v17 = vld [vmem:[%s9603_s3 + $0xa10] sm:$0xff] }
 0x74c   : > { %6291 = vmatprep.mubr.bf16.mxu1 %v10617_v24  ;;  %v5928_v45 = vpop.f32.mrf.mxu0  ;;  %v5225_v12 = vunpack.c.h.s8.bf16 %v4449_v5  ;;  %v5353_v14 = vunpack.c.h.s8.bf16 %v4513_v29  ;;  %v5224_v27 = vunpack.c.h.s8.bf16 %v4448_v15  ;;  %v5345_v28 = vunpack.c.l.s8.bf16 %v4513_v29 }
 0x74d   : > { %v5969_v11 = vpop.f32.mrf.mxu1  ;;  %v10816_v48 = vadd.f32 %v5967_v59, %v5927_v8  ;;  %6221 = vmatpush1.bf16.msra.mxu0 %v5264_v23  ;;  %v5352_v23 = vunpack.c.h.s8.bf16 %v4512_v17  ;;  %v4505_v59 = vld [vmem:[%s9603_s3 + $0x9d8] sm:$0xff]  ;;  %v5344_v55 = vunpack.c.l.s8.bf16 %v4512_v17  ;;  %v4504_v45 = vld [vmem:[%s9603_s3 + $0x9d0] sm:$0xff] }
 0x74e   : > { %6262 = vmatpush1.bf16.msra.mxu1 %v5392_v26  ;;  %v5929_v44 = vpop.f32.mrf.mxu0  ;;  %6222 = vmatprep.subr.bf16.mxu0 %v5257_v49  ;;  %v5217_v26 = vunpack.c.l.s8.bf16 %v4449_v5  ;;  %v4569_v49 = vld [vmem:[%s9603_s3 + $0xbd8] sm:$0xff]  ;;  %v5337_v63 = vunpack.c.h.s8.bf16 %v4505_v59  ;;  %v4568_v11 = vld [vmem:[%s9603_s3 + $0xbd0] sm:$0xff]  ;;  %v5328_v57 = vunpack.c.l.s8.bf16 %v4504_v45 }
 0x74f   : > { %v5970_v13 = vpop.f32.mrf.mxu1  ;;  %6263 = vmatprep.subr.bf16.mxu1 %v5385_v52  ;;  %v5216_v52 = vunpack.c.l.s8.bf16 %v4448_v15  ;;  %v5465_v8 = vunpack.c.h.s8.bf16 %v4569_v49  ;;  %v5329_v44 = vunpack.c.l.s8.bf16 %v4505_v59  ;;  %v5456_v53 = vunpack.c.l.s8.bf16 %v4568_v11 }
 0x750   : > { %v5457_v13 = vunpack.c.l.s8.bf16 %v4569_v49 }
 0x751   : > { %6223 = vmatpush1.bf16.msra.mxu0 %v5256_v30  ;;  %v5336_v30 = vunpack.c.h.s8.bf16 %v4504_v45 }
 0x752   : > { %6264 = vmatpush1.bf16.msra.mxu1 %v5384_v43  ;;  %6224 = vmatprep.subr.bf16.mxu0 %v5249_v40  ;;  %v5464_v43 = vunpack.c.h.s8.bf16 %v4568_v11  ;;  %v4497_v40 = vld [vmem:[%s9603_s3 + $0x998] sm:$0xff] }
 0x753   : > { %6265 = vmatprep.subr.bf16.mxu1 %v5377_v50  ;;  %v4561_v50 = vld [vmem:[%s9603_s3 + $0xb98] sm:$0xff] }
 0x755   : > { %6225 = vmatpush1.bf16.msra.mxu0 %v5248_v36  ;;  %v5321_v36 = vunpack.c.h.s8.bf16 %v4497_v40 }
 0x756   : > { %6266 = vmatpush1.bf16.msra.mxu1 %v5376_v54  ;;  %6226 = vmatprep.subr.bf16.mxu0 %v5241_v32  ;;  %v5449_v54 = vunpack.c.h.s8.bf16 %v4561_v50  ;;  %v4496_v32 = vld [vmem:[%s9603_s3 + $0x990] sm:$0xff] }
 0x757   : > { %6267 = vmatprep.subr.bf16.mxu1 %v5369_v10  ;;  %v4560_v10 = vld [vmem:[%s9603_s3 + $0xb90] sm:$0xff]  ;;  %v5320_v47 = vunpack.c.h.s8.bf16 %v4496_v32  ;;  %v5312_v5 = vunpack.c.l.s8.bf16 %v4496_v32 }
 0x758   : > { %v5448_v61 = vunpack.c.h.s8.bf16 %v4560_v10  ;;  %v5440_v29 = vunpack.c.l.s8.bf16 %v4560_v10 }
 0x759   : > { %6227 = vmatpush1.bf16.msra.mxu0 %v5240_v62  ;;  %v5313_v62 = vunpack.c.l.s8.bf16 %v4497_v40 }
 0x75a   : > { %6268 = vmatpush1.bf16.msra.mxu1 %v5368_v0  ;;  %6228 = vmatprep.subr.bf16.mxu0 %v5233_v2  ;;  %v5441_v0 = vunpack.c.l.s8.bf16 %v4561_v50  ;;  %v4489_v2 = vld [vmem:[%s9603_s3 + $0x958] sm:$0xff] }
 0x75b   : > { %6269 = vmatprep.subr.bf16.mxu1 %v5361_v4  ;;  %v4553_v4 = vld [vmem:[%s9603_s3 + $0xb58] sm:$0xff] }
 0x75d   : > { %6229 = vmatpush1.bf16.msra.mxu0 %v5232_v7  ;;  %v5305_v7 = vunpack.c.h.s8.bf16 %v4489_v2 }
 0x75e   : > { %6270 = vmatpush1.bf16.msra.mxu1 %v5360_v16  ;;  %6230 = vmatprep.subr.bf16.mxu0 %v5225_v12  ;;  %v5433_v16 = vunpack.c.h.s8.bf16 %v4553_v4  ;;  %v4488_v12 = vld [vmem:[%s9603_s3 + $0x950] sm:$0xff] }
 0x75f   : > { %6271 = vmatprep.subr.bf16.mxu1 %v5353_v14  ;;  %v4552_v14 = vld [vmem:[%s9603_s3 + $0xb50] sm:$0xff]  ;;  %v5304_v15 = vunpack.c.h.s8.bf16 %v4488_v12  ;;  %v5296_v59 = vunpack.c.l.s8.bf16 %v4488_v12 }
 0x760   : > { %v5432_v17 = vunpack.c.h.s8.bf16 %v4552_v14  ;;  %v5424_v49 = vunpack.c.l.s8.bf16 %v4552_v14 }
 0x761   : > { %6231 = vmatpush1.bf16.msra.mxu0 %v5224_v27  ;;  %v5297_v27 = vunpack.c.l.s8.bf16 %v4489_v2 }
 0x762   : > { %6272 = vmatpush1.bf16.msra.mxu1 %v5352_v23  ;;  %6232 = vmatprep.subr.bf16.mxu0 %v5217_v26  ;;  %v5425_v23 = vunpack.c.l.s8.bf16 %v4553_v4  ;;  %v4481_v26 = vld [vmem:[%s9603_s3 + $0x918] sm:$0xff] }
 0x763   : > { %6273 = vmatprep.subr.bf16.mxu1 %v5345_v28  ;;  %v4545_v28 = vld [vmem:[%s9603_s3 + $0xb18] sm:$0xff] }
 0x765   : > { %6233 = vmatpush1.bf16.msra.mxu0 %v5216_v52  ;;  %v5289_v52 = vunpack.c.h.s8.bf16 %v4481_v26 }
 0x766   : > { %6274 = vmatpush1.bf16.msra.mxu1 %v5344_v55  ;;  %6234 = vmatprep.subr.bf16.mxu0 %v5337_v63  ;;  %v5417_v55 = vunpack.c.h.s8.bf16 %v4545_v28  ;;  %v4480_v63 = vld [vmem:[%s9603_s3 + $0x910] sm:$0xff] }
 0x767   : > { %6275 = vmatprep.subr.bf16.mxu1 %v5465_v8  ;;  %v4544_v8 = vld [vmem:[%s9603_s3 + $0xb10] sm:$0xff]  ;;  %v5288_v45 = vunpack.c.h.s8.bf16 %v4480_v63  ;;  %v5280_v40 = vunpack.c.l.s8.bf16 %v4480_v63 }
 0x768   : > { %v5416_v11 = vunpack.c.h.s8.bf16 %v4544_v8  ;;  %v5408_v50 = vunpack.c.l.s8.bf16 %v4544_v8 }
 0x769   : > { %6235 = vmatpush2.bf16.msra.mxu0 %v5336_v30  ;;  %v5281_v30 = vunpack.c.l.s8.bf16 %v4481_v26 }
 0x76a   : > { %6276 = vmatpush2.bf16.msra.mxu1 %v5464_v43  ;;  %6236 = vmatprep.subr.bf16.mxu0 %v5329_v44  ;;  %v5409_v43 = vunpack.c.l.s8.bf16 %v4545_v28  ;;  %v4601_v44 = vld [vmem:[%s9603_s3 + $0xcd8] sm:$0xff] }
 0x76b   : > { %6277 = vmatprep.subr.bf16.mxu1 %v5457_v13  ;;  %v4665_v13 = vld [vmem:[%s9603_s3 + $0xed8] sm:$0xff] }
 0x76d   : > { %6237 = vmatpush2.bf16.msra.mxu0 %v5328_v57  ;;  %v5529_v57 = vunpack.c.h.s8.bf16 %v4601_v44 }
 0x76e   : > { %6278 = vmatpush2.bf16.msra.mxu1 %v5456_v53  ;;  %6238 = vmatprep.subr.bf16.mxu0 %v5321_v36  ;;  %v5657_v53 = vunpack.c.h.s8.bf16 %v4665_v13  ;;  %v4600_v36 = vld [vmem:[%s9603_s3 + $0xcd0] sm:$0xff] }
 0x76f   : > { %6279 = vmatprep.subr.bf16.mxu1 %v5449_v54  ;;  %v4664_v54 = vld [vmem:[%s9603_s3 + $0xed0] sm:$0xff]  ;;  %v5528_v32 = vunpack.c.h.s8.bf16 %v4600_v36 }
 0x770   : > { %v5656_v10 = vunpack.c.h.s8.bf16 %v4664_v54 }
 0x771   : > { %6239 = vmatpush2.bf16.msra.mxu0 %v5320_v47  ;;  %v5521_v47 = vunpack.c.l.s8.bf16 %v4601_v44 }
 0x772   : > { %6280 = vmatpush2.bf16.msra.mxu1 %v5448_v61  ;;  %6240 = vmatprep.subr.bf16.mxu0 %v5313_v62  ;;  %v5649_v61 = vunpack.c.l.s8.bf16 %v4665_v13  ;;  %v4593_v62 = vld [vmem:[%s9603_s3 + $0xc98] sm:$0xff] }
 0x773   : > { %6281 = vmatprep.subr.bf16.mxu1 %v5441_v0  ;;  %v4657_v0 = vld [vmem:[%s9603_s3 + $0xe98] sm:$0xff]  ;;  %v5513_v14 = vunpack.c.h.s8.bf16 %v4593_v62 }
 0x774   : > { %v5633_v8 = vunpack.c.l.s8.bf16 %v4657_v0 }
 0x775   : > { %6241 = vmatpush2.bf16.msra.mxu0 %v5312_v5 }
 0x776   : > { %6282 = vmatpush2.bf16.msra.mxu1 %v5440_v29  ;;  %6242 = vmatprep.subr.bf16.mxu0 %v5305_v7  ;;  %v5520_v29 = vunpack.c.l.s8.bf16 %v4600_v36  ;;  %v5648_v7 = vunpack.c.l.s8.bf16 %v4664_v54 }
 0x777   : > { %6283 = vmatprep.subr.bf16.mxu1 %v5433_v16 }
 0x779   : > { %6243 = vmatpush2.bf16.msra.mxu0 %v5304_v15  ;;  %v5641_v15 = vunpack.c.h.s8.bf16 %v4657_v0 }
 0x77a   : > { %6284 = vmatpush2.bf16.msra.mxu1 %v5432_v17  ;;  %6244 = vmatprep.subr.bf16.mxu0 %v5297_v27  ;;  %v4592_v17 = vld [vmem:[%s9603_s3 + $0xc90] sm:$0xff] }
 0x77b   : > { %6285 = vmatprep.subr.bf16.mxu1 %v5425_v23  ;;  %v4656_v27 = vld [vmem:[%s9603_s3 + $0xe90] sm:$0xff] }
 0x77d   : > { %6245 = vmatpush2.bf16.msra.mxu0 %v5296_v59 }
 0x77e   : > { %6286 = vmatpush2.bf16.msra.mxu1 %v5424_v49  ;;  %6246 = vmatprep.subr.bf16.mxu0 %v5289_v52  ;;  %v5512_v49 = vunpack.c.h.s8.bf16 %v4592_v17  ;;  %v5640_v52 = vunpack.c.h.s8.bf16 %v4656_v27 }
 0x77f   : > { %6287 = vmatprep.subr.bf16.mxu1 %v5417_v55 }
 0x781   : > { %6247 = vmatpush2.bf16.msra.mxu0 %v5288_v45  ;;  %v4585_v45 = vld [vmem:[%s9603_s3 + $0xc58] sm:$0xff] }
 0x782   : > { %6288 = vmatpush2.bf16.msra.mxu1 %v5416_v11  ;;  %6248 = vmatprep.subr.bf16.mxu0 %v5281_v30  ;;  %v4649_v11 = vld [vmem:[%s9603_s3 + $0xe58] sm:$0xff]  ;;  %v5504_v30 = vunpack.c.l.s8.bf16 %v4592_v17  ;;  %v5497_v44 = vunpack.c.h.s8.bf16 %v4585_v45  ;;  %v5489_v36 = vunpack.c.l.s8.bf16 %v4585_v45 }
 0x783   : > { %6289 = vmatprep.subr.bf16.mxu1 %v5409_v43  ;;  %v5632_v43 = vunpack.c.l.s8.bf16 %v4656_v27  ;;  %v5625_v13 = vunpack.c.h.s8.bf16 %v4649_v11  ;;  %v5617_v54 = vunpack.c.l.s8.bf16 %v4649_v11 }
 0x785   : > { %6249 = vmatpush2.bf16.msra.mxu0 %v5280_v40  ;;  %v4584_v40 = vld [vmem:[%s9603_s3 + $0xc50] sm:$0xff] }
 0x786   : > { %6290 = vmatpush2.bf16.msra.mxu1 %v5408_v50  ;;  %6300 = vmatprep.subr.bf16.mxu0 %v5529_v57  ;;  %v4648_v50 = vld [vmem:[%s9603_s3 + $0xe50] sm:$0xff]  ;;  %v5496_v57 = vunpack.c.h.s8.bf16 %v4584_v40 }
 0x787   : > { %6341 = vmatprep.subr.bf16.mxu1 %v5657_v53  ;;  %v5624_v53 = vunpack.c.h.s8.bf16 %v4648_v50 }
 0x788   : > { %v6006_v2 = vpop.f32.mrf.mxu0  ;;  %6251 = vmatmul.mubr.bf16.vlgmr.msra.gmra.mxu0 %v10668_v22 }
 0x789   : > { %v6047_v4 = vpop.f32.mrf.mxu1  ;;  %6292 = vmatmul.mubr.bf16.vlgmr.msra.gmra.mxu1 %v10672_v46  ;;  %v6007_v5 = vadd.f32 %v6006_v2, %v10811_v35  ;;  %6301 = vmatpush1.bf16.msra.mxu0 %v5528_v32  ;;  %v4577_v32 = vld [vmem:[%s9603_s3 + $0xc18] sm:$0xff]  ;;  %v4576_v2 = vld [vmem:[%s9603_s3 + $0xc10] sm:$0xff] }
 0x78a   : > { %6342 = vmatpush1.bf16.msra.mxu1 %v5656_v10  ;;  %v6008_v16 = vpop.f32.mrf.mxu0  ;;  %6302 = vmatprep.subr.bf16.mxu0 %v5521_v47  ;;  %v4641_v10 = vld [vmem:[%s9603_s3 + $0xe18] sm:$0xff]  ;;  %v5488_v47 = vunpack.c.l.s8.bf16 %v4584_v40 }
 0x78b   : > { %v6049_v12 = vpop.f32.mrf.mxu1  ;;  %6343 = vmatprep.subr.bf16.mxu1 %v5649_v61  ;;  %v10853_v23 = vadd.f32 %v6047_v4, %v6007_v5  ;;  %v6009_v26 = vadd.f32 %v6008_v16, %v10816_v48  ;;  %6332 = vmatprep.mubr.bf16.mxu0 %v10676_v21  ;;  %v5505_v48 = vunpack.c.l.s8.bf16 %v4593_v62  ;;  %v5616_v61 = vunpack.c.l.s8.bf16 %v4648_v50  ;;  %v4640_v4 = vld [vmem:[%s9603_s3 + $0xe10] sm:$0xff] }
 0x78c   : > { %6373 = vmatprep.mubr.bf16.mxu1 %v10678_v33  ;;  %v6010_v35 = vpop.f32.mrf.mxu0  ;;  %v5481_v62 = vunpack.c.h.s8.bf16 %v4577_v32  ;;  %v5609_v0 = vunpack.c.h.s8.bf16 %v4641_v10  ;;  %v5480_v5 = vunpack.c.h.s8.bf16 %v4576_v2  ;;  %v5601_v16 = vunpack.c.l.s8.bf16 %v4641_v10 }
 0x78d   : > { %v6051_v28 = vpop.f32.mrf.mxu1  ;;  %v10858_v59 = vadd.f32 %v6049_v12, %v6009_v26  ;;  %6303 = vmatpush1.bf16.msra.mxu0 %v5520_v29  ;;  %v5608_v29 = vunpack.c.h.s8.bf16 %v4640_v4  ;;  %v4633_v12 = vld [vmem:[%s9603_s3 + $0xdd8] sm:$0xff]  ;;  %v5600_v17 = vunpack.c.l.s8.bf16 %v4640_v4  ;;  %v4632_v35 = vld [vmem:[%s9603_s3 + $0xdd0] sm:$0xff] }
 0x78e   : > { %6344 = vmatpush1.bf16.msra.mxu1 %v5648_v7  ;;  %v6011_v55 = vpop.f32.mrf.mxu0  ;;  %6304 = vmatprep.subr.bf16.mxu0 %v5513_v14  ;;  %v5473_v7 = vunpack.c.l.s8.bf16 %v4577_v32  ;;  %v4697_v14 = vld [vmem:[%s9603_s3 + $0xfd8] sm:$0xff]  ;;  %v5593_v27 = vunpack.c.h.s8.bf16 %v4633_v12  ;;  %v4696_v28 = vld [vmem:[%s9603_s3 + $0xfd0] sm:$0xff]  ;;  %v5584_v45 = vunpack.c.l.s8.bf16 %v4632_v35 }
 0x78f   : > { %v6052_v63 = vpop.f32.mrf.mxu1  ;;  %6345 = vmatprep.subr.bf16.mxu1 %v5641_v15  ;;  %v5472_v15 = vunpack.c.l.s8.bf16 %v4576_v2  ;;  %v5721_v26 = vunpack.c.h.s8.bf16 %v4697_v14  ;;  %v5585_v55 = vunpack.c.l.s8.bf16 %v4633_v12  ;;  %v5712_v11 = vunpack.c.l.s8.bf16 %v4696_v28 }
 0x790   : > { %v5713_v63 = vunpack.c.l.s8.bf16 %v4697_v14 }
 0x791   : > { %6305 = vmatpush1.bf16.msra.mxu0 %v5512_v49  ;;  %v5592_v49 = vunpack.c.h.s8.bf16 %v4632_v35 }
 0x792   : > { %6346 = vmatpush1.bf16.msra.mxu1 %v5640_v52  ;;  %6306 = vmatprep.subr.bf16.mxu0 %v5505_v48  ;;  %v5720_v52 = vunpack.c.h.s8.bf16 %v4696_v28  ;;  %v4625_v48 = vld [vmem:[%s9603_s3 + $0xd98] sm:$0xff] }
 0x793   : > { %6347 = vmatprep.subr.bf16.mxu1 %v5633_v8  ;;  %v4689_v8 = vld [vmem:[%s9603_s3 + $0xf98] sm:$0xff] }
 0x795   : > { %6307 = vmatpush1.bf16.msra.mxu0 %v5504_v30  ;;  %v5577_v30 = vunpack.c.h.s8.bf16 %v4625_v48 }
 0x796   : > { %6348 = vmatpush1.bf16.msra.mxu1 %v5632_v43  ;;  %6308 = vmatprep.subr.bf16.mxu0 %v5497_v44  ;;  %v5705_v43 = vunpack.c.h.s8.bf16 %v4689_v8  ;;  %v4624_v44 = vld [vmem:[%s9603_s3 + $0xd90] sm:$0xff] }
 0x797   : > { %6349 = vmatprep.subr.bf16.mxu1 %v5625_v13  ;;  %v4688_v13 = vld [vmem:[%s9603_s3 + $0xf90] sm:$0xff]  ;;  %v5576_v40 = vunpack.c.h.s8.bf16 %v4624_v44  ;;  %v5568_v32 = vunpack.c.l.s8.bf16 %v4624_v44 }
 0x798   : > { %v5704_v50 = vunpack.c.h.s8.bf16 %v4688_v13  ;;  %v5696_v10 = vunpack.c.l.s8.bf16 %v4688_v13 }
 0x799   : > { %6309 = vmatpush1.bf16.msra.mxu0 %v5496_v57  ;;  %v5569_v57 = vunpack.c.l.s8.bf16 %v4625_v48 }
 0x79a   : > { %6350 = vmatpush1.bf16.msra.mxu1 %v5624_v53  ;;  %6310 = vmatprep.subr.bf16.mxu0 %v5489_v36  ;;  %v5697_v53 = vunpack.c.l.s8.bf16 %v4689_v8  ;;  %v4617_v36 = vld [vmem:[%s9603_s3 + $0xd58] sm:$0xff] }
 0x79b   : > { %6351 = vmatprep.subr.bf16.mxu1 %v5617_v54  ;;  %v4681_v54 = vld [vmem:[%s9603_s3 + $0xf58] sm:$0xff] }
 0x79d   : > { %6311 = vmatpush1.bf16.msra.mxu0 %v5488_v47  ;;  %v5561_v47 = vunpack.c.h.s8.bf16 %v4617_v36 }
 0x79e   : > { %6352 = vmatpush1.bf16.msra.mxu1 %v5616_v61  ;;  %6312 = vmatprep.subr.bf16.mxu0 %v5481_v62  ;;  %v5689_v61 = vunpack.c.h.s8.bf16 %v4681_v54  ;;  %v4616_v62 = vld [vmem:[%s9603_s3 + $0xd50] sm:$0xff] }
 0x79f   : > { %6353 = vmatprep.subr.bf16.mxu1 %v5609_v0  ;;  %v4680_v0 = vld [vmem:[%s9603_s3 + $0xf50] sm:$0xff]  ;;  %v5560_v2 = vunpack.c.h.s8.bf16 %v4616_v62  ;;  %v5552_v12 = vunpack.c.l.s8.bf16 %v4616_v62 }
 0x7a0   : > { %v5688_v4 = vunpack.c.h.s8.bf16 %v4680_v0  ;;  %v5680_v14 = vunpack.c.l.s8.bf16 %v4680_v0 }
 0x7a1   : > { %6313 = vmatpush1.bf16.msra.mxu0 %v5480_v5  ;;  %v5553_v5 = vunpack.c.l.s8.bf16 %v4617_v36 }
 0x7a2   : > { %6354 = vmatpush1.bf16.msra.mxu1 %v5608_v29  ;;  %6314 = vmatprep.subr.bf16.mxu0 %v5473_v7  ;;  %v5681_v29 = vunpack.c.l.s8.bf16 %v4681_v54  ;;  %v4609_v7 = vld [vmem:[%s9603_s3 + $0xd18] sm:$0xff] }
 0x7a3   : > { %6355 = vmatprep.subr.bf16.mxu1 %v5601_v16  ;;  %v4673_v16 = vld [vmem:[%s9603_s3 + $0xf18] sm:$0xff] }
 0x7a5   : > { %6315 = vmatpush1.bf16.msra.mxu0 %v5472_v15  ;;  %v5545_v15 = vunpack.c.h.s8.bf16 %v4609_v7 }
 0x7a6   : > { %6356 = vmatpush1.bf16.msra.mxu1 %v5600_v17  ;;  %6316 = vmatprep.subr.bf16.mxu0 %v5593_v27  ;;  %v5673_v17 = vunpack.c.h.s8.bf16 %v4673_v16  ;;  %v4608_v27 = vld [vmem:[%s9603_s3 + $0xd10] sm:$0xff] }
 0x7a7   : > { %6357 = vmatprep.subr.bf16.mxu1 %v5721_v26  ;;  %v4672_v26 = vld [vmem:[%s9603_s3 + $0xf10] sm:$0xff]  ;;  %v5544_v35 = vunpack.c.h.s8.bf16 %v4608_v27  ;;  %v5536_v48 = vunpack.c.l.s8.bf16 %v4608_v27 }
 0x7a8   : > { %v5672_v28 = vunpack.c.h.s8.bf16 %v4672_v26  ;;  %v5664_v8 = vunpack.c.l.s8.bf16 %v4672_v26 }
 0x7a9   : > { %6317 = vmatpush2.bf16.msra.mxu0 %v5592_v49  ;;  %v5537_v49 = vunpack.c.l.s8.bf16 %v4609_v7 }
 0x7aa   : > { %6358 = vmatpush2.bf16.msra.mxu1 %v5720_v52  ;;  %6318 = vmatprep.subr.bf16.mxu0 %v5585_v55  ;;  %v5665_v52 = vunpack.c.l.s8.bf16 %v4673_v16  ;;  %v4219_v55 = vld [vmem:[%s9603_s3 + $0xe8] sm:$0xff] }
 0x7ab   : > { %6359 = vmatprep.subr.bf16.mxu1 %v5713_v63  ;;  %v4283_v63 = vld [vmem:[%s9603_s3 + $0x2e8] sm:$0xff] }
 0x7ad   : > { %6319 = vmatpush2.bf16.msra.mxu0 %v5584_v45  ;;  %v4763_v45 = vunpack.c.h.s8.bf16 %v4219_v55 }
 0x7ae   : > { %6360 = vmatpush2.bf16.msra.mxu1 %v5712_v11  ;;  %6320 = vmatprep.subr.bf16.mxu0 %v5577_v30  ;;  %v4891_v11 = vunpack.c.h.s8.bf16 %v4283_v63  ;;  %v4218_v30 = vld [vmem:[%s9603_s3 + $0xe0] sm:$0xff] }
 0x7af   : > { %6361 = vmatprep.subr.bf16.mxu1 %v5705_v43  ;;  %v4282_v43 = vld [vmem:[%s9603_s3 + $0x2e0] sm:$0xff]  ;;  %v4762_v44 = vunpack.c.h.s8.bf16 %v4218_v30 }
 0x7b0   : > { %v4890_v13 = vunpack.c.h.s8.bf16 %v4282_v43 }
 0x7b1   : > { %6321 = vmatpush2.bf16.msra.mxu0 %v5576_v40  ;;  %v4755_v40 = vunpack.c.l.s8.bf16 %v4219_v55 }
 0x7b2   : > { %6362 = vmatpush2.bf16.msra.mxu1 %v5704_v50  ;;  %6322 = vmatprep.subr.bf16.mxu0 %v5569_v57  ;;  %v4883_v50 = vunpack.c.l.s8.bf16 %v4283_v63  ;;  %v4211_v57 = vld [vmem:[%s9603_s3 + $0xa8] sm:$0xff] }
 0x7b3   : > { %6363 = vmatprep.subr.bf16.mxu1 %v5697_v53  ;;  %v4275_v53 = vld [vmem:[%s9603_s3 + $0x2a8] sm:$0xff]  ;;  %v4747_v0 = vunpack.c.h.s8.bf16 %v4211_v57  ;;  %v4739_v27 = vunpack.c.l.s8.bf16 %v4211_v57 }
 0x7b4   : > { %v4867_v26 = vunpack.c.l.s8.bf16 %v4275_v53 }
 0x7b5   : > { %6323 = vmatpush2.bf16.msra.mxu0 %v5568_v32 }
 0x7b6   : > { %6364 = vmatpush2.bf16.msra.mxu1 %v5696_v10  ;;  %6324 = vmatprep.subr.bf16.mxu0 %v5561_v47  ;;  %v4754_v10 = vunpack.c.l.s8.bf16 %v4218_v30  ;;  %v4882_v47 = vunpack.c.l.s8.bf16 %v4282_v43 }
 0x7b7   : > { %6365 = vmatprep.subr.bf16.mxu1 %v5689_v61 }
 0x7b9   : > { %6325 = vmatpush2.bf16.msra.mxu0 %v5560_v2  ;;  %v4875_v2 = vunpack.c.h.s8.bf16 %v4275_v53 }
 0x7ba   : > { %6366 = vmatpush2.bf16.msra.mxu1 %v5688_v4  ;;  %6326 = vmatprep.subr.bf16.mxu0 %v5553_v5  ;;  %v4210_v4 = vld [vmem:[%s9603_s3 + $0xa0] sm:$0xff] }
 0x7bb   : > { %6367 = vmatprep.subr.bf16.mxu1 %v5681_v29  ;;  %v4274_v5 = vld [vmem:[%s9603_s3 + $0x2a0] sm:$0xff] }
 0x7bd   : > { %6327 = vmatpush2.bf16.msra.mxu0 %v5552_v12  ;;  %v4746_v12 = vunpack.c.h.s8.bf16 %v4210_v4 }
 0x7be   : > { %6368 = vmatpush2.bf16.msra.mxu1 %v5680_v14  ;;  %6328 = vmatprep.subr.bf16.mxu0 %v5545_v15  ;;  %v4874_v14 = vunpack.c.h.s8.bf16 %v4274_v5 }
 0x7bf   : > { %6369 = vmatprep.subr.bf16.mxu1 %v5673_v17 }
 0x7c1   : > { %6329 = vmatpush2.bf16.msra.mxu0 %v5544_v35  ;;  %v4203_v35 = vld [vmem:[%s9603_s3 + $0x68] sm:$0xff] }
 0x7c2   : > { %6370 = vmatpush2.bf16.msra.mxu1 %v5672_v28  ;;  %6330 = vmatprep.subr.bf16.mxu0 %v5537_v49  ;;  %v4267_v28 = vld [vmem:[%s9603_s3 + $0x268] sm:$0xff]  ;;  %v4738_v49 = vunpack.c.l.s8.bf16 %v4210_v4  ;;  %v4731_v55 = vunpack.c.h.s8.bf16 %v4203_v35  ;;  %v4723_v30 = vunpack.c.l.s8.bf16 %v4203_v35 }
 0x7c3   : > { %6371 = vmatprep.subr.bf16.mxu1 %v5665_v52  ;;  %v4866_v52 = vunpack.c.l.s8.bf16 %v4274_v5  ;;  %v4859_v63 = vunpack.c.h.s8.bf16 %v4267_v28  ;;  %v4851_v43 = vunpack.c.l.s8.bf16 %v4267_v28  ;;  %v4243_v35 = vld [vmem:[%s9603_s3 + $0x1a8] sm:$0xff] }
 0x7c4   : > { %v4307_v28 = vld [vmem:[%s9603_s3 + $0x3a8] sm:$0xff] }
 0x7c5   : > { %6331 = vmatpush2.bf16.msra.mxu0 %v5536_v48  ;;  %v4202_v48 = vld [vmem:[%s9603_s3 + $0x60] sm:$0xff] }
 0x7c6   : > { %6372 = vmatpush2.bf16.msra.mxu1 %v5664_v8  ;;  %6382 = vmatprep.subr.bf16.mxu0 %v4763_v45  ;;  %v4266_v8 = vld [vmem:[%s9603_s3 + $0x260] sm:$0xff]  ;;  %v4730_v45 = vunpack.c.h.s8.bf16 %v4202_v48 }
 0x7c7   : > { %6423 = vmatprep.subr.bf16.mxu1 %v4891_v11  ;;  %v4858_v11 = vunpack.c.h.s8.bf16 %v4266_v8 }
 0x7c8   : > { %v6088_v36 = vpop.f32.mrf.mxu0  ;;  %6333 = vmatmul.mubr.bf16.vlgmr.msra.gmra.mxu0 %v10716_v37 }
 0x7c9   : > { %v6129_v54 = vpop.f32.mrf.mxu1  ;;  %6374 = vmatmul.mubr.bf16.vlgmr.msra.gmra.mxu1 %v10720_v41  ;;  %6383 = vmatpush1.bf16.msra.mxu0 %v4762_v44  ;;  %v4195_v44 = vld [vmem:[%s9603_s3 + $0x28] sm:$0xff] }
 0x7ca   : > { %v10892_v32 = vadd.f32 %v6129_v54, %v6088_v36  ;;  %6424 = vmatpush1.bf16.msra.mxu1 %v4890_v13  ;;  %v6090_v61 = vpop.f32.mrf.mxu0  ;;  %6384 = vmatprep.subr.bf16.mxu0 %v4755_v40  ;;  %v4259_v13 = vld [vmem:[%s9603_s3 + $0x228] sm:$0xff]  ;;  %v4722_v40 = vunpack.c.l.s8.bf16 %v4202_v48  ;;  %v4715_v57 = vunpack.c.h.s8.bf16 %v4195_v44  ;;  %v4194_v36 = vld [vmem:[%s9603_s3 + $0x20] sm:$0xff] }
 0x7cb   : > { %v6131_v62 = vpop.f32.mrf.mxu1  ;;  %6425 = vmatprep.subr.bf16.mxu1 %v4883_v50  ;;  %6414 = vmatprep.mubr.bf16.mxu0 %v10437_v51  ;;  %v4850_v50 = vunpack.c.l.s8.bf16 %v4266_v8  ;;  %v4843_v53 = vunpack.c.h.s8.bf16 %v4259_v13  ;;  %v4258_v54 = vld [vmem:[%s9603_s3 + $0x220] sm:$0xff]  ;;  %v4706_v4 = vunpack.c.l.s8.bf16 %v4194_v36 }
 0x7cc   : > { %v10896_v29 = vadd.f32 %v6131_v62, %v6090_v61  ;;  %6455 = vmatprep.mubr.bf16.mxu1 %v10441_v25  ;;  %v6092_v7 = vpop.f32.mrf.mxu0  ;;  %v4707_v61 = vunpack.c.l.s8.bf16 %v4195_v44  ;;  %v4835_v62 = vunpack.c.l.s8.bf16 %v4259_v13  ;;  %v4834_v5 = vunpack.c.l.s8.bf16 %v4258_v54  ;;  %v4242_v48 = vld [vmem:[%s9603_s3 + $0x1a0] sm:$0xff]  ;;  %v4235_v44 = vld [vmem:[%s9603_s3 + $0x168] sm:$0xff] }
 0x7cd   : > { %v6133_v16 = vpop.f32.mrf.mxu1  ;;  %6385 = vmatpush1.bf16.msra.mxu0 %v4754_v10  ;;  %v4714_v10 = vunpack.c.h.s8.bf16 %v4194_v36  ;;  %v4306_v8 = vld [vmem:[%s9603_s3 + $0x3a0] sm:$0xff]  ;;  %v4299_v13 = vld [vmem:[%s9603_s3 + $0x368] sm:$0xff] }
 0x7ce   : > { %6426 = vmatpush1.bf16.msra.mxu1 %v4882_v47  ;;  %v6093_v15 = vpop.f32.mrf.mxu0  ;;  %6386 = vmatprep.subr.bf16.mxu0 %v4747_v0  ;;  %v4842_v47 = vunpack.c.h.s8.bf16 %v4258_v54  ;;  %v4251_v0 = vld [vmem:[%s9603_s3 + $0x1e8] sm:$0xff]  ;;  %v4234_v36 = vld [vmem:[%s9603_s3 + $0x160] sm:$0xff] }
 0x7cf   : > { %v6134_v17 = vpop.f32.mrf.mxu1  ;;  %6427 = vmatprep.subr.bf16.mxu1 %v4875_v2  ;;  %v4315_v2 = vld [vmem:[%s9603_s3 + $0x3e8] sm:$0xff]  ;;  %v4827_v7 = vunpack.c.h.s8.bf16 %v4251_v0  ;;  %v4298_v54 = vld [vmem:[%s9603_s3 + $0x360] sm:$0xff] }
 0x7d0   : > { %v4955_v16 = vunpack.c.h.s8.bf16 %v4315_v2 }
 0x7d1   : > { %6387 = vmatpush1.bf16.msra.mxu0 %v4746_v12  ;;  %v4250_v12 = vld [vmem:[%s9603_s3 + $0x1e0] sm:$0xff] }
 0x7d2   : > { %6428 = vmatpush1.bf16.msra.mxu1 %v4874_v14  ;;  %6388 = vmatprep.subr.bf16.mxu0 %v4739_v27  ;;  %v4314_v14 = vld [vmem:[%s9603_s3 + $0x3e0] sm:$0xff]  ;;  %v4826_v15 = vunpack.c.h.s8.bf16 %v4250_v12  ;;  %v4819_v27 = vunpack.c.l.s8.bf16 %v4251_v0  ;;  %v4227_v0 = vld [vmem:[%s9603_s3 + $0x128] sm:$0xff] }
 0x7d3   : > { %6429 = vmatprep.subr.bf16.mxu1 %v4867_v26  ;;  %v4954_v17 = vunpack.c.h.s8.bf16 %v4314_v14  ;;  %v4947_v26 = vunpack.c.l.s8.bf16 %v4315_v2  ;;  %v4291_v2 = vld [vmem:[%s9603_s3 + $0x328] sm:$0xff] }
 0x7d5   : > { %6389 = vmatpush1.bf16.msra.mxu0 %v4738_v49  ;;  %v4818_v49 = vunpack.c.l.s8.bf16 %v4250_v12  ;;  %v4226_v12 = vld [vmem:[%s9603_s3 + $0x120] sm:$0xff] }
 0x7d6   : > { %6430 = vmatpush1.bf16.msra.mxu1 %v4866_v52  ;;  %6390 = vmatprep.subr.bf16.mxu0 %v4731_v55  ;;  %v4946_v52 = vunpack.c.l.s8.bf16 %v4314_v14  ;;  %v4811_v55 = vunpack.c.h.s8.bf16 %v4243_v35  ;;  %v4290_v14 = vld [vmem:[%s9603_s3 + $0x320] sm:$0xff] }
 0x7d7   : > { %6431 = vmatprep.subr.bf16.mxu1 %v4859_v63  ;;  %v4939_v63 = vunpack.c.h.s8.bf16 %v4307_v28 }
 0x7d9   : > { %6391 = vmatpush1.bf16.msra.mxu0 %v4730_v45  ;;  %v4810_v45 = vunpack.c.h.s8.bf16 %v4242_v48 }
 0x7da   : > { %6432 = vmatpush1.bf16.msra.mxu1 %v4858_v11  ;;  %6392 = vmatprep.subr.bf16.mxu0 %v4723_v30  ;;  %v4938_v11 = vunpack.c.h.s8.bf16 %v4306_v8  ;;  %v4803_v30 = vunpack.c.l.s8.bf16 %v4243_v35  ;;  %v4347_v35 = vld [vmem:[%s9603_s3 + $0x4e8] sm:$0xff] }
 0x7db   : > { %6433 = vmatprep.subr.bf16.mxu1 %v4851_v43  ;;  %v4931_v43 = vunpack.c.l.s8.bf16 %v4307_v28  ;;  %v4411_v28 = vld [vmem:[%s9603_s3 + $0x6e8] sm:$0xff] }
 0x7dd   : > { %6393 = vmatpush1.bf16.msra.mxu0 %v4722_v40  ;;  %v4802_v40 = vunpack.c.l.s8.bf16 %v4242_v48  ;;  %v4346_v48 = vld [vmem:[%s9603_s3 + $0x4e0] sm:$0xff] }
 0x7de   : > { %6434 = vmatpush1.bf16.msra.mxu1 %v4850_v50  ;;  %6394 = vmatprep.subr.bf16.mxu0 %v4715_v57  ;;  %v4930_v50 = vunpack.c.l.s8.bf16 %v4306_v8  ;;  %v4795_v57 = vunpack.c.h.s8.bf16 %v4235_v44  ;;  %v4410_v8 = vld [vmem:[%s9603_s3 + $0x6e0] sm:$0xff] }
 0x7df   : > { %6435 = vmatprep.subr.bf16.mxu1 %v4843_v53  ;;  %v4923_v53 = vunpack.c.h.s8.bf16 %v4299_v13 }
 0x7e1   : > { %6395 = vmatpush1.bf16.msra.mxu0 %v4714_v10  ;;  %v4794_v10 = vunpack.c.h.s8.bf16 %v4234_v36 }
 0x7e2   : > { %6436 = vmatpush1.bf16.msra.mxu1 %v4842_v47  ;;  %6396 = vmatprep.subr.bf16.mxu0 %v4707_v61  ;;  %v4922_v47 = vunpack.c.h.s8.bf16 %v4298_v54  ;;  %v4787_v61 = vunpack.c.l.s8.bf16 %v4235_v44  ;;  %v4339_v44 = vld [vmem:[%s9603_s3 + $0x4a8] sm:$0xff] }
 0x7e3   : > { %6437 = vmatprep.subr.bf16.mxu1 %v4835_v62  ;;  %v4915_v62 = vunpack.c.l.s8.bf16 %v4299_v13  ;;  %v4403_v13 = vld [vmem:[%s9603_s3 + $0x6a8] sm:$0xff] }
 0x7e5   : > { %6397 = vmatpush1.bf16.msra.mxu0 %v4706_v4  ;;  %v4786_v4 = vunpack.c.l.s8.bf16 %v4234_v36  ;;  %v5138_v36 = vunpack.c.l.s8.bf16 %v4410_v8 }
 0x7e6   : > { %6438 = vmatpush1.bf16.msra.mxu1 %v4834_v5  ;;  %6398 = vmatprep.subr.bf16.mxu0 %v4827_v7  ;;  %v4914_v5 = vunpack.c.l.s8.bf16 %v4298_v54  ;;  %v4779_v7 = vunpack.c.h.s8.bf16 %v4227_v0 }
 0x7e7   : > { %6439 = vmatprep.subr.bf16.mxu1 %v4955_v16  ;;  %v4907_v16 = vunpack.c.h.s8.bf16 %v4291_v2 }
 0x7e9   : > { %6399 = vmatpush2.bf16.msra.mxu0 %v4826_v15  ;;  %v4778_v15 = vunpack.c.h.s8.bf16 %v4226_v12 }
 0x7ea   : > { %6440 = vmatpush2.bf16.msra.mxu1 %v4954_v17  ;;  %6400 = vmatprep.subr.bf16.mxu0 %v4819_v27  ;;  %v4906_v17 = vunpack.c.h.s8.bf16 %v4290_v14  ;;  %v4771_v27 = vunpack.c.l.s8.bf16 %v4227_v0  ;;  %v4402_v0 = vld [vmem:[%s9603_s3 + $0x6a0] sm:$0xff] }
 0x7eb   : > { %6441 = vmatprep.subr.bf16.mxu1 %v4947_v26  ;;  %v4899_v26 = vunpack.c.l.s8.bf16 %v4291_v2 }
 0x7ed   : > { %6401 = vmatpush2.bf16.msra.mxu0 %v4818_v49  ;;  %v4770_v49 = vunpack.c.l.s8.bf16 %v4226_v12  ;;  %v5130_v12 = vunpack.c.h.s8.bf16 %v4402_v0 }
 0x7ee   : > { %6442 = vmatpush2.bf16.msra.mxu1 %v4946_v52  ;;  %6402 = vmatprep.subr.bf16.mxu0 %v4811_v55  ;;  %v4898_v52 = vunpack.c.l.s8.bf16 %v4290_v14  ;;  %v5019_v55 = vunpack.c.h.s8.bf16 %v4347_v35 }
 0x7ef   : > { %6443 = vmatprep.subr.bf16.mxu1 %v4939_v63  ;;  %v5147_v63 = vunpack.c.h.s8.bf16 %v4411_v28 }
 0x7f1   : > { %6403 = vmatpush2.bf16.msra.mxu0 %v4810_v45  ;;  %v5018_v45 = vunpack.c.h.s8.bf16 %v4346_v48 }
 0x7f2   : > { %6444 = vmatpush2.bf16.msra.mxu1 %v4938_v11  ;;  %6404 = vmatprep.subr.bf16.mxu0 %v4803_v30  ;;  %v5146_v11 = vunpack.c.h.s8.bf16 %v4410_v8  ;;  %v5011_v30 = vunpack.c.l.s8.bf16 %v4347_v35 }
 0x7f3   : > { %6445 = vmatprep.subr.bf16.mxu1 %v4931_v43  ;;  %v5139_v43 = vunpack.c.l.s8.bf16 %v4411_v28  ;;  %v5122_v28 = vunpack.c.l.s8.bf16 %v4402_v0 }
 0x7f5   : > { %6405 = vmatpush2.bf16.msra.mxu0 %v4802_v40 }
 0x7f6   : > { %6446 = vmatpush2.bf16.msra.mxu1 %v4930_v50  ;;  %6406 = vmatprep.subr.bf16.mxu0 %v4795_v57 }
 0x7f7   : > { %6447 = vmatprep.subr.bf16.mxu1 %v4923_v53  ;;  %v5010_v53 = vunpack.c.l.s8.bf16 %v4346_v48 }
 0x7f9   : > { %6407 = vmatpush2.bf16.msra.mxu0 %v4794_v10 }
 0x7fa   : > { %6448 = vmatpush2.bf16.msra.mxu1 %v4922_v47  ;;  %6408 = vmatprep.subr.bf16.mxu0 %v4787_v61  ;;  %v5003_v47 = vunpack.c.h.s8.bf16 %v4339_v44  ;;  %v5131_v61 = vunpack.c.h.s8.bf16 %v4403_v13 }
 0x7fb   : > { %6449 = vmatprep.subr.bf16.mxu1 %v4915_v62  ;;  %v4338_v62 = vld [vmem:[%s9603_s3 + $0x4a0] sm:$0xff] }
 0x7fc   : > { %v4994_v35 = vunpack.c.l.s8.bf16 %v4338_v62 }
 0x7fd   : > { %6409 = vmatpush2.bf16.msra.mxu0 %v4786_v4 }
 0x7fe   : > { %6450 = vmatpush2.bf16.msra.mxu1 %v4914_v5  ;;  %6410 = vmatprep.subr.bf16.mxu0 %v4779_v7 }
 0x7ff   : > { %6451 = vmatprep.subr.bf16.mxu1 %v4907_v16  ;;  %v5002_v16 = vunpack.c.h.s8.bf16 %v4338_v62  ;;  %v4443_v62 = vld [vmem:[%s9603_s3 + $0x7e8] sm:$0xff] }
 0x801   : > { %6411 = vmatpush2.bf16.msra.mxu0 %v4778_v15 }
 0x802   : > { %6452 = vmatpush2.bf16.msra.mxu1 %v4906_v17  ;;  %6412 = vmatprep.subr.bf16.mxu0 %v4771_v27  ;;  %v5123_v17 = vunpack.c.l.s8.bf16 %v4403_v13  ;;  %v4331_v27 = vld [vmem:[%s9603_s3 + $0x468] sm:$0xff] }
 0x803   : > { %6453 = vmatprep.subr.bf16.mxu1 %v4899_v26  ;;  %v4395_v26 = vld [vmem:[%s9603_s3 + $0x668] sm:$0xff] }
 0x805   : > { %6413 = vmatpush2.bf16.msra.mxu0 %v4770_v49  ;;  %v4987_v49 = vunpack.c.h.s8.bf16 %v4331_v27 }
 0x806   : > { %6454 = vmatpush2.bf16.msra.mxu1 %v4898_v52  ;;  %6464 = vmatprep.subr.bf16.mxu0 %v5019_v55  ;;  %v5115_v52 = vunpack.c.h.s8.bf16 %v4395_v26  ;;  %v4330_v55 = vld [vmem:[%s9603_s3 + $0x460] sm:$0xff] }
 0x807   : > { %6505 = vmatprep.subr.bf16.mxu1 %v5147_v63  ;;  %v4394_v63 = vld [vmem:[%s9603_s3 + $0x660] sm:$0xff]  ;;  %v4986_v48 = vunpack.c.h.s8.bf16 %v4330_v55 }
 0x808   : > { %v6170_v40 = vpop.f32.mrf.mxu0  ;;  %6415 = vmatmul.mubr.bf16.vlgmr.msra.gmra.mxu0 %v10499_v38  ;;  %v5114_v8 = vunpack.c.h.s8.bf16 %v4394_v63  ;;  %v5106_v13 = vunpack.c.l.s8.bf16 %v4394_v63  ;;  %v4434_v63 = vld [vmem:[%s9603_s3 + $0x7a0] sm:$0xff] }
 0x809   : > { %v6211_v50 = vpop.f32.mrf.mxu1  ;;  %6456 = vmatmul.mubr.bf16.vlgmr.msra.gmra.mxu1 %v10503_v34  ;;  %v6171_v57 = vadd.f32 %v6170_v40, %v10892_v32  ;;  %6465 = vmatpush1.bf16.msra.mxu0 %v5018_v45  ;;  %v4979_v45 = vunpack.c.l.s8.bf16 %v4331_v27  ;;  %v4371_v27 = vld [vmem:[%s9603_s3 + $0x5a8] sm:$0xff] }
 0x80a   : > { %6506 = vmatpush1.bf16.msra.mxu1 %v5146_v11  ;;  %v6172_v54 = vpop.f32.mrf.mxu0  ;;  %6466 = vmatprep.subr.bf16.mxu0 %v5011_v30  ;;  %v5107_v11 = vunpack.c.l.s8.bf16 %v4395_v26  ;;  %v4323_v30 = vld [vmem:[%s9603_s3 + $0x428] sm:$0xff] }
 0x80b   : > { %v6213_v10 = vpop.f32.mrf.mxu1  ;;  %6507 = vmatprep.subr.bf16.mxu1 %v5139_v43  ;;  %v10935_v2 = vadd.f32 %v6211_v50, %v6171_v57  ;;  %v6173_v4 = vadd.f32 %v6172_v54, %v10896_v29  ;;  %6496 = vmatprep.mubr.bf16.mxu0 %v10509_v20  ;;  %v4995_v29 = vunpack.c.l.s8.bf16 %v4339_v44  ;;  %v4387_v43 = vld [vmem:[%s9603_s3 + $0x628] sm:$0xff]  ;;  %v4978_v44 = vunpack.c.l.s8.bf16 %v4330_v55  ;;  %v4322_v57 = vld [vmem:[%s9603_s3 + $0x420] sm:$0xff] }
 0x80c   : > { %6537 = vmatprep.mubr.bf16.mxu1 %v10511_v42  ;;  %v6174_v32 = vpop.f32.mrf.mxu0  ;;  %v4971_v40 = vunpack.c.h.s8.bf16 %v4323_v30  ;;  %v5099_v50 = vunpack.c.h.s8.bf16 %v4387_v43  ;;  %v4962_v0 = vunpack.c.l.s8.bf16 %v4322_v57  ;;  %v4435_v26 = vld [vmem:[%s9603_s3 + $0x7a8] sm:$0xff]  ;;  %v4370_v55 = vld [vmem:[%s9603_s3 + $0x5a0] sm:$0xff] }
 0x80d   : > { %v6215_v5 = vpop.f32.mrf.mxu1  ;;  %v10940_v7 = vadd.f32 %v6213_v10, %v6173_v4  ;;  %6467 = vmatpush1.bf16.msra.mxu0 %v5010_v53  ;;  %v4386_v53 = vld [vmem:[%s9603_s3 + $0x620] sm:$0xff]  ;;  %v4963_v10 = vunpack.c.l.s8.bf16 %v4323_v30  ;;  %v4363_v30 = vld [vmem:[%s9603_s3 + $0x568] sm:$0xff] }
 0x80e   : > { %6508 = vmatpush1.bf16.msra.mxu1 %v5138_v36  ;;  %v6175_v14 = vpop.f32.mrf.mxu0  ;;  %6468 = vmatprep.subr.bf16.mxu0 %v5003_v47  ;;  %v4970_v36 = vunpack.c.h.s8.bf16 %v4322_v57  ;;  %v5098_v54 = vunpack.c.h.s8.bf16 %v4386_v53  ;;  %v5091_v47 = vunpack.c.l.s8.bf16 %v4387_v43  ;;  %v5090_v4 = vunpack.c.l.s8.bf16 %v4386_v53  ;;  %v4427_v43 = vld [vmem:[%s9603_s3 + $0x768] sm:$0xff]  ;;  %v4362_v57 = vld [vmem:[%s9603_s3 + $0x560] sm:$0xff] }
 0x80f   : > { %v6216_v15 = vpop.f32.mrf.mxu1  ;;  %6509 = vmatprep.subr.bf16.mxu1 %v5131_v61  ;;  %v4379_v61 = vld [vmem:[%s9603_s3 + $0x5e8] sm:$0xff]  ;;  %v5211_v5 = vunpack.c.h.s8.bf16 %v4443_v62  ;;  %v4426_v53 = vld [vmem:[%s9603_s3 + $0x760] sm:$0xff] }
 0x810   : > { %v5083_v32 = vunpack.c.h.s8.bf16 %v4379_v61 }
 0x811   : > { %6469 = vmatpush1.bf16.msra.mxu0 %v5002_v16  ;;  %v4378_v16 = vld [vmem:[%s9603_s3 + $0x5e0] sm:$0xff] }
 0x812   : > { %6510 = vmatpush1.bf16.msra.mxu1 %v5130_v12  ;;  %6470 = vmatprep.subr.bf16.mxu0 %v4995_v29  ;;  %v4442_v12 = vld [vmem:[%s9603_s3 + $0x7e0] sm:$0xff]  ;;  %v5082_v14 = vunpack.c.h.s8.bf16 %v4378_v16  ;;  %v5075_v29 = vunpack.c.l.s8.bf16 %v4379_v61  ;;  %v4355_v61 = vld [vmem:[%s9603_s3 + $0x528] sm:$0xff] }
 0x813   : > { %6511 = vmatprep.subr.bf16.mxu1 %v5123_v17  ;;  %v5210_v15 = vunpack.c.h.s8.bf16 %v4442_v12  ;;  %v5203_v17 = vunpack.c.l.s8.bf16 %v4443_v62  ;;  %v4419_v62 = vld [vmem:[%s9603_s3 + $0x728] sm:$0xff] }
 0x815   : > { %6471 = vmatpush1.bf16.msra.mxu0 %v4994_v35  ;;  %v5074_v35 = vunpack.c.l.s8.bf16 %v4378_v16  ;;  %v4354_v16 = vld [vmem:[%s9603_s3 + $0x520] sm:$0xff] }
 0x816   : > { %6512 = vmatpush1.bf16.msra.mxu1 %v5122_v28  ;;  %6472 = vmatprep.subr.bf16.mxu0 %v4987_v49  ;;  %v5202_v28 = vunpack.c.l.s8.bf16 %v4442_v12  ;;  %v5067_v49 = vunpack.c.h.s8.bf16 %v4371_v27  ;;  %v4418_v12 = vld [vmem:[%s9603_s3 + $0x720] sm:$0xff] }
 0x817   : > { %6513 = vmatprep.subr.bf16.mxu1 %v5115_v52  ;;  %v5195_v52 = vunpack.c.h.s8.bf16 %v4435_v26 }
 0x819   : > { %6473 = vmatpush1.bf16.msra.mxu0 %v4986_v48  ;;  %v5066_v48 = vunpack.c.h.s8.bf16 %v4370_v55 }
 0x81a   : > { %6514 = vmatpush1.bf16.msra.mxu1 %v5114_v8  ;;  %6474 = vmatprep.subr.bf16.mxu0 %v4979_v45  ;;  %v5194_v8 = vunpack.c.h.s8.bf16 %v4434_v63  ;;  %v5059_v45 = vunpack.c.l.s8.bf16 %v4371_v27  ;;  %v4475_v27 = vld [vmem:[%s9603_s3 + $0x8e8] sm:$0xff] }
 0x81b   : > { %6515 = vmatprep.subr.bf16.mxu1 %v5107_v11  ;;  %v5187_v11 = vunpack.c.l.s8.bf16 %v4435_v26  ;;  %v4539_v26 = vld [vmem:[%s9603_s3 + $0xae8] sm:$0xff] }
 0x81d   : > { %6475 = vmatpush1.bf16.msra.mxu0 %v4978_v44  ;;  %v5058_v44 = vunpack.c.l.s8.bf16 %v4370_v55  ;;  %v4474_v55 = vld [vmem:[%s9603_s3 + $0x8e0] sm:$0xff] }
 0x81e   : > { %6516 = vmatpush1.bf16.msra.mxu1 %v5106_v13  ;;  %6476 = vmatprep.subr.bf16.mxu0 %v4971_v40  ;;  %v5186_v13 = vunpack.c.l.s8.bf16 %v4434_v63  ;;  %v5051_v40 = vunpack.c.h.s8.bf16 %v4363_v30  ;;  %v4538_v63 = vld [vmem:[%s9603_s3 + $0xae0] sm:$0xff] }
 0x81f   : > { %6517 = vmatprep.subr.bf16.mxu1 %v5099_v50  ;;  %v5179_v50 = vunpack.c.h.s8.bf16 %v4427_v43 }
 0x821   : > { %6477 = vmatpush1.bf16.msra.mxu0 %v4970_v36  ;;  %v5050_v36 = vunpack.c.h.s8.bf16 %v4362_v57 }
 0x822   : > { %6518 = vmatpush1.bf16.msra.mxu1 %v5098_v54  ;;  %6478 = vmatprep.subr.bf16.mxu0 %v4963_v10  ;;  %v5178_v54 = vunpack.c.h.s8.bf16 %v4426_v53  ;;  %v5043_v10 = vunpack.c.l.s8.bf16 %v4363_v30  ;;  %v4467_v30 = vld [vmem:[%s9603_s3 + $0x8a8] sm:$0xff] }
 0x823   : > { %6519 = vmatprep.subr.bf16.mxu1 %v5091_v47  ;;  %v5171_v47 = vunpack.c.l.s8.bf16 %v4427_v43  ;;  %v4531_v43 = vld [vmem:[%s9603_s3 + $0xaa8] sm:$0xff] }
 0x825   : > { %6479 = vmatpush1.bf16.msra.mxu0 %v4962_v0  ;;  %v5042_v0 = vunpack.c.l.s8.bf16 %v4362_v57  ;;  %v5394_v57 = vunpack.c.l.s8.bf16 %v4538_v63 }
 0x826   : > { %6520 = vmatpush1.bf16.msra.mxu1 %v5090_v4  ;;  %6480 = vmatprep.subr.bf16.mxu0 %v5083_v32  ;;  %v5170_v4 = vunpack.c.l.s8.bf16 %v4426_v53  ;;  %v5035_v32 = vunpack.c.h.s8.bf16 %v4355_v61 }
 0x827   : > { %6521 = vmatprep.subr.bf16.mxu1 %v5211_v5  ;;  %v5163_v5 = vunpack.c.h.s8.bf16 %v4419_v62 }
 0x829   : > { %6481 = vmatpush2.bf16.msra.mxu0 %v5082_v14  ;;  %v5034_v14 = vunpack.c.h.s8.bf16 %v4354_v16 }
 0x82a   : > { %6522 = vmatpush2.bf16.msra.mxu1 %v5210_v15  ;;  %6482 = vmatprep.subr.bf16.mxu0 %v5075_v29  ;;  %v5162_v15 = vunpack.c.h.s8.bf16 %v4418_v12  ;;  %v5027_v29 = vunpack.c.l.s8.bf16 %v4355_v61  ;;  %v4530_v61 = vld [vmem:[%s9603_s3 + $0xaa0] sm:$0xff] }
 0x82b   : > { %6523 = vmatprep.subr.bf16.mxu1 %v5203_v17  ;;  %v5155_v17 = vunpack.c.l.s8.bf16 %v4419_v62 }
 0x82d   : > { %6483 = vmatpush2.bf16.msra.mxu0 %v5074_v35  ;;  %v5026_v35 = vunpack.c.l.s8.bf16 %v4354_v16  ;;  %v5386_v16 = vunpack.c.h.s8.bf16 %v4530_v61 }
 0x82e   : > { %6524 = vmatpush2.bf16.msra.mxu1 %v5202_v28  ;;  %6484 = vmatprep.subr.bf16.mxu0 %v5067_v49  ;;  %v5154_v28 = vunpack.c.l.s8.bf16 %v4418_v12  ;;  %v5275_v49 = vunpack.c.h.s8.bf16 %v4475_v27 }
 0x82f   : > { %6525 = vmatprep.subr.bf16.mxu1 %v5195_v52  ;;  %v5403_v52 = vunpack.c.h.s8.bf16 %v4539_v26 }
 0x831   : > { %6485 = vmatpush2.bf16.msra.mxu0 %v5066_v48  ;;  %v5274_v48 = vunpack.c.h.s8.bf16 %v4474_v55 }
 0x832   : > { %6526 = vmatpush2.bf16.msra.mxu1 %v5194_v8  ;;  %6486 = vmatprep.subr.bf16.mxu0 %v5059_v45  ;;  %v5402_v8 = vunpack.c.h.s8.bf16 %v4538_v63  ;;  %v5267_v45 = vunpack.c.l.s8.bf16 %v4475_v27 }
 0x833   : > { %6527 = vmatprep.subr.bf16.mxu1 %v5187_v11  ;;  %v5395_v11 = vunpack.c.l.s8.bf16 %v4539_v26  ;;  %v5378_v26 = vunpack.c.l.s8.bf16 %v4530_v61 }
 0x835   : > { %6487 = vmatpush2.bf16.msra.mxu0 %v5058_v44 }
 0x836   : > { %6528 = vmatpush2.bf16.msra.mxu1 %v5186_v13  ;;  %6488 = vmatprep.subr.bf16.mxu0 %v5051_v40 }
 0x837   : > { %6529 = vmatprep.subr.bf16.mxu1 %v5179_v50  ;;  %v5266_v50 = vunpack.c.l.s8.bf16 %v4474_v55 }
 0x839   : > { %6489 = vmatpush2.bf16.msra.mxu0 %v5050_v36 }
 0x83a   : > { %6530 = vmatpush2.bf16.msra.mxu1 %v5178_v54  ;;  %6490 = vmatprep.subr.bf16.mxu0 %v5043_v10  ;;  %v5259_v54 = vunpack.c.h.s8.bf16 %v4467_v30  ;;  %v5387_v10 = vunpack.c.h.s8.bf16 %v4531_v43 }
 0x83b   : > { %6531 = vmatprep.subr.bf16.mxu1 %v5171_v47  ;;  %v4466_v47 = vld [vmem:[%s9603_s3 + $0x8a0] sm:$0xff] }
 0x83c   : > { %v5250_v27 = vunpack.c.l.s8.bf16 %v4466_v47 }
 0x83d   : > { %6491 = vmatpush2.bf16.msra.mxu0 %v5042_v0 }
 0x83e   : > { %6532 = vmatpush2.bf16.msra.mxu1 %v5170_v4  ;;  %6492 = vmatprep.subr.bf16.mxu0 %v5035_v32 }
 0x83f   : > { %6533 = vmatprep.subr.bf16.mxu1 %v5163_v5  ;;  %v5258_v5 = vunpack.c.h.s8.bf16 %v4466_v47  ;;  %v4571_v47 = vld [vmem:[%s9603_s3 + $0xbe8] sm:$0xff] }
 0x841   : > { %6493 = vmatpush2.bf16.msra.mxu0 %v5034_v14 }
 0x842   : > { %6534 = vmatpush2.bf16.msra.mxu1 %v5162_v15  ;;  %6494 = vmatprep.subr.bf16.mxu0 %v5027_v29  ;;  %v5379_v15 = vunpack.c.l.s8.bf16 %v4531_v43  ;;  %v4459_v29 = vld [vmem:[%s9603_s3 + $0x868] sm:$0xff] }
 0x843   : > { %6535 = vmatprep.subr.bf16.mxu1 %v5155_v17  ;;  %v4523_v17 = vld [vmem:[%s9603_s3 + $0xa68] sm:$0xff] }
 0x845   : > { %6495 = vmatpush2.bf16.msra.mxu0 %v5026_v35  ;;  %v5243_v35 = vunpack.c.h.s8.bf16 %v4459_v29 }
 0x846   : > { %6536 = vmatpush2.bf16.msra.mxu1 %v5154_v28  ;;  %6546 = vmatprep.subr.bf16.mxu0 %v5275_v49  ;;  %v5371_v28 = vunpack.c.h.s8.bf16 %v4523_v17  ;;  %v4458_v49 = vld [vmem:[%s9603_s3 + $0x860] sm:$0xff] }
 0x847   : > { %6587 = vmatprep.subr.bf16.mxu1 %v5403_v52  ;;  %v4522_v52 = vld [vmem:[%s9603_s3 + $0xa60] sm:$0xff]  ;;  %v5242_v55 = vunpack.c.h.s8.bf16 %v4458_v49 }
 0x848   : > { %v6252_v44 = vpop.f32.mrf.mxu0  ;;  %6497 = vmatmul.mubr.bf16.vlgmr.msra.gmra.mxu0 %v10607_v3  ;;  %v5370_v63 = vunpack.c.h.s8.bf16 %v4522_v52  ;;  %v5362_v43 = vunpack.c.l.s8.bf16 %v4522_v52  ;;  %v4562_v52 = vld [vmem:[%s9603_s3 + $0xba0] sm:$0xff] }
 0x849   : > { %v6293_v13 = vpop.f32.mrf.mxu1  ;;  %6538 = vmatmul.mubr.bf16.vlgmr.msra.gmra.mxu1 %v10611_v19  ;;  %v6253_v40 = vadd.f32 %v6252_v44, %v10935_v2  ;;  %6547 = vmatpush1.bf16.msra.mxu0 %v5274_v48  ;;  %v5235_v48 = vunpack.c.l.s8.bf16 %v4459_v29  ;;  %v4499_v29 = vld [vmem:[%s9603_s3 + $0x9a8] sm:$0xff] }
 0x84a   : > { %6588 = vmatpush1.bf16.msra.mxu1 %v5402_v8  ;;  %v6254_v53 = vpop.f32.mrf.mxu0  ;;  %6548 = vmatprep.subr.bf16.mxu0 %v5267_v45  ;;  %v5363_v8 = vunpack.c.l.s8.bf16 %v4523_v17  ;;  %v4451_v45 = vld [vmem:[%s9603_s3 + $0x828] sm:$0xff] }
 0x84b   : > { %v6295_v36 = vpop.f32.mrf.mxu1  ;;  %6589 = vmatprep.subr.bf16.mxu1 %v5395_v11  ;;  %v10977_v62 = vadd.f32 %v6293_v13, %v6253_v40  ;;  %v6255_v0 = vadd.f32 %v6254_v53, %v10940_v7  ;;  %6578 = vmatprep.mubr.bf16.mxu0 %v10615_v56  ;;  %v5251_v7 = vunpack.c.l.s8.bf16 %v4467_v30  ;;  %v4515_v11 = vld [vmem:[%s9603_s3 + $0xa28] sm:$0xff]  ;;  %v5234_v30 = vunpack.c.l.s8.bf16 %v4458_v49  ;;  %v4450_v40 = vld [vmem:[%s9603_s3 + $0x820] sm:$0xff] }
 0x84c   : > { %6619 = vmatprep.mubr.bf16.mxu1 %v10617_v24  ;;  %v6256_v2 = vpop.f32.mrf.mxu0  ;;  %v5227_v44 = vunpack.c.h.s8.bf16 %v4451_v45  ;;  %v5355_v13 = vunpack.c.h.s8.bf16 %v4515_v11  ;;  %v5218_v61 = vunpack.c.l.s8.bf16 %v4450_v40  ;;  %v4563_v17 = vld [vmem:[%s9603_s3 + $0xba8] sm:$0xff]  ;;  %v4498_v49 = vld [vmem:[%s9603_s3 + $0x9a0] sm:$0xff] }
 0x84d   : > { %v6297_v4 = vpop.f32.mrf.mxu1  ;;  %v10982_v32 = vadd.f32 %v6295_v36, %v6255_v0  ;;  %6549 = vmatpush1.bf16.msra.mxu0 %v5266_v50  ;;  %v4514_v50 = vld [vmem:[%s9603_s3 + $0xa20] sm:$0xff]  ;;  %v5219_v36 = vunpack.c.l.s8.bf16 %v4451_v45  ;;  %v4491_v45 = vld [vmem:[%s9603_s3 + $0x968] sm:$0xff] }
 0x84e   : > { %6590 = vmatpush1.bf16.msra.mxu1 %v5394_v57  ;;  %v6257_v12 = vpop.f32.mrf.mxu0  ;;  %6550 = vmatprep.subr.bf16.mxu0 %v5259_v54  ;;  %v5226_v57 = vunpack.c.h.s8.bf16 %v4450_v40  ;;  %v5354_v53 = vunpack.c.h.s8.bf16 %v4514_v50  ;;  %v5347_v54 = vunpack.c.l.s8.bf16 %v4515_v11  ;;  %v5346_v0 = vunpack.c.l.s8.bf16 %v4514_v50  ;;  %v4555_v11 = vld [vmem:[%s9603_s3 + $0xb68] sm:$0xff]  ;;  %v4490_v40 = vld [vmem:[%s9603_s3 + $0x960] sm:$0xff] }
 0x84f   : > { %v6298_v14 = vpop.f32.mrf.mxu1  ;;  %6591 = vmatprep.subr.bf16.mxu1 %v5387_v10  ;;  %v4507_v10 = vld [vmem:[%s9603_s3 + $0x9e8] sm:$0xff]  ;;  %v5467_v4 = vunpack.c.h.s8.bf16 %v4571_v47  ;;  %v4554_v50 = vld [vmem:[%s9603_s3 + $0xb60] sm:$0xff] }
 0x850   : > { %v5339_v2 = vunpack.c.h.s8.bf16 %v4507_v10 }
 0x851   : > { %6551 = vmatpush1.bf16.msra.mxu0 %v5258_v5  ;;  %v4506_v5 = vld [vmem:[%s9603_s3 + $0x9e0] sm:$0xff] }
 0x852   : > { %6592 = vmatpush1.bf16.msra.mxu1 %v5386_v16  ;;  %6552 = vmatprep.subr.bf16.mxu0 %v5251_v7  ;;  %v4570_v16 = vld [vmem:[%s9603_s3 + $0xbe0] sm:$0xff]  ;;  %v5338_v12 = vunpack.c.h.s8.bf16 %v4506_v5  ;;  %v5331_v7 = vunpack.c.l.s8.bf16 %v4507_v10  ;;  %v4483_v10 = vld [vmem:[%s9603_s3 + $0x928] sm:$0xff] }
 0x853   : > { %6593 = vmatprep.subr.bf16.mxu1 %v5379_v15  ;;  %v5466_v14 = vunpack.c.h.s8.bf16 %v4570_v16  ;;  %v5459_v15 = vunpack.c.l.s8.bf16 %v4571_v47  ;;  %v4547_v47 = vld [vmem:[%s9603_s3 + $0xb28] sm:$0xff] }
 0x855   : > { %6553 = vmatpush1.bf16.msra.mxu0 %v5250_v27  ;;  %v5330_v27 = vunpack.c.l.s8.bf16 %v4506_v5  ;;  %v4482_v5 = vld [vmem:[%s9603_s3 + $0x920] sm:$0xff] }
 0x856   : > { %6594 = vmatpush1.bf16.msra.mxu1 %v5378_v26  ;;  %6554 = vmatprep.subr.bf16.mxu0 %v5243_v35  ;;  %v5458_v26 = vunpack.c.l.s8.bf16 %v4570_v16  ;;  %v5323_v35 = vunpack.c.h.s8.bf16 %v4499_v29  ;;  %v4546_v16 = vld [vmem:[%s9603_s3 + $0xb20] sm:$0xff] }
 0x857   : > { %6595 = vmatprep.subr.bf16.mxu1 %v5371_v28  ;;  %v5451_v28 = vunpack.c.h.s8.bf16 %v4563_v17 }
 0x859   : > { %6555 = vmatpush1.bf16.msra.mxu0 %v5242_v55  ;;  %v5322_v55 = vunpack.c.h.s8.bf16 %v4498_v49 }
 0x85a   : > { %6596 = vmatpush1.bf16.msra.mxu1 %v5370_v63  ;;  %6556 = vmatprep.subr.bf16.mxu0 %v5235_v48  ;;  %v5450_v63 = vunpack.c.h.s8.bf16 %v4562_v52  ;;  %v5315_v48 = vunpack.c.l.s8.bf16 %v4499_v29  ;;  %v4603_v29 = vld [vmem:[%s9603_s3 + $0xce8] sm:$0xff] }
 0x85b   : > { %6597 = vmatprep.subr.bf16.mxu1 %v5363_v8  ;;  %v5443_v8 = vunpack.c.l.s8.bf16 %v4563_v17  ;;  %v4667_v17 = vld [vmem:[%s9603_s3 + $0xee8] sm:$0xff] }
 0x85d   : > { %6557 = vmatpush1.bf16.msra.mxu0 %v5234_v30  ;;  %v5314_v30 = vunpack.c.l.s8.bf16 %v4498_v49  ;;  %v4602_v49 = vld [vmem:[%s9603_s3 + $0xce0] sm:$0xff] }
 0x85e   : > { %6598 = vmatpush1.bf16.msra.mxu1 %v5362_v43  ;;  %6558 = vmatprep.subr.bf16.mxu0 %v5227_v44  ;;  %v5442_v43 = vunpack.c.l.s8.bf16 %v4562_v52  ;;  %v5307_v44 = vunpack.c.h.s8.bf16 %v4491_v45  ;;  %v4666_v52 = vld [vmem:[%s9603_s3 + $0xee0] sm:$0xff] }
 0x85f   : > { %6599 = vmatprep.subr.bf16.mxu1 %v5355_v13  ;;  %v5435_v13 = vunpack.c.h.s8.bf16 %v4555_v11 }
 0x861   : > { %6559 = vmatpush1.bf16.msra.mxu0 %v5226_v57  ;;  %v5306_v57 = vunpack.c.h.s8.bf16 %v4490_v40 }
 0x862   : > { %6600 = vmatpush1.bf16.msra.mxu1 %v5354_v53  ;;  %6560 = vmatprep.subr.bf16.mxu0 %v5219_v36  ;;  %v5434_v53 = vunpack.c.h.s8.bf16 %v4554_v50  ;;  %v5299_v36 = vunpack.c.l.s8.bf16 %v4491_v45  ;;  %v4595_v45 = vld [vmem:[%s9603_s3 + $0xca8] sm:$0xff] }
 0x863   : > { %6601 = vmatprep.subr.bf16.mxu1 %v5347_v54  ;;  %v5427_v54 = vunpack.c.l.s8.bf16 %v4555_v11  ;;  %v4659_v11 = vld [vmem:[%s9603_s3 + $0xea8] sm:$0xff] }
 0x865   : > { %6561 = vmatpush1.bf16.msra.mxu0 %v5218_v61  ;;  %v5298_v61 = vunpack.c.l.s8.bf16 %v4490_v40  ;;  %v5650_v40 = vunpack.c.l.s8.bf16 %v4666_v52 }
 0x866   : > { %6602 = vmatpush1.bf16.msra.mxu1 %v5346_v0  ;;  %6562 = vmatprep.subr.bf16.mxu0 %v5339_v2  ;;  %v5426_v0 = vunpack.c.l.s8.bf16 %v4554_v50  ;;  %v5291_v2 = vunpack.c.h.s8.bf16 %v4483_v10 }
 0x867   : > { %6603 = vmatprep.subr.bf16.mxu1 %v5467_v4  ;;  %v5419_v4 = vunpack.c.h.s8.bf16 %v4547_v47 }
 0x869   : > { %6563 = vmatpush2.bf16.msra.mxu0 %v5338_v12  ;;  %v5290_v12 = vunpack.c.h.s8.bf16 %v4482_v5 }
 0x86a   : > { %6604 = vmatpush2.bf16.msra.mxu1 %v5466_v14  ;;  %6564 = vmatprep.subr.bf16.mxu0 %v5331_v7  ;;  %v5418_v14 = vunpack.c.h.s8.bf16 %v4546_v16  ;;  %v5283_v7 = vunpack.c.l.s8.bf16 %v4483_v10  ;;  %v4658_v10 = vld [vmem:[%s9603_s3 + $0xea0] sm:$0xff] }
 0x86b   : > { %6605 = vmatprep.subr.bf16.mxu1 %v5459_v15  ;;  %v5411_v15 = vunpack.c.l.s8.bf16 %v4547_v47 }
 0x86d   : > { %6565 = vmatpush2.bf16.msra.mxu0 %v5330_v27  ;;  %v5282_v27 = vunpack.c.l.s8.bf16 %v4482_v5  ;;  %v5642_v5 = vunpack.c.h.s8.bf16 %v4658_v10 }
 0x86e   : > { %6606 = vmatpush2.bf16.msra.mxu1 %v5458_v26  ;;  %6566 = vmatprep.subr.bf16.mxu0 %v5323_v35  ;;  %v5410_v26 = vunpack.c.l.s8.bf16 %v4546_v16  ;;  %v5531_v35 = vunpack.c.h.s8.bf16 %v4603_v29 }
 0x86f   : > { %6607 = vmatprep.subr.bf16.mxu1 %v5451_v28  ;;  %v5659_v28 = vunpack.c.h.s8.bf16 %v4667_v17 }
 0x871   : > { %6567 = vmatpush2.bf16.msra.mxu0 %v5322_v55  ;;  %v5530_v55 = vunpack.c.h.s8.bf16 %v4602_v49 }
 0x872   : > { %6608 = vmatpush2.bf16.msra.mxu1 %v5450_v63  ;;  %6568 = vmatprep.subr.bf16.mxu0 %v5315_v48  ;;  %v5658_v63 = vunpack.c.h.s8.bf16 %v4666_v52  ;;  %v5523_v48 = vunpack.c.l.s8.bf16 %v4603_v29 }
 0x873   : > { %6609 = vmatprep.subr.bf16.mxu1 %v5443_v8  ;;  %v5651_v8 = vunpack.c.l.s8.bf16 %v4667_v17  ;;  %v5634_v17 = vunpack.c.l.s8.bf16 %v4658_v10 }
 0x875   : > { %6569 = vmatpush2.bf16.msra.mxu0 %v5314_v30 }
 0x876   : > { %6610 = vmatpush2.bf16.msra.mxu1 %v5442_v43  ;;  %6570 = vmatprep.subr.bf16.mxu0 %v5307_v44 }
 0x877   : > { %6611 = vmatprep.subr.bf16.mxu1 %v5435_v13  ;;  %v5522_v13 = vunpack.c.l.s8.bf16 %v4602_v49 }
 0x879   : > { %6571 = vmatpush2.bf16.msra.mxu0 %v5306_v57 }
 0x87a   : > { %6612 = vmatpush2.bf16.msra.mxu1 %v5434_v53  ;;  %6572 = vmatprep.subr.bf16.mxu0 %v5299_v36  ;;  %v5515_v53 = vunpack.c.h.s8.bf16 %v4595_v45  ;;  %v5643_v36 = vunpack.c.h.s8.bf16 %v4659_v11 }
 0x87b   : > { %6613 = vmatprep.subr.bf16.mxu1 %v5427_v54  ;;  %v4594_v54 = vld [vmem:[%s9603_s3 + $0xca0] sm:$0xff] }
 0x87c   : > { %v5506_v29 = vunpack.c.l.s8.bf16 %v4594_v54 }
 0x87d   : > { %6573 = vmatpush2.bf16.msra.mxu0 %v5298_v61 }
 0x87e   : > { %6614 = vmatpush2.bf16.msra.mxu1 %v5426_v0  ;;  %6574 = vmatprep.subr.bf16.mxu0 %v5291_v2 }
 0x87f   : > { %6615 = vmatprep.subr.bf16.mxu1 %v5419_v4  ;;  %v5514_v4 = vunpack.c.h.s8.bf16 %v4594_v54  ;;  %v4699_v54 = vld [vmem:[%s9603_s3 + $0xfe8] sm:$0xff] }
 0x881   : > { %6575 = vmatpush2.bf16.msra.mxu0 %v5290_v12 }
 0x882   : > { %6616 = vmatpush2.bf16.msra.mxu1 %v5418_v14  ;;  %6576 = vmatprep.subr.bf16.mxu0 %v5283_v7  ;;  %v5635_v14 = vunpack.c.l.s8.bf16 %v4659_v11  ;;  %v4587_v7 = vld [vmem:[%s9603_s3 + $0xc68] sm:$0xff] }
 0x883   : > { %6617 = vmatprep.subr.bf16.mxu1 %v5411_v15  ;;  %v4651_v15 = vld [vmem:[%s9603_s3 + $0xe68] sm:$0xff] }
 0x885   : > { %6577 = vmatpush2.bf16.msra.mxu0 %v5282_v27  ;;  %v5499_v27 = vunpack.c.h.s8.bf16 %v4587_v7 }
 0x886   : > { %6618 = vmatpush2.bf16.msra.mxu1 %v5410_v26  ;;  %6628 = vmatprep.subr.bf16.mxu0 %v5531_v35  ;;  %v5627_v26 = vunpack.c.h.s8.bf16 %v4651_v15  ;;  %v4586_v35 = vld [vmem:[%s9603_s3 + $0xc60] sm:$0xff] }
 0x887   : > { %6669 = vmatprep.subr.bf16.mxu1 %v5659_v28  ;;  %v4650_v28 = vld [vmem:[%s9603_s3 + $0xe60] sm:$0xff]  ;;  %v5498_v49 = vunpack.c.h.s8.bf16 %v4586_v35 }
 0x888   : > { %v6334_v30 = vpop.f32.mrf.mxu0  ;;  %6579 = vmatmul.mubr.bf16.vlgmr.msra.gmra.mxu0 %v10668_v22  ;;  %v5626_v52 = vunpack.c.h.s8.bf16 %v4650_v28  ;;  %v5618_v11 = vunpack.c.l.s8.bf16 %v4650_v28  ;;  %v4690_v28 = vld [vmem:[%s9603_s3 + $0xfa0] sm:$0xff] }
 0x889   : > { %v6375_v43 = vpop.f32.mrf.mxu1  ;;  %6620 = vmatmul.mubr.bf16.vlgmr.msra.gmra.mxu1 %v10672_v46  ;;  %v6335_v44 = vadd.f32 %v6334_v30, %v10977_v62  ;;  %6629 = vmatpush1.bf16.msra.mxu0 %v5530_v55  ;;  %v5491_v55 = vunpack.c.l.s8.bf16 %v4587_v7  ;;  %v4627_v7 = vld [vmem:[%s9603_s3 + $0xda8] sm:$0xff] }
 0x88a   : > { %6670 = vmatpush1.bf16.msra.mxu1 %v5658_v63  ;;  %v6336_v50 = vpop.f32.mrf.mxu0  ;;  %6630 = vmatprep.subr.bf16.mxu0 %v5523_v48  ;;  %v5619_v63 = vunpack.c.l.s8.bf16 %v4651_v15  ;;  %v4579_v48 = vld [vmem:[%s9603_s3 + $0xc28] sm:$0xff] }
 0x88b   : > { %v6377_v57 = vpop.f32.mrf.mxu1  ;;  %6671 = vmatprep.subr.bf16.mxu1 %v5651_v8  ;;  %v11019_v47 = vadd.f32 %v6375_v43, %v6335_v44  ;;  %v6337_v61 = vadd.f32 %v6336_v50, %v10982_v32  ;;  %6660 = vmatprep.mubr.bf16.mxu0 %v10676_v21  ;;  %v5507_v32 = vunpack.c.l.s8.bf16 %v4595_v45  ;;  %v4643_v8 = vld [vmem:[%s9603_s3 + $0xe28] sm:$0xff]  ;;  %v5490_v45 = vunpack.c.l.s8.bf16 %v4586_v35  ;;  %v4578_v44 = vld [vmem:[%s9603_s3 + $0xc20] sm:$0xff] }
 0x88c   : > { %6701 = vmatprep.mubr.bf16.mxu1 %v10678_v33  ;;  %v6338_v62 = vpop.f32.mrf.mxu0  ;;  %v5483_v30 = vunpack.c.h.s8.bf16 %v4579_v48  ;;  %v5611_v43 = vunpack.c.h.s8.bf16 %v4643_v8  ;;  %v5474_v10 = vunpack.c.l.s8.bf16 %v4578_v44  ;;  %v4691_v15 = vld [vmem:[%s9603_s3 + $0xfa8] sm:$0xff]  ;;  %v4626_v35 = vld [vmem:[%s9603_s3 + $0xda0] sm:$0xff] }
 0x88d   : > { %v6379_v0 = vpop.f32.mrf.mxu1  ;;  %v11024_v2 = vadd.f32 %v6377_v57, %v6337_v61  ;;  %6631 = vmatpush1.bf16.msra.mxu0 %v5522_v13  ;;  %v4642_v13 = vld [vmem:[%s9603_s3 + $0xe20] sm:$0xff]  ;;  %v5475_v57 = vunpack.c.l.s8.bf16 %v4579_v48  ;;  %v4619_v48 = vld [vmem:[%s9603_s3 + $0xd68] sm:$0xff] }
 0x88e   : > { %6672 = vmatpush1.bf16.msra.mxu1 %v5650_v40  ;;  %v6339_v16 = vpop.f32.mrf.mxu0  ;;  %6632 = vmatprep.subr.bf16.mxu0 %v5515_v53  ;;  %v5482_v40 = vunpack.c.h.s8.bf16 %v4578_v44  ;;  %v5610_v50 = vunpack.c.h.s8.bf16 %v4642_v13  ;;  %v5603_v53 = vunpack.c.l.s8.bf16 %v4643_v8  ;;  %v5602_v61 = vunpack.c.l.s8.bf16 %v4642_v13  ;;  %v4683_v8 = vld [vmem:[%s9603_s3 + $0xf68] sm:$0xff]  ;;  %v4618_v44 = vld [vmem:[%s9603_s3 + $0xd60] sm:$0xff] }
 0x88f   : > { %v6380_v12 = vpop.f32.mrf.mxu1  ;;  %6673 = vmatprep.subr.bf16.mxu1 %v5643_v36  ;;  %v4635_v36 = vld [vmem:[%s9603_s3 + $0xde8] sm:$0xff]  ;;  %v5723_v0 = vunpack.c.h.s8.bf16 %v4699_v54  ;;  %v4682_v13 = vld [vmem:[%s9603_s3 + $0xf60] sm:$0xff] }
 0x890   : > { %v5595_v62 = vunpack.c.h.s8.bf16 %v4635_v36 }
 0x891   : > { %6633 = vmatpush1.bf16.msra.mxu0 %v5514_v4  ;;  %v4634_v4 = vld [vmem:[%s9603_s3 + $0xde0] sm:$0xff] }
 0x892   : > { %6674 = vmatpush1.bf16.msra.mxu1 %v5642_v5  ;;  %6634 = vmatprep.subr.bf16.mxu0 %v5507_v32  ;;  %v4698_v5 = vld [vmem:[%s9603_s3 + $0xfe0] sm:$0xff]  ;;  %v5594_v16 = vunpack.c.h.s8.bf16 %v4634_v4  ;;  %v5587_v32 = vunpack.c.l.s8.bf16 %v4635_v36  ;;  %v4611_v36 = vld [vmem:[%s9603_s3 + $0xd28] sm:$0xff] }
 0x893   : > { %6675 = vmatprep.subr.bf16.mxu1 %v5635_v14  ;;  %v5722_v12 = vunpack.c.h.s8.bf16 %v4698_v5  ;;  %v5715_v14 = vunpack.c.l.s8.bf16 %v4699_v54  ;;  %v4675_v54 = vld [vmem:[%s9603_s3 + $0xf28] sm:$0xff] }
 0x895   : > { %6635 = vmatpush1.bf16.msra.mxu0 %v5506_v29  ;;  %v5586_v29 = vunpack.c.l.s8.bf16 %v4634_v4  ;;  %v4610_v4 = vld [vmem:[%s9603_s3 + $0xd20] sm:$0xff] }
 0x896   : > { %6676 = vmatpush1.bf16.msra.mxu1 %v5634_v17  ;;  %6636 = vmatprep.subr.bf16.mxu0 %v5499_v27  ;;  %v5714_v17 = vunpack.c.l.s8.bf16 %v4698_v5  ;;  %v5579_v27 = vunpack.c.h.s8.bf16 %v4627_v7  ;;  %v4674_v5 = vld [vmem:[%s9603_s3 + $0xf20] sm:$0xff] }
 0x897   : > { %6677 = vmatprep.subr.bf16.mxu1 %v5627_v26  ;;  %v5707_v26 = vunpack.c.h.s8.bf16 %v4691_v15 }
 0x899   : > { %6637 = vmatpush1.bf16.msra.mxu0 %v5498_v49  ;;  %v5578_v49 = vunpack.c.h.s8.bf16 %v4626_v35 }
 0x89a   : > { %6678 = vmatpush1.bf16.msra.mxu1 %v5626_v52  ;;  %6638 = vmatprep.subr.bf16.mxu0 %v5491_v55  ;;  %v5706_v52 = vunpack.c.h.s8.bf16 %v4690_v28  ;;  %v5571_v55 = vunpack.c.l.s8.bf16 %v4627_v7  ;;  %v4221_v7 = vld [vmem:[%s9603_s3 + $0xf8] sm:$0xff] }
 0x89b   : > { %6679 = vmatprep.subr.bf16.mxu1 %v5619_v63  ;;  %v5699_v63 = vunpack.c.l.s8.bf16 %v4691_v15  ;;  %v4285_v15 = vld [vmem:[%s9603_s3 + $0x2f8] sm:$0xff] }
 0x89d   : > { %6639 = vmatpush1.bf16.msra.mxu0 %v5490_v45  ;;  %v5570_v45 = vunpack.c.l.s8.bf16 %v4626_v35  ;;  %v4220_v35 = vld [vmem:[%s9603_s3 + $0xf0] sm:$0xff] }
 0x89e   : > { %6680 = vmatpush1.bf16.msra.mxu1 %v5618_v11  ;;  %6640 = vmatprep.subr.bf16.mxu0 %v5483_v30  ;;  %v5698_v11 = vunpack.c.l.s8.bf16 %v4690_v28  ;;  %v5563_v30 = vunpack.c.h.s8.bf16 %v4619_v48  ;;  %v4284_v28 = vld [vmem:[%s9603_s3 + $0x2f0] sm:$0xff] }
 0x89f   : > { %6681 = vmatprep.subr.bf16.mxu1 %v5611_v43  ;;  %v5691_v43 = vunpack.c.h.s8.bf16 %v4683_v8 }
 0x8a1   : > { %6641 = vmatpush1.bf16.msra.mxu0 %v5482_v40  ;;  %v5562_v40 = vunpack.c.h.s8.bf16 %v4618_v44 }
 0x8a2   : > { %6682 = vmatpush1.bf16.msra.mxu1 %v5610_v50  ;;  %6642 = vmatprep.subr.bf16.mxu0 %v5475_v57  ;;  %v5690_v50 = vunpack.c.h.s8.bf16 %v4682_v13  ;;  %v5555_v57 = vunpack.c.l.s8.bf16 %v4619_v48  ;;  %v4213_v48 = vld [vmem:[%s9603_s3 + $0xb8] sm:$0xff] }
 0x8a3   : > { %6683 = vmatprep.subr.bf16.mxu1 %v5603_v53  ;;  %v5683_v53 = vunpack.c.l.s8.bf16 %v4683_v8  ;;  %v4277_v8 = vld [vmem:[%s9603_s3 + $0x2b8] sm:$0xff] }
 0x8a5   : > { %6643 = vmatpush1.bf16.msra.mxu0 %v5474_v10  ;;  %v5554_v10 = vunpack.c.l.s8.bf16 %v4618_v44  ;;  %v4884_v44 = vunpack.c.l.s8.bf16 %v4284_v28 }
 0x8a6   : > { %6684 = vmatpush1.bf16.msra.mxu1 %v5602_v61  ;;  %6644 = vmatprep.subr.bf16.mxu0 %v5595_v62  ;;  %v5682_v61 = vunpack.c.l.s8.bf16 %v4682_v13  ;;  %v5547_v62 = vunpack.c.h.s8.bf16 %v4611_v36 }
 0x8a7   : > { %6685 = vmatprep.subr.bf16.mxu1 %v5723_v0  ;;  %v5675_v0 = vunpack.c.h.s8.bf16 %v4675_v54 }
 0x8a9   : > { %6645 = vmatpush2.bf16.msra.mxu0 %v5594_v16  ;;  %v5546_v16 = vunpack.c.h.s8.bf16 %v4610_v4 }
 0x8aa   : > { %6686 = vmatpush2.bf16.msra.mxu1 %v5722_v12  ;;  %6646 = vmatprep.subr.bf16.mxu0 %v5587_v32  ;;  %v5674_v12 = vunpack.c.h.s8.bf16 %v4674_v5  ;;  %v5539_v32 = vunpack.c.l.s8.bf16 %v4611_v36  ;;  %v4276_v36 = vld [vmem:[%s9603_s3 + $0x2b0] sm:$0xff] }
 0x8ab   : > { %6687 = vmatprep.subr.bf16.mxu1 %v5715_v14  ;;  %v5667_v14 = vunpack.c.l.s8.bf16 %v4675_v54 }
 0x8ad   : > { %6647 = vmatpush2.bf16.msra.mxu0 %v5586_v29  ;;  %v5538_v29 = vunpack.c.l.s8.bf16 %v4610_v4 }
 0x8ae   : > { %6688 = vmatpush2.bf16.msra.mxu1 %v5714_v17  ;;  %6648 = vmatprep.subr.bf16.mxu0 %v5579_v27  ;;  %v5666_v17 = vunpack.c.l.s8.bf16 %v4674_v5  ;;  %v4765_v27 = vunpack.c.h.s8.bf16 %v4221_v7 }
 0x8af   : > { %6689 = vmatprep.subr.bf16.mxu1 %v5707_v26  ;;  %v4893_v26 = vunpack.c.h.s8.bf16 %v4285_v15 }
 0x8b1   : > { %6649 = vmatpush2.bf16.msra.mxu0 %v5578_v49  ;;  %v4764_v49 = vunpack.c.h.s8.bf16 %v4220_v35 }
 0x8b2   : > { %6690 = vmatpush2.bf16.msra.mxu1 %v5706_v52  ;;  %6650 = vmatprep.subr.bf16.mxu0 %v5571_v55  ;;  %v4892_v52 = vunpack.c.h.s8.bf16 %v4284_v28  ;;  %v4757_v55 = vunpack.c.l.s8.bf16 %v4221_v7 }
 0x8b3   : > { %6691 = vmatprep.subr.bf16.mxu1 %v5699_v63  ;;  %v4885_v63 = vunpack.c.l.s8.bf16 %v4285_v15 }
 0x8b5   : > { %6651 = vmatpush2.bf16.msra.mxu0 %v5570_v45 }
 0x8b6   : > { %6692 = vmatpush2.bf16.msra.mxu1 %v5698_v11  ;;  %6652 = vmatprep.subr.bf16.mxu0 %v5563_v30 }
 0x8b7   : > { %6693 = vmatprep.subr.bf16.mxu1 %v5691_v43  ;;  %v4756_v43 = vunpack.c.l.s8.bf16 %v4220_v35 }
 0x8b9   : > { %6653 = vmatpush2.bf16.msra.mxu0 %v5562_v40 }
 0x8ba   : > { %6694 = vmatpush2.bf16.msra.mxu1 %v5690_v50  ;;  %6654 = vmatprep.subr.bf16.mxu0 %v5555_v57  ;;  %v4749_v50 = vunpack.c.h.s8.bf16 %v4213_v48  ;;  %v4877_v57 = vunpack.c.h.s8.bf16 %v4277_v8 }
 0x8bb   : > { %6695 = vmatprep.subr.bf16.mxu1 %v5683_v53  ;;  %v4212_v53 = vld [vmem:[%s9603_s3 + $0xb0] sm:$0xff] }
 0x8bd   : > { %6655 = vmatpush2.bf16.msra.mxu0 %v5554_v10 }
 0x8be   : > { %6696 = vmatpush2.bf16.msra.mxu1 %v5682_v61  ;;  %6656 = vmatprep.subr.bf16.mxu0 %v5547_v62  ;;  %v4748_v62 = vunpack.c.h.s8.bf16 %v4212_v53 }
 0x8bf   : > { %6697 = vmatprep.subr.bf16.mxu1 %v5675_v0  ;;  %v4876_v0 = vunpack.c.h.s8.bf16 %v4276_v36 }
 0x8c1   : > { %6657 = vmatpush2.bf16.msra.mxu0 %v5546_v16  ;;  %v4741_v16 = vunpack.c.l.s8.bf16 %v4213_v48 }
 0x8c2   : > { %6698 = vmatpush2.bf16.msra.mxu1 %v5674_v12  ;;  %6658 = vmatprep.subr.bf16.mxu0 %v5539_v32  ;;  %v4869_v12 = vunpack.c.l.s8.bf16 %v4277_v8  ;;  %v4205_v32 = vld [vmem:[%s9603_s3 + $0x78] sm:$0xff] }
 0x8c3   : > { %6699 = vmatprep.subr.bf16.mxu1 %v5667_v14  ;;  %v4269_v14 = vld [vmem:[%s9603_s3 + $0x278] sm:$0xff]  ;;  %v4733_v7 = vunpack.c.h.s8.bf16 %v4205_v32  ;;  %v4725_v35 = vunpack.c.l.s8.bf16 %v4205_v32 }
 0x8c4   : > { %v4861_v15 = vunpack.c.h.s8.bf16 %v4269_v14  ;;  %v4853_v28 = vunpack.c.l.s8.bf16 %v4269_v14  ;;  %v4245_v32 = vld [vmem:[%s9603_s3 + $0x1b8] sm:$0xff] }
 0x8c5   : > { %6659 = vmatpush2.bf16.msra.mxu0 %v5538_v29  ;;  %v4204_v29 = vld [vmem:[%s9603_s3 + $0x70] sm:$0xff]  ;;  %v4309_v14 = vld [vmem:[%s9603_s3 + $0x3b8] sm:$0xff] }
 0x8c6   : > { %6700 = vmatpush2.bf16.msra.mxu1 %v5666_v17  ;;  %6710 = vmatprep.subr.bf16.mxu0 %v4765_v27  ;;  %v4268_v17 = vld [vmem:[%s9603_s3 + $0x270] sm:$0xff]  ;;  %v4732_v27 = vunpack.c.h.s8.bf16 %v4204_v29 }
 0x8c7   : > { %6751 = vmatprep.subr.bf16.mxu1 %v4893_v26  ;;  %v4860_v26 = vunpack.c.h.s8.bf16 %v4268_v17 }
 0x8c8   : > { %v6416_v45 = vpop.f32.mrf.mxu0  ;;  %6661 = vmatmul.mubr.bf16.vlgmr.msra.gmra.mxu0 %v10716_v37 }
 0x8c9   : > { %v6457_v11 = vpop.f32.mrf.mxu1  ;;  %6702 = vmatmul.mubr.bf16.vlgmr.msra.gmra.mxu1 %v10720_v41  ;;  %6711 = vmatpush1.bf16.msra.mxu0 %v4764_v49  ;;  %v4197_v49 = vld [vmem:[%s9603_s3 + $0x38] sm:$0xff] }
 0x8ca   : > { %v11058_v30 = vadd.f32 %v6457_v11, %v6416_v45  ;;  %6752 = vmatpush1.bf16.msra.mxu1 %v4892_v52  ;;  %v6418_v13 = vpop.f32.mrf.mxu0  ;;  %6712 = vmatprep.subr.bf16.mxu0 %v4757_v55  ;;  %v4261_v52 = vld [vmem:[%s9603_s3 + $0x238] sm:$0xff]  ;;  %v4724_v55 = vunpack.c.l.s8.bf16 %v4204_v29  ;;  %v4717_v48 = vunpack.c.h.s8.bf16 %v4197_v49  ;;  %v4196_v45 = vld [vmem:[%s9603_s3 + $0x30] sm:$0xff] }
 0x8cb   : > { %v6459_v40 = vpop.f32.mrf.mxu1  ;;  %6753 = vmatprep.subr.bf16.mxu1 %v4885_v63  ;;  %6742 = vmatprep.mubr.bf16.mxu0 %v10437_v51  ;;  %v4740_v51 = vunpack.c.l.s8.bf16 %v4212_v53  ;;  %v4852_v63 = vunpack.c.l.s8.bf16 %v4268_v17  ;;  %v4845_v8 = vunpack.c.h.s8.bf16 %v4261_v52  ;;  %v4260_v11 = vld [vmem:[%s9603_s3 + $0x230] sm:$0xff]  ;;  %v4708_v53 = vunpack.c.l.s8.bf16 %v4196_v45 }
 0x8cc   : > { %v11062_v54 = vadd.f32 %v6459_v40, %v6418_v13  ;;  %6783 = vmatprep.mubr.bf16.mxu1 %v10441_v25  ;;  %v6420_v10 = vpop.f32.mrf.mxu0  ;;  %v4868_v25 = vunpack.c.l.s8.bf16 %v4276_v36  ;;  %v4709_v13 = vunpack.c.l.s8.bf16 %v4197_v49  ;;  %v4837_v40 = vunpack.c.l.s8.bf16 %v4261_v52  ;;  %v4244_v29 = vld [vmem:[%s9603_s3 + $0x1b0] sm:$0xff]  ;;  %v4237_v49 = vld [vmem:[%s9603_s3 + $0x178] sm:$0xff] }
 0x8cd   : > { %v6461_v61 = vpop.f32.mrf.mxu1  ;;  %6713 = vmatpush1.bf16.msra.mxu0 %v4756_v43  ;;  %v4716_v43 = vunpack.c.h.s8.bf16 %v4196_v45  ;;  %v4836_v36 = vunpack.c.l.s8.bf16 %v4260_v11  ;;  %v4308_v17 = vld [vmem:[%s9603_s3 + $0x3b0] sm:$0xff]  ;;  %v4301_v52 = vld [vmem:[%s9603_s3 + $0x378] sm:$0xff] }
 0x8ce   : > { %6754 = vmatpush1.bf16.msra.mxu1 %v4884_v44  ;;  %v6421_v4 = vpop.f32.mrf.mxu0  ;;  %6714 = vmatprep.subr.bf16.mxu0 %v4749_v50  ;;  %v4844_v44 = vunpack.c.h.s8.bf16 %v4260_v11  ;;  %v4253_v50 = vld [vmem:[%s9603_s3 + $0x1f8] sm:$0xff]  ;;  %v4236_v45 = vld [vmem:[%s9603_s3 + $0x170] sm:$0xff] }
 0x8cf   : > { %v6462_v5 = vpop.f32.mrf.mxu1  ;;  %6755 = vmatprep.subr.bf16.mxu1 %v4877_v57  ;;  %v4317_v57 = vld [vmem:[%s9603_s3 + $0x3f8] sm:$0xff]  ;;  %v4829_v10 = vunpack.c.h.s8.bf16 %v4253_v50  ;;  %v4300_v11 = vld [vmem:[%s9603_s3 + $0x370] sm:$0xff] }
 0x8d0   : > { %v4957_v61 = vunpack.c.h.s8.bf16 %v4317_v57 }
 0x8d1   : > { %6715 = vmatpush1.bf16.msra.mxu0 %v4748_v62  ;;  %v4252_v62 = vld [vmem:[%s9603_s3 + $0x1f0] sm:$0xff] }
 0x8d2   : > { %6756 = vmatpush1.bf16.msra.mxu1 %v4876_v0  ;;  %6716 = vmatprep.subr.bf16.mxu0 %v4741_v16  ;;  %v4316_v0 = vld [vmem:[%s9603_s3 + $0x3f0] sm:$0xff]  ;;  %v4828_v4 = vunpack.c.h.s8.bf16 %v4252_v62  ;;  %v4821_v16 = vunpack.c.l.s8.bf16 %v4253_v50  ;;  %v4229_v50 = vld [vmem:[%s9603_s3 + $0x138] sm:$0xff] }
 0x8d3   : > { %6757 = vmatprep.subr.bf16.mxu1 %v4869_v12  ;;  %v4956_v5 = vunpack.c.h.s8.bf16 %v4316_v0  ;;  %v4949_v12 = vunpack.c.l.s8.bf16 %v4317_v57  ;;  %v4293_v57 = vld [vmem:[%s9603_s3 + $0x338] sm:$0xff] }
 0x8d5   : > { %6717 = vmatpush1.bf16.msra.mxu0 %v4740_v51  ;;  %v4820_v51 = vunpack.c.l.s8.bf16 %v4252_v62  ;;  %v4228_v62 = vld [vmem:[%s9603_s3 + $0x130] sm:$0xff] }
 0x8d6   : > { %6758 = vmatpush1.bf16.msra.mxu1 %v4868_v25  ;;  %6718 = vmatprep.subr.bf16.mxu0 %v4733_v7  ;;  %v4948_v25 = vunpack.c.l.s8.bf16 %v4316_v0  ;;  %v4813_v7 = vunpack.c.h.s8.bf16 %v4245_v32  ;;  %v4292_v0 = vld [vmem:[%s9603_s3 + $0x330] sm:$0xff] }
 0x8d7   : > { %6759 = vmatprep.subr.bf16.mxu1 %v4861_v15  ;;  %v4941_v15 = vunpack.c.h.s8.bf16 %v4309_v14 }
 0x8d9   : > { %6719 = vmatpush1.bf16.msra.mxu0 %v4732_v27  ;;  %v4812_v27 = vunpack.c.h.s8.bf16 %v4244_v29 }
 0x8da   : > { %6760 = vmatpush1.bf16.msra.mxu1 %v4860_v26  ;;  %6720 = vmatprep.subr.bf16.mxu0 %v4725_v35  ;;  %v4940_v26 = vunpack.c.h.s8.bf16 %v4308_v17  ;;  %v4805_v35 = vunpack.c.l.s8.bf16 %v4245_v32  ;;  %v4349_v32 = vld [vmem:[%s9603_s3 + $0x4f8] sm:$0xff] }
 0x8db   : > { %6761 = vmatprep.subr.bf16.mxu1 %v4853_v28  ;;  %v4933_v28 = vunpack.c.l.s8.bf16 %v4309_v14  ;;  %v4413_v14 = vld [vmem:[%s9603_s3 + $0x6f8] sm:$0xff] }
 0x8dd   : > { %6721 = vmatpush1.bf16.msra.mxu0 %v4724_v55  ;;  %v4804_v55 = vunpack.c.l.s8.bf16 %v4244_v29  ;;  %v4348_v29 = vld [vmem:[%s9603_s3 + $0x4f0] sm:$0xff] }
 0x8de   : > { %6762 = vmatpush1.bf16.msra.mxu1 %v4852_v63  ;;  %6722 = vmatprep.subr.bf16.mxu0 %v4717_v48  ;;  %v4932_v63 = vunpack.c.l.s8.bf16 %v4308_v17  ;;  %v4797_v48 = vunpack.c.h.s8.bf16 %v4237_v49  ;;  %v4412_v17 = vld [vmem:[%s9603_s3 + $0x6f0] sm:$0xff] }
 0x8df   : > { %6763 = vmatprep.subr.bf16.mxu1 %v4845_v8  ;;  %v4925_v8 = vunpack.c.h.s8.bf16 %v4301_v52 }
 0x8e1   : > { %6723 = vmatpush1.bf16.msra.mxu0 %v4716_v43  ;;  %v4796_v43 = vunpack.c.h.s8.bf16 %v4236_v45 }
 0x8e2   : > { %6764 = vmatpush1.bf16.msra.mxu1 %v4844_v44  ;;  %6724 = vmatprep.subr.bf16.mxu0 %v4709_v13  ;;  %v4924_v44 = vunpack.c.h.s8.bf16 %v4300_v11  ;;  %v4789_v13 = vunpack.c.l.s8.bf16 %v4237_v49  ;;  %v4341_v49 = vld [vmem:[%s9603_s3 + $0x4b8] sm:$0xff] }
 0x8e3   : > { %6765 = vmatprep.subr.bf16.mxu1 %v4837_v40  ;;  %v4917_v40 = vunpack.c.l.s8.bf16 %v4301_v52  ;;  %v4405_v52 = vld [vmem:[%s9603_s3 + $0x6b8] sm:$0xff] }
 0x8e5   : > { %6725 = vmatpush1.bf16.msra.mxu0 %v4708_v53  ;;  %v4788_v53 = vunpack.c.l.s8.bf16 %v4236_v45  ;;  %v5140_v45 = vunpack.c.l.s8.bf16 %v4412_v17 }
 0x8e6   : > { %6766 = vmatpush1.bf16.msra.mxu1 %v4836_v36  ;;  %6726 = vmatprep.subr.bf16.mxu0 %v4829_v10  ;;  %v4916_v36 = vunpack.c.l.s8.bf16 %v4300_v11  ;;  %v4781_v10 = vunpack.c.h.s8.bf16 %v4229_v50 }
 0x8e7   : > { %6767 = vmatprep.subr.bf16.mxu1 %v4957_v61  ;;  %v4909_v61 = vunpack.c.h.s8.bf16 %v4293_v57 }
 0x8e9   : > { %6727 = vmatpush2.bf16.msra.mxu0 %v4828_v4  ;;  %v4780_v4 = vunpack.c.h.s8.bf16 %v4228_v62 }
 0x8ea   : > { %6768 = vmatpush2.bf16.msra.mxu1 %v4956_v5  ;;  %6728 = vmatprep.subr.bf16.mxu0 %v4821_v16  ;;  %v4908_v5 = vunpack.c.h.s8.bf16 %v4292_v0  ;;  %v4773_v16 = vunpack.c.l.s8.bf16 %v4229_v50  ;;  %v4404_v50 = vld [vmem:[%s9603_s3 + $0x6b0] sm:$0xff] }
 0x8eb   : > { %6769 = vmatprep.subr.bf16.mxu1 %v4949_v12  ;;  %v4901_v12 = vunpack.c.l.s8.bf16 %v4293_v57 }
 0x8ed   : > { %6729 = vmatpush2.bf16.msra.mxu0 %v4820_v51  ;;  %v4772_v51 = vunpack.c.l.s8.bf16 %v4228_v62 }
 0x8ee   : > { %6770 = vmatpush2.bf16.msra.mxu1 %v4948_v25  ;;  %6730 = vmatprep.subr.bf16.mxu0 %v4813_v7  ;;  %v4900_v25 = vunpack.c.l.s8.bf16 %v4292_v0  ;;  %v5021_v7 = vunpack.c.h.s8.bf16 %v4349_v32  ;;  %v5125_v0 = vunpack.c.l.s8.bf16 %v4405_v52 }
 0x8ef   : > { %6771 = vmatprep.subr.bf16.mxu1 %v4941_v15  ;;  %v5149_v15 = vunpack.c.h.s8.bf16 %v4413_v14 }
 0x8f1   : > { %6731 = vmatpush2.bf16.msra.mxu0 %v4812_v27  ;;  %v5020_v27 = vunpack.c.h.s8.bf16 %v4348_v29 }
 0x8f2   : > { %6772 = vmatpush2.bf16.msra.mxu1 %v4940_v26  ;;  %6732 = vmatprep.subr.bf16.mxu0 %v4805_v35  ;;  %v5148_v26 = vunpack.c.h.s8.bf16 %v4412_v17  ;;  %v5013_v35 = vunpack.c.l.s8.bf16 %v4349_v32  ;;  %v4332_v32 = vld [vmem:[%s9603_s3 + $0x470] sm:$0xff]  ;;  %v4389_v17 = vld [vmem:[%s9603_s3 + $0x638] sm:$0xff] }
 0x8f3   : > { %6773 = vmatprep.subr.bf16.mxu1 %v4933_v28  ;;  %v5141_v28 = vunpack.c.l.s8.bf16 %v4413_v14  ;;  %v4396_v14 = vld [vmem:[%s9603_s3 + $0x670] sm:$0xff] }
 0x8f5   : > { %6733 = vmatpush2.bf16.msra.mxu0 %v4804_v55 }
 0x8f6   : > { %6774 = vmatpush2.bf16.msra.mxu1 %v4932_v63  ;;  %6734 = vmatprep.subr.bf16.mxu0 %v4797_v48 }
 0x8f7   : > { %6775 = vmatprep.subr.bf16.mxu1 %v4925_v8  ;;  %v5012_v8 = vunpack.c.l.s8.bf16 %v4348_v29  ;;  %v4325_v29 = vld [vmem:[%s9603_s3 + $0x438] sm:$0xff] }
 0x8f9   : > { %6735 = vmatpush2.bf16.msra.mxu0 %v4796_v43 }
 0x8fa   : > { %6776 = vmatpush2.bf16.msra.mxu1 %v4924_v44  ;;  %6736 = vmatprep.subr.bf16.mxu0 %v4789_v13  ;;  %v5005_v44 = vunpack.c.h.s8.bf16 %v4341_v49  ;;  %v5133_v13 = vunpack.c.h.s8.bf16 %v4405_v52  ;;  %v4388_v52 = vld [vmem:[%s9603_s3 + $0x630] sm:$0xff] }
 0x8fb   : > { %6777 = vmatprep.subr.bf16.mxu1 %v4917_v40  ;;  %v4340_v40 = vld [vmem:[%s9603_s3 + $0x4b0] sm:$0xff] }
 0x8fd   : > { %6737 = vmatpush2.bf16.msra.mxu0 %v4788_v53 }
 0x8fe   : > { %6778 = vmatpush2.bf16.msra.mxu1 %v4916_v36  ;;  %6738 = vmatprep.subr.bf16.mxu0 %v4781_v10  ;;  %v5004_v36 = vunpack.c.h.s8.bf16 %v4340_v40  ;;  %v5132_v10 = vunpack.c.h.s8.bf16 %v4404_v50 }
 0x8ff   : > { %6779 = vmatprep.subr.bf16.mxu1 %v4909_v61 }
 0x901   : > { %6739 = vmatpush2.bf16.msra.mxu0 %v4780_v4  ;;  %v4397_v4 = vld [vmem:[%s9603_s3 + $0x678] sm:$0xff] }
 0x902   : > { %6780 = vmatpush2.bf16.msra.mxu1 %v4908_v5  ;;  %6740 = vmatprep.subr.bf16.mxu0 %v4773_v16  ;;  %v5124_v5 = vunpack.c.l.s8.bf16 %v4404_v50  ;;  %v4380_v50 = vld [vmem:[%s9603_s3 + $0x5f0] sm:$0xff] }
 0x903   : > { %6781 = vmatprep.subr.bf16.mxu1 %v4901_v12  ;;  %v5117_v12 = vunpack.c.h.s8.bf16 %v4397_v4 }
 0x905   : > { %6741 = vmatpush2.bf16.msra.mxu0 %v4772_v51  ;;  %v4988_v51 = vunpack.c.h.s8.bf16 %v4332_v32 }
 0x906   : > { %6782 = vmatpush2.bf16.msra.mxu1 %v4900_v25  ;;  %6792 = vmatprep.subr.bf16.mxu0 %v5021_v7  ;;  %v5116_v25 = vunpack.c.h.s8.bf16 %v4396_v14 }
 0x907   : > { %6833 = vmatprep.subr.bf16.mxu1 %v5149_v15  ;;  %v5109_v15 = vunpack.c.l.s8.bf16 %v4397_v4 }
 0x908   : > { %v6498_v55 = vpop.f32.mrf.mxu0  ;;  %6743 = vmatmul.mubr.bf16.vlgmr.msra.gmra.mxu0 %v10499_v38 }
 0x909   : > { %v6539_v63 = vpop.f32.mrf.mxu1  ;;  %6784 = vmatmul.mubr.bf16.vlgmr.msra.gmra.mxu1 %v10503_v34  ;;  %v6499_v48 = vadd.f32 %v6498_v55, %v11058_v30  ;;  %6793 = vmatpush1.bf16.msra.mxu0 %v5020_v27  ;;  %v4980_v27 = vunpack.c.l.s8.bf16 %v4332_v32 }
 0x90a   : > { %6834 = vmatpush1.bf16.msra.mxu1 %v5148_v26  ;;  %v6500_v11 = vpop.f32.mrf.mxu0  ;;  %6794 = vmatprep.subr.bf16.mxu0 %v5013_v35  ;;  %v5108_v26 = vunpack.c.l.s8.bf16 %v4396_v14  ;;  %v4973_v35 = vunpack.c.h.s8.bf16 %v4325_v29 }
 0x90b   : > { %v6541_v43 = vpop.f32.mrf.mxu1  ;;  %6835 = vmatprep.subr.bf16.mxu1 %v5141_v28  ;;  %v11101_v57 = vadd.f32 %v6539_v63, %v6499_v48  ;;  %v6501_v38 = vadd.f32 %v6500_v11, %v11062_v54  ;;  %6824 = vmatprep.mubr.bf16.mxu0 %v10509_v20  ;;  %v4997_v54 = vunpack.c.l.s8.bf16 %v4341_v49  ;;  %v4333_v20 = vld [vmem:[%s9603_s3 + $0x478] sm:$0xff]  ;;  %v5101_v28 = vunpack.c.h.s8.bf16 %v4389_v17  ;;  %v4324_v49 = vld [vmem:[%s9603_s3 + $0x430] sm:$0xff] }
 0x90c   : > { %6865 = vmatprep.mubr.bf16.mxu1 %v10511_v42  ;;  %v6502_v34 = vpop.f32.mrf.mxu0  ;;  %v4996_v42 = vunpack.c.l.s8.bf16 %v4340_v40  ;;  %v4989_v16 = vunpack.c.h.s8.bf16 %v4333_v20  ;;  %v4981_v7 = vunpack.c.l.s8.bf16 %v4333_v20  ;;  %v4972_v55 = vunpack.c.h.s8.bf16 %v4324_v49  ;;  %v4445_v11 = vld [vmem:[%s9603_s3 + $0x7f8] sm:$0xff] }
 0x90d   : > { %v6543_v30 = vpop.f32.mrf.mxu1  ;;  %v11106_v53 = vadd.f32 %v6541_v43, %v6501_v38  ;;  %6795 = vmatpush1.bf16.msra.mxu0 %v5012_v8  ;;  %v5100_v63 = vunpack.c.h.s8.bf16 %v4388_v52  ;;  %v4965_v48 = vunpack.c.l.s8.bf16 %v4325_v29  ;;  %v5093_v8 = vunpack.c.l.s8.bf16 %v4389_v17  ;;  %v4444_v38 = vld [vmem:[%s9603_s3 + $0x7f0] sm:$0xff] }
 0x90e   : > { %6836 = vmatpush1.bf16.msra.mxu1 %v5140_v45  ;;  %v6503_v61 = vpop.f32.mrf.mxu0  ;;  %6796 = vmatprep.subr.bf16.mxu0 %v5005_v44  ;;  %v4381_v45 = vld [vmem:[%s9603_s3 + $0x5f8] sm:$0xff]  ;;  %v4964_v43 = vunpack.c.l.s8.bf16 %v4324_v49  ;;  %v5092_v44 = vunpack.c.l.s8.bf16 %v4388_v52  ;;  %v5213_v40 = vunpack.c.h.s8.bf16 %v4445_v11  ;;  %v5084_v34 = vunpack.c.h.s8.bf16 %v4380_v50 }
 0x90f   : > { %v6544_v62 = vpop.f32.mrf.mxu1  ;;  %6837 = vmatprep.subr.bf16.mxu1 %v5133_v13  ;;  %v5085_v13 = vunpack.c.h.s8.bf16 %v4381_v45  ;;  %v5212_v30 = vunpack.c.h.s8.bf16 %v4444_v38  ;;  %v4373_v61 = vld [vmem:[%s9603_s3 + $0x5b8] sm:$0xff] }
 0x910   : > { %v4437_v62 = vld [vmem:[%s9603_s3 + $0x7b8] sm:$0xff]  ;;  %v5069_v20 = vunpack.c.h.s8.bf16 %v4373_v61  ;;  %v5061_v32 = vunpack.c.l.s8.bf16 %v4373_v61 }
 0x911   : > { %6797 = vmatpush1.bf16.msra.mxu0 %v5004_v36  ;;  %v5077_v36 = vunpack.c.l.s8.bf16 %v4381_v45  ;;  %v5197_v4 = vunpack.c.h.s8.bf16 %v4437_v62  ;;  %v5189_v14 = vunpack.c.l.s8.bf16 %v4437_v62 }
 0x912   : > { %6838 = vmatpush1.bf16.msra.mxu1 %v5132_v10  ;;  %6798 = vmatprep.subr.bf16.mxu0 %v4997_v54  ;;  %v5205_v10 = vunpack.c.l.s8.bf16 %v4445_v11  ;;  %v5076_v54 = vunpack.c.l.s8.bf16 %v4380_v50 }
 0x913   : > { %6839 = vmatprep.subr.bf16.mxu1 %v5125_v0  ;;  %v5204_v0 = vunpack.c.l.s8.bf16 %v4444_v38 }
 0x915   : > { %6799 = vmatpush1.bf16.msra.mxu0 %v4996_v42  ;;  %v4372_v42 = vld [vmem:[%s9603_s3 + $0x5b0] sm:$0xff] }
 0x916   : > { %6840 = vmatpush1.bf16.msra.mxu1 %v5124_v5  ;;  %6800 = vmatprep.subr.bf16.mxu0 %v4989_v16  ;;  %v4436_v5 = vld [vmem:[%s9603_s3 + $0x7b0] sm:$0xff]  ;;  %v5068_v16 = vunpack.c.h.s8.bf16 %v4372_v42 }
 0x917   : > { %6841 = vmatprep.subr.bf16.mxu1 %v5117_v12  ;;  %v5196_v12 = vunpack.c.h.s8.bf16 %v4436_v5 }
 0x919   : > { %6801 = vmatpush1.bf16.msra.mxu0 %v4988_v51  ;;  %v4365_v51 = vld [vmem:[%s9603_s3 + $0x578] sm:$0xff] }
 0x91a   : > { %6842 = vmatpush1.bf16.msra.mxu1 %v5116_v25  ;;  %6802 = vmatprep.subr.bf16.mxu0 %v4981_v7  ;;  %v4429_v25 = vld [vmem:[%s9603_s3 + $0x778] sm:$0xff]  ;;  %v5060_v7 = vunpack.c.l.s8.bf16 %v4372_v42  ;;  %v5053_v29 = vunpack.c.h.s8.bf16 %v4365_v51  ;;  %v5045_v49 = vunpack.c.l.s8.bf16 %v4365_v51 }
 0x91b   : > { %6843 = vmatprep.subr.bf16.mxu1 %v5109_v15  ;;  %v5188_v15 = vunpack.c.l.s8.bf16 %v4436_v5  ;;  %v5181_v17 = vunpack.c.h.s8.bf16 %v4429_v25  ;;  %v5173_v52 = vunpack.c.l.s8.bf16 %v4429_v25 }
 0x91d   : > { %6803 = vmatpush1.bf16.msra.mxu0 %v4980_v27  ;;  %v4364_v27 = vld [vmem:[%s9603_s3 + $0x570] sm:$0xff] }
 0x91e   : > { %6844 = vmatpush1.bf16.msra.mxu1 %v5108_v26  ;;  %6804 = vmatprep.subr.bf16.mxu0 %v4973_v35  ;;  %v4428_v26 = vld [vmem:[%s9603_s3 + $0x770] sm:$0xff]  ;;  %v5052_v35 = vunpack.c.h.s8.bf16 %v4364_v27 }
 0x91f   : > { %6845 = vmatprep.subr.bf16.mxu1 %v5101_v28  ;;  %v5180_v28 = vunpack.c.h.s8.bf16 %v4428_v26 }
 0x921   : > { %6805 = vmatpush1.bf16.msra.mxu0 %v4972_v55  ;;  %v4357_v55 = vld [vmem:[%s9603_s3 + $0x538] sm:$0xff] }
 0x922   : > { %6846 = vmatpush1.bf16.msra.mxu1 %v5100_v63  ;;  %6806 = vmatprep.subr.bf16.mxu0 %v4965_v48  ;;  %v4421_v63 = vld [vmem:[%s9603_s3 + $0x738] sm:$0xff]  ;;  %v5044_v48 = vunpack.c.l.s8.bf16 %v4364_v27  ;;  %v5037_v45 = vunpack.c.h.s8.bf16 %v4357_v55  ;;  %v5029_v50 = vunpack.c.l.s8.bf16 %v4357_v55 }
 0x923   : > { %6847 = vmatprep.subr.bf16.mxu1 %v5093_v8  ;;  %v5172_v8 = vunpack.c.l.s8.bf16 %v4428_v26  ;;  %v5165_v11 = vunpack.c.h.s8.bf16 %v4421_v63  ;;  %v5157_v38 = vunpack.c.l.s8.bf16 %v4421_v63  ;;  %v4468_v26 = vld [vmem:[%s9603_s3 + $0x8b0] sm:$0xff] }
 0x925   : > { %6807 = vmatpush1.bf16.msra.mxu0 %v4964_v43  ;;  %v4356_v43 = vld [vmem:[%s9603_s3 + $0x530] sm:$0xff] }
 0x926   : > { %6848 = vmatpush1.bf16.msra.mxu1 %v5092_v44  ;;  %6808 = vmatprep.subr.bf16.mxu0 %v5085_v13  ;;  %v4420_v44 = vld [vmem:[%s9603_s3 + $0x730] sm:$0xff]  ;;  %v5036_v13 = vunpack.c.h.s8.bf16 %v4356_v43 }
 0x927   : > { %6849 = vmatprep.subr.bf16.mxu1 %v5213_v40  ;;  %v5164_v40 = vunpack.c.h.s8.bf16 %v4420_v44 }
 0x929   : > { %6809 = vmatpush2.bf16.msra.mxu0 %v5084_v34  ;;  %v4477_v34 = vld [vmem:[%s9603_s3 + $0x8f8] sm:$0xff] }
 0x92a   : > { %6850 = vmatpush2.bf16.msra.mxu1 %v5212_v30  ;;  %6810 = vmatprep.subr.bf16.mxu0 %v5077_v36  ;;  %v4541_v30 = vld [vmem:[%s9603_s3 + $0xaf8] sm:$0xff]  ;;  %v5028_v36 = vunpack.c.l.s8.bf16 %v4356_v43  ;;  %v5277_v61 = vunpack.c.h.s8.bf16 %v4477_v34  ;;  %v5269_v42 = vunpack.c.l.s8.bf16 %v4477_v34 }
 0x92b   : > { %6851 = vmatprep.subr.bf16.mxu1 %v5205_v10  ;;  %v5156_v10 = vunpack.c.l.s8.bf16 %v4420_v44  ;;  %v5405_v62 = vunpack.c.h.s8.bf16 %v4541_v30  ;;  %v5397_v5 = vunpack.c.l.s8.bf16 %v4541_v30 }
 0x92d   : > { %6811 = vmatpush2.bf16.msra.mxu0 %v5076_v54  ;;  %v4476_v54 = vld [vmem:[%s9603_s3 + $0x8f0] sm:$0xff] }
 0x92e   : > { %6852 = vmatpush2.bf16.msra.mxu1 %v5204_v0  ;;  %6812 = vmatprep.subr.bf16.mxu0 %v5069_v20  ;;  %v4540_v0 = vld [vmem:[%s9603_s3 + $0xaf0] sm:$0xff]  ;;  %v5276_v20 = vunpack.c.h.s8.bf16 %v4476_v54  ;;  %v5268_v25 = vunpack.c.l.s8.bf16 %v4476_v54 }
 0x92f   : > { %6853 = vmatprep.subr.bf16.mxu1 %v5197_v4  ;;  %v5404_v4 = vunpack.c.h.s8.bf16 %v4540_v0 }
 0x931   : > { %6813 = vmatpush2.bf16.msra.mxu0 %v5068_v16  ;;  %v4469_v16 = vld [vmem:[%s9603_s3 + $0x8b8] sm:$0xff] }
 0x932   : > { %6854 = vmatpush2.bf16.msra.mxu1 %v5196_v12  ;;  %6814 = vmatprep.subr.bf16.mxu0 %v5061_v32  ;;  %v4533_v12 = vld [vmem:[%s9603_s3 + $0xab8] sm:$0xff] }
 0x933   : > { %6855 = vmatprep.subr.bf16.mxu1 %v5189_v14  ;;  %v5389_v27 = vunpack.c.h.s8.bf16 %v4533_v12 }
 0x935   : > { %6815 = vmatpush2.bf16.msra.mxu0 %v5060_v7  ;;  %v5396_v7 = vunpack.c.l.s8.bf16 %v4540_v0 }
 0x936   : > { %6856 = vmatpush2.bf16.msra.mxu1 %v5188_v15  ;;  %6816 = vmatprep.subr.bf16.mxu0 %v5053_v29 }
 0x937   : > { %6857 = vmatprep.subr.bf16.mxu1 %v5181_v17  ;;  %v5261_v17 = vunpack.c.h.s8.bf16 %v4469_v16 }
 0x939   : > { %6817 = vmatpush2.bf16.msra.mxu0 %v5052_v35  ;;  %v4532_v35 = vld [vmem:[%s9603_s3 + $0xab0] sm:$0xff] }
 0x93a   : > { %6858 = vmatpush2.bf16.msra.mxu1 %v5180_v28  ;;  %6818 = vmatprep.subr.bf16.mxu0 %v5045_v49  ;;  %v5388_v55 = vunpack.c.h.s8.bf16 %v4532_v35 }
 0x93b   : > { %6859 = vmatprep.subr.bf16.mxu1 %v5173_v52  ;;  %v5260_v52 = vunpack.c.h.s8.bf16 %v4468_v26 }
 0x93d   : > { %6819 = vmatpush2.bf16.msra.mxu0 %v5044_v48 }
 0x93e   : > { %6860 = vmatpush2.bf16.msra.mxu1 %v5172_v8  ;;  %6820 = vmatprep.subr.bf16.mxu0 %v5037_v45  ;;  %v5381_v8 = vunpack.c.l.s8.bf16 %v4533_v12  ;;  %v4525_v45 = vld [vmem:[%s9603_s3 + $0xa78] sm:$0xff] }
 0x93f   : > { %6861 = vmatprep.subr.bf16.mxu1 %v5165_v11  ;;  %v5380_v11 = vunpack.c.l.s8.bf16 %v4532_v35  ;;  %v5373_v44 = vunpack.c.h.s8.bf16 %v4525_v45  ;;  %v5365_v30 = vunpack.c.l.s8.bf16 %v4525_v45 }
 0x941   : > { %6821 = vmatpush2.bf16.msra.mxu0 %v5036_v13  ;;  %v4460_v13 = vld [vmem:[%s9603_s3 + $0x870] sm:$0xff] }
 0x942   : > { %6862 = vmatpush2.bf16.msra.mxu1 %v5164_v40  ;;  %6822 = vmatprep.subr.bf16.mxu0 %v5029_v50  ;;  %v4524_v40 = vld [vmem:[%s9603_s3 + $0xa70] sm:$0xff]  ;;  %v5244_v50 = vunpack.c.h.s8.bf16 %v4460_v13 }
 0x943   : > { %6863 = vmatprep.subr.bf16.mxu1 %v5157_v38  ;;  %v5372_v38 = vunpack.c.h.s8.bf16 %v4524_v40 }
 0x945   : > { %6823 = vmatpush2.bf16.msra.mxu0 %v5028_v36  ;;  %v4453_v36 = vld [vmem:[%s9603_s3 + $0x838] sm:$0xff] }
 0x946   : > { %6864 = vmatpush2.bf16.msra.mxu1 %v5156_v10  ;;  %6874 = vmatprep.subr.bf16.mxu0 %v5277_v61  ;;  %v4517_v10 = vld [vmem:[%s9603_s3 + $0xa38] sm:$0xff]  ;;  %v5236_v61 = vunpack.c.l.s8.bf16 %v4460_v13  ;;  %v5229_v54 = vunpack.c.h.s8.bf16 %v4453_v36 }
 0x947   : > { %6915 = vmatprep.subr.bf16.mxu1 %v5405_v62  ;;  %v5364_v62 = vunpack.c.l.s8.bf16 %v4524_v40  ;;  %v5357_v0 = vunpack.c.h.s8.bf16 %v4517_v10  ;;  %v5349_v12 = vunpack.c.l.s8.bf16 %v4517_v10 }
 0x948   : > { %v6580_v32 = vpop.f32.mrf.mxu0  ;;  %6825 = vmatmul.mubr.bf16.vlgmr.msra.gmra.mxu0 %v10607_v3 }
 0x949   : > { %v6621_v14 = vpop.f32.mrf.mxu1  ;;  %6866 = vmatmul.mubr.bf16.vlgmr.msra.gmra.mxu1 %v10611_v19  ;;  %v6581_v51 = vadd.f32 %v6580_v32, %v11101_v57  ;;  %6875 = vmatpush1.bf16.msra.mxu0 %v5276_v20  ;;  %v4452_v20 = vld [vmem:[%s9603_s3 + $0x830] sm:$0xff]  ;;  %v4509_v32 = vld [vmem:[%s9603_s3 + $0x9f8] sm:$0xff] }
 0x94a   : > { %6916 = vmatpush1.bf16.msra.mxu1 %v5404_v4  ;;  %v6582_v15 = vpop.f32.mrf.mxu0  ;;  %6876 = vmatprep.subr.bf16.mxu0 %v5269_v42  ;;  %v4516_v4 = vld [vmem:[%s9603_s3 + $0xa30] sm:$0xff]  ;;  %v5228_v42 = vunpack.c.h.s8.bf16 %v4452_v20  ;;  %v5333_v35 = vunpack.c.l.s8.bf16 %v4509_v32 }
 0x94b   : > { %v6623_v29 = vpop.f32.mrf.mxu1  ;;  %6917 = vmatprep.subr.bf16.mxu1 %v5397_v5  ;;  %v11143_v28 = vadd.f32 %v6621_v14, %v6581_v51  ;;  %v6583_v3 = vadd.f32 %v6582_v15, %v11106_v53  ;;  %6906 = vmatprep.mubr.bf16.mxu0 %v10615_v56  ;;  %v5253_v53 = vunpack.c.l.s8.bf16 %v4469_v16  ;;  %v4461_v56 = vld [vmem:[%s9603_s3 + $0x878] sm:$0xff]  ;;  %v5356_v5 = vunpack.c.h.s8.bf16 %v4516_v4 }
 0x94c   : > { %6947 = vmatprep.mubr.bf16.mxu1 %v10617_v24  ;;  %v6584_v19 = vpop.f32.mrf.mxu0  ;;  %v5252_v24 = vunpack.c.l.s8.bf16 %v4468_v26  ;;  %v5245_v43 = vunpack.c.h.s8.bf16 %v4461_v56  ;;  %v5237_v34 = vunpack.c.l.s8.bf16 %v4461_v56  ;;  %v5221_v16 = vunpack.c.l.s8.bf16 %v4453_v36  ;;  %v4573_v14 = vld [vmem:[%s9603_s3 + $0xbf8] sm:$0xff] }
 0x94d   : > { %v6625_v57 = vpop.f32.mrf.mxu1  ;;  %v11148_v49 = vadd.f32 %v6623_v29, %v6583_v3  ;;  %6877 = vmatpush1.bf16.msra.mxu0 %v5268_v25  ;;  %v5220_v51 = vunpack.c.l.s8.bf16 %v4452_v20  ;;  %v5348_v25 = vunpack.c.l.s8.bf16 %v4516_v4  ;;  %v5469_v15 = vunpack.c.h.s8.bf16 %v4573_v14  ;;  %v4508_v29 = vld [vmem:[%s9603_s3 + $0x9f0] sm:$0xff]  ;;  %v4501_v19 = vld [vmem:[%s9603_s3 + $0x9b8] sm:$0xff] }
 0x94e   : > { %6918 = vmatpush1.bf16.msra.mxu1 %v5396_v7  ;;  %v6585_v63 = vpop.f32.mrf.mxu0  ;;  %6878 = vmatprep.subr.bf16.mxu0 %v5261_v17  ;;  %v5341_v7 = vunpack.c.h.s8.bf16 %v4509_v32  ;;  %v4572_v17 = vld [vmem:[%s9603_s3 + $0xbf0] sm:$0xff]  ;;  %v5461_v3 = vunpack.c.l.s8.bf16 %v4573_v14  ;;  %v4565_v57 = vld [vmem:[%s9603_s3 + $0xbb8] sm:$0xff] }
 0x94f   : > { %v6626_v48 = vpop.f32.mrf.mxu1  ;;  %6919 = vmatprep.subr.bf16.mxu1 %v5389_v27  ;;  %v5340_v27 = vunpack.c.h.s8.bf16 %v4508_v29  ;;  %v5468_v26 = vunpack.c.h.s8.bf16 %v4572_v17  ;;  %v5325_v63 = vunpack.c.h.s8.bf16 %v4501_v19 }
 0x950   : > { %v5453_v48 = vunpack.c.h.s8.bf16 %v4565_v57 }
 0x951   : > { %6879 = vmatpush1.bf16.msra.mxu0 %v5260_v52  ;;  %v5332_v52 = vunpack.c.l.s8.bf16 %v4508_v29 }
 0x952   : > { %6920 = vmatpush1.bf16.msra.mxu1 %v5388_v55  ;;  %6880 = vmatprep.subr.bf16.mxu0 %v5253_v53  ;;  %v5460_v55 = vunpack.c.l.s8.bf16 %v4572_v17  ;;  %v4500_v53 = vld [vmem:[%s9603_s3 + $0x9b0] sm:$0xff] }
 0x953   : > { %6921 = vmatprep.subr.bf16.mxu1 %v5381_v8  ;;  %v4564_v8 = vld [vmem:[%s9603_s3 + $0xbb0] sm:$0xff]  ;;  %v5324_v56 = vunpack.c.h.s8.bf16 %v4500_v53  ;;  %v5316_v13 = vunpack.c.l.s8.bf16 %v4500_v53 }
 0x954   : > { %v5452_v45 = vunpack.c.h.s8.bf16 %v4564_v8  ;;  %v5444_v40 = vunpack.c.l.s8.bf16 %v4564_v8 }
 0x955   : > { %6881 = vmatpush1.bf16.msra.mxu0 %v5252_v24  ;;  %v5317_v24 = vunpack.c.l.s8.bf16 %v4501_v19 }
 0x956   : > { %6922 = vmatpush1.bf16.msra.mxu1 %v5380_v11  ;;  %6882 = vmatprep.subr.bf16.mxu0 %v5245_v43  ;;  %v5445_v11 = vunpack.c.l.s8.bf16 %v4565_v57  ;;  %v4493_v43 = vld [vmem:[%s9603_s3 + $0x978] sm:$0xff] }
 0x957   : > { %6923 = vmatprep.subr.bf16.mxu1 %v5373_v44  ;;  %v4557_v44 = vld [vmem:[%s9603_s3 + $0xb78] sm:$0xff] }
 0x959   : > { %6883 = vmatpush1.bf16.msra.mxu0 %v5244_v50  ;;  %v5309_v50 = vunpack.c.h.s8.bf16 %v4493_v43 }
 0x95a   : > { %6924 = vmatpush1.bf16.msra.mxu1 %v5372_v38  ;;  %6884 = vmatprep.subr.bf16.mxu0 %v5237_v34  ;;  %v5437_v38 = vunpack.c.h.s8.bf16 %v4557_v44  ;;  %v4492_v34 = vld [vmem:[%s9603_s3 + $0x970] sm:$0xff] }
 0x95b   : > { %6925 = vmatprep.subr.bf16.mxu1 %v5365_v30  ;;  %v4556_v30 = vld [vmem:[%s9603_s3 + $0xb70] sm:$0xff]  ;;  %v5308_v36 = vunpack.c.h.s8.bf16 %v4492_v34  ;;  %v5300_v20 = vunpack.c.l.s8.bf16 %v4492_v34 }
 0x95c   : > { %v5436_v10 = vunpack.c.h.s8.bf16 %v4556_v30  ;;  %v5428_v4 = vunpack.c.l.s8.bf16 %v4556_v30 }
 0x95d   : > { %6885 = vmatpush1.bf16.msra.mxu0 %v5236_v61  ;;  %v5301_v61 = vunpack.c.l.s8.bf16 %v4493_v43 }
 0x95e   : > { %6926 = vmatpush1.bf16.msra.mxu1 %v5364_v62  ;;  %6886 = vmatprep.subr.bf16.mxu0 %v5229_v54  ;;  %v5429_v62 = vunpack.c.l.s8.bf16 %v4557_v44  ;;  %v4485_v54 = vld [vmem:[%s9603_s3 + $0x938] sm:$0xff] }
 0x95f   : > { %6927 = vmatprep.subr.bf16.mxu1 %v5357_v0  ;;  %v4549_v0 = vld [vmem:[%s9603_s3 + $0xb38] sm:$0xff] }
 0x961   : > { %6887 = vmatpush1.bf16.msra.mxu0 %v5228_v42  ;;  %v5293_v42 = vunpack.c.h.s8.bf16 %v4485_v54 }
 0x962   : > { %6928 = vmatpush1.bf16.msra.mxu1 %v5356_v5  ;;  %6888 = vmatprep.subr.bf16.mxu0 %v5221_v16  ;;  %v5421_v5 = vunpack.c.h.s8.bf16 %v4549_v0  ;;  %v4484_v16 = vld [vmem:[%s9603_s3 + $0x930] sm:$0xff] }
 0x963   : > { %6929 = vmatprep.subr.bf16.mxu1 %v5349_v12  ;;  %v4548_v12 = vld [vmem:[%s9603_s3 + $0xb30] sm:$0xff]  ;;  %v5292_v32 = vunpack.c.h.s8.bf16 %v4484_v16  ;;  %v5284_v29 = vunpack.c.l.s8.bf16 %v4484_v16 }
 0x964   : > { %v5420_v14 = vunpack.c.h.s8.bf16 %v4548_v12  ;;  %v5412_v17 = vunpack.c.l.s8.bf16 %v4548_v12 }
 0x965   : > { %6889 = vmatpush1.bf16.msra.mxu0 %v5220_v51  ;;  %v5285_v51 = vunpack.c.l.s8.bf16 %v4485_v54  ;;  %v4653_v54 = vld [vmem:[%s9603_s3 + $0xe78] sm:$0xff] }
 0x966   : > { %6930 = vmatpush1.bf16.msra.mxu1 %v5348_v25  ;;  %6890 = vmatprep.subr.bf16.mxu0 %v5341_v7  ;;  %v5413_v25 = vunpack.c.l.s8.bf16 %v4549_v0  ;;  %v4605_v7 = vld [vmem:[%s9603_s3 + $0xcf8] sm:$0xff] }
 0x967   : > { %6931 = vmatprep.subr.bf16.mxu1 %v5469_v15  ;;  %v4669_v15 = vld [vmem:[%s9603_s3 + $0xef8] sm:$0xff] }
 0x969   : > { %6891 = vmatpush2.bf16.msra.mxu0 %v5340_v27  ;;  %v5533_v27 = vunpack.c.h.s8.bf16 %v4605_v7 }
 0x96a   : > { %6932 = vmatpush2.bf16.msra.mxu1 %v5468_v26  ;;  %6892 = vmatprep.subr.bf16.mxu0 %v5333_v35  ;;  %v5661_v26 = vunpack.c.h.s8.bf16 %v4669_v15  ;;  %v4604_v35 = vld [vmem:[%s9603_s3 + $0xcf0] sm:$0xff] }
 0x96b   : > { %6933 = vmatprep.subr.bf16.mxu1 %v5461_v3  ;;  %v4668_v3 = vld [vmem:[%s9603_s3 + $0xef0] sm:$0xff]  ;;  %v5532_v19 = vunpack.c.h.s8.bf16 %v4604_v35 }
 0x96c   : > { %v5660_v57 = vunpack.c.h.s8.bf16 %v4668_v3 }
 0x96d   : > { %6893 = vmatpush2.bf16.msra.mxu0 %v5332_v52  ;;  %v5525_v52 = vunpack.c.l.s8.bf16 %v4605_v7 }
 0x96e   : > { %6934 = vmatpush2.bf16.msra.mxu1 %v5460_v55  ;;  %6894 = vmatprep.subr.bf16.mxu0 %v5325_v63  ;;  %v5653_v55 = vunpack.c.l.s8.bf16 %v4669_v15  ;;  %v4597_v63 = vld [vmem:[%s9603_s3 + $0xcb8] sm:$0xff] }
 0x96f   : > { %6935 = vmatprep.subr.bf16.mxu1 %v5453_v48  ;;  %v4661_v48 = vld [vmem:[%s9603_s3 + $0xeb8] sm:$0xff]  ;;  %v5517_v44 = vunpack.c.h.s8.bf16 %v4597_v63 }
 0x971   : > { %6895 = vmatpush2.bf16.msra.mxu0 %v5324_v56 }
 0x972   : > { %6936 = vmatpush2.bf16.msra.mxu1 %v5452_v45  ;;  %6896 = vmatprep.subr.bf16.mxu0 %v5317_v24  ;;  %v5524_v45 = vunpack.c.l.s8.bf16 %v4604_v35  ;;  %v5652_v24 = vunpack.c.l.s8.bf16 %v4668_v3 }
 0x973   : > { %6937 = vmatprep.subr.bf16.mxu1 %v5445_v11 }
 0x975   : > { %6897 = vmatpush2.bf16.msra.mxu0 %v5316_v13  ;;  %v5645_v13 = vunpack.c.h.s8.bf16 %v4661_v48 }
 0x976   : > { %6938 = vmatpush2.bf16.msra.mxu1 %v5444_v40  ;;  %6898 = vmatprep.subr.bf16.mxu0 %v5309_v50  ;;  %v4596_v40 = vld [vmem:[%s9603_s3 + $0xcb0] sm:$0xff] }
 0x977   : > { %6939 = vmatprep.subr.bf16.mxu1 %v5437_v38  ;;  %v4660_v50 = vld [vmem:[%s9603_s3 + $0xeb0] sm:$0xff]  ;;  %v5516_v30 = vunpack.c.h.s8.bf16 %v4596_v40 }
 0x978   : > { %v5636_v0 = vunpack.c.l.s8.bf16 %v4660_v50 }
 0x979   : > { %6899 = vmatpush2.bf16.msra.mxu0 %v5308_v36  ;;  %v5644_v36 = vunpack.c.h.s8.bf16 %v4660_v50 }
 0x97a   : > { %6940 = vmatpush2.bf16.msra.mxu1 %v5436_v10  ;;  %6900 = vmatprep.subr.bf16.mxu0 %v5301_v61 }
 0x97b   : > { %6941 = vmatprep.subr.bf16.mxu1 %v5429_v62  ;;  %v5637_v62 = vunpack.c.l.s8.bf16 %v4661_v48 }
 0x97d   : > { %6901 = vmatpush2.bf16.msra.mxu0 %v5300_v20 }
 0x97e   : > { %6942 = vmatpush2.bf16.msra.mxu1 %v5428_v4  ;;  %6902 = vmatprep.subr.bf16.mxu0 %v5293_v42  ;;  %v5629_v4 = vunpack.c.h.s8.bf16 %v4653_v54  ;;  %v4588_v42 = vld [vmem:[%s9603_s3 + $0xc70] sm:$0xff] }
 0x97f   : > { %6943 = vmatprep.subr.bf16.mxu1 %v5421_v5  ;;  %v4652_v5 = vld [vmem:[%s9603_s3 + $0xe70] sm:$0xff]  ;;  %v5500_v16 = vunpack.c.h.s8.bf16 %v4588_v42  ;;  %v5492_v7 = vunpack.c.l.s8.bf16 %v4588_v42 }
 0x980   : > { %v5628_v12 = vunpack.c.h.s8.bf16 %v4652_v5  ;;  %v5620_v15 = vunpack.c.l.s8.bf16 %v4652_v5  ;;  %v4620_v42 = vld [vmem:[%s9603_s3 + $0xd70] sm:$0xff] }
 0x981   : > { %6903 = vmatpush2.bf16.msra.mxu0 %v5292_v32  ;;  %v4684_v5 = vld [vmem:[%s9603_s3 + $0xf70] sm:$0xff] }
 0x982   : > { %6944 = vmatpush2.bf16.msra.mxu1 %v5420_v14  ;;  %6904 = vmatprep.subr.bf16.mxu0 %v5285_v51  ;;  %v5621_v14 = vunpack.c.l.s8.bf16 %v4653_v54  ;;  %v4581_v51 = vld [vmem:[%s9603_s3 + $0xc38] sm:$0xff] }
 0x983   : > { %6945 = vmatprep.subr.bf16.mxu1 %v5413_v25  ;;  %v4645_v25 = vld [vmem:[%s9603_s3 + $0xe38] sm:$0xff] }
 0x984   : > { %v4685_v54 = vld [vmem:[%s9603_s3 + $0xf78] sm:$0xff] }
 0x985   : > { %6905 = vmatpush2.bf16.msra.mxu0 %v5284_v29  ;;  %v5485_v29 = vunpack.c.h.s8.bf16 %v4581_v51 }
 0x986   : > { %6946 = vmatpush2.bf16.msra.mxu1 %v5412_v17  ;;  %6956 = vmatprep.subr.bf16.mxu0 %v5533_v27  ;;  %v5613_v17 = vunpack.c.h.s8.bf16 %v4645_v25  ;;  %v4580_v27 = vld [vmem:[%s9603_s3 + $0xc30] sm:$0xff] }
 0x987   : > { %6997 = vmatprep.subr.bf16.mxu1 %v5661_v26  ;;  %v4644_v26 = vld [vmem:[%s9603_s3 + $0xe30] sm:$0xff]  ;;  %v5484_v35 = vunpack.c.h.s8.bf16 %v4580_v27 }
 0x988   : > { %v6662_v53 = vpop.f32.mrf.mxu0  ;;  %6907 = vmatmul.mubr.bf16.vlgmr.msra.gmra.mxu0 %v10668_v22  ;;  %v5612_v3 = vunpack.c.h.s8.bf16 %v4644_v26  ;;  %v5604_v48 = vunpack.c.l.s8.bf16 %v4644_v26 }
 0x989   : > { %v6703_v8 = vpop.f32.mrf.mxu1  ;;  %6948 = vmatmul.mubr.bf16.vlgmr.msra.gmra.mxu1 %v10672_v46  ;;  %v6663_v56 = vadd.f32 %v6662_v53, %v11143_v28  ;;  %6957 = vmatpush1.bf16.msra.mxu0 %v5532_v19  ;;  %v5477_v19 = vunpack.c.l.s8.bf16 %v4581_v51  ;;  %v5692_v51 = vunpack.c.h.s8.bf16 %v4684_v5 }
 0x98a   : > { %6998 = vmatpush1.bf16.msra.mxu1 %v5660_v57  ;;  %v6664_v11 = vpop.f32.mrf.mxu0  ;;  %6958 = vmatprep.subr.bf16.mxu0 %v5525_v52  ;;  %v5605_v57 = vunpack.c.l.s8.bf16 %v4645_v25  ;;  %v4637_v52 = vld [vmem:[%s9603_s3 + $0xdf8] sm:$0xff] }
 0x98b   : > { %v6705_v43 = vpop.f32.mrf.mxu1  ;;  %6999 = vmatprep.subr.bf16.mxu1 %v5653_v55  ;;  %v11185_v38 = vadd.f32 %v6703_v8, %v6663_v56  ;;  %v6665_v22 = vadd.f32 %v6664_v11, %v11148_v49  ;;  %6988 = vmatprep.mubr.bf16.mxu0 %v10676_v21  ;;  %v5509_v49 = vunpack.c.l.s8.bf16 %v4597_v63  ;;  %v4589_v21 = vld [vmem:[%s9603_s3 + $0xc78] sm:$0xff]  ;;  %v5476_v63 = vunpack.c.l.s8.bf16 %v4580_v27  ;;  %v4636_v56 = vld [vmem:[%s9603_s3 + $0xdf0] sm:$0xff] }
 0x98c   : > { %7029 = vmatprep.mubr.bf16.mxu1 %v10678_v33  ;;  %v6666_v46 = vpop.f32.mrf.mxu0  ;;  %v5508_v33 = vunpack.c.l.s8.bf16 %v4596_v40  ;;  %v5501_v20 = vunpack.c.h.s8.bf16 %v4589_v21  ;;  %v5493_v32 = vunpack.c.l.s8.bf16 %v4589_v21  ;;  %v4701_v55 = vld [vmem:[%s9603_s3 + $0xff8] sm:$0xff]  ;;  %v5597_v53 = vunpack.c.h.s8.bf16 %v4637_v52 }
 0x98d   : > { %v6707_v28 = vpop.f32.mrf.mxu1  ;;  %v11190_v34 = vadd.f32 %v6705_v43, %v6665_v22  ;;  %6959 = vmatpush1.bf16.msra.mxu0 %v5524_v45  ;;  %v5725_v8 = vunpack.c.h.s8.bf16 %v4701_v55  ;;  %v4700_v45 = vld [vmem:[%s9603_s3 + $0xff0] sm:$0xff]  ;;  %v5589_v43 = vunpack.c.l.s8.bf16 %v4637_v52  ;;  %v4693_v40 = vld [vmem:[%s9603_s3 + $0xfb8] sm:$0xff]  ;;  %v5588_v50 = vunpack.c.l.s8.bf16 %v4636_v56 }
 0x98e   : > { %7000 = vmatpush1.bf16.msra.mxu1 %v5652_v24  ;;  %v6667_v10 = vpop.f32.mrf.mxu0  ;;  %6960 = vmatprep.subr.bf16.mxu0 %v5517_v44  ;;  %v5596_v24 = vunpack.c.h.s8.bf16 %v4636_v56  ;;  %v5724_v11 = vunpack.c.h.s8.bf16 %v4700_v45  ;;  %v5717_v44 = vunpack.c.l.s8.bf16 %v4701_v55  ;;  %v5716_v22 = vunpack.c.l.s8.bf16 %v4700_v45  ;;  %v4621_v21 = vld [vmem:[%s9603_s3 + $0xd78] sm:$0xff] }
 0x98f   : > { %v6708_v61 = vpop.f32.mrf.mxu1  ;;  %7001 = vmatprep.subr.bf16.mxu1 %v5645_v13  ;;  %v4629_v13 = vld [vmem:[%s9603_s3 + $0xdb8] sm:$0xff]  ;;  %v5709_v28 = vunpack.c.h.s8.bf16 %v4693_v40  ;;  %v5557_v25 = vunpack.c.l.s8.bf16 %v4621_v21 }
 0x990   : > { %v5581_v46 = vunpack.c.h.s8.bf16 %v4629_v13 }
 0x991   : > { %6961 = vmatpush1.bf16.msra.mxu0 %v5516_v30  ;;  %v4628_v30 = vld [vmem:[%s9603_s3 + $0xdb0] sm:$0xff] }
 0x992   : > { %7002 = vmatpush1.bf16.msra.mxu1 %v5644_v36  ;;  %6962 = vmatprep.subr.bf16.mxu0 %v5509_v49  ;;  %v4692_v36 = vld [vmem:[%s9603_s3 + $0xfb0] sm:$0xff]  ;;  %v5580_v10 = vunpack.c.h.s8.bf16 %v4628_v30  ;;  %v5573_v49 = vunpack.c.l.s8.bf16 %v4629_v13 }
 0x993   : > { %7003 = vmatprep.subr.bf16.mxu1 %v5637_v62  ;;  %v5708_v61 = vunpack.c.h.s8.bf16 %v4692_v36  ;;  %v5701_v62 = vunpack.c.l.s8.bf16 %v4693_v40 }
 0x995   : > { %6963 = vmatpush1.bf16.msra.mxu0 %v5508_v33  ;;  %v5572_v33 = vunpack.c.l.s8.bf16 %v4628_v30 }
 0x996   : > { %7004 = vmatpush1.bf16.msra.mxu1 %v5636_v0  ;;  %6964 = vmatprep.subr.bf16.mxu0 %v5501_v20  ;;  %v5700_v0 = vunpack.c.l.s8.bf16 %v4692_v36  ;;  %v5565_v20 = vunpack.c.h.s8.bf16 %v4621_v21 }
 0x997   : > { %7005 = vmatprep.subr.bf16.mxu1 %v5629_v4  ;;  %v5693_v4 = vunpack.c.h.s8.bf16 %v4685_v54 }
 0x999   : > { %6965 = vmatpush1.bf16.msra.mxu0 %v5500_v16  ;;  %v11213_v16 = vld [vmem:[%s9623_s4] ss:$2 sm:$0xff] }
 0x99a   : > { %7006 = vmatpush1.bf16.msra.mxu1 %v5628_v12  ;;  %6966 = vmatprep.subr.bf16.mxu0 %v5493_v32  ;;  %v7047_v12 = vrot.slane %v11213_v16, %v10383_v9  ;;  %v7055_v32 = vrot.slane %v11213_v16, %v10402_v60 }
 0x99b   : > { %7007 = vmatprep.subr.bf16.mxu1 %v5621_v14  ;;  %v5564_v14 = vunpack.c.h.s8.bf16 %v4620_v42 }
 0x99c   : > { %v7081_v27 = vmul.f32 %v7047_v12, %v10858_v59  ;;  %v4676_v59 = vld [vmem:[%s9603_s3 + $0xf30] sm:$0xff] }
 0x99d   : > { %6967 = vmatpush1.bf16.msra.mxu0 %v5492_v7  ;;  %v5685_v7 = vunpack.c.l.s8.bf16 %v4685_v54  ;;  %v5668_v13 = vunpack.c.l.s8.bf16 %v4676_v59  ;;  %v7180_v54 = vld [vmem:[%s9611_s18 + $0x48] sm:$0xff] }
 0x99e   : > { %7008 = vmatpush1.bf16.msra.mxu1 %v5620_v15  ;;  %6968 = vmatprep.subr.bf16.mxu0 %v5485_v29  ;;  %v11220_v15 = vld [vmem:[%s9623_s4 + $0x1] ss:$2 sm:$0xff] }
 0x99f   : > { %7009 = vmatprep.subr.bf16.mxu1 %v5613_v17  ;;  %v4613_v29 = vld [vmem:[%s9603_s3 + $0xd38] sm:$0xff]  ;;  %v7098_v26 = vrot.slane %v11220_v15, %v10383_v9 }
 0x9a0   : > { %v4677_v17 = vld [vmem:[%s9603_s3 + $0xf38] sm:$0xff]  ;;  %v5549_v52 = vunpack.c.h.s8.bf16 %v4613_v29  ;;  %v5541_v56 = vunpack.c.l.s8.bf16 %v4613_v29 }
 0x9a1   : > { %6969 = vmatpush1.bf16.msra.mxu0 %v5484_v35  ;;  %v7083_v35 = vmul.f32 %v7055_v32, %v11024_v2  ;;  %v5677_v55 = vunpack.c.h.s8.bf16 %v4677_v17  ;;  %v5669_v45 = vunpack.c.l.s8.bf16 %v4677_v17 }
 0x9a2   : > { %7010 = vmatpush1.bf16.msra.mxu1 %v5612_v3  ;;  %6970 = vmatprep.subr.bf16.mxu0 %v5477_v19  ;;  %v7106_v3 = vrot.slane %v11220_v15, %v10402_v60  ;;  %v5556_v19 = vunpack.c.l.s8.bf16 %v4620_v42 }
 0x9a3   : > { %7011 = vmatprep.subr.bf16.mxu1 %v5605_v57  ;;  %v5684_v57 = vunpack.c.l.s8.bf16 %v4684_v5 }
 0x9a5   : > { %6971 = vmatpush1.bf16.msra.mxu0 %v5476_v63  ;;  %v4612_v63 = vld [vmem:[%s9603_s3 + $0xd30] sm:$0xff]  ;;  %s8355_s3 = scalar_select %p8354_p6, 1, 0 }
 0x9a6   : > { %7012 = vmatpush1.bf16.msra.mxu1 %v5604_v48  ;;  %6972 = vmatprep.subr.bf16.mxu0 %v5597_v53  ;;  %v7132_v48 = vadd.f32 %v7098_v26, %v7081_v27  ;;  %v7134_v53 = vadd.f32 %v7106_v3, %v7083_v35  ;;  %v5548_v2 = vunpack.c.h.s8.bf16 %v4612_v63 }
 0x9a7   : > { %7013 = vmatprep.subr.bf16.mxu1 %v5725_v8  ;;  %v5676_v8 = vunpack.c.h.s8.bf16 %v4676_v59 }
 0x9a8   : > { %vm7140_vm4 = vcmp.gt.f32.partialorder %v7132_v48, 0.0  ;;  %v7150_v40 = vmul.f32 0.1, %v7134_v53  ;;  %vm7142_vm5 = vcmp.gt.f32.partialorder %v7134_v53, 0.0 }
 0x9a9   : > { %6973 = vmatpush2.bf16.msra.mxu0 %v5596_v24  ;;  %v7184_v24 = vld [vmem:[%s9611_s18 + $0x68] sm:$0xff] }
 0x9aa   : > { %7014 = vmatpush2.bf16.msra.mxu1 %v5724_v11  ;;  %6974 = vmatprep.subr.bf16.mxu0 %v5589_v43  ;;  %v7216_v11 = vld [vmem:[%s9611_s18 + $0x168] sm:$0xff]  ;;  %v7148_v43 = vmul.f32 0.1, %v7132_v48 }
 0x9ab   : > { %7015 = vmatprep.subr.bf16.mxu1 %v5717_v44  ;;  %v5540_v44 = vunpack.c.l.s8.bf16 %v4612_v63  ;;  %v7388_v21 = vunpack.c.l.s8.bf16 %v7216_v11 }
 0x9ac   : > { %v7156_v30 = vsel %vm7140_vm4, %v7132_v48, %v7148_v43  ;;  %v7172_v43 = vld [vmem:[%s9611_s18 + $0x8] sm:$0xff] }
 0x9ad   : > { %6975 = vmatpush2.bf16.msra.mxu0 %v5588_v50  ;;  %v7328_v50 = vunpack.c.h.s8.bf16 %v7184_v24 }
 0x9ae   : > { %7016 = vmatpush2.bf16.msra.mxu1 %v5716_v22  ;;  %6976 = vmatprep.subr.bf16.mxu0 %v5581_v46  ;;  %v7392_v22 = vunpack.c.h.s8.bf16 %v7216_v11  ;;  %v7183_v46 = vld [vmem:[%s9611_s18 + $0x60] sm:$0xff] }
 0x9af   : > { %7017 = vmatprep.subr.bf16.mxu1 %v5709_v28  ;;  %v7215_v28 = vld [vmem:[%s9611_s18 + $0x160] sm:$0xff]  ;;  %v7327_v36 = vunpack.c.h.s8.bf16 %v7183_v46  ;;  %v7323_v5 = vunpack.c.l.s8.bf16 %v7183_v46 }
 0x9b1   : > { %6977 = vmatpush2.bf16.msra.mxu0 %v5580_v10  ;;  %v7158_v10 = vsel %vm7142_vm5, %v7134_v53, %v7150_v40  ;;  %v7175_v53 = vld [vmem:[%s9611_s18 + $0x20] sm:$0xff] }
 0x9b2   : > { %7018 = vmatpush2.bf16.msra.mxu1 %v5708_v61  ;;  %6978 = vmatprep.subr.bf16.mxu0 %v5573_v49  ;;  %v7391_v61 = vunpack.c.h.s8.bf16 %v7215_v28  ;;  %v11236_v49 = vpack.c.bf16 %v7156_v30, %v7156_v30 }
 0x9b3   : > { %7019 = vmatprep.subr.bf16.mxu1 %v5701_v62  ;;  %v7324_v62 = vunpack.c.l.s8.bf16 %v7184_v24 }
 0x9b5   : > { %6979 = vmatpush2.bf16.msra.mxu0 %v5572_v33 }
 0x9b6   : > { %7020 = vmatpush2.bf16.msra.mxu1 %v5700_v0  ;;  %6980 = vmatprep.subr.bf16.mxu0 %v5565_v20  ;;  %v11241_v20 = vpack.c.bf16 %v7158_v10, %v7158_v10  ;;  %v7300_v10 = vunpack.c.l.s8.bf16 %v7172_v43 }
 0x9b7   : > { %7021 = vmatprep.subr.bf16.mxu1 %v5693_v4  ;;  %v7212_v4 = vld [vmem:[%s9611_s18 + $0x148] sm:$0xff] }
 0x9b9   : > { %6981 = vmatpush2.bf16.msra.mxu0 %v5564_v14  ;;  %v7387_v14 = vunpack.c.l.s8.bf16 %v7215_v28  ;;  %v7203_v28 = vld [vmem:[%s9611_s18 + $0x100] sm:$0xff] }
 0x9ba   : > { %7022 = vmatpush2.bf16.msra.mxu1 %v5692_v51  ;;  %6982 = vmatprep.subr.bf16.mxu0 %v5557_v25  ;;  %v7320_v51 = vunpack.c.h.s8.bf16 %v7180_v54 }
 0x9bb   : > { %7023 = vmatprep.subr.bf16.mxu1 %v5685_v7  ;;  %v7211_v7 = vld [vmem:[%s9611_s18 + $0x140] sm:$0xff] }
 0x9bc   : > { %v7383_v3 = vunpack.c.h.s8.bf16 %v7211_v7  ;;  %v7379_v59 = vunpack.c.l.s8.bf16 %v7211_v7  ;;  %v7228_v7 = vld [vmem:[%s9611_s18 + $0x1c8] sm:$0xff] }
 0x9bd   : > { %6983 = vmatpush2.bf16.msra.mxu0 %v5556_v19  ;;  %v7316_v19 = vunpack.c.l.s8.bf16 %v7180_v54 }
 0x9be   : > { %7024 = vmatpush2.bf16.msra.mxu1 %v5684_v57  ;;  %6984 = vmatprep.subr.bf16.mxu0 %v5549_v52  ;;  %v7380_v57 = vunpack.c.l.s8.bf16 %v7212_v4  ;;  %v7176_v52 = vld [vmem:[%s9611_s18 + $0x28] sm:$0xff] }
 0x9bf   : > { %7025 = vmatprep.subr.bf16.mxu1 %v5677_v55  ;;  %v7208_v55 = vld [vmem:[%s9611_s18 + $0x128] sm:$0xff]  ;;  %v7312_v48 = vunpack.c.h.s8.bf16 %v7176_v52  ;;  %v7308_v24 = vunpack.c.l.s8.bf16 %v7176_v52 }
 0x9c0   : > { %v7372_v11 = vunpack.c.l.s8.bf16 %v7208_v55 }
 0x9c1   : > { %6985 = vmatpush2.bf16.msra.mxu0 %v5548_v2  ;;  %v7376_v2 = vunpack.c.h.s8.bf16 %v7208_v55  ;;  %v7412_v55 = vunpack.c.l.s8.bf16 %v7228_v7 }
 0x9c2   : > { %7026 = vmatpush2.bf16.msra.mxu1 %v5676_v8  ;;  %6986 = vmatprep.subr.bf16.mxu0 %v5541_v56  ;;  %v7207_v8 = vld [vmem:[%s9611_s18 + $0x120] sm:$0xff]  ;;  %v7311_v56 = vunpack.c.h.s8.bf16 %v7175_v53 }
 0x9c3   : > { %7027 = vmatprep.subr.bf16.mxu1 %v5669_v45  ;;  %v7375_v45 = vunpack.c.h.s8.bf16 %v7207_v8  ;;  %v7371_v40 = vunpack.c.l.s8.bf16 %v7207_v8  ;;  %v7191_v8 = vld [vmem:[%s9611_s18 + $0xa0] sm:$0xff] }
 0x9c5   : > { %6987 = vmatpush2.bf16.msra.mxu0 %v5540_v44  ;;  %v7204_v44 = vld [vmem:[%s9611_s18 + $0x108] sm:$0xff] }
 0x9c6   : > { %7028 = vmatpush2.bf16.msra.mxu1 %v5668_v13  ;;  %7555 = vmatprep.subr.bf16.mxu0 %v7328_v50  ;;  %v7307_v13 = vunpack.c.l.s8.bf16 %v7175_v53  ;;  %v7304_v50 = vunpack.c.h.s8.bf16 %v7172_v43  ;;  %v7368_v46 = vunpack.c.h.s8.bf16 %v7204_v44  ;;  %v7063_v43 = vrot.slane %v11213_v16, %v10447_v58 }
 0x9c7   : > { %7596 = vmatprep.subr.bf16.mxu1 %v7392_v22  ;;  %v7171_v22 = vld [vmem:[%s9611_s18] sm:$0xff] }
 0x9c8   : > { %v6744_v33 = vpop.f32.mrf.mxu0  ;;  %6989 = vmatmul.mubr.bf16.vlgmr.msra.gmra.mxu0 %v10716_v37  ;;  %v7179_v37 = vld [vmem:[%s9611_s18 + $0x40] sm:$0xff]  ;;  %v7303_v30 = vunpack.c.h.s8.bf16 %v7171_v22  ;;  %v7299_v54 = vunpack.c.l.s8.bf16 %v7171_v22  ;;  %v7094_v22 = vrot.slane %v11220_v15, %v10378_v6 }
 0x9c9   : > { %v6785_v0 = vpop.f32.mrf.mxu1  ;;  %7030 = vmatmul.mubr.bf16.vlgmr.msra.gmra.mxu1 %v10720_v41  ;;  %7556 = vmatpush1.bf16.msra.mxu0 %v7327_v36  ;;  %v7384_v41 = vunpack.c.h.s8.bf16 %v7212_v4  ;;  %v7319_v27 = vunpack.c.h.s8.bf16 %v7179_v37  ;;  %v7315_v63 = vunpack.c.l.s8.bf16 %v7179_v37  ;;  %v7367_v36 = vunpack.c.h.s8.bf16 %v7203_v28  ;;  %v7199_v4 = vld [vmem:[%s9611_s18 + $0xe0] sm:$0xff] }
 0x9ca   : > { %v11244_v42 = vadd.f32 %v6785_v0, %v6744_v33  ;;  %7587 = vmatprep.mubr.bf16.mxu0 %v11236_v49  ;;  %7597 = vmatpush1.bf16.msra.mxu1 %v7391_v61  ;;  %v6746_v12 = vpop.f32.mrf.mxu0  ;;  %v7364_v61 = vunpack.c.l.s8.bf16 %v7204_v44  ;;  %v7363_v33 = vunpack.c.l.s8.bf16 %v7203_v28  ;;  %v7343_v44 = vunpack.c.h.s8.bf16 %v7191_v8  ;;  %v7188_v28 = vld [vmem:[%s9611_s18 + $0x88] sm:$0xff] }
 0x9cb   : > { %7628 = vmatprep.mubr.bf16.mxu1 %v11241_v20  ;;  %v6787_v32 = vpop.f32.mrf.mxu1  ;;  %7557 = vmatprep.subr.bf16.mxu0 %v7324_v62  ;;  %v7200_v62 = vld [vmem:[%s9611_s18 + $0xe8] sm:$0xff] }
 0x9cc   : > { %v11249_v25 = vadd.f32 %v6787_v32, %v6746_v12  ;;  %7598 = vmatprep.subr.bf16.mxu1 %v7388_v21  ;;  %v6748_v29 = vpop.f32.mrf.mxu0  ;;  %v7232_v21 = vld [vmem:[%s9611_s18 + $0x1e8] sm:$0xff]  ;;  %v7360_v0 = vunpack.c.h.s8.bf16 %v7200_v62  ;;  %v7231_v12 = vld [vmem:[%s9611_s18 + $0x1e0] sm:$0xff]  ;;  %v7359_v32 = vunpack.c.h.s8.bf16 %v7199_v4 }
 0x9cd   : > { %v6789_v17 = vpop.f32.mrf.mxu1  ;;  %7558 = vmatpush1.bf16.msra.mxu0 %v7323_v5  ;;  %v7424_v5 = vunpack.c.h.s8.bf16 %v7232_v21  ;;  %v7420_v37 = vunpack.c.l.s8.bf16 %v7232_v21  ;;  %v7355_v29 = vunpack.c.l.s8.bf16 %v7199_v4  ;;  %v7219_v4 = vld [vmem:[%s9611_s18 + $0x180] sm:$0xff] }
 0x9ce   : > { %7599 = vmatpush1.bf16.msra.mxu1 %v7387_v14  ;;  %v6749_v26 = vpop.f32.mrf.mxu0  ;;  %7559 = vmatprep.subr.bf16.mxu0 %v7320_v51  ;;  %v7423_v14 = vunpack.c.h.s8.bf16 %v7231_v12  ;;  %v7356_v51 = vunpack.c.l.s8.bf16 %v7200_v62  ;;  %v7419_v17 = vunpack.c.l.s8.bf16 %v7231_v12  ;;  %v7114_v62 = vrot.slane %v11220_v15, %v10447_v58 }
 0x9cf   : > { %v6790_v35 = vpop.f32.mrf.mxu1  ;;  %7600 = vmatprep.subr.bf16.mxu1 %v7384_v41  ;;  %v7196_v41 = vld [vmem:[%s9611_s18 + $0xc8] sm:$0xff]  ;;  %v7195_v26 = vld [vmem:[%s9611_s18 + $0xc0] sm:$0xff]  ;;  %v7399_v58 = vunpack.c.h.s8.bf16 %v7219_v4 }
 0x9d0   : > { %v7416_v35 = vunpack.c.h.s8.bf16 %v7228_v7  ;;  %v7348_v52 = vunpack.c.l.s8.bf16 %v7196_v41  ;;  %v7280_v7 = vld [vmem:[%s9611_s18 + $0x368] sm:$0xff] }
 0x9d1   : > { %7560 = vmatpush1.bf16.msra.mxu0 %v7319_v27  ;;  %v7352_v27 = vunpack.c.h.s8.bf16 %v7196_v41 }
 0x9d2   : > { %7601 = vmatpush1.bf16.msra.mxu1 %v7383_v3  ;;  %7561 = vmatprep.subr.bf16.mxu0 %v7316_v19  ;;  %v7227_v3 = vld [vmem:[%s9611_s18 + $0x1c0] sm:$0xff]  ;;  %v7351_v19 = vunpack.c.h.s8.bf16 %v7195_v26 }
 0x9d3   : > { %7602 = vmatprep.subr.bf16.mxu1 %v7380_v57  ;;  %v7415_v57 = vunpack.c.h.s8.bf16 %v7227_v3  ;;  %v7411_v53 = vunpack.c.l.s8.bf16 %v7227_v3 }
 0x9d5   : > { %7562 = vmatpush1.bf16.msra.mxu0 %v7315_v63  ;;  %v7192_v63 = vld [vmem:[%s9611_s18 + $0xa8] sm:$0xff] }
 0x9d6   : > { %7603 = vmatpush1.bf16.msra.mxu1 %v7379_v59  ;;  %7563 = vmatprep.subr.bf16.mxu0 %v7312_v48  ;;  %v7224_v59 = vld [vmem:[%s9611_s18 + $0x1a8] sm:$0xff]  ;;  %v7347_v48 = vunpack.c.l.s8.bf16 %v7195_v26 }
 0x9d7   : > { %7604 = vmatprep.subr.bf16.mxu1 %v7376_v2  ;;  %v7344_v2 = vunpack.c.h.s8.bf16 %v7192_v63 }
 0x9d9   : > { %7564 = vmatpush1.bf16.msra.mxu0 %v7311_v56  ;;  %v7043_v56 = vrot.slane %v11213_v16, %v10378_v6 }
 0x9da   : > { %7605 = vmatpush1.bf16.msra.mxu1 %v7375_v45  ;;  %7565 = vmatprep.subr.bf16.mxu0 %v7308_v24  ;;  %v7408_v45 = vunpack.c.h.s8.bf16 %v7224_v59  ;;  %v7223_v24 = vld [vmem:[%s9611_s18 + $0x1a0] sm:$0xff] }
 0x9db   : > { %7606 = vmatprep.subr.bf16.mxu1 %v7372_v11  ;;  %v7051_v11 = vrot.slane %v11213_v16, %v10386_v39  ;;  %v7403_v21 = vunpack.c.l.s8.bf16 %v7223_v24 }
 0x9dd   : > { %7566 = vmatpush1.bf16.msra.mxu0 %v7307_v13  ;;  %v7407_v13 = vunpack.c.h.s8.bf16 %v7223_v24 }
 0x9de   : > { %7607 = vmatpush1.bf16.msra.mxu1 %v7371_v40  ;;  %7567 = vmatprep.subr.bf16.mxu0 %v7304_v50  ;;  %v7340_v40 = vunpack.c.l.s8.bf16 %v7192_v63  ;;  %v7080_v50 = vmul.f32 %v7043_v56, %v10853_v23  ;;  %v7339_v23 = vunpack.c.l.s8.bf16 %v7191_v8 }
 0x9df   : > { %7608 = vmatprep.subr.bf16.mxu1 %v7368_v46  ;;  %v7404_v46 = vunpack.c.l.s8.bf16 %v7224_v59 }
 0x9e1   : > { %7568 = vmatpush1.bf16.msra.mxu0 %v7303_v30  ;;  %v7082_v30 = vmul.f32 %v7051_v11, %v11019_v47  ;;  %v7516_v11 = vunpack.c.l.s8.bf16 %v7280_v7 }
 0x9e2   : > { %7609 = vmatpush1.bf16.msra.mxu1 %v7367_v36  ;;  %7569 = vmatprep.subr.bf16.mxu0 %v7300_v10  ;;  %v7102_v36 = vrot.slane %v11220_v15, %v10386_v39  ;;  %v7220_v10 = vld [vmem:[%s9611_s18 + $0x188] sm:$0xff] }
 0x9e3   : > { %7610 = vmatprep.subr.bf16.mxu1 %v7364_v61  ;;  %v7085_v61 = vmul.f32 %v7063_v43, %v11190_v34  ;;  %v7400_v47 = vunpack.c.h.s8.bf16 %v7220_v10 }
 0x9e5   : > { %7570 = vmatpush1.bf16.msra.mxu0 %v7299_v54  ;;  %v7336_v54 = vunpack.c.h.s8.bf16 %v7188_v28  ;;  %v7136_v12 = vadd.f32 %v7114_v62, %v7085_v61  ;;  %v7275_v62 = vld [vmem:[%s9611_s18 + $0x340] sm:$0xff] }
 0x9e6   : > { %7611 = vmatpush1.bf16.msra.mxu1 %v7363_v33  ;;  %7571 = vmatprep.subr.bf16.mxu0 %v7360_v0  ;;  %v7187_v33 = vld [vmem:[%s9611_s18 + $0x80] sm:$0xff]  ;;  %v7131_v0 = vadd.f32 %v7094_v22, %v7080_v50 }
 0x9e7   : > { %7612 = vmatprep.subr.bf16.mxu1 %v7424_v5  ;;  %v7133_v5 = vadd.f32 %v7102_v36, %v7082_v30  ;;  %v7335_v34 = vunpack.c.h.s8.bf16 %v7187_v33  ;;  %vm7144_vm8 = vcmp.gt.f32.partialorder %v7136_v12, 0.0 }
 0x9e8   : > { %vm7139_vm6 = vcmp.gt.f32.partialorder %v7131_v0, 0.0 }
 0x9e9   : > { %7572 = vmatpush2.bf16.msra.mxu0 %v7359_v32  ;;  %v7332_v32 = vunpack.c.l.s8.bf16 %v7188_v28  ;;  %v7149_v41 = vmul.f32 0.1, %v7133_v5  ;;  %vm7141_vm7 = vcmp.gt.f32.partialorder %v7133_v5, 0.0 }
 0x9ea   : > { %7613 = vmatpush2.bf16.msra.mxu1 %v7423_v14  ;;  %7573 = vmatprep.subr.bf16.mxu0 %v7356_v51  ;;  %v7147_v14 = vmul.f32 0.1, %v7131_v0  ;;  %v7396_v51 = vunpack.c.l.s8.bf16 %v7220_v10 }
 0x9eb   : > { %7614 = vmatprep.subr.bf16.mxu1 %v7420_v37  ;;  %v7248_v37 = vld [vmem:[%s9611_s18 + $0x268] sm:$0xff] }
 0x9ec   : > { %v7456_v26 = vunpack.c.h.s8.bf16 %v7248_v37  ;;  %v7155_v3 = vsel %vm7139_vm6, %v7131_v0, %v7147_v14 }
 0x9ed   : > { %7574 = vmatpush2.bf16.msra.mxu0 %v7355_v29  ;;  %v7331_v29 = vunpack.c.l.s8.bf16 %v7187_v33  ;;  %v11295_v59 = vpack.c.bf16 %v7155_v3, %v7155_v3  ;;  %v7235_v3 = vld [vmem:[%s9611_s18 + $0x200] sm:$0xff] }
 0x9ee   : > { %7615 = vmatpush2.bf16.msra.mxu1 %v7419_v17  ;;  %7575 = vmatprep.subr.bf16.mxu0 %v7352_v27  ;;  %v7152_v17 = vmul.f32 0.1, %v7136_v12  ;;  %v7395_v27 = vunpack.c.l.s8.bf16 %v7219_v4 }
 0x9ef   : > { %7616 = vmatprep.subr.bf16.mxu1 %v7416_v35  ;;  %v7247_v35 = vld [vmem:[%s9611_s18 + $0x260] sm:$0xff] }
 0x9f0   : > { %v7160_v63 = vsel %vm7144_vm8, %v7136_v12, %v7152_v17  ;;  %v7272_v12 = vld [vmem:[%s9611_s18 + $0x328] sm:$0xff] }
 0x9f1   : > { %7576 = vmatpush2.bf16.msra.mxu0 %v7351_v19  ;;  %v7520_v19 = vunpack.c.h.s8.bf16 %v7280_v7  ;;  %v11301_v24 = vpack.c.bf16 %v7160_v63, %v7160_v63  ;;  %v7504_v14 = vunpack.c.h.s8.bf16 %v7272_v12  ;;  %v7236_v7 = vld [vmem:[%s9611_s18 + $0x208] sm:$0xff]  ;;  %v7500_v17 = vunpack.c.l.s8.bf16 %v7272_v12 }
 0x9f2   : > { %7617 = vmatpush2.bf16.msra.mxu1 %v7415_v57  ;;  %7577 = vmatprep.subr.bf16.mxu0 %v7348_v52  ;;  %v7157_v57 = vsel %vm7141_vm7, %v7133_v5, %v7149_v41  ;;  %v7279_v52 = vld [vmem:[%s9611_s18 + $0x360] sm:$0xff]  ;;  %v7428_v63 = vunpack.c.l.s8.bf16 %v7236_v7 }
 0x9f3   : > { %7618 = vmatprep.subr.bf16.mxu1 %v7412_v55  ;;  %v7455_v55 = vunpack.c.h.s8.bf16 %v7247_v35  ;;  %v7519_v8 = vunpack.c.h.s8.bf16 %v7279_v52 }
 0x9f5   : > { %7578 = vmatpush2.bf16.msra.mxu0 %v7347_v48  ;;  %v7452_v48 = vunpack.c.l.s8.bf16 %v7248_v37 }
 0x9f6   : > { %7619 = vmatpush2.bf16.msra.mxu1 %v7411_v53  ;;  %7579 = vmatprep.subr.bf16.mxu0 %v7344_v2  ;;  %v11297_v53 = vpack.c.bf16 %v7157_v57, %v7157_v57  ;;  %v7244_v2 = vld [vmem:[%s9611_s18 + $0x248] sm:$0xff] }
 0x9f7   : > { %7620 = vmatprep.subr.bf16.mxu1 %v7408_v45  ;;  %v7448_v22 = vunpack.c.h.s8.bf16 %v7244_v2  ;;  %v7444_v0 = vunpack.c.l.s8.bf16 %v7244_v2 }
 0x9f9   : > { %7580 = vmatpush2.bf16.msra.mxu0 %v7343_v44  ;;  %v7451_v44 = vunpack.c.l.s8.bf16 %v7247_v35  ;;  %v7432_v35 = vunpack.c.h.s8.bf16 %v7236_v7 }
 0x9fa   : > { %7621 = vmatpush2.bf16.msra.mxu1 %v7407_v13  ;;  %7581 = vmatprep.subr.bf16.mxu0 %v7340_v40  ;;  %v7276_v13 = vld [vmem:[%s9611_s18 + $0x348] sm:$0xff] }
 0x9fb   : > { %7622 = vmatprep.subr.bf16.mxu1 %v7404_v46  ;;  %v7243_v46 = vld [vmem:[%s9611_s18 + $0x240] sm:$0xff]  ;;  %v7512_v61 = vunpack.c.h.s8.bf16 %v7276_v13  ;;  %v7508_v4 = vunpack.c.l.s8.bf16 %v7276_v13 }
 0x9fc   : > { %v7443_v5 = vunpack.c.l.s8.bf16 %v7243_v46 }
 0x9fd   : > { %7582 = vmatpush2.bf16.msra.mxu0 %v7339_v23 }
 0x9fe   : > { %7623 = vmatpush2.bf16.msra.mxu1 %v7403_v21  ;;  %7583 = vmatprep.subr.bf16.mxu0 %v7336_v54  ;;  %v7447_v21 = vunpack.c.h.s8.bf16 %v7243_v46  ;;  %v7260_v46 = vld [vmem:[%s9611_s18 + $0x2c8] sm:$0xff] }
 0x9ff   : > { %7624 = vmatprep.subr.bf16.mxu1 %v7400_v47  ;;  %v7240_v47 = vld [vmem:[%s9611_s18 + $0x228] sm:$0xff] }
 0xa00   : > { %v7436_v41 = vunpack.c.l.s8.bf16 %v7240_v47 }
 0xa01   : > { %7584 = vmatpush2.bf16.msra.mxu0 %v7335_v34  ;;  %v7440_v34 = vunpack.c.h.s8.bf16 %v7240_v47  ;;  %v7476_v47 = vunpack.c.l.s8.bf16 %v7260_v46 }
 0xa02   : > { %7625 = vmatpush2.bf16.msra.mxu1 %v7399_v58  ;;  %7585 = vmatprep.subr.bf16.mxu0 %v7332_v32  ;;  %v7239_v58 = vld [vmem:[%s9611_s18 + $0x220] sm:$0xff]  ;;  %v7507_v32 = vunpack.c.l.s8.bf16 %v7275_v62 }
 0xa03   : > { %7626 = vmatprep.subr.bf16.mxu1 %v7396_v51  ;;  %v7271_v51 = vld [vmem:[%s9611_s18 + $0x320] sm:$0xff]  ;;  %v7439_v37 = vunpack.c.h.s8.bf16 %v7239_v58 }
 0xa05   : > { %7586 = vmatpush2.bf16.msra.mxu0 %v7331_v29  ;;  %v7503_v29 = vunpack.c.h.s8.bf16 %v7271_v51 }
 0xa06   : > { %7627 = vmatpush2.bf16.msra.mxu1 %v7395_v27  ;;  %7637 = vmatprep.subr.bf16.mxu0 %v7456_v26  ;;  %v7435_v27 = vunpack.c.l.s8.bf16 %v7239_v58  ;;  %v7268_v26 = vld [vmem:[%s9611_s18 + $0x308] sm:$0xff] }
 0xa07   : > { %7678 = vmatprep.subr.bf16.mxu1 %v7520_v19  ;;  %v7499_v19 = vunpack.c.l.s8.bf16 %v7271_v51  ;;  %v7496_v57 = vunpack.c.h.s8.bf16 %v7268_v26 }
 0xa08   : > { %v6826_v56 = vpop.f32.mrf.mxu0  ;;  %7588 = vmatmul.mubr.bf16.vlgmr.msra.gmra.mxu0 %v11295_v59 }
 0xa09   : > { %v6867_v45 = vpop.f32.mrf.mxu1  ;;  %v6827_v43 = vadd.f32 %v6826_v56, %v11244_v42  ;;  %7629 = vmatmul.mubr.bf16.vlgmr.msra.gmra.mxu1 %v11297_v53  ;;  %7638 = vmatpush1.bf16.msra.mxu0 %v7455_v55  ;;  %v7515_v42 = vunpack.c.l.s8.bf16 %v7279_v52  ;;  %v7267_v52 = vld [vmem:[%s9611_s18 + $0x300] sm:$0xff]  ;;  %v7431_v55 = vunpack.c.h.s8.bf16 %v7235_v3  ;;  %v7427_v56 = vunpack.c.l.s8.bf16 %v7235_v3 }
 0xa0a   : > { %7669 = vmatprep.mubr.bf16.mxu0 %v11301_v24  ;;  %v6828_v40 = vpop.f32.mrf.mxu0  ;;  %7639 = vmatprep.subr.bf16.mxu0 %v7452_v48  ;;  %v7264_v48 = vld [vmem:[%s9611_s18 + $0x2e8] sm:$0xff]  ;;  %v7495_v2 = vunpack.c.h.s8.bf16 %v7267_v52 }
 0xa0b   : > { %v6869_v50 = vpop.f32.mrf.mxu1  ;;  %v11308_v28 = vadd.f32 %v6867_v45, %v6827_v43  ;;  %v6829_v30 = vadd.f32 %v6828_v40, %v11249_v25  ;;  %7679 = vmatpush1.bf16.msra.mxu1 %v7519_v8  ;;  %v7511_v25 = vunpack.c.h.s8.bf16 %v7275_v62  ;;  %v7492_v8 = vunpack.c.l.s8.bf16 %v7268_v26  ;;  %v7296_v45 = vld [vmem:[%s9611_s18 + $0x3e8] sm:$0xff]  ;;  %v7263_v43 = vld [vmem:[%s9611_s18 + $0x2e0] sm:$0xff] }
 0xa0c   : > { %v6830_v36 = vpop.f32.mrf.mxu0  ;;  %7680 = vmatprep.subr.bf16.mxu1 %v7516_v11  ;;  %v7488_v11 = vunpack.c.h.s8.bf16 %v7264_v48  ;;  %v7552_v13 = vunpack.c.h.s8.bf16 %v7296_v45  ;;  %v7295_v40 = vld [vmem:[%s9611_s18 + $0x3e0] sm:$0xff]  ;;  %v7252_v26 = vld [vmem:[%s9611_s18 + $0x288] sm:$0xff] }
 0xa0d   : > { %v6871_v10 = vpop.f32.mrf.mxu1  ;;  %v11312_v23 = vadd.f32 %v6869_v50, %v6829_v30  ;;  %7640 = vmatpush1.bf16.msra.mxu0 %v7451_v44  ;;  %v7491_v44 = vunpack.c.l.s8.bf16 %v7267_v52  ;;  %v7487_v50 = vunpack.c.h.s8.bf16 %v7263_v43  ;;  %v7551_v30 = vunpack.c.h.s8.bf16 %v7295_v40  ;;  %v7259_v62 = vld [vmem:[%s9611_s18 + $0x2c0] sm:$0xff] }
 0xa0e   : > { %v6831_v54 = vpop.f32.mrf.mxu0  ;;  %7641 = vmatprep.subr.bf16.mxu0 %v7448_v22  ;;  %v7484_v22 = vunpack.c.l.s8.bf16 %v7264_v48  ;;  %v7483_v36 = vunpack.c.l.s8.bf16 %v7263_v43  ;;  %v7292_v10 = vld [vmem:[%s9611_s18 + $0x3c8] sm:$0xff]  ;;  %v7475_v12 = vunpack.c.l.s8.bf16 %v7259_v62  ;;  %v7251_v52 = vld [vmem:[%s9611_s18 + $0x280] sm:$0xff]  ;;  %v7460_v48 = vunpack.c.l.s8.bf16 %v7252_v26  ;;  %v11345_v43 = vld [vmem:[%s9611_s18 + $0x178] sm:$0xff] }
 0xa0f   : > { %v6872_v33 = vpop.f32.mrf.mxu1  ;;  %7681 = vmatpush1.bf16.msra.mxu1 %v7515_v42  ;;  %v7548_v42 = vunpack.c.l.s8.bf16 %v7296_v45  ;;  %v7544_v54 = vunpack.c.h.s8.bf16 %v7292_v10 }
 0xa10   : > { %7682 = vmatprep.subr.bf16.mxu1 %v7512_v61  ;;  %v7480_v61 = vunpack.c.h.s8.bf16 %v7260_v46  ;;  %v7291_v33 = vld [vmem:[%s9611_s18 + $0x3c0] sm:$0xff] }
 0xa11   : > { %7642 = vmatpush1.bf16.msra.mxu0 %v7447_v21  ;;  %v7547_v21 = vunpack.c.l.s8.bf16 %v7295_v40  ;;  %v7539_v51 = vunpack.c.l.s8.bf16 %v7291_v33 }
 0xa12   : > { %7643 = vmatprep.subr.bf16.mxu0 %v7444_v0  ;;  %v7479_v0 = vunpack.c.h.s8.bf16 %v7259_v62 }
 0xa13   : > { %7683 = vmatpush1.bf16.msra.mxu1 %v7511_v25  ;;  %v7256_v25 = vld [vmem:[%s9611_s18 + $0x2a8] sm:$0xff] }
 0xa14   : > { %7684 = vmatprep.subr.bf16.mxu1 %v7508_v4  ;;  %v7543_v4 = vunpack.c.h.s8.bf16 %v7291_v33  ;;  %v7472_v58 = vunpack.c.h.s8.bf16 %v7256_v25 }
 0xa15   : > { %7644 = vmatpush1.bf16.msra.mxu0 %v7443_v5  ;;  %v7540_v5 = vunpack.c.l.s8.bf16 %v7292_v10 }
 0xa16   : > { %7645 = vmatprep.subr.bf16.mxu0 %v7440_v34  ;;  %v7288_v34 = vld [vmem:[%s9611_s18 + $0x3a8] sm:$0xff] }
 0xa17   : > { %7685 = vmatpush1.bf16.msra.mxu1 %v7507_v32  ;;  %v7255_v32 = vld [vmem:[%s9611_s18 + $0x2a0] sm:$0xff] }
 0xa18   : > { %7686 = vmatprep.subr.bf16.mxu1 %v7504_v14  ;;  %v7059_v14 = vrot.slane %v11213_v16, %v10444_v18  ;;  %v7471_v7 = vunpack.c.h.s8.bf16 %v7255_v32  ;;  %v7467_v3 = vunpack.c.l.s8.bf16 %v7255_v32 }
 0xa19   : > { %7646 = vmatpush1.bf16.msra.mxu0 %v7439_v37  ;;  %v7536_v37 = vunpack.c.h.s8.bf16 %v7288_v34 }
 0xa1a   : > { %7647 = vmatprep.subr.bf16.mxu0 %v7436_v41  ;;  %v7287_v41 = vld [vmem:[%s9611_s18 + $0x3a0] sm:$0xff] }
 0xa1b   : > { %7687 = vmatpush1.bf16.msra.mxu1 %v7503_v29  ;;  %v7468_v29 = vunpack.c.l.s8.bf16 %v7256_v25  ;;  %v7535_v16 = vunpack.c.h.s8.bf16 %v7287_v41 }
 0xa1c   : > { %7688 = vmatprep.subr.bf16.mxu1 %v7500_v17  ;;  %v7084_v17 = vmul.f32 %v7059_v14, %v11185_v38 }
 0xa1d   : > { %7648 = vmatpush1.bf16.msra.mxu0 %v7435_v27  ;;  %v7110_v27 = vrot.slane %v11220_v15, %v10444_v18  ;;  %v7283_v18 = vld [vmem:[%s9611_s18 + $0x380] sm:$0xff]  ;;  %v7463_v15 = vunpack.c.h.s8.bf16 %v7251_v52 }
 0xa1e   : > { %7649 = vmatprep.subr.bf16.mxu0 %v7432_v35  ;;  %v7532_v35 = vunpack.c.l.s8.bf16 %v7288_v34 }
 0xa1f   : > { %7689 = vmatpush1.bf16.msra.mxu1 %v7499_v19  ;;  %v7284_v19 = vld [vmem:[%s9611_s18 + $0x388] sm:$0xff] }
 0xa20   : > { %7690 = vmatprep.subr.bf16.mxu1 %v7496_v57  ;;  %v7464_v57 = vunpack.c.h.s8.bf16 %v7252_v26  ;;  %v7528_v38 = vunpack.c.h.s8.bf16 %v7284_v19  ;;  %v7524_v45 = vunpack.c.l.s8.bf16 %v7284_v19 }
 0xa21   : > { %7650 = vmatpush1.bf16.msra.mxu0 %v7431_v55  ;;  %v7135_v55 = vadd.f32 %v7110_v27, %v7084_v17  ;;  %v7173_v27 = vld [vmem:[%s9611_s18 + $0x10] sm:$0xff] }
 0xa22   : > { %7651 = vmatprep.subr.bf16.mxu0 %v7428_v63  ;;  %v7531_v63 = vunpack.c.l.s8.bf16 %v7287_v41  ;;  %v7305_v26 = vunpack.c.h.s8.bf16 %v7173_v27 }
 0xa23   : > { %7691 = vmatpush1.bf16.msra.mxu1 %v7495_v2  ;;  %v7151_v2 = vmul.f32 0.1, %v7135_v55  ;;  %vm7143_vm9 = vcmp.gt.f32.partialorder %v7135_v55, 0.0 }
 0xa24   : > { %7692 = vmatprep.subr.bf16.mxu1 %v7492_v8  ;;  %v7186_v8 = vld [vmem:[%s9611_s18 + $0x78] sm:$0xff] }
 0xa25   : > { %7652 = vmatpush1.bf16.msra.mxu0 %v7427_v56  ;;  %v7527_v56 = vunpack.c.h.s8.bf16 %v7283_v18  ;;  %v7159_v40 = vsel %vm7143_vm9, %v7135_v55, %v7151_v2 }
 0xa26   : > { %7653 = vmatprep.subr.bf16.mxu0 %v7488_v11  ;;  %v7459_v11 = vunpack.c.l.s8.bf16 %v7251_v52 }
 0xa27   : > { %7693 = vmatpush1.bf16.msra.mxu1 %v7491_v44  ;;  %v7330_v44 = vunpack.c.h.s8.bf16 %v7186_v8 }
 0xa28   : > { %7694 = vmatprep.subr.bf16.mxu1 %v7552_v13  ;;  %v7185_v13 = vld [vmem:[%s9611_s18 + $0x70] sm:$0xff] }
 0xa29   : > { %7654 = vmatpush2.bf16.msra.mxu0 %v7487_v50  ;;  %v7523_v50 = vunpack.c.l.s8.bf16 %v7283_v18  ;;  %v7329_v46 = vunpack.c.h.s8.bf16 %v7185_v13 }
 0xa2a   : > { %7655 = vmatprep.subr.bf16.mxu0 %v7484_v22  ;;  %v7394_v22 = vunpack.c.h.s8.bf16 %v11345_v43 }
 0xa2b   : > { %7695 = vmatpush2.bf16.msra.mxu1 %v7551_v30  ;;  %v11349_v30 = vpack.c.bf16 %v7159_v40, %v7159_v40  ;;  %v7190_v40 = vld [vmem:[%s9611_s18 + $0x98] sm:$0xff] }
 0xa2c   : > { %7696 = vmatprep.subr.bf16.mxu1 %v7548_v42  ;;  %v7326_v42 = vunpack.c.l.s8.bf16 %v7186_v8  ;;  %v7194_v8 = vld [vmem:[%s9611_s18 + $0xb8] sm:$0xff] }
 0xa2d   : > { %7656 = vmatpush2.bf16.msra.mxu0 %v7483_v36  ;;  %v7182_v36 = vld [vmem:[%s9611_s18 + $0x58] sm:$0xff] }
 0xa2e   : > { %7657 = vmatprep.subr.bf16.mxu0 %v7480_v61 }
 0xa2f   : > { %7697 = vmatpush2.bf16.msra.mxu1 %v7547_v21  ;;  %v7325_v21 = vunpack.c.l.s8.bf16 %v7185_v13  ;;  %v7342_v13 = vunpack.c.l.s8.bf16 %v7194_v8 }
 0xa30   : > { %7698 = vmatprep.subr.bf16.mxu1 %v7544_v54 }
 0xa31   : > { %7658 = vmatpush2.bf16.msra.mxu0 %v7479_v0  ;;  %v7322_v0 = vunpack.c.h.s8.bf16 %v7182_v36 }
 0xa32   : > { %7659 = vmatprep.subr.bf16.mxu0 %v7476_v47  ;;  %v7181_v47 = vld [vmem:[%s9611_s18 + $0x50] sm:$0xff] }
 0xa33   : > { %7699 = vmatpush2.bf16.msra.mxu1 %v7543_v4  ;;  %v7317_v32 = vunpack.c.l.s8.bf16 %v7181_v47 }
 0xa34   : > { %7700 = vmatprep.subr.bf16.mxu1 %v7540_v5 }
 0xa35   : > { %7660 = vmatpush2.bf16.msra.mxu0 %v7475_v12 }
 0xa36   : > { %7661 = vmatprep.subr.bf16.mxu0 %v7472_v58  ;;  %v7178_v58 = vld [vmem:[%s9611_s18 + $0x38] sm:$0xff] }
 0xa37   : > { %7701 = vmatpush2.bf16.msra.mxu1 %v7539_v51  ;;  %v7314_v14 = vunpack.c.h.s8.bf16 %v7178_v58  ;;  %v7177_v51 = vld [vmem:[%s9611_s18 + $0x30] sm:$0xff]  ;;  %v7310_v41 = vunpack.c.l.s8.bf16 %v7178_v58 }
 0xa38   : > { %7702 = vmatprep.subr.bf16.mxu1 %v7536_v37  ;;  %v7313_v37 = vunpack.c.h.s8.bf16 %v7177_v51  ;;  %v8909_v58 = vld [vmem:[%s9623_s4] ss:$2 sm:$0xff] }
 0xa39   : > { %7662 = vmatpush2.bf16.msra.mxu0 %v7471_v7  ;;  %v7174_v7 = vld [vmem:[%s9611_s18 + $0x18] sm:$0xff] }
 0xa3a   : > { %7663 = vmatprep.subr.bf16.mxu0 %v7468_v29  ;;  %v7309_v29 = vunpack.c.l.s8.bf16 %v7177_v51  ;;  %v7306_v17 = vunpack.c.h.s8.bf16 %v7174_v7 }
 0xa3b   : > { %7703 = vmatpush2.bf16.msra.mxu1 %v7535_v16  ;;  %v7302_v16 = vunpack.c.l.s8.bf16 %v7174_v7  ;;  %v8910_v7 = vld [vmem:[%s9623_s4 + $0x1] ss:$2 sm:$0xff] }
 0xa3c   : > { %7704 = vmatprep.subr.bf16.mxu1 %v7532_v35  ;;  %v7202_v35 = vld [vmem:[%s9611_s18 + $0xf8] sm:$0xff] }
 0xa3d   : > { %7664 = vmatpush2.bf16.msra.mxu0 %v7467_v3  ;;  %v7301_v3 = vunpack.c.l.s8.bf16 %v7173_v27  ;;  %v7362_v19 = vunpack.c.h.s8.bf16 %v7202_v35  ;;  %v7358_v55 = vunpack.c.l.s8.bf16 %v7202_v35 }
 0xa3e   : > { %7665 = vmatprep.subr.bf16.mxu0 %v7464_v57  ;;  %v7201_v57 = vld [vmem:[%s9611_s18 + $0xf0] sm:$0xff] }
 0xa3f   : > { %7705 = vmatpush2.bf16.msra.mxu1 %v7531_v63  ;;  %v7361_v52 = vunpack.c.h.s8.bf16 %v7201_v57  ;;  %v7198_v63 = vld [vmem:[%s9611_s18 + $0xd8] sm:$0xff] }
 0xa40   : > { %7706 = vmatprep.subr.bf16.mxu1 %v7528_v38  ;;  %v7357_v38 = vunpack.c.l.s8.bf16 %v7201_v57  ;;  %v7354_v18 = vunpack.c.h.s8.bf16 %v7198_v63  ;;  %v7350_v2 = vunpack.c.l.s8.bf16 %v7198_v63 }
 0xa41   : > { %7666 = vmatpush2.bf16.msra.mxu0 %v7463_v15  ;;  %v7197_v15 = vld [vmem:[%s9611_s18 + $0xd0] sm:$0xff] }
 0xa42   : > { %7667 = vmatprep.subr.bf16.mxu0 %v7460_v48  ;;  %v7353_v48 = vunpack.c.h.s8.bf16 %v7197_v15 }
 0xa43   : > { %7707 = vmatpush2.bf16.msra.mxu1 %v7527_v56  ;;  %v7349_v56 = vunpack.c.l.s8.bf16 %v7197_v15 }
 0xa44   : > { %7708 = vmatprep.subr.bf16.mxu1 %v7524_v45  ;;  %v7346_v45 = vunpack.c.h.s8.bf16 %v7194_v8 }
 0xa45   : > { %7668 = vmatpush2.bf16.msra.mxu0 %v7459_v11  ;;  %v7193_v11 = vld [vmem:[%s9611_s18 + $0xb0] sm:$0xff] }
 0xa46   : > { %7719 = vmatprep.subr.bf16.mxu0 %v7330_v44  ;;  %v7345_v44 = vunpack.c.h.s8.bf16 %v7193_v11 }
 0xa47   : > { %7709 = vmatpush2.bf16.msra.mxu1 %v7523_v50  ;;  %v7341_v50 = vunpack.c.l.s8.bf16 %v7193_v11 }
 0xa48   : > { %v6908_v10 = vpop.f32.mrf.mxu0  ;;  %7670 = vmatmul.mubr.bf16.vlgmr.msra.gmra.mxu0 %v11349_v30  ;;  %7760 = vmatprep.subr.bf16.mxu1 %v7394_v22  ;;  %v7338_v22 = vunpack.c.h.s8.bf16 %v7190_v40 }
 0xa49   : > { %v6949_v61 = vpop.f32.mrf.mxu1  ;;  %v6909_v62 = vadd.f32 %v6908_v10, %v11308_v28  ;;  %7720 = vmatpush1.bf16.msra.mxu0 %v7329_v46  ;;  %7751 = vmatprep.mubr.bf16.mxu0 %v11236_v49  ;;  %v7321_v28 = vunpack.c.h.s8.bf16 %v7181_v47  ;;  %v7318_v49 = vunpack.c.l.s8.bf16 %v7182_v36  ;;  %v7189_v46 = vld [vmem:[%s9611_s18 + $0x90] sm:$0xff]  ;;  %v7334_v36 = vunpack.c.l.s8.bf16 %v7190_v40  ;;  %v7250_v10 = vld [vmem:[%s9611_s18 + $0x278] sm:$0xff] }
 0xa4a   : > { %v11355_v54 = vpop.f32.mrf.mxu0  ;;  %7721 = vmatprep.subr.bf16.mxu0 %v7326_v42  ;;  %v7337_v42 = vunpack.c.h.s8.bf16 %v7189_v46 }
 0xa4b   : > { %v11357_v33 = vpop.f32.mrf.mxu1  ;;  %v11360_v25 = vadd.f32 %v6949_v61, %v6909_v62  ;;  %v7333_v61 = vunpack.c.l.s8.bf16 %v7189_v46  ;;  %v7458_v62 = vunpack.c.h.s8.bf16 %v7250_v10 }
 0xa4c   : > { %v6912_v4 = vpop.f32.mrf.mxu0 }
 0xa4d   : > { %v6953_v5 = vpop.f32.mrf.mxu1  ;;  %7722 = vmatpush1.bf16.msra.mxu0 %v7325_v21  ;;  %v7249_v21 = vld [vmem:[%s9611_s18 + $0x270] sm:$0xff]  ;;  %v7454_v4 = vunpack.c.l.s8.bf16 %v7250_v10 }
 0xa4e   : > { %v6913_v12 = vpop.f32.mrf.mxu0  ;;  %7723 = vmatprep.subr.bf16.mxu0 %v7322_v0  ;;  %v6911_v0 = vadd.f32 %v11355_v54, %v11312_v23  ;;  %v7457_v47 = vunpack.c.h.s8.bf16 %v7249_v21  ;;  %v7246_v5 = vld [vmem:[%s9611_s18 + $0x258] sm:$0xff]  ;;  %v7453_v23 = vunpack.c.l.s8.bf16 %v7249_v21  ;;  %v7237_v10 = vld [vmem:[%s9611_s18 + $0x210] sm:$0xff] }
 0xa4f   : > { %v6954_v34 = vpop.f32.mrf.mxu1  ;;  %v7450_v51 = vunpack.c.h.s8.bf16 %v7246_v5 }
 0xa50   : > { %v6952_v34 = vadd.f32 %v11357_v33, %v6911_v0 }
 0xa51   : > { %7724 = vmatpush1.bf16.msra.mxu0 %v7321_v28 }
 0xa52   : > { %7725 = vmatprep.subr.bf16.mxu0 %v7318_v49 }
 0xa55   : > { %7726 = vmatpush1.bf16.msra.mxu0 %v7317_v32  ;;  %v7067_v32 = vrot.slane %v8909_v58, %v10450_v1 }
 0xa56   : > { %7727 = vmatprep.subr.bf16.mxu0 %v7314_v14 }
 0xa59   : > { %7728 = vmatpush1.bf16.msra.mxu0 %v7313_v37  ;;  %v7245_v37 = vld [vmem:[%s9611_s18 + $0x250] sm:$0xff] }
 0xa5a   : > { %7729 = vmatprep.subr.bf16.mxu0 %v7310_v41 }
 0xa5d   : > { %7730 = vmatpush1.bf16.msra.mxu0 %v7309_v29 }
 0xa5e   : > { %7731 = vmatprep.subr.bf16.mxu0 %v7306_v17 }
 0xa61   : > { %7732 = vmatpush1.bf16.msra.mxu0 %v7305_v26 }
 0xa62   : > { %7733 = vmatprep.subr.bf16.mxu0 %v7302_v16  ;;  %v7449_v16 = vunpack.c.h.s8.bf16 %v7245_v37 }
 0xa65   : > { %7734 = vmatpush1.bf16.msra.mxu0 %v7301_v3 }
 0xa66   : > { %7735 = vmatprep.subr.bf16.mxu0 %v7362_v19  ;;  %v7446_v19 = vunpack.c.l.s8.bf16 %v7246_v5  ;;  %v7429_v5 = vunpack.c.l.s8.bf16 %v7237_v10 }
 0xa69   : > { %7736 = vmatpush2.bf16.msra.mxu0 %v7361_v52  ;;  %v7242_v52 = vld [vmem:[%s9611_s18 + $0x238] sm:$0xff] }
 0xa6a   : > { %7737 = vmatprep.subr.bf16.mxu0 %v7358_v55  ;;  %v7438_v40 = vunpack.c.l.s8.bf16 %v7242_v52 }
 0xa6d   : > { %7738 = vmatpush2.bf16.msra.mxu0 %v7357_v38  ;;  %v7445_v38 = vunpack.c.l.s8.bf16 %v7245_v37  ;;  %v7206_v37 = vld [vmem:[%s9611_s18 + $0x118] sm:$0xff] }
 0xa6e   : > { %7739 = vmatprep.subr.bf16.mxu0 %v7354_v18  ;;  %v7442_v18 = vunpack.c.h.s8.bf16 %v7242_v52 }
 0xa71   : > { %7740 = vmatpush2.bf16.msra.mxu0 %v7353_v48  ;;  %v7217_v48 = vld [vmem:[%s9611_s18 + $0x170] sm:$0xff] }
 0xa72   : > { %7741 = vmatprep.subr.bf16.mxu0 %v7350_v2  ;;  %v7393_v11 = vunpack.c.h.s8.bf16 %v7217_v48 }
 0xa75   : > { %7742 = vmatpush2.bf16.msra.mxu0 %v7349_v56 }
 0xa76   : > { %7743 = vmatprep.subr.bf16.mxu0 %v7346_v45 }
 0xa79   : > { %7744 = vmatpush2.bf16.msra.mxu0 %v7345_v44 }
 0xa7a   : > { %7745 = vmatprep.subr.bf16.mxu0 %v7342_v13  ;;  %v7390_v13 = vunpack.c.l.s8.bf16 %v11345_v43 }
 0xa7d   : > { %7746 = vmatpush2.bf16.msra.mxu0 %v7341_v50  ;;  %v7238_v50 = vld [vmem:[%s9611_s18 + $0x218] sm:$0xff] }
 0xa7e   : > { %7747 = vmatprep.subr.bf16.mxu0 %v7338_v22  ;;  %v7214_v22 = vld [vmem:[%s9611_s18 + $0x158] sm:$0xff]  ;;  %v7430_v0 = vunpack.c.l.s8.bf16 %v7238_v50 }
 0xa7f   : > { %v7386_v43 = vunpack.c.h.s8.bf16 %v7214_v22 }
 0xa81   : > { %7748 = vmatpush2.bf16.msra.mxu0 %v7337_v42  ;;  %v7389_v42 = vunpack.c.l.s8.bf16 %v7217_v48  ;;  %v7230_v48 = vld [vmem:[%s9611_s18 + $0x1d8] sm:$0xff] }
 0xa82   : > { %7749 = vmatprep.subr.bf16.mxu0 %v7334_v36  ;;  %v7434_v36 = vunpack.c.h.s8.bf16 %v7238_v50 }
 0xa85   : > { %7750 = vmatpush2.bf16.msra.mxu0 %v7333_v61  ;;  %v7213_v61 = vld [vmem:[%s9611_s18 + $0x150] sm:$0xff] }
 0xa86   : > { %7801 = vmatprep.subr.bf16.mxu0 %v7458_v62  ;;  %v7433_v62 = vunpack.c.h.s8.bf16 %v7237_v10  ;;  %v7385_v21 = vunpack.c.h.s8.bf16 %v7213_v61  ;;  %v7226_v10 = vld [vmem:[%s9611_s18 + $0x1b8] sm:$0xff] }
 0xa88   : > { %v6990_v28 = vpop.f32.mrf.mxu0  ;;  %7752 = vmatmul.mubr.bf16.vlgmr.msra.gmra.mxu0 %v11295_v59  ;;  %v7118_v59 = vrot.slane %v8910_v7, %v10450_v1 }
 0xa89   : > { %v7031_v12 = vpop.f32.mrf.mxu1  ;;  %v6991_v49 = vadd.f32 %v6990_v28, %v11360_v25  ;;  %7802 = vmatpush1.bf16.msra.mxu0 %v7457_v47  ;;  %7833 = vmatprep.mubr.bf16.mxu0 %v11301_v24  ;;  %v7071_v25 = vrot.slane %v8909_v58, %v10457_v31  ;;  %v7122_v24 = vrot.slane %v8910_v7, %v10457_v31  ;;  %v7241_v31 = vld [vmem:[%s9611_s18 + $0x230] sm:$0xff]  ;;  %v7382_v47 = vunpack.c.l.s8.bf16 %v7214_v22 }
 0xa8a   : > { %v6992_v54 = vpop.f32.mrf.mxu0  ;;  %7803 = vmatprep.subr.bf16.mxu0 %v7454_v4  ;;  %v7441_v56 = vunpack.c.h.s8.bf16 %v7241_v31  ;;  %v7437_v46 = vunpack.c.l.s8.bf16 %v7241_v31  ;;  %v7210_v4 = vld [vmem:[%s9611_s18 + $0x138] sm:$0xff]  ;;  %v7381_v28 = vunpack.c.l.s8.bf16 %v7213_v61  ;;  %v7209_v58 = vld [vmem:[%s9611_s18 + $0x130] sm:$0xff] }
 0xa8b   : > { %v7033_v14 = vpop.f32.mrf.mxu1  ;;  %v7032_v41 = vadd.f32 %v7031_v12, %v6991_v49  ;;  %v6993_v33 = vadd.f32 %v6992_v54, %v6952_v34  ;;  %v7265_v34 = vld [vmem:[%s9611_s18 + $0x2f0] sm:$0xff]  ;;  %v7378_v49 = vunpack.c.h.s8.bf16 %v7210_v4  ;;  %v7373_v7 = vunpack.c.l.s8.bf16 %v7209_v58 }
 0xa8c   : > { %v6994_v29 = vpop.f32.mrf.mxu0 }
 0xa8d   : > { %v7035_v17 = vpop.f32.mrf.mxu1  ;;  %v7086_v27 = vmul.f32 %v7067_v32, %v7032_v41  ;;  %v7034_v26 = vadd.f32 %v7033_v14, %v6993_v33  ;;  %7804 = vmatpush1.bf16.msra.mxu0 %v7453_v23  ;;  %v7489_v32 = vunpack.c.h.s8.bf16 %v7265_v34  ;;  %v7377_v23 = vunpack.c.h.s8.bf16 %v7209_v58  ;;  %v7261_v33 = vld [vmem:[%s9611_s18 + $0x2d0] sm:$0xff] }
 0xa8e   : > { %v6995_v35 = vpop.f32.mrf.mxu0  ;;  %7805 = vmatprep.subr.bf16.mxu0 %v7450_v51  ;;  %v7374_v14 = vunpack.c.l.s8.bf16 %v7210_v4  ;;  %v7262_v51 = vld [vmem:[%s9611_s18 + $0x2d8] sm:$0xff]  ;;  %v7485_v41 = vunpack.c.l.s8.bf16 %v7265_v34  ;;  %v7205_v29 = vld [vmem:[%s9611_s18 + $0x110] sm:$0xff]  ;;  %v7481_v17 = vunpack.c.h.s8.bf16 %v7261_v33 }
 0xa8f   : > { %v7036_v3 = vpop.f32.mrf.mxu1  ;;  %v7137_v57 = vadd.f32 %v7118_v59, %v7086_v27  ;;  %v7087_v1 = vmul.f32 %v7071_v25, %v7034_v26  ;;  %v7482_v59 = vunpack.c.h.s8.bf16 %v7262_v51  ;;  %v7370_v25 = vunpack.c.h.s8.bf16 %v7206_v37  ;;  %v7234_v35 = vld [vmem:[%s9611_s18 + $0x1f8] sm:$0xff] }
 0xa90   : > { %v7369_v27 = vunpack.c.h.s8.bf16 %v7205_v29  ;;  %v7478_v26 = vunpack.c.l.s8.bf16 %v7262_v51  ;;  %v7477_v3 = vunpack.c.l.s8.bf16 %v7261_v33  ;;  %v7426_v52 = vunpack.c.h.s8.bf16 %v7234_v35 }
 0xa91   : > { %vm7145_vm10 = vcmp.gt.f32.partialorder %v7137_v57, 0.0  ;;  %v7153_v55 = vmul.f32 0.1, %v7137_v57  ;;  %v7138_v63 = vadd.f32 %v7122_v24, %v7087_v1  ;;  %7806 = vmatpush1.bf16.msra.mxu0 %v7449_v16  ;;  %v7366_v24 = vunpack.c.l.s8.bf16 %v7206_v37  ;;  %v7258_v16 = vld [vmem:[%s9611_s18 + $0x2b8] sm:$0xff]  ;;  %v7257_v1 = vld [vmem:[%s9611_s18 + $0x2b0] sm:$0xff]  ;;  %v7956_v37 = vld [vmem:[%s9613_s14 + $0x20] sm:$0xff] }
 0xa92   : > { %7807 = vmatprep.subr.bf16.mxu0 %v7446_v19  ;;  %v7365_v19 = vunpack.c.l.s8.bf16 %v7205_v29  ;;  %v7422_v31 = vunpack.c.l.s8.bf16 %v7234_v35  ;;  %v7994_v29 = vunpack.c.h.s8.bf16 %v7956_v37  ;;  %v7955_v35 = vld [vmem:[%s9613_s14 + $0x18] sm:$0xff] }
 0xa93   : > { %vm7146_vm11 = vcmp.gt.f32.partialorder %v7138_v63, 0.0  ;;  %v7154_v15 = vmul.f32 0.1, %v7138_v63  ;;  %v7161_v2 = vsel %vm7145_vm10, %v7137_v57, %v7153_v55  ;;  %v7474_v57 = vunpack.c.h.s8.bf16 %v7258_v16  ;;  %v7233_v55 = vld [vmem:[%s9611_s18 + $0x1f0] sm:$0xff] }
 0xa94   : > { %v11395_v44 = vpack.c.bf16 %v7161_v2, %v7161_v2  ;;  %v7469_v2 = vunpack.c.l.s8.bf16 %v7257_v1 }
 0xa95   : > { %7808 = vmatpush1.bf16.msra.mxu0 %v7445_v38  ;;  %v7162_v8 = vsel %vm7146_vm11, %v7138_v63, %v7154_v15  ;;  %v7473_v63 = vunpack.c.h.s8.bf16 %v7257_v1  ;;  %v7425_v38 = vunpack.c.h.s8.bf16 %v7233_v55  ;;  %v7254_v15 = vld [vmem:[%s9611_s18 + $0x298] sm:$0xff]  ;;  %v7991_v1 = vunpack.c.h.s8.bf16 %v7955_v35 }
 0xa96   : > { %v11393_v45 = vpack.c.bf16 %v7162_v8, %v7162_v8  ;;  %7809 = vmatprep.subr.bf16.mxu0 %v7442_v18  ;;  %v7470_v18 = vunpack.c.l.s8.bf16 %v7258_v16  ;;  %v7421_v8 = vunpack.c.l.s8.bf16 %v7233_v55 }
 0xa98   : > { %7710 = vmatprep.mubr.bf16.mxu1 %v11393_v45 }
 0xa99   : > { %7711 = vmatmul.mubr.bf16.vlgmr.msra.gmra.mxu1 %v11395_v44  ;;  %7810 = vmatpush1.bf16.msra.mxu0 %v7441_v56  ;;  %v7466_v56 = vunpack.c.h.s8.bf16 %v7254_v15 }
 0xa9a   : > { %7761 = vmatpush1.bf16.msra.mxu1 %v7393_v11  ;;  %7792 = vmatprep.mubr.bf16.mxu1 %v11241_v20  ;;  %v7266_v20 = vld [vmem:[%s9611_s18 + $0x2f8] sm:$0xff]  ;;  %v7253_v11 = vld [vmem:[%s9611_s18 + $0x290] sm:$0xff] }
 0xa9b   : > { %7762 = vmatprep.subr.bf16.mxu1 %v7390_v13  ;;  %7811 = vmatprep.subr.bf16.mxu0 %v7438_v40  ;;  %v7490_v12 = vunpack.c.h.s8.bf16 %v7266_v20  ;;  %v7486_v54 = vunpack.c.l.s8.bf16 %v7266_v20  ;;  %v7418_v13 = vunpack.c.h.s8.bf16 %v7230_v48  ;;  %v7229_v40 = vld [vmem:[%s9611_s18 + $0x1d0] sm:$0xff]  ;;  %v7465_v50 = vunpack.c.h.s8.bf16 %v7253_v11 }
 0xa9c   : > { %v7417_v22 = vunpack.c.h.s8.bf16 %v7229_v40  ;;  %v7413_v61 = vunpack.c.l.s8.bf16 %v7229_v40 }
 0xa9d   : > { %7812 = vmatpush1.bf16.msra.mxu0 %v7437_v46  ;;  %v7462_v46 = vunpack.c.l.s8.bf16 %v7254_v15  ;;  %v7989_v15 = vunpack.c.l.s8.bf16 %v7955_v35 }
 0xa9e   : > { %7763 = vmatpush1.bf16.msra.mxu1 %v7389_v42  ;;  %7813 = vmatprep.subr.bf16.mxu0 %v7434_v36  ;;  %v7414_v42 = vunpack.c.l.s8.bf16 %v7230_v48  ;;  %v7959_v36 = vld [vmem:[%s9613_s14 + $0x38] sm:$0xff]  ;;  %v7953_v48 = vld [vmem:[%s9613_s14 + $0x8] sm:$0xff] }
 0xa9f   : > { %7764 = vmatprep.subr.bf16.mxu1 %v7386_v43  ;;  %v7461_v43 = vunpack.c.l.s8.bf16 %v7253_v11  ;;  %v7987_v11 = vunpack.c.h.s8.bf16 %v7953_v48 }
 0xaa1   : > { %7814 = vmatpush1.bf16.msra.mxu0 %v7433_v62  ;;  %v7999_v62 = vunpack.c.h.s8.bf16 %v7959_v36 }
 0xaa2   : > { %7765 = vmatpush1.bf16.msra.mxu1 %v7385_v21  ;;  %7815 = vmatprep.subr.bf16.mxu0 %v7430_v0  ;;  %v7958_v21 = vld [vmem:[%s9613_s14 + $0x30] sm:$0xff]  ;;  %v7410_v0 = vunpack.c.h.s8.bf16 %v7226_v10 }
 0xaa3   : > { %7766 = vmatprep.subr.bf16.mxu1 %v7382_v47  ;;  %v7225_v47 = vld [vmem:[%s9611_s18 + $0x1b0] sm:$0xff]  ;;  %v7998_v20 = vunpack.c.h.s8.bf16 %v7958_v21 }
 0xaa4   : > { %v7409_v4 = vunpack.c.h.s8.bf16 %v7225_v47 }
 0xaa5   : > { %7816 = vmatpush1.bf16.msra.mxu0 %v7429_v5  ;;  %v7997_v5 = vunpack.c.l.s8.bf16 %v7959_v36  ;;  %v7274_v36 = vld [vmem:[%s9611_s18 + $0x338] sm:$0xff] }
 0xaa6   : > { %7767 = vmatpush1.bf16.msra.mxu1 %v7381_v28  ;;  %7817 = vmatprep.subr.bf16.mxu0 %v7490_v12  ;;  %v7406_v28 = vunpack.c.l.s8.bf16 %v7226_v10  ;;  %v7957_v12 = vld [vmem:[%s9613_s14 + $0x28] sm:$0xff] }
 0xaa7   : > { %7768 = vmatprep.subr.bf16.mxu1 %v7378_v49  ;;  %v7222_v49 = vld [vmem:[%s9611_s18 + $0x198] sm:$0xff]  ;;  %v7995_v51 = vunpack.c.h.s8.bf16 %v7957_v12 }
 0xaa8   : > { %v7398_v16 = vunpack.c.l.s8.bf16 %v7222_v49 }
 0xaa9   : > { %7818 = vmatpush2.bf16.msra.mxu0 %v7489_v32  ;;  %v7996_v32 = vunpack.c.l.s8.bf16 %v7958_v21  ;;  %v7506_v21 = vunpack.c.h.s8.bf16 %v7274_v36 }
 0xaaa   : > { %7769 = vmatpush1.bf16.msra.mxu1 %v7377_v23  ;;  %7819 = vmatprep.subr.bf16.mxu0 %v7486_v54 }
 0xaab   : > { %7770 = vmatprep.subr.bf16.mxu1 %v7374_v14  ;;  %v7405_v14 = vunpack.c.l.s8.bf16 %v7225_v47 }
 0xaad   : > { %7820 = vmatpush2.bf16.msra.mxu0 %v7485_v41 }
 0xaae   : > { %7771 = vmatpush1.bf16.msra.mxu1 %v7373_v7  ;;  %7821 = vmatprep.subr.bf16.mxu0 %v7482_v59  ;;  %v7402_v7 = vunpack.c.h.s8.bf16 %v7222_v49  ;;  %v7221_v59 = vld [vmem:[%s9611_s18 + $0x190] sm:$0xff] }
 0xaaf   : > { %7772 = vmatprep.subr.bf16.mxu1 %v7370_v25 }
 0xab1   : > { %7822 = vmatpush2.bf16.msra.mxu0 %v7481_v17 }
 0xab2   : > { %7773 = vmatpush1.bf16.msra.mxu1 %v7369_v27  ;;  %7823 = vmatprep.subr.bf16.mxu0 %v7478_v26  ;;  %v7401_v27 = vunpack.c.h.s8.bf16 %v7221_v59  ;;  %v7993_v26 = vunpack.c.l.s8.bf16 %v7957_v12  ;;  %v7270_v12 = vld [vmem:[%s9611_s18 + $0x318] sm:$0xff] }
 0xab3   : > { %7774 = vmatprep.subr.bf16.mxu1 %v7366_v24 }
 0xab5   : > { %7824 = vmatpush2.bf16.msra.mxu0 %v7477_v3  ;;  %v7282_v3 = vld [vmem:[%s9611_s18 + $0x378] sm:$0xff] }
 0xab6   : > { %7775 = vmatpush1.bf16.msra.mxu1 %v7365_v19  ;;  %7825 = vmatprep.subr.bf16.mxu0 %v7474_v57  ;;  %v7992_v19 = vunpack.c.l.s8.bf16 %v7956_v37  ;;  %v7397_v57 = vunpack.c.l.s8.bf16 %v7221_v59  ;;  %v7522_v55 = vunpack.c.h.s8.bf16 %v7282_v3  ;;  %v7963_v59 = vld [vmem:[%s9613_s14 + $0x58] sm:$0xff] }
 0xab7   : > { %7776 = vmatprep.subr.bf16.mxu1 %v7426_v52  ;;  %v7954_v52 = vld [vmem:[%s9613_s14 + $0x10] sm:$0xff] }
 0xab9   : > { %7826 = vmatpush2.bf16.msra.mxu0 %v7473_v63  ;;  %v7281_v63 = vld [vmem:[%s9611_s18 + $0x370] sm:$0xff] }
 0xaba   : > { %7777 = vmatpush2.bf16.msra.mxu1 %v7425_v38  ;;  %7827 = vmatprep.subr.bf16.mxu0 %v7470_v18  ;;  %v7990_v38 = vunpack.c.h.s8.bf16 %v7954_v52  ;;  %v7521_v18 = vunpack.c.h.s8.bf16 %v7281_v63 }
 0xabb   : > { %7778 = vmatprep.subr.bf16.mxu1 %v7422_v31  ;;  %v7518_v31 = vunpack.c.l.s8.bf16 %v7282_v3  ;;  %v8005_v3 = vunpack.c.l.s8.bf16 %v7963_v59 }
 0xabd   : > { %7828 = vmatpush2.bf16.msra.mxu0 %v7469_v2  ;;  %v7278_v2 = vld [vmem:[%s9611_s18 + $0x358] sm:$0xff] }
 0xabe   : > { %7779 = vmatpush2.bf16.msra.mxu1 %v7421_v8  ;;  %7829 = vmatprep.subr.bf16.mxu0 %v7466_v56  ;;  %v7988_v8 = vunpack.c.l.s8.bf16 %v7954_v52  ;;  %v7517_v56 = vunpack.c.l.s8.bf16 %v7281_v63  ;;  %v7514_v40 = vunpack.c.h.s8.bf16 %v7278_v2 }
 0xabf   : > { %7780 = vmatprep.subr.bf16.mxu1 %v7418_v13  ;;  %v7952_v13 = vld [vmem:[%s9613_s14] sm:$0xff] }
 0xac0   : > { %v7984_v10 = vunpack.c.l.s8.bf16 %v7952_v13 }
 0xac1   : > { %7830 = vmatpush2.bf16.msra.mxu0 %v7465_v50  ;;  %v7277_v50 = vld [vmem:[%s9611_s18 + $0x350] sm:$0xff] }
 0xac2   : > { %7781 = vmatpush2.bf16.msra.mxu1 %v7417_v22  ;;  %7831 = vmatprep.subr.bf16.mxu0 %v7462_v46  ;;  %v7986_v22 = vunpack.c.h.s8.bf16 %v7952_v13  ;;  %v7513_v46 = vunpack.c.h.s8.bf16 %v7277_v50 }
 0xac3   : > { %7782 = vmatprep.subr.bf16.mxu1 %v7414_v42  ;;  %v7510_v42 = vunpack.c.l.s8.bf16 %v7278_v2 }
 0xac5   : > { %7832 = vmatpush2.bf16.msra.mxu0 %v7461_v43  ;;  %v7509_v43 = vunpack.c.l.s8.bf16 %v7277_v50  ;;  %v7289_v50 = vld [vmem:[%s9611_s18 + $0x3b0] sm:$0xff] }
 0xac6   : > { %7783 = vmatpush2.bf16.msra.mxu1 %v7413_v61  ;;  %8048 = vmatprep.subr.bf16.mxu0 %v7999_v62  ;;  %v7966_v62 = vld [vmem:[%s9613_s14 + $0x70] sm:$0xff] }
 0xac7   : > { %7784 = vmatprep.subr.bf16.mxu1 %v7410_v0  ;;  %v7273_v0 = vld [vmem:[%s9611_s18 + $0x330] sm:$0xff]  ;;  %v8014_v47 = vunpack.c.h.s8.bf16 %v7966_v62 }
 0xac8   : > { %v7589_v34 = vpop.f32.mrf.mxu0  ;;  %7834 = vmatmul.mubr.bf16.vlgmr.msra.gmra.mxu0 %v11349_v30  ;;  %v7501_v49 = vunpack.c.l.s8.bf16 %v7273_v0 }
 0xac9   : > { %v7630_v58 = vpop.f32.mrf.mxu1  ;;  %8049 = vmatpush1.bf16.msra.mxu0 %v7998_v20  ;;  %v7505_v20 = vunpack.c.h.s8.bf16 %v7273_v0 }
 0xaca   : > { %v11428_v23 = vadd.f32 %v7630_v58, %v7589_v34  ;;  %7785 = vmatpush2.bf16.msra.mxu1 %v7409_v4  ;;  %v7591_v54 = vpop.f32.mrf.mxu0  ;;  %8050 = vmatprep.subr.bf16.mxu0 %v7997_v5  ;;  %v7502_v5 = vunpack.c.l.s8.bf16 %v7274_v36  ;;  %v8012_v34 = vunpack.c.l.s8.bf16 %v7966_v62  ;;  %v7285_v62 = vld [vmem:[%s9611_s18 + $0x390] sm:$0xff] }
 0xacb   : > { %v7632_v41 = vpop.f32.mrf.mxu1  ;;  %7786 = vmatprep.subr.bf16.mxu1 %v7406_v28  ;;  %v7965_v28 = vld [vmem:[%s9613_s14 + $0x68] sm:$0xff] }
 0xacc   : > { %v11432_v33 = vadd.f32 %v7632_v41, %v7591_v54  ;;  %v7593_v30 = vpop.f32.mrf.mxu0  ;;  %v8011_v58 = vunpack.c.h.s8.bf16 %v7965_v28  ;;  %v7498_v54 = vunpack.c.h.s8.bf16 %v7270_v12  ;;  %v8009_v41 = vunpack.c.l.s8.bf16 %v7965_v28 }
 0xacd   : > { %v7634_v25 = vpop.f32.mrf.mxu1  ;;  %8051 = vmatpush1.bf16.msra.mxu0 %v7996_v32  ;;  %v7964_v32 = vld [vmem:[%s9613_s14 + $0x60] sm:$0xff]  ;;  %v7298_v30 = vld [vmem:[%s9611_s18 + $0x3f8] sm:$0xff] }
 0xace   : > { %7787 = vmatpush2.bf16.msra.mxu1 %v7405_v14  ;;  %v7594_v17 = vpop.f32.mrf.mxu0  ;;  %8052 = vmatprep.subr.bf16.mxu0 %v7995_v51  ;;  %v7269_v14 = vld [vmem:[%s9611_s18 + $0x310] sm:$0xff]  ;;  %v8010_v51 = vunpack.c.h.s8.bf16 %v7964_v32  ;;  %v8008_v25 = vunpack.c.l.s8.bf16 %v7964_v32  ;;  %v7972_v32 = vld [vmem:[%s9613_s14 + $0xa0] sm:$0xff] }
 0xacf   : > { %v7635_v24 = vpop.f32.mrf.mxu1  ;;  %7788 = vmatprep.subr.bf16.mxu1 %v7402_v7  ;;  %v7497_v37 = vunpack.c.h.s8.bf16 %v7269_v14  ;;  %v7494_v7 = vunpack.c.l.s8.bf16 %v7270_v12  ;;  %v8007_v17 = vunpack.c.h.s8.bf16 %v7963_v59 }
 0xad0   : > { %v7297_v24 = vld [vmem:[%s9611_s18 + $0x3f0] sm:$0xff] }
 0xad1   : > { %8053 = vmatpush1.bf16.msra.mxu0 %v7994_v29  ;;  %v7493_v29 = vunpack.c.l.s8.bf16 %v7269_v14  ;;  %v7553_v35 = vunpack.c.h.s8.bf16 %v7297_v24 }
 0xad2   : > { %7789 = vmatpush2.bf16.msra.mxu1 %v7401_v27  ;;  %8054 = vmatprep.subr.bf16.mxu0 %v7993_v26  ;;  %v7962_v27 = vld [vmem:[%s9613_s14 + $0x50] sm:$0xff]  ;;  %v7554_v26 = vunpack.c.h.s8.bf16 %v7298_v30 }
 0xad3   : > { %7790 = vmatprep.subr.bf16.mxu1 %v7398_v16  ;;  %v8006_v16 = vunpack.c.h.s8.bf16 %v7962_v27  ;;  %v8004_v52 = vunpack.c.l.s8.bf16 %v7962_v27 }
 0xad5   : > { %8055 = vmatpush1.bf16.msra.mxu0 %v7992_v19  ;;  %v7550_v19 = vunpack.c.l.s8.bf16 %v7298_v30  ;;  %v7969_v30 = vld [vmem:[%s9613_s14 + $0x88] sm:$0xff] }
 0xad6   : > { %7791 = vmatpush2.bf16.msra.mxu1 %v7397_v57  ;;  %8056 = vmatprep.subr.bf16.mxu0 %v7991_v1  ;;  %v7961_v57 = vld [vmem:[%s9613_s14 + $0x48] sm:$0xff]  ;;  %v7294_v1 = vld [vmem:[%s9611_s18 + $0x3d8] sm:$0xff] }
 0xad7   : > { %7842 = vmatprep.subr.bf16.mxu1 %v7522_v55  ;;  %v7549_v55 = vunpack.c.l.s8.bf16 %v7297_v24  ;;  %v8003_v63 = vunpack.c.h.s8.bf16 %v7961_v57  ;;  %v8001_v2 = vunpack.c.l.s8.bf16 %v7961_v57  ;;  %v7983_v24 = vld [vmem:[%s9613_s14 + $0xf8] sm:$0xff] }
 0xad8   : > { %v8045_v57 = vunpack.c.l.s8.bf16 %v7983_v24 }
 0xad9   : > { %7793 = vmatmul.mubr.bf16.vlgmr.msra.gmra.mxu1 %v11297_v53  ;;  %8057 = vmatpush1.bf16.msra.mxu0 %v7990_v38  ;;  %v7985_v53 = vunpack.c.l.s8.bf16 %v7953_v48  ;;  %v7960_v38 = vld [vmem:[%s9613_s14 + $0x40] sm:$0xff] }
 0xada   : > { %7843 = vmatpush1.bf16.msra.mxu1 %v7521_v18  ;;  %7874 = vmatprep.mubr.bf16.mxu1 %v11393_v45  ;;  %v7967_v45 = vld [vmem:[%s9613_s14 + $0x78] sm:$0xff]  ;;  %v7546_v18 = vunpack.c.h.s8.bf16 %v7294_v1 }
 0xadb   : > { %7844 = vmatprep.subr.bf16.mxu1 %v7518_v31  ;;  %8058 = vmatprep.subr.bf16.mxu0 %v7989_v15  ;;  %v8015_v61 = vunpack.c.h.s8.bf16 %v7967_v45  ;;  %v8013_v4 = vunpack.c.l.s8.bf16 %v7967_v45  ;;  %v7293_v31 = vld [vmem:[%s9611_s18 + $0x3d0] sm:$0xff]  ;;  %v8002_v15 = vunpack.c.h.s8.bf16 %v7960_v38 }
 0xadc   : > { %v7545_v48 = vunpack.c.h.s8.bf16 %v7293_v31  ;;  %v7541_v13 = vunpack.c.l.s8.bf16 %v7293_v31 }
 0xadd   : > { %8059 = vmatpush1.bf16.msra.mxu0 %v7988_v8  ;;  %v7542_v8 = vunpack.c.l.s8.bf16 %v7294_v1  ;;  %v7981_v1 = vld [vmem:[%s9613_s14 + $0xe8] sm:$0xff] }
 0xade   : > { %7845 = vmatpush1.bf16.msra.mxu1 %v7517_v56  ;;  %8060 = vmatprep.subr.bf16.mxu0 %v7987_v11  ;;  %v7290_v56 = vld [vmem:[%s9611_s18 + $0x3b8] sm:$0xff]  ;;  %v8000_v11 = vunpack.c.l.s8.bf16 %v7960_v38  ;;  %v8041_v31 = vunpack.c.l.s8.bf16 %v7981_v1 }
 0xadf   : > { %7846 = vmatprep.subr.bf16.mxu1 %v7514_v40  ;;  %v7538_v40 = vunpack.c.h.s8.bf16 %v7290_v56 }
 0xae1   : > { %8061 = vmatpush1.bf16.msra.mxu0 %v7986_v22  ;;  %v7537_v22 = vunpack.c.h.s8.bf16 %v7289_v50 }
 0xae2   : > { %7847 = vmatpush1.bf16.msra.mxu1 %v7513_v46  ;;  %8062 = vmatprep.subr.bf16.mxu0 %v7985_v53  ;;  %v7534_v46 = vunpack.c.l.s8.bf16 %v7290_v56 }
 0xae3   : > { %7848 = vmatprep.subr.bf16.mxu1 %v7510_v42  ;;  %v7286_v42 = vld [vmem:[%s9611_s18 + $0x398] sm:$0xff] }
 0xae5   : > { %8063 = vmatpush1.bf16.msra.mxu0 %v7984_v10  ;;  %v7533_v10 = vunpack.c.l.s8.bf16 %v7289_v50  ;;  %v11493_v50 = vld [vmem:[%s9631_s0 + $0x1] ss:$2 sm:$0xf] }
 0xae6   : > { %7849 = vmatpush1.bf16.msra.mxu1 %v7509_v43  ;;  %8064 = vmatprep.subr.bf16.mxu0 %v8015_v61  ;;  %v7530_v61 = vunpack.c.h.s8.bf16 %v7286_v42 }
 0xae7   : > { %7850 = vmatprep.subr.bf16.mxu1 %v7506_v21 }
 0xae9   : > { %8065 = vmatpush2.bf16.msra.mxu0 %v8014_v47  ;;  %v7529_v47 = vunpack.c.h.s8.bf16 %v7285_v62 }
 0xaea   : > { %7851 = vmatpush1.bf16.msra.mxu1 %v7505_v20  ;;  %8066 = vmatprep.subr.bf16.mxu0 %v8013_v4  ;;  %v7526_v20 = vunpack.c.l.s8.bf16 %v7286_v42  ;;  %v7974_v4 = vld [vmem:[%s9613_s14 + $0xb0] sm:$0xff] }
 0xaeb   : > { %7852 = vmatprep.subr.bf16.mxu1 %v7502_v5  ;;  %v8030_v28 = vunpack.c.h.s8.bf16 %v7974_v4 }
 0xaed   : > { %8067 = vmatpush2.bf16.msra.mxu0 %v8012_v34  ;;  %v7973_v34 = vld [vmem:[%s9613_s14 + $0xa8] sm:$0xff] }
 0xaee   : > { %7853 = vmatpush1.bf16.msra.mxu1 %v7501_v49  ;;  %8068 = vmatprep.subr.bf16.mxu0 %v8011_v58  ;;  %v8028_v49 = vunpack.c.l.s8.bf16 %v7974_v4  ;;  %v8027_v58 = vunpack.c.h.s8.bf16 %v7973_v34  ;;  %v8025_v14 = vunpack.c.l.s8.bf16 %v7973_v34 }
 0xaef   : > { %7854 = vmatprep.subr.bf16.mxu1 %v7498_v54  ;;  %v8026_v54 = vunpack.c.h.s8.bf16 %v7972_v32 }
 0xaf1   : > { %8069 = vmatpush2.bf16.msra.mxu0 %v8010_v51  ;;  %v8024_v51 = vunpack.c.l.s8.bf16 %v7972_v32 }
 0xaf2   : > { %7855 = vmatpush1.bf16.msra.mxu1 %v7497_v37  ;;  %8070 = vmatprep.subr.bf16.mxu0 %v8009_v41  ;;  %v7970_v41 = vld [vmem:[%s9613_s14 + $0x90] sm:$0xff] }
 0xaf3   : > { %7856 = vmatprep.subr.bf16.mxu1 %v7494_v7  ;;  %v8022_v7 = vunpack.c.h.s8.bf16 %v7970_v41 }
 0xaf5   : > { %8071 = vmatpush2.bf16.msra.mxu0 %v8008_v25  ;;  %v8020_v25 = vunpack.c.l.s8.bf16 %v7970_v41 }
 0xaf6   : > { %7857 = vmatpush1.bf16.msra.mxu1 %v7493_v29  ;;  %8072 = vmatprep.subr.bf16.mxu0 %v8007_v17  ;;  %v8019_v29 = vunpack.c.h.s8.bf16 %v7969_v30  ;;  %v7968_v17 = vld [vmem:[%s9613_s14 + $0x80] sm:$0xff] }
 0xaf7   : > { %7858 = vmatprep.subr.bf16.mxu1 %v7554_v26  ;;  %v8018_v27 = vunpack.c.h.s8.bf16 %v7968_v17  ;;  %v8017_v26 = vunpack.c.l.s8.bf16 %v7969_v30 }
 0xaf9   : > { %8073 = vmatpush2.bf16.msra.mxu0 %v8006_v16  ;;  %v8016_v16 = vunpack.c.l.s8.bf16 %v7968_v17 }
 0xafa   : > { %7859 = vmatpush2.bf16.msra.mxu1 %v7553_v35  ;;  %8074 = vmatprep.subr.bf16.mxu0 %v8005_v3  ;;  %v8047_v35 = vunpack.c.h.s8.bf16 %v7983_v24  ;;  %v7982_v3 = vld [vmem:[%s9613_s14 + $0xf0] sm:$0xff]  ;;  %v8892_v24 = vld [vmem:[%s9650_s29 + $0x38] sm:$0xff]  }
 0xafb   : > { %7860 = vmatprep.subr.bf16.mxu1 %v7550_v19  ;;  %v8046_v19 = vunpack.c.h.s8.bf16 %v7982_v3 }
 0xafd   : > { %8075 = vmatpush2.bf16.msra.mxu0 %v8004_v52  ;;  %v8044_v52 = vunpack.c.l.s8.bf16 %v7982_v3  ;;  %v8895_v3 = vld [vmem:[%s9650_s29 + $0x68] sm:$0xff]  }
 0xafe   : > { %7861 = vmatpush2.bf16.msra.mxu1 %v7549_v55  ;;  %8076 = vmatprep.subr.bf16.mxu0 %v8003_v63  ;;  %v8043_v55 = vunpack.c.h.s8.bf16 %v7981_v1  ;;  %v7980_v63 = vld [vmem:[%s9613_s14 + $0xe0] sm:$0xff] }
 0xaff   : > { %7862 = vmatprep.subr.bf16.mxu1 %v7546_v18  ;;  %v8042_v38 = vunpack.c.h.s8.bf16 %v7980_v63  ;;  %v8898_v1 = vld [vmem:[%s9650_s29 + $0x20] sm:$0xff]  }
 0xb01   : > { %8077 = vmatpush2.bf16.msra.mxu0 %v8002_v15  ;;  %v7979_v15 = vld [vmem:[%s9613_s14 + $0xd8] sm:$0xff] }
 0xb02   : > { %7863 = vmatpush2.bf16.msra.mxu1 %v7545_v48  ;;  %8078 = vmatprep.subr.bf16.mxu0 %v8001_v2  ;;  %v8040_v2 = vunpack.c.l.s8.bf16 %v7980_v63  ;;  %v8039_v56 = vunpack.c.h.s8.bf16 %v7979_v15 }
 0xb03   : > { %7864 = vmatprep.subr.bf16.mxu1 %v7542_v8 }
 0xb05   : > { %8079 = vmatpush2.bf16.msra.mxu0 %v8000_v11 }
 0xb06   : > { %7865 = vmatpush2.bf16.msra.mxu1 %v7541_v13  ;;  %v11489_v13 = vld [vmem:[%s9631_s0] ss:$2 sm:$0xf] }
 0xb07   : > { %7866 = vmatprep.subr.bf16.mxu1 %v7538_v40  ;;  %v7978_v40 = vld [vmem:[%s9613_s14 + $0xd0] sm:$0xff] }
 0xb08   : > { %v7671_v53 = vpop.f32.mrf.mxu0 }
 0xb09   : > { %v11464_v45 = vadd.f32 %v7671_v53, %v11428_v23  ;;  %v7525_v23 = vunpack.c.l.s8.bf16 %v7285_v62 }
 0xb0a   : > { %7867 = vmatpush2.bf16.msra.mxu1 %v7537_v22  ;;  %v7673_v36 = vpop.f32.mrf.mxu0  ;;  %v8038_v22 = vunpack.c.h.s8.bf16 %v7978_v40 }
 0xb0b   : > { %v11467_v43 = vadd.f32 %v7673_v36, %v11432_v33  ;;  %7868 = vmatprep.subr.bf16.mxu1 %v7534_v46  ;;  %v7975_v33 = vld [vmem:[%s9613_s14 + $0xb8] sm:$0xff]  ;;  %v7888_v46 = vrot.slane %v11489_v13, %v10378_v6  ;;  %v7915_v36 = vrot.slane %v11493_v50, %v10378_v6 }
 0xb0c   : > { %v7675_v21 = vpop.f32.mrf.mxu0  ;;  %v8031_v5 = vunpack.c.h.s8.bf16 %v7975_v33  ;;  %v8029_v12 = vunpack.c.l.s8.bf16 %v7975_v33 }
 0xb0d   : > { %v8036_v21 = vunpack.c.l.s8.bf16 %v7978_v40 }
 0xb0e   : > { %7869 = vmatpush2.bf16.msra.mxu1 %v7533_v10  ;;  %v7676_v0 = vpop.f32.mrf.mxu0  ;;  %v7892_v10 = vrot.slane %v11489_v13, %v10383_v9 }
 0xb0f   : > { %7870 = vmatprep.subr.bf16.mxu1 %v7530_v61  ;;  %v8037_v61 = vunpack.c.l.s8.bf16 %v7979_v15 }
 0xb12   : > { %7871 = vmatpush2.bf16.msra.mxu1 %v7529_v47 }
 0xb13   : > { %7872 = vmatprep.subr.bf16.mxu1 %v7526_v20  ;;  %v7919_v20 = vrot.slane %v11493_v50, %v10383_v9 }
 0xb16   : > { %7873 = vmatpush2.bf16.msra.mxu1 %v7525_v23 }
 0xb17   : > { %8089 = vmatprep.subr.bf16.mxu1 %v8031_v5 }
 0xb19   : > { %7875 = vmatmul.mubr.bf16.vlgmr.msra.gmra.mxu1 %v11395_v44  ;;  %v7971_v44 = vld [vmem:[%s9613_s14 + $0x98] sm:$0xff] }
 0xb1a   : > { %8090 = vmatpush1.bf16.msra.mxu1 %v8030_v28  ;;  %v8023_v37 = vunpack.c.h.s8.bf16 %v7971_v44  ;;  %v8021_v59 = vunpack.c.l.s8.bf16 %v7971_v44  ;;  %v7976_v28 = vld [vmem:[%s9613_s14 + $0xc0] sm:$0xff] }
 0xb1b   : > { %8091 = vmatprep.subr.bf16.mxu1 %v8029_v12  ;;  %v8034_v34 = vunpack.c.h.s8.bf16 %v7976_v28 }
 0xb1e   : > { %8092 = vmatpush1.bf16.msra.mxu1 %v8028_v49 }
 0xb1f   : > { %8093 = vmatprep.subr.bf16.mxu1 %v8027_v58 }
 0xb22   : > { %8094 = vmatpush1.bf16.msra.mxu1 %v8026_v54 }
 0xb23   : > { %8095 = vmatprep.subr.bf16.mxu1 %v8025_v14 }
 0xb26   : > { %8096 = vmatpush1.bf16.msra.mxu1 %v8024_v51 }
 0xb27   : > { %8097 = vmatprep.subr.bf16.mxu1 %v8023_v37 }
 0xb2a   : > { %8098 = vmatpush1.bf16.msra.mxu1 %v8022_v7 }
 0xb2b   : > { %8099 = vmatprep.subr.bf16.mxu1 %v8021_v59 }
 0xb2e   : > { %8100 = vmatpush1.bf16.msra.mxu1 %v8020_v25 }
 0xb2f   : > { %8101 = vmatprep.subr.bf16.mxu1 %v8019_v29 }
 0xb32   : > { %8102 = vmatpush1.bf16.msra.mxu1 %v8018_v27 }
 0xb33   : > { %8103 = vmatprep.subr.bf16.mxu1 %v8017_v26  ;;  %v8891_v26 = vld [vmem:[%s9650_s29 + $0x78] sm:$0xff]  }
 0xb34   : > { %8722 = vmatprep.subr.bf16.mxu0 %v8891_v26 }
 0xb36   : > { %8104 = vmatpush1.bf16.msra.mxu1 %v8016_v16  ;;  %v8893_v16 = vld [vmem:[%s9650_s29 + $0x70] sm:$0xff]  }
 0xb37   : > { %8105 = vmatprep.subr.bf16.mxu1 %v8047_v35  ;;  %v8894_v35 = vld [vmem:[%s9650_s29 + $0x30] sm:$0xff]  }
 0xb3a   : > { %8106 = vmatpush2.bf16.msra.mxu1 %v8046_v19  ;;  %v8896_v19 = vld [vmem:[%s9650_s29 + $0x28] sm:$0xff]  }
 0xb3b   : > { %8107 = vmatprep.subr.bf16.mxu1 %v8045_v57  ;;  %v8897_v57 = vld [vmem:[%s9650_s29 + $0x60] sm:$0xff]  }
 0xb3e   : > { %8108 = vmatpush2.bf16.msra.mxu1 %v8044_v52  ;;  %v8899_v52 = vld [vmem:[%s9650_s29 + $0x58] sm:$0xff]  }
 0xb3f   : > { %8109 = vmatprep.subr.bf16.mxu1 %v8043_v55 }
 0xb42   : > { %8110 = vmatpush2.bf16.msra.mxu1 %v8042_v38 }
 0xb43   : > { %8111 = vmatprep.subr.bf16.mxu1 %v8041_v31  ;;  %v7896_v31 = vrot.slane %v11489_v13, %v10386_v39 }
 0xb46   : > { %8112 = vmatpush2.bf16.msra.mxu1 %v8040_v2 }
 0xb47   : > { %8113 = vmatprep.subr.bf16.mxu1 %v8039_v56 }
 0xb48   : > { %v11483_v18 = vpop.f32.mrf.mxu0 }
 0xb4a   : > { %v11486_v48 = vpop.f32.mrf.mxu0  ;;  %8114 = vmatpush2.bf16.msra.mxu1 %v8038_v22 }
 0xb4b   : > { %8115 = vmatprep.subr.bf16.mxu1 %v8037_v61 }
 0xb4c   : > { %v7757_v8 = vpop.f32.mrf.mxu0 }
 0xb4d   : > { %v7923_v8 = vrot.slane %v11493_v50, %v10386_v39 }
 0xb4e   : > { %v7758_v11 = vpop.f32.mrf.mxu0  ;;  %8116 = vmatpush2.bf16.msra.mxu1 %v8036_v21 }
 0xb4f   : > { %v7900_v11 = vrot.slane %v11489_v13, %v10402_v60 }
 0xb59   : > { %v7712_v53 = vpop.f32.mrf.mxu1 }
 0xb5a   : > { %v7713_v42 = vadd.f32 %v7712_v53, %v11464_v45  ;;  %v7977_v45 = vld [vmem:[%s9613_s14 + $0xc8] sm:$0xff] }
 0xb5b   : > { %v7714_v62 = vpop.f32.mrf.mxu1  ;;  %v8035_v5 = vunpack.c.h.s8.bf16 %v7977_v45  ;;  %v8033_v32 = vunpack.c.l.s8.bf16 %v7977_v45 }
 0xb5c   : > { %v7905_v0 = vmul.f32 %v7888_v46, %v7713_v42  ;;  %v7715_v47 = vadd.f32 %v7714_v62, %v11467_v43  ;;  %v8032_v43 = vunpack.c.l.s8.bf16 %v7976_v28  ;;  %v8905_v28 = vld [vmem:[%s9650_s29 + $0x40] sm:$0xff]  }
 0xb5d   : > { %v7716_v23 = vpop.f32.mrf.mxu1  ;;  %8117 = vmatprep.subr.bf16.mxu1 %v8035_v5  ;;  %v8904_v5 = vld [vmem:[%s9650_s29 + $0x8] sm:$0xff]  }
 0xb5e   : > { %v7932_v33 = vadd.f32 %v7915_v36, %v7905_v0  ;;  %v7906_v4 = vmul.f32 %v7892_v10, %v7715_v47  ;;  %8118 = vmatpush2.bf16.msra.mxu1 %v8034_v34  ;;  %v8901_v47 = vld [vmem:[%s9650_s29 + $0x50] sm:$0xff]  }
 0xb5f   : > { %v7717_v12 = vpop.f32.mrf.mxu1  ;;  %8119 = vmatprep.subr.bf16.mxu1 %v8033_v32  ;;  %v8902_v23 = vld [vmem:[%s9650_s29 + $0x10] sm:$0xff]  }
 0xb60   : > { %vm7936_vm12 = vcmp.gt.f32.partialorder %v7932_v33, 0.0  ;;  %v7940_v49 = vmul.f32 0.1, %v7932_v33  ;;  %v7933_v58 = vadd.f32 %v7919_v20, %v7906_v4  ;;  %v8906_v12 = vld [vmem:[%s9650_s29] sm:$0xff]  }
 0xb61   : > { %v8130_v34 = vld [vmem:[%s9633_s15] ss:$2 sm:$0x3] }
 0xb62   : > { %vm7937_vm13 = vcmp.gt.f32.partialorder %v7933_v58, 0.0  ;;  %v7941_v54 = vmul.f32 0.1, %v7933_v58  ;;  %v7944_v14 = vsel %vm7936_vm12, %v7932_v33, %v7940_v49  ;;  %8120 = vmatpush2.bf16.msra.mxu1 %v8032_v43  ;;  %v8903_v33 = vld [vmem:[%s9650_s29 + $0x48] sm:$0xff]  }
 0xb63   : > { %v7948_v37 = vpack.c.bf16 %v7944_v14, %v7944_v14  ;;  %v8692_v49 = vld [vmem:[%s9633_s15 + $0x1] ss:$2 sm:$0x3]  ;;  %v8139_v14 = vrot.slane %v8130_v34, %v10383_v9 }
 0xb64   : > { %v7945_v44 = vsel %vm7937_vm13, %v7933_v58, %v7941_v54  ;;  %v8135_v58 = vrot.slane %v8130_v34, %v10378_v6  ;;  %v8150_v54 = vrot.slane %v8692_v49, %v10378_v6 }
 0xb65   : > { %v7949_v51 = vpack.c.bf16 %v7945_v44, %v7945_v44 }
 0xb67   : > { %8080 = vmatprep.mubr.bf16.mxu0 %v7949_v51 }
 0xb68   : > { %8081 = vmatmul.mubr.bf16.vlgmr.msra.gmra.mxu0 %v7948_v37 }
 0xb69   : > { %8723 = vmatpush3.bf16.msra.mxu0 %v8892_v24 }
 0xb6a   : > { %8724 = vmatprep.subr.bf16.mxu0 %v8893_v16 }
 0xb6d   : > { %8725 = vmatpush3.bf16.msra.mxu0 %v8894_v35 }
 0xb6e   : > { %8726 = vmatprep.subr.bf16.mxu0 %v8895_v3  ;;  %v8709_v3 = vld [vmem:[%s9657_s25] ss:$0 sm:$0xff] }
 0xb71   : > { %8727 = vmatpush3.bf16.msra.mxu0 %v8896_v19 }
 0xb72   : > { %8728 = vmatprep.subr.bf16.mxu0 %v8897_v57 }
 0xb75   : > { %8729 = vmatpush3.bf16.msra.mxu0 %v8898_v1  ;;  %v8710_v1 = vld [vmem:[%s9657_s25 + $0x1] ss:$0 sm:$0xff] }
 0xb76   : > { %8730 = vmatprep.subr.bf16.mxu0 %v8899_v52 }
 0xb88   : > { %v7835_v41 = vpop.f32.mrf.mxu0 }
 0xb8a   : > { %v7837_v7 = vpop.f32.mrf.mxu0 }
 0xb8c   : > { %v7839_v59 = vpop.f32.mrf.mxu0 }
 0xb8e   : > { %v7840_v30 = vpop.f32.mrf.mxu0 }
 0xb99   : > { %v7794_v25 = vpop.f32.mrf.mxu1 }
 0xb9a   : > { %v7795_v55 = vadd.f32 %v7794_v25, %v11483_v18  ;;  %v7927_v18 = vrot.slane %v11493_v50, %v10402_v60  ;;  %v8900_v60 = vld [vmem:[%s9650_s29 + $0x18] sm:$0xff]  }
 0xb9b   : > { %v7796_v29 = vpop.f32.mrf.mxu1  ;;  %8731 = vmatpush3.bf16.msra.mxu0 %v8900_v60 }
 0xb9c   : > { %v7797_v63 = vadd.f32 %v7796_v29, %v11486_v48  ;;  %v7836_v38 = vadd.f32 %v7835_v41, %v7795_v55  ;;  %8732 = vmatprep.subr.bf16.mxu0 %v8901_v47  ;;  %v8154_v41 = vrot.slane %v8692_v49, %v10383_v9 }
 0xb9d   : > { %v7798_v17 = vpop.f32.mrf.mxu1 }
 0xb9e   : > { %v7838_v56 = vadd.f32 %v7837_v7, %v7797_v63 }
 0xb9f   : > { %v7799_v27 = vpop.f32.mrf.mxu1  ;;  %8733 = vmatpush3.bf16.msra.mxu0 %v8902_v23 }
 0xba0   : > { %8734 = vmatprep.subr.bf16.mxu0 %v8903_v33 }
 0xba3   : > { %8735 = vmatpush3.bf16.msra.mxu0 %v8904_v5 }
 0xba4   : > { %8736 = vmatprep.subr.bf16.mxu0 %v8905_v28 }
 0xba7   : > { %8737 = vmatpush3.bf16.msra.mxu0 %v8906_v12 }
 0xbd9   : > { %v7876_v15 = vpop.f32.mrf.mxu1 }
 0xbda   : > { %v7877_v2 = vadd.f32 %v7876_v15, %v7836_v38 }
 0xbdb   : > { %v7878_v40 = vpop.f32.mrf.mxu1 }
 0xbdc   : > { %v7907_v22 = vmul.f32 %v7896_v31, %v7877_v2  ;;  %v7879_v46 = vadd.f32 %v7878_v40, %v7838_v56 }
 0xbdd   : > { %v7880_v48 = vpop.f32.mrf.mxu1 }
 0xbde   : > { %v7934_v53 = vadd.f32 %v7923_v8, %v7907_v22  ;;  %v7908_v42 = vmul.f32 %v7900_v11, %v7879_v46  ;;  %v8356_v8 = vstv %s8355_s3 }
 0xbdf   : > { %v7881_v36 = vpop.f32.mrf.mxu1  ;;  %vm8357_vm3 = vcmp.eq.s32.totalorder %v8356_v8, 1 }
 0xbe0   : > { %vm7938_vm14 = vcmp.gt.f32.partialorder %v7934_v53, 0.0  ;;  %v7942_v10 = vmul.f32 0.1, %v7934_v53  ;;  %v7935_v39 = vadd.f32 %v7927_v18, %v7908_v42 }
 0xbe2   : > { %vm7939_vm15 = vcmp.gt.f32.partialorder %v7935_v39, 0.0  ;;  %v7943_v61 = vmul.f32 0.1, %v7935_v39  ;;  %v7946_v13 = vsel %vm7938_vm14, %v7934_v53, %v7942_v10 }
 0xbe3   : > { %v7950_v0 = vpack.c.bf16 %v7946_v13, %v7946_v13 }
 0xbe4   : > { %v7947_v62 = vsel %vm7939_vm15, %v7935_v39, %v7943_v61 }
 0xbe5   : > { %v7951_v21 = vpack.c.bf16 %v7947_v62, %v7947_v62 }
 0xbe7   : > { %8121 = vmatprep.mubr.bf16.mxu1 %v7951_v21 }
 0xbe8   : > { %8122 = vmatmul.mubr.bf16.vlgmr.msra.gmra.mxu1 %v7950_v0 }
 0xc28   : > { %v8082_v50 = vpop.f32.mrf.mxu0 }
 0xc2a   : > { %v8084_v20 = vpop.f32.mrf.mxu0 }
 0xc2c   : > { %v8086_v45 = vpop.f32.mrf.mxu0 }
 0xc2e   : > { %v8087_v4 = vpop.f32.mrf.mxu0 }
 0xca8   : > { %v8123_v32 = vpop.f32.mrf.mxu1 }
 0xca9   : > { %v8124_v43 = vadd.f32 %v8123_v32, %v8082_v50 }
 0xcaa   : > { %v8125_v44 = vpop.f32.mrf.mxu1 }
 0xcab   : > { %v8142_v51 = vmul.f32 %v8135_v58, %v8124_v43  ;;  %v8126_v37 = vadd.f32 %v8125_v44, %v8084_v20 }
 0xcac   : > { %v8127_v7 = vpop.f32.mrf.mxu1 }
 0xcad   : > { %v8157_v59 = vadd.f32 %v8150_v54, %v8142_v51  ;;  %v8143_v30 = vmul.f32 %v8139_v14, %v8126_v37 }
 0xcae   : > { %v8128_v25 = vpop.f32.mrf.mxu1 }
 0xcaf   : > { %vm8159_vm0 = vcmp.gt.f32.partialorder %v8157_v59, 0.0  ;;  %v8161_v29 = vmul.f32 0.1, %v8157_v59  ;;  %v8158_v17 = vadd.f32 %v8154_v41, %v8143_v30 }
 0xcb1   : > { %vm8160_vm1 = vcmp.gt.f32.partialorder %v8158_v17, 0.0  ;;  %v8162_v27 = vmul.f32 0.1, %v8158_v17  ;;  %v8163_v26 = vsel %vm8159_vm0, %v8157_v59, %v8161_v29 }
 0xcb2   : > { %v8165_v16 = vpack.c.bf16 %v8163_v26, %v8163_v26 }
 0xcb3   : > { %v8164_v6 = vsel %vm8160_vm1, %v8158_v17, %v8162_v27 }
 0xcb4   : > { %v8166_v24 = vpack.c.bf16 %v8164_v6, %v8164_v6 }
 0xcb6   : > { %8327 = vmatprep.mubr.bf16.mxu0 %v8166_v24 }
 0xcb7   : > { %8328 = vmatmul.mubr.bf16.vlgmr.msra.gmra.mxu0 %v8165_v16 }
 0xd77   : > { %v8738_v35 = vpop.f32.mrf.mxu0 }
 0xd79   : > { %v8739_v9 = vpop.f32.mrf.mxu0 }
 0xd7a   : > { %v8740_v19 = vadd.f32 %v8739_v9, %v8738_v35 }
 0xd7b   : > { %v8741_v57 = vpop.f32.mrf.mxu0 }
 0xd7c   : > { %v8340_v52 = vmul.f32 %v8740_v19, %v8709_v3 }
 0xd7d   : > { %v8742_v55 = vpop.f32.mrf.mxu0 }
 0xd7e   : > { %v8346_v63 = vadd.f32 %v8710_v1, %v8340_v52 }
 0xd80   : > { %v8347_v38 = vmul.f32 %v8346_v63, %v8346_v63 }
 0xd82   : > { %v8349_v31 = vsel %vm8348_vm2, %v8347_v38, 0.0 }
 0xd83   : > { %8350 = vadd.xlane.f32.xlu0 %v8349_v31 }
 0xe0c   : > { %v8351_v15 = vpop.xlane.xlu0 %8350 }
 0xe0d   : > { %v8352_v2 = vmax.f32 %v8351_v15, 1e-24 }
 0xe0f   : > { %8907 = vrsqrt.f32 %v8352_v2 }
 0xe1c   : > { %v8908_v56 = vpop.eup %8907 }
 0xe1d   : > { %v8358_v11 = vsel %vm8357_vm3, %v8908_v56, 1.0 }
 0xe1e   : > { %v8359_v40 = vmul.f32 %v8358_v11, %v8346_v63 }
 0xe20   : > { %8360 = vst.msk [vmem:[%s9655_s13] sm:$0x3] %vm8348_vm2, %v8359_v40 }
 0xe21 PF: > { %s36_s27 = sadd.s32 1, %s9269_s27   ;;  %s11655_s17 = sld [smem:[#allocation22_spill]] }
 0xe22   : > { %p33_p9 = scmp.ge.s32.totalorder %s36_s27, 6   ;;  %s11656_s14 = sld [smem:[#allocation23_spill]] }
 0xe23   : > { %s11657_s22 = sld [smem:[#allocation31_spill]]  ;;  %s11662_s18 = smov %s9237_s19 }
 0xe24   : > { %s11658_s23 = sld [smem:[#allocation26_spill]]  ;;  %s11663_s19 = smov %s9522_s12 }
 0xe25   : > { %s11659_s24 = sld [smem:[#allocation27_spill]]  ;;  %s11664_s20 = smov %s9245_s21 }
 0xe26   : > { %s11660_s25 = sld [smem:[#allocation29_spill]]  ;;  %35 = sbr.rel (!%p33_p9) target bundleno = 28 (0x1c), region = 221 }
 0xe27   : > { %s11661_s26 = sld [smem:[#allocation30_spill]] }
 0xe28   : > { %s11665_s21 = smov %s11656_s14 }
 0xe2b   :  { %8380 = vsyncpa [#allocation4], 1 }
 0xe2c   :  { %8382 = vsyncpa [#allocation4 + $0x1], 1 }
 0xe2d   :  { %8383 = vsyncpa [#allocation6], 1 }
 0xe2e   :  { %8385 = vsyncpa [#allocation6 + $0x1], 1 }
 0xe2f   :  { %8386 = vsyncpa [#allocation9], 1 }
 0xe30   :  { %8388 = vsyncpa [#allocation9 + $0x1], 1 }
 0xe31   :  { %8389 = vsyncpa [#allocation12], 1 }
 0xe32   :  { %8391 = vsyncpa [#allocation12 + $0x1], 1 }
 0xe33   :  { %8392 = vsyncpa [#allocation15], 1 }
 0xe34   :  { %8394 = vsyncpa [#allocation15 + $0x1], 1 }

</bundles_post_ra>
